<compile_context>
chip_gen: v5e
topology: v5e:2x2
jax: 0.10.0
libtpu: 0.0.40
codegen_flags: <defaults>
</compile_context>

<pallas_src>
import functools

import jax
import jax.numpy as jnp
from jax.experimental import pallas as pl
from jax.experimental.pallas import tpu as pltpu


def _relu(x):
    return jnp.maximum(x, 0.0)


def _round_up(x, m):
    return ((x + m - 1) // m) * m


def _full_spec(a):
    # Whole-array block, same block for every grid step.
    zeros = (0,) * a.ndim
    return pl.BlockSpec(a.shape, lambda g, _z=zeros: _z)


# ---------------------------------------------------------------------------
# Fused kernel: STN (point-MLP + max + FC head) -> transform fold -> encoder
# point-MLP + max.  One grid step per `bb` batch elements.
# ---------------------------------------------------------------------------
def fused_pointnet_kernel(
    x_ref,
    sw1_ref, sb1_ref, sw2_ref, sb2_ref, sw3_ref, sb3_ref,
    fw1_ref, fb1_ref, fw2_ref, fb2_ref, fw3_ref, fb3_ref,
    ew1_ref, eb1_ref, ew2_ref, eb2_ref, ew3_ref, eb3_ref,
    o_ref,
    *, bb, n_chunk, num_chunks):

    f32 = jnp.float32

    # Hoist small loop-invariant loads (Mosaic does not guarantee hoisting).
    sb1 = sb1_ref[...]
    sb2 = sb2_ref[...]
    eb1 = eb1_ref[...]
    eb2 = eb2_ref[...]
    sw1 = sw1_ref[...]          # (3, 64) f32, tiny
    ew1 = ew1_ref[...]          # (3, 64) f32, tiny

    def chunk_update(carry, c, first_fn, w2_ref, b2, w3_ref):
        start = c * n_chunk
        if not isinstance(start, int):
            start = pl.multiple_of(start, n_chunk)
        # Per-batch-element first layer (K=3, cheap); the big shared-weight matmuls
        # then run flattened at M = bb * n_chunk so the MXU stays full.
        h1s = [first_fn(b, x_ref[b, pl.ds(start, n_chunk), :]) for b in range(bb)]
        h1 = h1s[0] if bb == 1 else jnp.concatenate(h1s, axis=0)       # (bb*n_chunk, 64)
        cdt = w2_ref.dtype                                             # bf16 (or f32)
        h2 = _relu(jnp.dot(h1.astype(cdt), w2_ref[...],
                           preferred_element_type=f32) + b2)           # (M, 128)
        # Last-layer bias (and ReLU for the STN branch) are commuted past the max.
        s = jnp.dot(h2.astype(cdt), w3_ref[...],
                    preferred_element_type=f32)                        # (M, C3)
        if bb > 1:
            m = jnp.max(s.reshape(bb, n_chunk, s.shape[-1]), axis=1)   # (bb, C3)
        else:
            m = jnp.max(s, axis=0, keepdims=True)
        return jnp.maximum(carry, m)

    def run_chunks(step_fn, width):
        init = jnp.full((bb, width), -jnp.inf, dtype=f32)
        if num_chunks == 1:
            return step_fn(init, 0)
        unroll = True if num_chunks <= 8 else 2
        return jax.lax.fori_loop(
            0, num_chunks, lambda c, carry: step_fn(carry, c), init, unroll=unroll)

    # ---- Stage 1: STN point MLP (3 -> 64 -> 128 -> 1024), max over points. ----
    def stn_first(b, xb):                       # xb: (n_chunk, 3)
        del b
        return _relu(jnp.dot(xb, sw1, preferred_element_type=f32) + sb1)

    stn_max = run_chunks(
        lambda carry, c: chunk_update(carry, c, stn_first, sw2_ref, sb2, sw3_ref),
        sw3_ref.shape[1])                                              # (bb, 1024)
    feat = _relu(stn_max + sb3_ref[...])                               # (bb, 1024)

    # ---- Stage 2: STN FC head 1024 -> 512 -> 256 -> 3x3, batched at M = bb. ----
    h = _relu(jnp.dot(feat, fw1_ref[...], preferred_element_type=f32) + fb1_ref[...])
    h = _relu(jnp.dot(h, fw2_ref[...], preferred_element_type=f32) + fb2_ref[...])
    # Three (bb,256)@(256,3) dots put each 3x3 row at lane offset 0 (no in-kernel lane
    # slicing / lane->sublane reshape needed); identity already folded into fb3_ref.
    rows = [jnp.dot(h, fw3_ref[r], preferred_element_type=f32) for r in range(3)]
    rid = jax.lax.broadcasted_iota(jnp.int32, (3, 3), 0)
    fb3 = fb3_ref[...]                                                 # (3, 3)
    # Fold each batch element's 3x3 transform into the first encoder conv weight.
    w1_eff = []
    for b in range(bb):
        tb = jnp.where(rid == 0, rows[0][b:b + 1, :],
                       jnp.where(rid == 1, rows[1][b:b + 1, :],
                                 rows[2][b:b + 1, :])) + fb3           # (3, 3)
        w1_eff.append(jnp.dot(tb, ew1, preferred_element_type=f32))    # (3, 64)

    # ---- Stage 3: encoder point MLP (3 -> 64 -> 128 -> 512), max over points. ----
    def enc_first(b, xb):
        return _relu(jnp.dot(xb, w1_eff[b], preferred_element_type=f32) + eb1)

    enc_max = run_chunks(
        lambda carry, c: chunk_update(carry, c, enc_first, ew2_ref, eb2, ew3_ref),
        ew3_ref.shape[1])                                              # (bb, 512)
    o_ref[...] = enc_max + eb3_ref[...]


def _pick_vmem_limit():
    # ~3/4 of physical VMEM: 48 MiB on v7x (64 MiB/TC), 96 MiB on v5e/v6e (128 MiB).
    try:
        cap = int(pltpu.get_tpu_info().vmem_capacity_bytes)
        return max(32 * 1024 * 1024, min((cap * 3) // 4, 96 * 1024 * 1024))
    except Exception:
        return 48 * 1024 * 1024


def pointnet_encoder(x_bdn, params, *, n_chunk=None, batch_block=None,
                     compute_dtype=jnp.bfloat16):
    """x_bdn: (B, D, N) as in the PyTorch module (D == 3).  Returns (B, 512)."""
    B, D, N = x_bdn.shape
    assert D == 3, "only channel == 3 is supported"
    x = jnp.transpose(x_bdn, (0, 2, 1)).astype(jnp.float32)            # (B, N, 3)

    # Point-chunk size: auto choice has a 256 floor (8 is only a layout floor, not a
    # performance floor), clamped so we never pad beyond the data; explicit overrides
    # are honoured (rounded to a sublane multiple) for testing the chunk loop.
    if n_chunk is None:
        n_chunk = min(1024, _round_up(N, 256))
    n_chunk = _round_up(max(8, min(n_chunk, _round_up(N, 8))), 8)
    n_pad = _round_up(N, n_chunk)
    num_chunks = n_pad // n_chunk

    # Batch block: amortizes the M=1 FC head + per-step overhead, capped so the
    # (bb*n_chunk, 1024) f32 intermediates and the double-buffered lane-padded x block
    # stay well inside VMEM on every generation (v7x: 64 MiB).
    if batch_block is None:
        bb = min(B, 8)
        bb = max(1, min(bb, 2048 // n_chunk))
        bb = max(1, min(bb, (8 * 1024 * 1024) // max(1, n_pad * 512)))
    else:
        bb = max(1, min(int(batch_block), B))
    b_pad = _round_up(B, bb)

    # Pad points with duplicates (exact for the max) and batch with copies of row 0.
    if n_pad != N:
        x = jnp.concatenate(
            [x, jnp.broadcast_to(x[:, :1, :], (B, n_pad - N, D))], axis=1)
    if b_pad != B:
        x = jnp.concatenate(
            [x, jnp.broadcast_to(x[:1], (b_pad - B, n_pad, D))], axis=0)

    (sw1, sb1), (sw2, sb2), (sw3, sb3) = params["stn_pw"]
    (fw1, fb1), (fw2, fb2), (fw3, fb3) = params["stn_fc"]
    (ew1, eb1), (ew2, eb2), (ew3, eb3) = params["enc_pw"]

    # fc3 weight as (3, 256, 3) rows of the 3x3 output; identity folded into its bias.
    fw3_r = jnp.transpose(fw3.reshape(fw3.shape[0], 3, 3), (1, 0, 2))
    fb3_r = fb3.reshape(3, 3) + jnp.eye(3, dtype=jnp.float32)

    # bf16 operands for the big point-MLP matmuls (single-pass MXU, half the weight
    # HBM/VMEM).  First layers (K=3) and the tiny FC head stay f32.
    cdt = compute_dtype
    sw2c, sw3c, ew2c, ew3c = (w.astype(cdt) for w in (sw2, sw3, ew2, ew3))

    kern = functools.partial(fused_pointnet_kernel, bb=bb, n_chunk=n_chunk,
                             num_chunks=num_chunks)
    args = (x,
            sw1, sb1, sw2c, sb2, sw3c, sb3,
            fw1, fb1, fw2, fb2, fw3_r, fb3_r,
            ew1, eb1, ew2c, eb2, ew3c, eb3)
    # TODO(synk): the weight specs have constant index maps; pl.Buffered(1) would drop
    # their redundant second pipeline buffer (left at defaults for robustness).
    in_specs = [pl.BlockSpec((bb, n_pad, D), lambda g: (g, 0, 0))] + \
               [_full_spec(a) for a in args[1:]]

    out = pl.pallas_call(
        kern,
        out_shape=jax.ShapeDtypeStruct((b_pad, ew3.shape[1]), jnp.float32),
        grid=(b_pad // bb,),
        in_specs=in_specs,
        out_specs=pl.BlockSpec((bb, ew3.shape[1]), lambda g: (g, 0)),
        compiler_params=pltpu.CompilerParams(
            dimension_semantics=("parallel",),
            vmem_limit_bytes=_pick_vmem_limit()),
    )(*args)
    return out[:B]


# ---------------------------------------------------------------------------
# Parameter construction (deterministic, eval-mode BN folded into the weights).
# ---------------------------------------------------------------------------
def _dense(key, cin, cout):
    kw, kb = jax.random.split(key)
    w = jax.random.normal(kw, (cin, cout), jnp.float32) / jnp.sqrt(jnp.float32(cin))
    b = 0.01 * jax.random.normal(kb, (cout,), jnp.float32)
    return w, b


def _bn(key, c):
    kg, kb = jax.random.split(key)
    gamma = 1.0 + 0.1 * jax.random.normal(kg, (c,), jnp.float32)
    beta = 0.1 * jax.random.normal(kb, (c,), jnp.float32)
    mean = jnp.zeros((c,), jnp.float32)
    var = jnp.ones((c,), jnp.float32)
    return gamma, beta, mean, var


def _fold_bn(w, b, bn_params, eps=1e-5):
    gamma, beta, mean, var = bn_params
    scale = gamma / jnp.sqrt(var + eps)
    w_eff = w * scale[None, :]
    b_eff = (b - mean) * scale + beta
    return w_eff, b_eff.reshape(1, -1)


def init_params(key, channel=3):
    keys = jax.random.split(key, 16)
    # STN3d point-wise convs (with BN1..3)
    stn_pw = [
        _fold_bn(*_dense(keys[0], channel, 64), _bn(keys[1], 64)),
        _fold_bn(*_dense(keys[2], 64, 128), _bn(keys[3], 128)),
        _fold_bn(*_dense(keys[4], 128, 1024), _bn(keys[5], 1024)),
    ]
    # STN3d FC head (fc1+bn4, fc2+bn5, fc3 raw)
    w3, b3 = _dense(keys[10], 256, 9)
    stn_fc_p = [
        _fold_bn(*_dense(keys[6], 1024, 512), _bn(keys[7], 512)),
        _fold_bn(*_dense(keys[8], 512, 256), _bn(keys[9], 256)),
        (w3, b3.reshape(1, -1)),
    ]
    # Encoder point-wise convs (with BN1..3; last layer has BN but no relu)
    enc_pw = [
        _fold_bn(*_dense(keys[11], channel, 64), _bn(keys[12], 64)),
        _fold_bn(*_dense(keys[13], 64, 128), _bn(keys[14], 128)),
        _fold_bn(*_dense(keys[15], 128, 512), _bn(jax.random.fold_in(key, 99), 512)),
    ]
    return {"stn_pw": stn_pw, "stn_fc": stn_fc_p, "enc_pw": enc_pw}


# ---------------------------------------------------------------------------
# Pure-JAX reference (original operation order) for verification.
# ---------------------------------------------------------------------------
def pointnet_encoder_ref(x_bdn, params):
    x = jnp.transpose(x_bdn, (0, 2, 1)).astype(jnp.float32)

    def mlp_max(h, pw, last_relu):
        (w1, b1), (w2, b2), (w3, b3) = pw
        h = jnp.maximum(h @ w1 + b1, 0.0)
        h = jnp.maximum(h @ w2 + b2, 0.0)
        h = h @ w3 + b3
        if last_relu:
            h = jnp.maximum(h, 0.0)
        return jnp.max(h, axis=1)

    stn_feat = mlp_max(x, params["stn_pw"], True)
    (w1, b1), (w2, b2), (w3, b3) = params["stn_fc"]
    h = jnp.maximum(stn_feat @ w1 + b1, 0.0)
    h = jnp.maximum(h @ w2 + b2, 0.0)
    t9 = h @ w3 + b3
    iden = jnp.array([1, 0, 0, 0, 1, 0, 0, 0, 1], jnp.float32)
    trans = (t9 + iden[None, :]).reshape(-1, 3, 3)
    xt = jnp.einsum("bnc,bcd->bnd", x, trans)
    return mlp_max(xt, params["enc_pw"], False)


if __name__ == "__main__":
    key = jax.random.PRNGKey(0)
    kx, kp, kx2, kx3 = jax.random.split(key, 4)

    B, D, N = 2, 3, 128
    x = jax.random.normal(kx, (B, D, N), jnp.float32)
    params = init_params(kp, channel=D)
    ref = pointnet_encoder_ref(x, params)

    # f32 matmul path: checks the fused kernel logic against the plain-JAX reference.
    out_f32 = jax.block_until_ready(
        pointnet_encoder(x, params, compute_dtype=jnp.float32))
    assert out_f32.shape == (B, 512), out_f32.shape
    assert jnp.allclose(out_f32, ref, rtol=3e-2, atol=5e-2), \
        float(jnp.max(jnp.abs(out_f32 - ref)))

    # Default path (bf16 point-MLP operands): looser tolerance vs the f32 reference.
    out_bf16 = jax.block_until_ready(pointnet_encoder(x, params))
    assert out_bf16.shape == (B, 512)
    assert bool(jnp.all(jnp.isfinite(out_bf16)))
    assert jnp.allclose(out_bf16, ref, rtol=8e-2, atol=4e-1), \
        float(jnp.max(jnp.abs(out_bf16 - ref)))

    # Non-multiple N + small explicit chunk: exercises the unrolled in-kernel chunk
    # loop and the duplicate-point padding path.
    N2 = 100
    x2 = jax.random.normal(kx2, (B, D, N2), jnp.float32)
    out2 = jax.block_until_ready(pointnet_encoder(x2, params, n_chunk=64))
    ref2 = pointnet_encoder_ref(x2, params)
    assert jnp.allclose(out2, ref2, rtol=8e-2, atol=4e-1), \
        float(jnp.max(jnp.abs(out2 - ref2)))

    # Odd batch + explicit batch block: exercises batch padding and a grid of length 2.
    B3, N3 = 3, 77
    x3 = jax.random.normal(kx3, (B3, D, N3), jnp.float32)
    out3 = jax.block_until_ready(
        pointnet_encoder(x3, params, n_chunk=64, batch_block=2))
    ref3 = pointnet_encoder_ref(x3, params)
    assert out3.shape == (B3, 512)
    assert jnp.allclose(out3, ref3, rtol=8e-2, atol=4e-1), \
        float(jnp.max(jnp.abs(out3 - ref3)))

    print("KERNEL_OK")
</pallas_src>

<mosaic_0001>
module attributes {stable_mosaic.version = 11 : i64} {
  func.func @fused_pointnet_kernel(%arg0: i32, %arg1: memref<2x128x3xf32, #tpu.memory_space<vmem>>, %arg2: memref<3x64xf32, #tpu.memory_space<vmem>>, %arg3: memref<1x64xf32, #tpu.memory_space<vmem>>, %arg4: memref<64x128xf32, #tpu.memory_space<vmem>>, %arg5: memref<1x128xf32, #tpu.memory_space<vmem>>, %arg6: memref<128x1024xf32, #tpu.memory_space<vmem>>, %arg7: memref<1x1024xf32, #tpu.memory_space<vmem>>, %arg8: memref<1024x512xf32, #tpu.memory_space<vmem>>, %arg9: memref<1x512xf32, #tpu.memory_space<vmem>>, %arg10: memref<512x256xf32, #tpu.memory_space<vmem>>, %arg11: memref<1x256xf32, #tpu.memory_space<vmem>>, %arg12: memref<3x256x3xf32, #tpu.memory_space<vmem>>, %arg13: memref<3x3xf32, #tpu.memory_space<vmem>>, %arg14: memref<3x64xf32, #tpu.memory_space<vmem>>, %arg15: memref<1x64xf32, #tpu.memory_space<vmem>>, %arg16: memref<64x128xf32, #tpu.memory_space<vmem>>, %arg17: memref<1x128xf32, #tpu.memory_space<vmem>>, %arg18: memref<128x512xf32, #tpu.memory_space<vmem>>, %arg19: memref<1x512xf32, #tpu.memory_space<vmem>>, %arg20: memref<2x512xf32, #tpu.memory_space<vmem>>) attributes {dimension_semantics = [#tpu.dimension_semantics<parallel>], iteration_bounds = array<i64: 1>, scalar_prefetch = 0 : i64, scratch_operands = 0 : i64, tpu.core_type = #tpu.core_type<tc>, window_params = [{transform_indices = @transform_0, window_bounds = array<i64: 2, 128, 3>}, {pipeline_mode = #tpu.pipeline_mode<synchronous>, transform_indices = @transform_1, window_bounds = array<i64: 3, 64>}, {pipeline_mode = #tpu.pipeline_mode<synchronous>, transform_indices = @transform_2, window_bounds = array<i64: 1, 64>}, {pipeline_mode = #tpu.pipeline_mode<synchronous>, transform_indices = @transform_3, window_bounds = array<i64: 64, 128>}, {pipeline_mode = #tpu.pipeline_mode<synchronous>, transform_indices = @transform_4, window_bounds = array<i64: 1, 128>}, {pipeline_mode = #tpu.pipeline_mode<synchronous>, transform_indices = @transform_5, window_bounds = array<i64: 128, 1024>}, {pipeline_mode = #tpu.pipeline_mode<synchronous>, transform_indices = @transform_6, window_bounds = array<i64: 1, 1024>}, {pipeline_mode = #tpu.pipeline_mode<synchronous>, transform_indices = @transform_7, window_bounds = array<i64: 1024, 512>}, {pipeline_mode = #tpu.pipeline_mode<synchronous>, transform_indices = @transform_8, window_bounds = array<i64: 1, 512>}, {pipeline_mode = #tpu.pipeline_mode<synchronous>, transform_indices = @transform_9, window_bounds = array<i64: 512, 256>}, {pipeline_mode = #tpu.pipeline_mode<synchronous>, transform_indices = @transform_10, window_bounds = array<i64: 1, 256>}, {pipeline_mode = #tpu.pipeline_mode<synchronous>, transform_indices = @transform_11, window_bounds = array<i64: 3, 256, 3>}, {pipeline_mode = #tpu.pipeline_mode<synchronous>, transform_indices = @transform_12, window_bounds = array<i64: 3, 3>}, {pipeline_mode = #tpu.pipeline_mode<synchronous>, transform_indices = @transform_13, window_bounds = array<i64: 3, 64>}, {pipeline_mode = #tpu.pipeline_mode<synchronous>, transform_indices = @transform_14, window_bounds = array<i64: 1, 64>}, {pipeline_mode = #tpu.pipeline_mode<synchronous>, transform_indices = @transform_15, window_bounds = array<i64: 64, 128>}, {pipeline_mode = #tpu.pipeline_mode<synchronous>, transform_indices = @transform_16, window_bounds = array<i64: 1, 128>}, {pipeline_mode = #tpu.pipeline_mode<synchronous>, transform_indices = @transform_17, window_bounds = array<i64: 128, 512>}, {pipeline_mode = #tpu.pipeline_mode<synchronous>, transform_indices = @transform_18, window_bounds = array<i64: 1, 512>}, {transform_indices = @transform_19, window_bounds = array<i64: 2, 512>}]} {
    %c0 = arith.constant 0 : index
    %c0_0 = arith.constant 0 : index
    %0 = vector.load %arg3[%c0, %c0_0] : memref<1x64xf32, #tpu.memory_space<vmem>>, vector<1x64xf32>
    %c0_1 = arith.constant 0 : index
    %c0_2 = arith.constant 0 : index
    %1 = vector.load %arg5[%c0_1, %c0_2] : memref<1x128xf32, #tpu.memory_space<vmem>>, vector<1x128xf32>
    %c0_3 = arith.constant 0 : index
    %c0_4 = arith.constant 0 : index
    %2 = vector.load %arg15[%c0_3, %c0_4] : memref<1x64xf32, #tpu.memory_space<vmem>>, vector<1x64xf32>
    %c0_5 = arith.constant 0 : index
    %c0_6 = arith.constant 0 : index
    %3 = vector.load %arg17[%c0_5, %c0_6] : memref<1x128xf32, #tpu.memory_space<vmem>>, vector<1x128xf32>
    %c0_7 = arith.constant 0 : index
    %c0_8 = arith.constant 0 : index
    %4 = vector.load %arg2[%c0_7, %c0_8] : memref<3x64xf32, #tpu.memory_space<vmem>>, vector<3x64xf32>
    %c0_9 = arith.constant 0 : index
    %c0_10 = arith.constant 0 : index
    %5 = vector.load %arg14[%c0_9, %c0_10] : memref<3x64xf32, #tpu.memory_space<vmem>>, vector<3x64xf32>
    %cst = arith.constant 0xFF800000 : f32
    %6 = vector.broadcast %cst : f32 to vector<2x1024xf32>
    %c0_11 = arith.constant 0 : index
    %c0_12 = arith.constant 0 : index
    %c0_13 = arith.constant 0 : index
    %7 = vector.load %arg1[%c0_11, %c0_12, %c0_13] : memref<2x128x3xf32, #tpu.memory_space<vmem>>, vector<1x128x3xf32>
    %8 = vector.shape_cast %7 : vector<1x128x3xf32> to vector<128x3xf32>
    %cst_14 = arith.constant dense<0.000000e+00> : vector<128x64xf32>
    %9 = tpu.matmul %8, %4, %cst_14 {dimension_numbers = #tpu.dot_dimension_numbers<[1], [0], [0], [1], [0, 0, 1, 1], [], []>} : vector<128x3xf32>, vector<3x64xf32>, vector<128x64xf32> -> vector<128x64xf32>
    %10 = vector.broadcast %0 : vector<1x64xf32> to vector<128x64xf32>
    %11 = arith.addf %9, %10 : vector<128x64xf32>
    %cst_15 = arith.constant 0.000000e+00 : f32
    %12 = vector.broadcast %cst_15 : f32 to vector<128x64xf32>
    %13 = arith.maximumf %11, %12 : vector<128x64xf32>
    %c1 = arith.constant 1 : index
    %c0_16 = arith.constant 0 : index
    %c0_17 = arith.constant 0 : index
    %14 = vector.load %arg1[%c1, %c0_16, %c0_17] : memref<2x128x3xf32, #tpu.memory_space<vmem>>, vector<1x128x3xf32>
    %15 = vector.shape_cast %14 : vector<1x128x3xf32> to vector<128x3xf32>
    %cst_18 = arith.constant dense<0.000000e+00> : vector<128x64xf32>
    %16 = tpu.matmul %15, %4, %cst_18 {dimension_numbers = #tpu.dot_dimension_numbers<[1], [0], [0], [1], [0, 0, 1, 1], [], []>} : vector<128x3xf32>, vector<3x64xf32>, vector<128x64xf32> -> vector<128x64xf32>
    %17 = vector.broadcast %0 : vector<1x64xf32> to vector<128x64xf32>
    %18 = arith.addf %16, %17 : vector<128x64xf32>
    %cst_19 = arith.constant 0.000000e+00 : f32
    %19 = vector.broadcast %cst_19 : f32 to vector<128x64xf32>
    %20 = arith.maximumf %18, %19 : vector<128x64xf32>
    %21 = tpu.concatenate %13, %20 in 0 : vector<128x64xf32>, vector<128x64xf32> -> vector<256x64xf32>
    %c0_20 = arith.constant 0 : index
    %c0_21 = arith.constant 0 : index
    %22 = vector.load %arg4[%c0_20, %c0_21] : memref<64x128xf32, #tpu.memory_space<vmem>>, vector<64x128xf32>
    %cst_22 = arith.constant dense<0.000000e+00> : vector<256x128xf32>
    %23 = tpu.matmul %21, %22, %cst_22 {dimension_numbers = #tpu.dot_dimension_numbers<[1], [0], [0], [1], [0, 0, 1, 1], [], []>} : vector<256x64xf32>, vector<64x128xf32>, vector<256x128xf32> -> vector<256x128xf32>
    %24 = vector.broadcast %1 : vector<1x128xf32> to vector<256x128xf32>
    %25 = arith.addf %23, %24 : vector<256x128xf32>
    %cst_23 = arith.constant 0.000000e+00 : f32
    %26 = vector.broadcast %cst_23 : f32 to vector<256x128xf32>
    %27 = arith.maximumf %25, %26 : vector<256x128xf32>
    %c0_24 = arith.constant 0 : index
    %c0_25 = arith.constant 0 : index
    %28 = vector.load %arg6[%c0_24, %c0_25] : memref<128x1024xf32, #tpu.memory_space<vmem>>, vector<128x1024xf32>
    %cst_26 = arith.constant dense<0.000000e+00> : vector<256x1024xf32>
    %29 = tpu.matmul %27, %28, %cst_26 {dimension_numbers = #tpu.dot_dimension_numbers<[1], [0], [0], [1], [0, 0, 1, 1], [], []>} : vector<256x128xf32>, vector<128x1024xf32>, vector<256x1024xf32> -> vector<256x1024xf32>
    %30 = vector.shape_cast %29 : vector<256x1024xf32> to vector<2x128x1024xf32>
    %cst_27 = arith.constant dense<0xFF800000> : vector<2x1024xf32>
    %31 = vector.multi_reduction <maximumf>, %30, %cst_27 [1] : vector<2x128x1024xf32> to vector<2x1024xf32>
    %32 = arith.maximumf %6, %31 : vector<2x1024xf32>
    %c0_28 = arith.constant 0 : index
    %c0_29 = arith.constant 0 : index
    %33 = vector.load %arg7[%c0_28, %c0_29] : memref<1x1024xf32, #tpu.memory_space<vmem>>, vector<1x1024xf32>
    %34 = vector.broadcast %33 : vector<1x1024xf32> to vector<2x1024xf32>
    %35 = arith.addf %32, %34 : vector<2x1024xf32>
    %cst_30 = arith.constant 0.000000e+00 : f32
    %36 = vector.broadcast %cst_30 : f32 to vector<2x1024xf32>
    %37 = arith.maximumf %35, %36 : vector<2x1024xf32>
    %c0_31 = arith.constant 0 : index
    %c0_32 = arith.constant 0 : index
    %38 = vector.load %arg8[%c0_31, %c0_32] : memref<1024x512xf32, #tpu.memory_space<vmem>>, vector<1024x512xf32>
    %cst_33 = arith.constant dense<0.000000e+00> : vector<2x512xf32>
    %39 = tpu.matmul %37, %38, %cst_33 {dimension_numbers = #tpu.dot_dimension_numbers<[1], [0], [0], [1], [0, 0, 1, 1], [], []>} : vector<2x1024xf32>, vector<1024x512xf32>, vector<2x512xf32> -> vector<2x512xf32>
    %c0_34 = arith.constant 0 : index
    %c0_35 = arith.constant 0 : index
    %40 = vector.load %arg9[%c0_34, %c0_35] : memref<1x512xf32, #tpu.memory_space<vmem>>, vector<1x512xf32>
    %41 = vector.broadcast %40 : vector<1x512xf32> to vector<2x512xf32>
    %42 = arith.addf %39, %41 : vector<2x512xf32>
    %cst_36 = arith.constant 0.000000e+00 : f32
    %43 = vector.broadcast %cst_36 : f32 to vector<2x512xf32>
    %44 = arith.maximumf %42, %43 : vector<2x512xf32>
    %c0_37 = arith.constant 0 : index
    %c0_38 = arith.constant 0 : index
    %45 = vector.load %arg10[%c0_37, %c0_38] : memref<512x256xf32, #tpu.memory_space<vmem>>, vector<512x256xf32>
    %cst_39 = arith.constant dense<0.000000e+00> : vector<2x256xf32>
    %46 = tpu.matmul %44, %45, %cst_39 {dimension_numbers = #tpu.dot_dimension_numbers<[1], [0], [0], [1], [0, 0, 1, 1], [], []>} : vector<2x512xf32>, vector<512x256xf32>, vector<2x256xf32> -> vector<2x256xf32>
    %c0_40 = arith.constant 0 : index
    %c0_41 = arith.constant 0 : index
    %47 = vector.load %arg11[%c0_40, %c0_41] : memref<1x256xf32, #tpu.memory_space<vmem>>, vector<1x256xf32>
    %48 = vector.broadcast %47 : vector<1x256xf32> to vector<2x256xf32>
    %49 = arith.addf %46, %48 : vector<2x256xf32>
    %cst_42 = arith.constant 0.000000e+00 : f32
    %50 = vector.broadcast %cst_42 : f32 to vector<2x256xf32>
    %51 = arith.maximumf %49, %50 : vector<2x256xf32>
    %c0_43 = arith.constant 0 : index
    %c0_44 = arith.constant 0 : index
    %c0_45 = arith.constant 0 : index
    %52 = vector.load %arg12[%c0_43, %c0_44, %c0_45] : memref<3x256x3xf32, #tpu.memory_space<vmem>>, vector<1x256x3xf32>
    %53 = vector.shape_cast %52 : vector<1x256x3xf32> to vector<256x3xf32>
    %cst_46 = arith.constant dense<0.000000e+00> : vector<2x3xf32>
    %54 = tpu.matmul %51, %53, %cst_46 {dimension_numbers = #tpu.dot_dimension_numbers<[1], [0], [0], [1], [0, 0, 1, 1], [], []>} : vector<2x256xf32>, vector<256x3xf32>, vector<2x3xf32> -> vector<2x3xf32>
    %c1_47 = arith.constant 1 : index
    %c0_48 = arith.constant 0 : index
    %c0_49 = arith.constant 0 : index
    %55 = vector.load %arg12[%c1_47, %c0_48, %c0_49] : memref<3x256x3xf32, #tpu.memory_space<vmem>>, vector<1x256x3xf32>
    %56 = vector.shape_cast %55 : vector<1x256x3xf32> to vector<256x3xf32>
    %cst_50 = arith.constant dense<0.000000e+00> : vector<2x3xf32>
    %57 = tpu.matmul %51, %56, %cst_50 {dimension_numbers = #tpu.dot_dimension_numbers<[1], [0], [0], [1], [0, 0, 1, 1], [], []>} : vector<2x256xf32>, vector<256x3xf32>, vector<2x3xf32> -> vector<2x3xf32>
    %c2 = arith.constant 2 : index
    %c0_51 = arith.constant 0 : index
    %c0_52 = arith.constant 0 : index
    %58 = vector.load %arg12[%c2, %c0_51, %c0_52] : memref<3x256x3xf32, #tpu.memory_space<vmem>>, vector<1x256x3xf32>
    %59 = vector.shape_cast %58 : vector<1x256x3xf32> to vector<256x3xf32>
    %cst_53 = arith.constant dense<0.000000e+00> : vector<2x3xf32>
    %60 = tpu.matmul %51, %59, %cst_53 {dimension_numbers = #tpu.dot_dimension_numbers<[1], [0], [0], [1], [0, 0, 1, 1], [], []>} : vector<2x256xf32>, vector<256x3xf32>, vector<2x3xf32> -> vector<2x3xf32>
    %61 = tpu.iota {dimensions = array<i32: 0>} : vector<3x3xi32>
    %c0_54 = arith.constant 0 : index
    %c0_55 = arith.constant 0 : index
    %62 = vector.load %arg13[%c0_54, %c0_55] : memref<3x3xf32, #tpu.memory_space<vmem>>, vector<3x3xf32>
    %c0_i32 = arith.constant 0 : i32
    %63 = vector.broadcast %c0_i32 : i32 to vector<3x3xi32>
    %64 = arith.cmpi eq, %61, %63 : vector<3x3xi32>
    %65 = vector.extract_strided_slice %54 {offsets = [0, 0], sizes = [1, 3], strides = [1, 1]} : vector<2x3xf32> to vector<1x3xf32>
    %c1_i32 = arith.constant 1 : i32
    %66 = vector.broadcast %c1_i32 : i32 to vector<3x3xi32>
    %67 = arith.cmpi eq, %61, %66 : vector<3x3xi32>
    %68 = vector.extract_strided_slice %57 {offsets = [0, 0], sizes = [1, 3], strides = [1, 1]} : vector<2x3xf32> to vector<1x3xf32>
    %69 = vector.extract_strided_slice %60 {offsets = [0, 0], sizes = [1, 3], strides = [1, 1]} : vector<2x3xf32> to vector<1x3xf32>
    %70 = vector.shape_cast %68 : vector<1x3xf32> to vector<1x3xf32>
    %71 = vector.broadcast %70 : vector<1x3xf32> to vector<3x3xf32>
    %72 = vector.shape_cast %69 : vector<1x3xf32> to vector<1x3xf32>
    %73 = vector.broadcast %72 : vector<1x3xf32> to vector<3x3xf32>
    %74 = arith.select %67, %71, %73 : vector<3x3xi1>, vector<3x3xf32>
    %75 = vector.shape_cast %65 : vector<1x3xf32> to vector<1x3xf32>
    %76 = vector.broadcast %75 : vector<1x3xf32> to vector<3x3xf32>
    %77 = arith.select %64, %76, %74 : vector<3x3xi1>, vector<3x3xf32>
    %78 = arith.addf %77, %62 : vector<3x3xf32>
    %cst_56 = arith.constant dense<0.000000e+00> : vector<3x64xf32>
    %79 = tpu.matmul %78, %5, %cst_56 {dimension_numbers = #tpu.dot_dimension_numbers<[1], [0], [0], [1], [0, 0, 1, 1], [], []>} : vector<3x3xf32>, vector<3x64xf32>, vector<3x64xf32> -> vector<3x64xf32>
    %c0_i32_57 = arith.constant 0 : i32
    %80 = vector.broadcast %c0_i32_57 : i32 to vector<3x3xi32>
    %81 = arith.cmpi eq, %61, %80 : vector<3x3xi32>
    %82 = vector.extract_strided_slice %54 {offsets = [1, 0], sizes = [1, 3], strides = [1, 1]} : vector<2x3xf32> to vector<1x3xf32>
    %c1_i32_58 = arith.constant 1 : i32
    %83 = vector.broadcast %c1_i32_58 : i32 to vector<3x3xi32>
    %84 = arith.cmpi eq, %61, %83 : vector<3x3xi32>
    %85 = vector.extract_strided_slice %57 {offsets = [1, 0], sizes = [1, 3], strides = [1, 1]} : vector<2x3xf32> to vector<1x3xf32>
    %86 = vector.extract_strided_slice %60 {offsets = [1, 0], sizes = [1, 3], strides = [1, 1]} : vector<2x3xf32> to vector<1x3xf32>
    %87 = vector.shape_cast %85 : vector<1x3xf32> to vector<1x3xf32>
    %88 = vector.broadcast %87 : vector<1x3xf32> to vector<3x3xf32>
    %89 = vector.shape_cast %86 : vector<1x3xf32> to vector<1x3xf32>
    %90 = vector.broadcast %89 : vector<1x3xf32> to vector<3x3xf32>
    %91 = arith.select %84, %88, %90 : vector<3x3xi1>, vector<3x3xf32>
    %92 = vector.shape_cast %82 : vector<1x3xf32> to vector<1x3xf32>
    %93 = vector.broadcast %92 : vector<1x3xf32> to vector<3x3xf32>
    %94 = arith.select %81, %93, %91 : vector<3x3xi1>, vector<3x3xf32>
    %95 = arith.addf %94, %62 : vector<3x3xf32>
    %cst_59 = arith.constant dense<0.000000e+00> : vector<3x64xf32>
    %96 = tpu.matmul %95, %5, %cst_59 {dimension_numbers = #tpu.dot_dimension_numbers<[1], [0], [0], [1], [0, 0, 1, 1], [], []>} : vector<3x3xf32>, vector<3x64xf32>, vector<3x64xf32> -> vector<3x64xf32>
    %cst_60 = arith.constant 0xFF800000 : f32
    %97 = vector.broadcast %cst_60 : f32 to vector<2x512xf32>
    %c0_61 = arith.constant 0 : index
    %c0_62 = arith.constant 0 : index
    %c0_63 = arith.constant 0 : index
    %98 = vector.load %arg1[%c0_61, %c0_62, %c0_63] : memref<2x128x3xf32, #tpu.memory_space<vmem>>, vector<1x128x3xf32>
    %99 = vector.shape_cast %98 : vector<1x128x3xf32> to vector<128x3xf32>
    %cst_64 = arith.constant dense<0.000000e+00> : vector<128x64xf32>
    %100 = tpu.matmul %99, %79, %cst_64 {dimension_numbers = #tpu.dot_dimension_numbers<[1], [0], [0], [1], [0, 0, 1, 1], [], []>} : vector<128x3xf32>, vector<3x64xf32>, vector<128x64xf32> -> vector<128x64xf32>
    %101 = vector.broadcast %2 : vector<1x64xf32> to vector<128x64xf32>
    %102 = arith.addf %100, %101 : vector<128x64xf32>
    %cst_65 = arith.constant 0.000000e+00 : f32
    %103 = vector.broadcast %cst_65 : f32 to vector<128x64xf32>
    %104 = arith.maximumf %102, %103 : vector<128x64xf32>
    %c1_66 = arith.constant 1 : index
    %c0_67 = arith.constant 0 : index
    %c0_68 = arith.constant 0 : index
    %105 = vector.load %arg1[%c1_66, %c0_67, %c0_68] : memref<2x128x3xf32, #tpu.memory_space<vmem>>, vector<1x128x3xf32>
    %106 = vector.shape_cast %105 : vector<1x128x3xf32> to vector<128x3xf32>
    %cst_69 = arith.constant dense<0.000000e+00> : vector<128x64xf32>
    %107 = tpu.matmul %106, %96, %cst_69 {dimension_numbers = #tpu.dot_dimension_numbers<[1], [0], [0], [1], [0, 0, 1, 1], [], []>} : vector<128x3xf32>, vector<3x64xf32>, vector<128x64xf32> -> vector<128x64xf32>
    %108 = vector.broadcast %2 : vector<1x64xf32> to vector<128x64xf32>
    %109 = arith.addf %107, %108 : vector<128x64xf32>
    %cst_70 = arith.constant 0.000000e+00 : f32
    %110 = vector.broadcast %cst_70 : f32 to vector<128x64xf32>
    %111 = arith.maximumf %109, %110 : vector<128x64xf32>
    %112 = tpu.concatenate %104, %111 in 0 : vector<128x64xf32>, vector<128x64xf32> -> vector<256x64xf32>
    %c0_71 = arith.constant 0 : index
    %c0_72 = arith.constant 0 : index
    %113 = vector.load %arg16[%c0_71, %c0_72] : memref<64x128xf32, #tpu.memory_space<vmem>>, vector<64x128xf32>
    %cst_73 = arith.constant dense<0.000000e+00> : vector<256x128xf32>
    %114 = tpu.matmul %112, %113, %cst_73 {dimension_numbers = #tpu.dot_dimension_numbers<[1], [0], [0], [1], [0, 0, 1, 1], [], []>} : vector<256x64xf32>, vector<64x128xf32>, vector<256x128xf32> -> vector<256x128xf32>
    %115 = vector.broadcast %3 : vector<1x128xf32> to vector<256x128xf32>
    %116 = arith.addf %114, %115 : vector<256x128xf32>
    %cst_74 = arith.constant 0.000000e+00 : f32
    %117 = vector.broadcast %cst_74 : f32 to vector<256x128xf32>
    %118 = arith.maximumf %116, %117 : vector<256x128xf32>
    %c0_75 = arith.constant 0 : index
    %c0_76 = arith.constant 0 : index
    %119 = vector.load %arg18[%c0_75, %c0_76] : memref<128x512xf32, #tpu.memory_space<vmem>>, vector<128x512xf32>
    %cst_77 = arith.constant dense<0.000000e+00> : vector<256x512xf32>
    %120 = tpu.matmul %118, %119, %cst_77 {dimension_numbers = #tpu.dot_dimension_numbers<[1], [0], [0], [1], [0, 0, 1, 1], [], []>} : vector<256x128xf32>, vector<128x512xf32>, vector<256x512xf32> -> vector<256x512xf32>
    %121 = vector.shape_cast %120 : vector<256x512xf32> to vector<2x128x512xf32>
    %cst_78 = arith.constant dense<0xFF800000> : vector<2x512xf32>
    %122 = vector.multi_reduction <maximumf>, %121, %cst_78 [1] : vector<2x128x512xf32> to vector<2x512xf32>
    %123 = arith.maximumf %97, %122 : vector<2x512xf32>
    %c0_79 = arith.constant 0 : index
    %c0_80 = arith.constant 0 : index
    %124 = vector.load %arg19[%c0_79, %c0_80] : memref<1x512xf32, #tpu.memory_space<vmem>>, vector<1x512xf32>
    %125 = vector.broadcast %124 : vector<1x512xf32> to vector<2x512xf32>
    %126 = arith.addf %123, %125 : vector<2x512xf32>
    %c0_81 = arith.constant 0 : index
    %c0_82 = arith.constant 0 : index
    %127 = vector.load %arg20[%c0_81, %c0_82] : memref<2x512xf32, #tpu.memory_space<vmem>>, vector<2x512xf32>
    tpu.vector_store %arg20[%c0_81, %c0_82], %126 {strides = array<i32>} : memref<2x512xf32, #tpu.memory_space<vmem>>, vector<2x512xf32>,
    return
  }
  func.func @transform_0(%arg0: i32) -> (i32, i32, i32) {
    %c0_i32 = arith.constant 0 : i32
    %c0_i32_0 = arith.constant 0 : i32
    %c0_i32_1 = arith.constant 0 : i32
    return %arg0, %c0_i32, %c0_i32_0 : i32, i32, i32
  }
  func.func @transform_1(%arg0: i32) -> (i32, i32) {
    %c0_i32 = arith.constant 0 : i32
    %c0_i32_0 = arith.constant 0 : i32
    %c0_i32_1 = arith.constant 0 : i32
    return %c0_i32, %c0_i32_0 : i32, i32
  }
  func.func @transform_2(%arg0: i32) -> (i32, i32) {
    %c0_i32 = arith.constant 0 : i32
    %c0_i32_0 = arith.constant 0 : i32
    %c0_i32_1 = arith.constant 0 : i32
    return %c0_i32, %c0_i32_0 : i32, i32
  }
  func.func @transform_3(%arg0: i32) -> (i32, i32) {
    %c0_i32 = arith.constant 0 : i32
    %c0_i32_0 = arith.constant 0 : i32
    %c0_i32_1 = arith.constant 0 : i32
    return %c0_i32, %c0_i32_0 : i32, i32
  }
  func.func @transform_4(%arg0: i32) -> (i32, i32) {
    %c0_i32 = arith.constant 0 : i32
    %c0_i32_0 = arith.constant 0 : i32
    %c0_i32_1 = arith.constant 0 : i32
    return %c0_i32, %c0_i32_0 : i32, i32
  }
  func.func @transform_5(%arg0: i32) -> (i32, i32) {
    %c0_i32 = arith.constant 0 : i32
    %c0_i32_0 = arith.constant 0 : i32
    %c0_i32_1 = arith.constant 0 : i32
    return %c0_i32, %c0_i32_0 : i32, i32
  }
  func.func @transform_6(%arg0: i32) -> (i32, i32) {
    %c0_i32 = arith.constant 0 : i32
    %c0_i32_0 = arith.constant 0 : i32
    %c0_i32_1 = arith.constant 0 : i32
    return %c0_i32, %c0_i32_0 : i32, i32
  }
  func.func @transform_7(%arg0: i32) -> (i32, i32) {
    %c0_i32 = arith.constant 0 : i32
    %c0_i32_0 = arith.constant 0 : i32
    %c0_i32_1 = arith.constant 0 : i32
    return %c0_i32, %c0_i32_0 : i32, i32
  }
  func.func @transform_8(%arg0: i32) -> (i32, i32) {
    %c0_i32 = arith.constant 0 : i32
    %c0_i32_0 = arith.constant 0 : i32
    %c0_i32_1 = arith.constant 0 : i32
    return %c0_i32, %c0_i32_0 : i32, i32
  }
  func.func @transform_9(%arg0: i32) -> (i32, i32) {
    %c0_i32 = arith.constant 0 : i32
    %c0_i32_0 = arith.constant 0 : i32
    %c0_i32_1 = arith.constant 0 : i32
    return %c0_i32, %c0_i32_0 : i32, i32
  }
  func.func @transform_10(%arg0: i32) -> (i32, i32) {
    %c0_i32 = arith.constant 0 : i32
    %c0_i32_0 = arith.constant 0 : i32
    %c0_i32_1 = arith.constant 0 : i32
    return %c0_i32, %c0_i32_0 : i32, i32
  }
  func.func @transform_11(%arg0: i32) -> (i32, i32, i32) {
    %c0_i32 = arith.constant 0 : i32
    %c0_i32_0 = arith.constant 0 : i32
    %c0_i32_1 = arith.constant 0 : i32
    %c0_i32_2 = arith.constant 0 : i32
    return %c0_i32, %c0_i32_0, %c0_i32_1 : i32, i32, i32
  }
  func.func @transform_12(%arg0: i32) -> (i32, i32) {
    %c0_i32 = arith.constant 0 : i32
    %c0_i32_0 = arith.constant 0 : i32
    %c0_i32_1 = arith.constant 0 : i32
    return %c0_i32, %c0_i32_0 : i32, i32
  }
  func.func @transform_13(%arg0: i32) -> (i32, i32) {
    %c0_i32 = arith.constant 0 : i32
    %c0_i32_0 = arith.constant 0 : i32
    %c0_i32_1 = arith.constant 0 : i32
    return %c0_i32, %c0_i32_0 : i32, i32
  }
  func.func @transform_14(%arg0: i32) -> (i32, i32) {
    %c0_i32 = arith.constant 0 : i32
    %c0_i32_0 = arith.constant 0 : i32
    %c0_i32_1 = arith.constant 0 : i32
    return %c0_i32, %c0_i32_0 : i32, i32
  }
  func.func @transform_15(%arg0: i32) -> (i32, i32) {
    %c0_i32 = arith.constant 0 : i32
    %c0_i32_0 = arith.constant 0 : i32
    %c0_i32_1 = arith.constant 0 : i32
    return %c0_i32, %c0_i32_0 : i32, i32
  }
  func.func @transform_16(%arg0: i32) -> (i32, i32) {
    %c0_i32 = arith.constant 0 : i32
    %c0_i32_0 = arith.constant 0 : i32
    %c0_i32_1 = arith.constant 0 : i32
    return %c0_i32, %c0_i32_0 : i32, i32
  }
  func.func @transform_17(%arg0: i32) -> (i32, i32) {
    %c0_i32 = arith.constant 0 : i32
    %c0_i32_0 = arith.constant 0 : i32
    %c0_i32_1 = arith.constant 0 : i32
    return %c0_i32, %c0_i32_0 : i32, i32
  }
  func.func @transform_18(%arg0: i32) -> (i32, i32) {
    %c0_i32 = arith.constant 0 : i32
    %c0_i32_0 = arith.constant 0 : i32
    %c0_i32_1 = arith.constant 0 : i32
    return %c0_i32, %c0_i32_0 : i32, i32
  }
  func.func @transform_19(%arg0: i32) -> (i32, i32) {
    %c0_i32 = arith.constant 0 : i32
    %c0_i32_0 = arith.constant 0 : i32
    return %arg0, %c0_i32 : i32, i32
  }
}

</mosaic_0001>

<bundles_post_ra>
// kernel: tpu_custom_call.1
= control target key start
LH: loop header
LB: loop body
LE: loop exit
PB: predicated region body
PF: predicated region fallthrough
CT: control target
= control target key end

     0   :  { %s7940_s0 = inlined_call_operand.vmem [shape: f32[2,128,3], index: 0, kind: input, shape index: {}]   ;;  %s7941_s1 = inlined_call_operand.hbm [shape: f32[3,64], index: 1, kind: input, shape index: {}]   ;;  %s7942_s2 = inlined_call_operand.hbm [shape: f32[1,64], index: 2, kind: input, shape index: {}]   ;;  %s7943_s3 = inlined_call_operand.hbm [shape: f32[64,128], index: 3, kind: input, shape index: {}]   ;;  %s7944_s4 = inlined_call_operand.hbm [shape: f32[1,128], index: 4, kind: input, shape index: {}]   ;;  %s7945_s5 = inlined_call_operand.hbm [shape: f32[128,1024], index: 5, kind: input, shape index: {}]   ;;  %s7946_s6 = inlined_call_operand.hbm [shape: f32[1,1024], index: 6, kind: input, shape index: {}]   ;;  %s7947_s7 = inlined_call_operand.hbm [shape: f32[1024,512], index: 7, kind: input, shape index: {}]   ;;  %s7948_s8 = inlined_call_operand.hbm [shape: f32[1,512], index: 8, kind: input, shape index: {}]   ;;  %s7949_s9 = inlined_call_operand.hbm [shape: f32[512,256], index: 9, kind: input, shape index: {}]   ;;  %s7950_s10 = inlined_call_operand.hbm [shape: f32[1,256], index: 10, kind: input, shape index: {}]   ;;  %s7951_s11 = inlined_call_operand.vmem [shape: f32[3,256,3], index: 11, kind: input, shape index: {}]   ;;  %s7952_s12 = inlined_call_operand.hbm [shape: f32[3,3], index: 12, kind: input, shape index: {}]   ;;  %s7953_s13 = inlined_call_operand.hbm [shape: f32[3,64], index: 13, kind: input, shape index: {}]   ;;  %s7954_s14 = inlined_call_operand.hbm [shape: f32[1,64], index: 14, kind: input, shape index: {}]   ;;  %s7955_s15 = inlined_call_operand.hbm [shape: f32[64,128], index: 15, kind: input, shape index: {}]   ;;  %s7956_s16 = inlined_call_operand.hbm [shape: f32[1,128], index: 16, kind: input, shape index: {}]   ;;  %s7957_s17 = inlined_call_operand.hbm [shape: f32[128,512], index: 17, kind: input, shape index: {}]   ;;  %s7958_s18 = inlined_call_operand.hbm [shape: f32[1,512], index: 18, kind: input, shape index: {}]   ;;  %s7959_s19 = inlined_call_operand.hbm [shape: f32[2,512], index: 19, kind: output, shape index: {}]  }
   0x1   :  { %8016 = sst [smem:[#allocation76_spill]] %s7940_s0 }
   0x2   :  { %8017 = sst [smem:[#allocation77_spill]] %s7941_s1 }
   0x3   :  { %8018 = sst [smem:[#allocation78_spill]] %s7942_s2 }
   0x4   :  { %8019 = sst [smem:[#allocation79_spill]] %s7943_s3 }
   0x5   :  { %24 = vsyncpa [#allocation3], 0 }
   0x6   :  { %25 = vsyncpa [#allocation6], 0 }
   0x7   :  { %26 = vsyncpa [#allocation9], 0 }
   0x8   :  { %27 = vsyncpa [#allocation12], 0 }
   0x9   :  { %28 = vsyncpa [#allocation15], 0 }
   0xa   :  { %29 = vsyncpa [#allocation18], 0 }
   0xb   :  { %30 = vsyncpa [#allocation21], 0 }
   0xc   :  { %31 = vsyncpa [#allocation24], 0 }
   0xd   :  { %32 = vsyncpa [#allocation27], 0  ;;  %s8020_s20 = sld [smem:[#allocation78_spill]] }
  0x13   :  { %s52_s21 = sshll.u32 %s8020_s20, 4  ;;  %s53_s21 = int_to_ptr.hbm [resolvable:$true] %s52_s21 }
  0x14   :  { %33 = vsyncpa [#allocation4], 0  ;;  %s5994_s1 = smov [#allocation5]   ;;  %s76_s24 = sshll.u32 %s7944_s4, 4  ;;  %s77_s24 = int_to_ptr.hbm [resolvable:$true] %s76_s24 }
  0x15   :  { %s54_s22 = sshll.u32 %s5994_s1, 4  ;;  %s5995_s25 = smov [#allocation8]   ;;  %s55_s22 = int_to_ptr.vmem [resolvable:$true] %s54_s22 }
  0x16   :  { %57 = dma.hbm_to_vmem [thread:$0]  %s53_s21, 16, %s55_s22, [#allocation6]  }
  0x17   :  { %s78_s3 = sshll.u32 %s5995_s25, 4  ;;  %s100_s28 = sshll.u32 %s7946_s6, 4  ;;  %s79_s3 = int_to_ptr.vmem [resolvable:$true] %s78_s3  ;;  %s101_s28 = int_to_ptr.hbm [resolvable:$true] %s100_s28 }
  0x18   :  { %81 = dma.hbm_to_vmem [thread:$0]  %s77_s24, 16, %s79_s3, [#allocation9]  }
  0x19   :  { %s124_s30 = sshll.u32 %s7948_s8, 4  ;;  %s5996_s20 = smov [#allocation11]   ;;  %s125_s30 = int_to_ptr.hbm [resolvable:$true] %s124_s30 }
  0x1a   :  { %s102_s1 = sshll.u32 %s5996_s20, 4  ;;  %s5997_s4 = smov [#allocation14]   ;;  %s103_s1 = int_to_ptr.vmem [resolvable:$true] %s102_s1 }
  0x1b   :  { %105 = dma.hbm_to_vmem [thread:$0]  %s101_s28, 128, %s103_s1, [#allocation12]  }
  0x1c   :  { %s126_s21 = sshll.u32 %s5997_s4, 4  ;;  %s148_s23 = sshll.u32 %s7950_s10, 4  ;;  %s127_s21 = int_to_ptr.vmem [resolvable:$true] %s126_s21  ;;  %s149_s23 = int_to_ptr.hbm [resolvable:$true] %s148_s23 }
  0x1d   :  { %129 = dma.hbm_to_vmem [thread:$0]  %s125_s30, 64, %s127_s21, [#allocation15]  }
  0x1e   :  { %s172_s25 = sshll.u32 %s7953_s13, 4  ;;  %s5998_s3 = smov [#allocation17]   ;;  %s173_s25 = int_to_ptr.hbm [resolvable:$true] %s172_s25 }
  0x1f   :  { %s150_s8 = sshll.u32 %s5998_s3, 4  ;;  %s5999_s26 = smov [#allocation20]   ;;  %s151_s8 = int_to_ptr.vmem [resolvable:$true] %s150_s8 }
  0x20   :  { %153 = dma.hbm_to_vmem [thread:$0]  %s149_s23, 32, %s151_s8, [#allocation18]  }
  0x21   :  { %s174_s27 = sshll.u32 %s5999_s26, 4  ;;  %s193_s10 = sshll.u32 %s7955_s15, 4  ;;  %s175_s27 = int_to_ptr.vmem [resolvable:$true] %s174_s27  ;;  %s194_s10 = int_to_ptr.hbm [resolvable:$true] %s193_s10 }
  0x22   :  { %177 = dma.hbm_to_vmem [thread:$0]  %s173_s25, 64, %s175_s27, [#allocation21]  }
  0x23   :  { %s6000_s0 = smov [#allocation23]   ;;  %s6001_s20 = smov 128  }
  0x24   :  { %s195_s30 = sshll.u32 %s6000_s0, 4  ;;  %s6002_s1 = smov 8   ;;  %s196_s30 = int_to_ptr.vmem [resolvable:$true] %s195_s30 }
  0x25   :  { %201 = dma.hbm_to_vmem [thread:$0]  %s194_s10, 1024, %s196_s30, [#allocation24], %s6001_s20, %s6001_s20, %s6002_s1  }
  0x26   :  { %s217_s21 = sshll.u32 %s7957_s17, 4  ;;  %s6003_s22 = smov [#allocation26]   ;;  %s218_s21 = int_to_ptr.hbm [resolvable:$true] %s217_s21 }
  0x27   :  { %s219_s2 = sshll.u32 %s6003_s22, 4  ;;  %s8021_s24 = sld [smem:[#allocation77_spill]]  ;;  %s220_s2 = int_to_ptr.vmem [resolvable:$true] %s219_s2 }
  0x28   :  { %s6004_s15 = smov 512   ;;  %s6005_s3 = smov 32  }
  0x29   :  { %225 = dma.hbm_to_vmem [thread:$0]  %s218_s21, 8192, %s220_s2, [#allocation27], %s6004_s15, %s6004_s15, %s6005_s3  }
  0x2a   :  { %s8022_s27 = sld [smem:[#allocation79_spill]]  ;;  %s6006_s17 = smov [#allocation2]  }
  0x2b   :  { %s43_s29 = sshll.u32 %s6006_s17, 4  ;;  %s6007_s10 = smov [#allocation7]   ;;  %s44_s29 = int_to_ptr.vmem [resolvable:$true] %s43_s29 }
  0x2c   :  { %s64_s0 = sshll.u32 %s6007_s10, 4  ;;  %s86_s4 = sshll.u32 %s7945_s5, 4  ;;  %s65_s0 = int_to_ptr.vmem [resolvable:$true] %s64_s0  ;;  %s87_s4 = int_to_ptr.hbm [resolvable:$true] %s86_s4 }
  0x2d   :  { %s41_s25 = sshll.u32 %s8021_s24, 4  ;;  %s6008_s22 = smov [#allocation10]   ;;  %s42_s25 = int_to_ptr.hbm [resolvable:$true] %s41_s25 }
  0x2e   :  { %46 = dma.hbm_to_vmem [thread:$0]  %s42_s25, 64, %s44_s29, [#allocation3]  }
  0x2f   :  { %s88_s21 = sshll.u32 %s6008_s22, 4  ;;  %s110_s6 = sshll.u32 %s7947_s7, 4  ;;  %s89_s21 = int_to_ptr.vmem [resolvable:$true] %s88_s21  ;;  %s111_s6 = int_to_ptr.hbm [resolvable:$true] %s110_s6 }
  0x30   :  { %s62_s28 = sshll.u32 %s8022_s27, 4  ;;  %s6009_s24 = smov 1024   ;;  %s63_s28 = int_to_ptr.hbm [resolvable:$true] %s62_s28 }
  0x31   :  { %70 = dma.hbm_to_vmem [thread:$0]  %s63_s28, 1024, %s65_s0, [#allocation6], %s6001_s20, %s6001_s20, %s6002_s1  }
  0x32   :  { %s6010_s8 = smov 64   ;;  %s6011_s25 = smov [#allocation13]  }
  0x33   :  { %94 = dma.hbm_to_vmem [thread:$0]  %s87_s4, 16384, %s89_s21, [#allocation9], %s6009_s24, %s6009_s24, %s6010_s8  }
  0x34   :  { %s112_s26 = sshll.u32 %s6011_s25, 4  ;;  %s134_s5 = sshll.u32 %s7949_s9, 4  ;;  %s113_s26 = int_to_ptr.vmem [resolvable:$true] %s112_s26  ;;  %s135_s5 = int_to_ptr.hbm [resolvable:$true] %s134_s5 }
  0x35   :  { %118 = dma.hbm_to_vmem [thread:$0]  %s111_s6, 65536, %s113_s26, [#allocation12], %s6004_s15, %s6004_s15, %s6005_s3  }
  0x36   :  { %s6012_s20 = smov [#allocation16]   ;;  %s161_s29 = sshll.u32 %s7952_s12, 4  ;;  %s162_s29 = int_to_ptr.hbm [resolvable:$true] %s161_s29 }
  0x37   :  { %s136_s1 = sshll.u32 %s6012_s20, 4  ;;  %s6013_s10 = smov 256   ;;  %s137_s1 = int_to_ptr.vmem [resolvable:$true] %s136_s1 }
  0x38   :  { %s6014_s0 = smov 16   ;;  %s6015_s30 = smov [#allocation19]  }
  0x39   :  { %142 = dma.hbm_to_vmem [thread:$0]  %s135_s5, 16384, %s137_s1, [#allocation15], %s6013_s10, %s6013_s10, %s6014_s0  }
  0x3a   :  { %s163_s13 = sshll.u32 %s6015_s30, 4  ;;  %s183_s22 = sshll.u32 %s7954_s14, 4  ;;  %s164_s13 = int_to_ptr.vmem [resolvable:$true] %s163_s13  ;;  %s184_s22 = int_to_ptr.hbm [resolvable:$true] %s183_s22 }
  0x3b   :  { %166 = dma.hbm_to_vmem [thread:$0]  %s162_s29, 64, %s164_s13, [#allocation18]  }
  0x3c   :  { %s207_s21 = sshll.u32 %s7956_s16, 4  ;;  %s6016_s2 = smov [#allocation22]   ;;  %s208_s21 = int_to_ptr.hbm [resolvable:$true] %s207_s21 }
  0x3d   :  { %s185_s23 = sshll.u32 %s6016_s2, 4  ;;  %s6017_s12 = smov [#allocation25]   ;;  %s186_s23 = int_to_ptr.vmem [resolvable:$true] %s185_s23 }
  0x3e   :  { %188 = dma.hbm_to_vmem [thread:$0]  %s184_s22, 16, %s186_s23, [#allocation21]  }
  0x3f   :  { %s209_s6 = sshll.u32 %s6017_s12, 4  ;;  %s231_s25 = sshll.u32 %s7958_s18, 4  ;;  %s210_s6 = int_to_ptr.vmem [resolvable:$true] %s209_s6  ;;  %s232_s25 = int_to_ptr.hbm [resolvable:$true] %s231_s25 }
  0x40   :  { %212 = dma.hbm_to_vmem [thread:$0]  %s208_s21, 16, %s210_s6, [#allocation24]  }
  0x41   :  { %s6018_s14 = smov [#allocation28]  }
  0x42   :  { %s233_s26 = sshll.u32 %s6018_s14, 4  ;;  %s234_s26 = int_to_ptr.vmem [resolvable:$true] %s233_s26 }
  0x43   :  { %236 = dma.hbm_to_vmem [thread:$0]  %s232_s25, 64, %s234_s26, [#allocation27]  }
  0x44   :  { %5974 = dma.done.wait [#allocation3], 64  }
  0x45   :  { %5975 = vsyncadd [#allocation3], 4294967232 }
  0x46   :  { %5976 = dma.done.wait [#allocation6], 1040  }
  0x47   :  { %5977 = vsyncadd [#allocation6], 4294966256 }
  0x48   :  { %5978 = dma.done.wait [#allocation9], 16400  }
  0x49   :  { %5979 = vsyncadd [#allocation9], 4294950896 }
  0x4a   :  { %5980 = dma.done.wait [#allocation12], 65664  }
  0x4b   :  { %5981 = vsyncadd [#allocation12], 4294901632 }
  0x4c   :  { %5982 = dma.done.wait [#allocation15], 16448  }
  0x4d   :  { %5983 = vsyncadd [#allocation15], 4294950848 }
  0x4e   :  { %5984 = dma.done.wait [#allocation18], 96  }
  0x4f   :  { %5985 = vsyncadd [#allocation18], 4294967200 }
  0x50   :  { %5986 = dma.done.wait [#allocation21], 80  }
  0x51   :  { %5987 = vsyncadd [#allocation21], 4294967216 }
  0x52   :  { %5988 = dma.done.wait [#allocation24], 1040  }
  0x53   :  { %5989 = vsyncadd [#allocation24], 4294966256 }
  0x54   :  { %5990 = dma.done.wait [#allocation27], 8256  }
  0x55   :  { %5991 = vsyncadd [#allocation27], 4294959040  ;;  %vm379_vm0 = vcmask 1042432   ;;  %vm330_vm1 = vcmask 23552   ;;  %v309_v0 = vld [vmem:[#allocation2] sm:$0x7] }
  0x56   :  { %s8023_s27 = sld [smem:[#allocation76_spill]]  ;;  %5255 = vmatpush.msk.msra.mxu0 %vm379_vm0, %v309_v0  ;;  %5288 = vmatpush.msk.msra.mxu1 %vm379_vm0, %v309_v0  ;;  %v617_v12 = vld [vmem:[#allocation7 + $0x38] sm:$0xff]  ;;  %v616_v13 = vld [vmem:[#allocation7 + $0x30] sm:$0xff]  ;;  %v615_v14 = vld [vmem:[#allocation7 + $0x28] sm:$0xff]  ;;  %vm621_vm2 = vcmask 523264   ;;  %vm2820_vm3 = vcmask 1041409  }
  0x57   :  { %726 = vmatpush.msra.mxu2 %v617_v12  ;;  %v614_v16 = vld [vmem:[#allocation7 + $0x20] sm:$0xff]  ;;  %v613_v17 = vld [vmem:[#allocation7 + $0x18] sm:$0xff]  ;;  %v612_v18 = vld [vmem:[#allocation7 + $0x10] sm:$0xff]  ;;  %vm5207_vm6 = vcmask 1041408   ;;  %vm5209_vm7 = vcmask 1045508   ;;  %vm5211_vm8 = vcmask 1043456  }
  0x58   :  { %v611_v20 = vld [vmem:[#allocation7 + $0x8] sm:$0xff]  ;;  %v610_v22 = vld [vmem:[#allocation7] sm:$0xff]  ;;  %v6259_v29 = vld [vmem:[#allocation5] ss:$0 sm:$0xff]  ;;  %vm5222_vm9 = vcmask 1043459   ;;  %vm5224_vm10 = vcmask 1045509  }
  0x59   :  { %727 = vmatpush.msra.mxu2 %v616_v13  ;;  %v986_v54 = vld [vmem:[#allocation10 + $0x3d8] sm:$0xff]  ;;  %v975_v12 = vld [vmem:[#allocation10 + $0x380] sm:$0xff]  ;;  %v976_v13 = vld [vmem:[#allocation10 + $0x388] sm:$0xff]  ;;  %s5237_s13 = sshll.u32 %s7959_s19, 4  ;;  %vm5226_vm11 = vcmask 1047559   ;;  %s5238_s13 = int_to_ptr.hbm [resolvable:$true] %s5237_s13 }
  0x5a   :  { %v978_v63 = vld [vmem:[#allocation10 + $0x398] sm:$0xff] }
  0x5b   :  { %728 = vmatpush.msra.mxu2 %v615_v14  ;;  %v977_v14 = vld [vmem:[#allocation10 + $0x390] sm:$0xff] }
  0x5c   :  { %v311_v1 = vld [vmem:[%s8023_s27] sm:$0xff]  ;;  %v312_v2 = vld [vmem:[%s8023_s27 + $0x8] sm:$0xff]  ;;  %v313_v3 = vld [vmem:[%s8023_s27 + $0x10] sm:$0xff] }
  0x5d   :  { %5256 = vmatmul.msk.f32.vlgmr.msra.gmra.mxu0 %vm330_vm1, %v311_v1  ;;  %v314_v4 = vld [vmem:[%s8023_s27 + $0x18] sm:$0xff]  ;;  %v315_v5 = vld [vmem:[%s8023_s27 + $0x20] sm:$0xff]  ;;  %v316_v6 = vld [vmem:[%s8023_s27 + $0x28] sm:$0xff]  ;;  %729 = vmatpush.msra.mxu2 %v614_v16 }
  0x5e   :  { %v317_v7 = vld [vmem:[%s8023_s27 + $0x30] sm:$0xff]  ;;  %v318_v8 = vld [vmem:[%s8023_s27 + $0x38] sm:$0xff]  ;;  %v319_v9 = vld [vmem:[%s8023_s27 + $0x40] sm:$0xff] }
  0x5f   :  { %v320_v10 = vld [vmem:[%s8023_s27 + $0x48] sm:$0xff]  ;;  %v321_v11 = vld [vmem:[%s8023_s27 + $0x50] sm:$0xff]  ;;  %v322_v15 = vld [vmem:[%s8023_s27 + $0x58] sm:$0xff]  ;;  %730 = vmatpush.msra.mxu2 %v613_v17 }
  0x60   :  { %v323_v19 = vld [vmem:[%s8023_s27 + $0x60] sm:$0xff]  ;;  %v324_v23 = vld [vmem:[%s8023_s27 + $0x68] sm:$0xff]  ;;  %v325_v25 = vld [vmem:[%s8023_s27 + $0x70] sm:$0xff] }
  0x61   :  { %731 = vmatpush.msra.mxu2 %v612_v18  ;;  %v5272_v21 = vld [vmem:[%s8023_s27 + $0x80] sm:$0xff]  ;;  %v5273_v24 = vld [vmem:[%s8023_s27 + $0x88] sm:$0xff]  ;;  %v5274_v26 = vld [vmem:[%s8023_s27 + $0x90] sm:$0xff] }
  0x62   :  { %5289 = vmatmul.msk.f32.vlgmr.msra.gmra.mxu1 %vm330_vm1, %v5272_v21  ;;  %v326_v27 = vld [vmem:[%s8023_s27 + $0x78] sm:$0xff]  ;;  %v5276_v32 = vld [vmem:[%s8023_s27 + $0xa0] sm:$0xff]  ;;  %v5277_v36 = vld [vmem:[%s8023_s27 + $0xa8] sm:$0xff] }
  0x63   :  { %732 = vmatpush.msra.mxu2 %v611_v20  ;;  %v5275_v28 = vld [vmem:[%s8023_s27 + $0x98] sm:$0xff]  ;;  %v5278_v40 = vld [vmem:[%s8023_s27 + $0xb0] sm:$0xff]  ;;  %v5280_v48 = vld [vmem:[%s8023_s27 + $0xc0] sm:$0xff] }
  0x64   :  { %v5279_v44 = vld [vmem:[%s8023_s27 + $0xb8] sm:$0xff]  ;;  %v5281_v52 = vld [vmem:[%s8023_s27 + $0xc8] sm:$0xff]  ;;  %v5282_v57 = vld [vmem:[%s8023_s27 + $0xd0] sm:$0xff] }
  0x65   :  { %5257 = vmatmul.msk.f32.gmra.mxu0 %vm330_vm1, %v312_v2  ;;  %733 = vmatpush.msra.mxu2 %v610_v22  ;;  %v5283_v61 = vld [vmem:[%s8023_s27 + $0xd8] sm:$0xff]  ;;  %v5284_v2 = vld [vmem:[%s8023_s27 + $0xe0] sm:$0xff]  ;;  %v967_v17 = vld [vmem:[#allocation10 + $0x340] sm:$0xff] }
  0x66   :  { %v968_v18 = vld [vmem:[#allocation10 + $0x348] sm:$0xff]  ;;  %v959_v22 = vld [vmem:[#allocation10 + $0x300] sm:$0xff] }
  0x67   :  { %1330 = vmatpush.msrb.mxu2 %v986_v54  ;;  %v5286_v20 = vld [vmem:[%s8023_s27 + $0xf0] sm:$0xff]  ;;  %v905_v54 = vld [vmem:[#allocation10 + $0x150] sm:$0xff] }
  0x69   :  { %1331 = vmatpush.msrb.mxu2 %v978_v63  ;;  %v880_v63 = vld [vmem:[#allocation10 + $0x88] sm:$0xff] }
  0x6a   :  { %5290 = vmatmul.msk.f32.gmra.mxu1 %vm330_vm1, %v5273_v24  ;;  %v961_v24 = vld [vmem:[#allocation10 + $0x310] sm:$0xff] }
  0x6d   :  { %5258 = vmatmul.msk.f32.gmra.mxu0 %vm330_vm1, %v313_v3 }
  0x72   :  { %5291 = vmatmul.msk.f32.gmra.mxu1 %vm330_vm1, %v5274_v26  ;;  %v952_v26 = vld [vmem:[#allocation10 + $0x2c8] sm:$0xff] }
  0x75   :  { %5259 = vmatmul.msk.f32.gmra.mxu0 %vm330_vm1, %v314_v4 }
  0x7a   :  { %5292 = vmatmul.msk.f32.gmra.mxu1 %vm330_vm1, %v5275_v28  ;;  %v943_v28 = vld [vmem:[#allocation10 + $0x280] sm:$0xff] }
  0x7d   :  { %5260 = vmatmul.msk.f32.gmra.mxu0 %vm330_vm1, %v315_v5 }
  0x82   :  { %5293 = vmatmul.msk.f32.gmra.mxu1 %vm330_vm1, %v5276_v32 }
  0x85   :  { %5261 = vmatmul.msk.f32.gmra.mxu0 %vm330_vm1, %v316_v6  ;;  %v5285_v6 = vld [vmem:[%s8023_s27 + $0xe8] sm:$0xff] }
  0x8a   :  { %5294 = vmatmul.msk.f32.gmra.mxu1 %vm330_vm1, %v5277_v36  ;;  %v937_v36 = vld [vmem:[#allocation10 + $0x250] sm:$0xff] }
  0x8d   :  { %5262 = vmatmul.msk.f32.gmra.mxu0 %vm330_vm1, %v317_v7 }
  0x92   :  { %5295 = vmatmul.msk.f32.gmra.mxu1 %vm330_vm1, %v5278_v40  ;;  %v927_v40 = vld [vmem:[#allocation10 + $0x200] sm:$0xff] }
  0x95   :  { %5263 = vmatmul.msk.f32.gmra.mxu0 %vm330_vm1, %v318_v8  ;;  %v970_v8 = vld [vmem:[#allocation10 + $0x358] sm:$0xff] }
  0x96   :  { %1332 = vmatpush.msrb.mxu2 %v970_v8  ;;  %v873_v8 = vld [vmem:[#allocation10 + $0x50] sm:$0xff] }
  0x9a   :  { %5296 = vmatmul.msk.f32.gmra.mxu1 %vm330_vm1, %v5279_v44  ;;  %v920_v44 = vld [vmem:[#allocation10 + $0x1c8] sm:$0xff] }
  0x9d   :  { %5264 = vmatmul.msk.f32.gmra.mxu0 %vm330_vm1, %v319_v9  ;;  %v983_v9 = vld [vmem:[#allocation10 + $0x3c0] sm:$0xff] }
  0x9e   :  { %991 = vmatpush.msra.mxu3 %v983_v9  ;;  %v863_v9 = vld [vmem:[#allocation10] sm:$0xff] }
  0xa0   :  { %992 = vmatpush.msra.mxu3 %v975_v12 }
  0xa2   :  { %5297 = vmatmul.msk.f32.gmra.mxu1 %vm330_vm1, %v5280_v48  ;;  %993 = vmatpush.msra.mxu3 %v967_v17 }
  0xa4   :  { %994 = vmatpush.msra.mxu3 %v959_v22 }
  0xa5   :  { %5265 = vmatmul.msk.f32.gmra.mxu0 %vm330_vm1, %v320_v10  ;;  %v984_v10 = vld [vmem:[#allocation10 + $0x3c8] sm:$0xff] }
  0xa6   :  { %1104 = vmatpush.msrb.mxu0 %v984_v10  ;;  %v864_v10 = vld [vmem:[#allocation10 + $0x8] sm:$0xff] }
  0xa8   :  { %1105 = vmatpush.msrb.mxu0 %v976_v13 }
  0xaa   :  { %5298 = vmatmul.msk.f32.gmra.mxu1 %vm330_vm1, %v5281_v52  ;;  %1106 = vmatpush.msrb.mxu0 %v968_v18  ;;  %v903_v52 = vld [vmem:[#allocation10 + $0x140] sm:$0xff] }
  0xad   :  { %5266 = vmatmul.msk.f32.gmra.mxu0 %vm330_vm1, %v321_v11  ;;  %v985_v11 = vld [vmem:[#allocation10 + $0x3d0] sm:$0xff] }
  0xae   :  { %1217 = vmatpush.msrb.mxu1 %v985_v11  ;;  %v865_v11 = vld [vmem:[#allocation10 + $0x10] sm:$0xff] }
  0xb0   :  { %1218 = vmatpush.msrb.mxu1 %v977_v14 }
  0xb2   :  { %5299 = vmatmul.msk.f32.gmra.mxu1 %vm330_vm1, %v5282_v57  ;;  %v896_v57 = vld [vmem:[#allocation10 + $0x108] sm:$0xff] }
  0xb5   :  { %5267 = vmatmul.msk.f32.gmra.mxu0 %vm330_vm1, %v322_v15 }
  0xba   :  { %5300 = vmatmul.msk.f32.gmra.mxu1 %vm330_vm1, %v5283_v61  ;;  %v889_v61 = vld [vmem:[#allocation10 + $0xd0] sm:$0xff] }
  0xbd   :  { %5268 = vmatmul.msk.f32.gmra.mxu0 %vm330_vm1, %v323_v19  ;;  %v969_v19 = vld [vmem:[#allocation10 + $0x350] sm:$0xff] }
  0xbe   :  { %1219 = vmatpush.msrb.mxu1 %v969_v19 }
  0xc0   :  { %1220 = vmatpush.msrb.mxu1 %v961_v24 }
  0xc2   :  { %5301 = vmatmul.msk.f32.gmra.mxu1 %vm330_vm1, %v5284_v2  ;;  %v881_v2 = vld [vmem:[#allocation10 + $0x90] sm:$0xff] }
  0xc5   :  { %5269 = vmatmul.msk.f32.gmra.mxu0 %vm330_vm1, %v324_v23  ;;  %v960_v23 = vld [vmem:[#allocation10 + $0x308] sm:$0xff] }
  0xc6   :  { %1107 = vmatpush.msrb.mxu0 %v960_v23 }
  0xc8   :  { %1108 = vmatpush.msrb.mxu0 %v952_v26 }
  0xca   :  { %5302 = vmatmul.msk.f32.gmra.mxu1 %vm330_vm1, %v5285_v6 }
  0xcd   :  { %5270 = vmatmul.msk.f32.gmra.mxu0 %vm330_vm1, %v325_v25  ;;  %v951_v25 = vld [vmem:[#allocation10 + $0x2c0] sm:$0xff] }
  0xce   :  { %995 = vmatpush.msra.mxu3 %v951_v25  ;;  %v6347_v25 = vld [vmem:[#allocation8] ss:$0 sm:$0xff] }
  0xd0   :  { %996 = vmatpush.msra.mxu3 %v943_v28 }
  0xd2   :  { %5303 = vmatmul.msk.f32.gmra.mxu1 %vm330_vm1, %v5286_v20  ;;  %v946_v20 = vld [vmem:[#allocation10 + $0x298] sm:$0xff] }
  0xd5   :  { %5271 = vmatmul.msk.f32.gmra.mxu0 %vm330_vm1, %v326_v27  ;;  %v953_v27 = vld [vmem:[#allocation10 + $0x2d0] sm:$0xff] }
  0xd6   :  { %1221 = vmatpush.msrb.mxu1 %v953_v27 }
  0xda   :  { %v400_v30 = vpop.f32.mrf.mxu0 }
  0xdb   :  { %v401_v31 = vadd.f32 %v6259_v29, %v400_v30  ;;  %v944_v30 = vld [vmem:[#allocation10 + $0x288] sm:$0xff] }
  0xdc   :  { %1109 = vmatpush.msrb.mxu0 %v944_v30 }
  0xdd   :  { %v448_v33 = vmax.f32 %v401_v31, 0.0  ;;  %v945_v31 = vld [vmem:[#allocation10 + $0x290] sm:$0xff] }
  0xde   :  { %1222 = vmatpush.msrb.mxu1 %v945_v31  ;;  %v938_v31 = vld [vmem:[#allocation10 + $0x258] sm:$0xff] }
  0xdf   :  { %5305 = vmatmul.msk.f32.vlgmr.msra.gmra.mxu2 %vm621_vm2, %v448_v33 }
  0xe0   :  { %1223 = vmatpush.msrb.mxu1 %v937_v36 }
  0xe2   :  { %v403_v34 = vpop.f32.mrf.mxu0 }
  0xe3   :  { %v404_v35 = vadd.f32 %v6259_v29, %v403_v34  ;;  %v935_v34 = vld [vmem:[#allocation10 + $0x240] sm:$0xff] }
  0xe4   :  { %997 = vmatpush.msra.mxu3 %v935_v34 }
  0xe5   :  { %v449_v37 = vmax.f32 %v404_v35, 0.0  ;;  %v936_v35 = vld [vmem:[#allocation10 + $0x248] sm:$0xff] }
  0xe6   :  { %1110 = vmatpush.msrb.mxu0 %v936_v35  ;;  %998 = vmatpush.msra.mxu3 %v927_v40 }
  0xe7   :  { %5306 = vmatmul.msk.f32.gmra.mxu2 %vm621_vm2, %v449_v37  ;;  %v5287_v37 = vld [vmem:[%s8023_s27 + $0xf8] sm:$0xff] }
  0xe8   :  { %5304 = vmatmul.msk.f32.gmra.mxu1 %vm330_vm1, %v5287_v37 }
  0xea   :  { %v406_v38 = vpop.f32.mrf.mxu0 }
  0xeb   :  { %v407_v39 = vadd.f32 %v6259_v29, %v406_v38 }
  0xed   :  { %v450_v41 = vmax.f32 %v407_v39, 0.0  ;;  %v962_v39 = vld [vmem:[#allocation10 + $0x318] sm:$0xff] }
  0xee   :  { %1333 = vmatpush.msrb.mxu2 %v962_v39 }
  0xef   :  { %5307 = vmatmul.msk.f32.gmra.mxu2 %vm621_vm2, %v450_v41  ;;  %v928_v41 = vld [vmem:[#allocation10 + $0x208] sm:$0xff] }
  0xf0   :  { %1111 = vmatpush.msrb.mxu0 %v928_v41 }
  0xf2   :  { %v409_v42 = vpop.f32.mrf.mxu0  ;;  %1112 = vmatpush.msrb.mxu0 %v920_v44  ;;  %v930_v44 = vld [vmem:[#allocation10 + $0x218] sm:$0xff] }
  0xf3   :  { %v410_v43 = vadd.f32 %v6259_v29, %v409_v42  ;;  %v929_v42 = vld [vmem:[#allocation10 + $0x210] sm:$0xff] }
  0xf4   :  { %1224 = vmatpush.msrb.mxu1 %v929_v42 }
  0xf5   :  { %v451_v45 = vmax.f32 %v410_v43, 0.0  ;;  %v919_v43 = vld [vmem:[#allocation10 + $0x1c0] sm:$0xff] }
  0xf6   :  { %999 = vmatpush.msra.mxu3 %v919_v43 }
  0xf7   :  { %5308 = vmatmul.msk.f32.gmra.mxu2 %vm621_vm2, %v451_v45  ;;  %v921_v45 = vld [vmem:[#allocation10 + $0x1d0] sm:$0xff] }
  0xf8   :  { %1225 = vmatpush.msrb.mxu1 %v921_v45 }
  0xfa   :  { %v412_v46 = vpop.f32.mrf.mxu0 }
  0xfb   :  { %v413_v47 = vadd.f32 %v6259_v29, %v412_v46  ;;  %v911_v46 = vld [vmem:[#allocation10 + $0x180] sm:$0xff] }
  0xfc   :  { %1000 = vmatpush.msra.mxu3 %v911_v46 }
  0xfd   :  { %v452_v49 = vmax.f32 %v413_v47, 0.0  ;;  %v912_v47 = vld [vmem:[#allocation10 + $0x188] sm:$0xff] }
  0xfe   :  { %1113 = vmatpush.msrb.mxu0 %v912_v47  ;;  %1001 = vmatpush.msra.mxu3 %v903_v52 }
  0xff   :  { %5309 = vmatmul.msk.f32.gmra.mxu2 %vm621_vm2, %v452_v49  ;;  %v6333_v49 = vpop.f32.mrf.mxu1 }
 0x102   :  { %v415_v50 = vpop.f32.mrf.mxu0 }
 0x103   :  { %v416_v51 = vadd.f32 %v6259_v29, %v415_v50  ;;  %v913_v50 = vld [vmem:[#allocation10 + $0x190] sm:$0xff] }
 0x104   :  { %1226 = vmatpush.msrb.mxu1 %v913_v50 }
 0x105   :  { %v453_v53 = vmax.f32 %v416_v51, 0.0 }
 0x106   :  { %1227 = vmatpush.msrb.mxu1 %v905_v54 }
 0x107   :  { %5310 = vmatmul.msk.f32.gmra.mxu2 %vm621_vm2, %v453_v53  ;;  %v904_v53 = vld [vmem:[#allocation10 + $0x148] sm:$0xff] }
 0x108   :  { %1114 = vmatpush.msrb.mxu0 %v904_v53 }
 0x10a   :  { %v418_v55 = vpop.f32.mrf.mxu0  ;;  %1115 = vmatpush.msrb.mxu0 %v896_v57 }
 0x10b   :  { %v419_v56 = vadd.f32 %v6259_v29, %v418_v55 }
 0x10d   :  { %v454_v58 = vmax.f32 %v419_v56, 0.0  ;;  %v895_v56 = vld [vmem:[#allocation10 + $0x100] sm:$0xff] }
 0x10e   :  { %1002 = vmatpush.msra.mxu3 %v895_v56  ;;  %v922_v56 = vld [vmem:[#allocation10 + $0x1d8] sm:$0xff] }
 0x10f   :  { %5311 = vmatmul.msk.f32.gmra.mxu2 %vm621_vm2, %v454_v58  ;;  %v897_v58 = vld [vmem:[#allocation10 + $0x110] sm:$0xff] }
 0x110   :  { %1228 = vmatpush.msrb.mxu1 %v897_v58 }
 0x112   :  { %v421_v59 = vpop.f32.mrf.mxu0  ;;  %1229 = vmatpush.msrb.mxu1 %v889_v61 }
 0x113   :  { %v422_v60 = vadd.f32 %v6259_v29, %v421_v59  ;;  %v887_v59 = vld [vmem:[#allocation10 + $0xc0] sm:$0xff] }
 0x114   :  { %1003 = vmatpush.msra.mxu3 %v887_v59  ;;  %1230 = vmatpush.msrb.mxu1 %v881_v2 }
 0x115   :  { %v455_v62 = vmax.f32 %v422_v60, 0.0  ;;  %v888_v60 = vld [vmem:[#allocation10 + $0xc8] sm:$0xff] }
 0x116   :  { %1116 = vmatpush.msrb.mxu0 %v888_v60  ;;  %1231 = vmatpush.msrb.mxu1 %v873_v8 }
 0x117   :  { %5312 = vmatmul.msk.f32.gmra.mxu2 %vm621_vm2, %v455_v62  ;;  %v879_v62 = vld [vmem:[#allocation10 + $0x80] sm:$0xff] }
 0x118   :  { %1004 = vmatpush.msra.mxu3 %v879_v62  ;;  %1117 = vmatpush.msrb.mxu0 %v880_v63 }
 0x119   :  { %1232 = vmatpush.msrb.mxu1 %v865_v11 }
 0x11a   :  { %v424_v0 = vpop.f32.mrf.mxu0 }
 0x11b   :  { %v425_v1 = vadd.f32 %v6259_v29, %v424_v0 }
 0x11d   :  { %v456_v3 = vmax.f32 %v425_v1, 0.0  ;;  %v549_v1 = vpop.f32.mrf.mxu1 }
 0x11e   :  { %v550_v24 = vadd.f32 %v6259_v29, %v549_v1 }
 0x11f   :  { %5313 = vmatmul.msk.f32.gmra.mxu2 %vm621_vm2, %v456_v3 }
 0x120   :  { %v595_v27 = vmax.f32 %v550_v24, 0.0 }
 0x122   :  { %v427_v4 = vpop.f32.mrf.mxu0 }
 0x123   :  { %v428_v5 = vadd.f32 %v6259_v29, %v427_v4  ;;  %v871_v4 = vld [vmem:[#allocation10 + $0x40] sm:$0xff] }
 0x124   :  { %1005 = vmatpush.msra.mxu3 %v871_v4 }
 0x125   :  { %v457_v7 = vmax.f32 %v428_v5, 0.0  ;;  %v872_v5 = vld [vmem:[#allocation10 + $0x48] sm:$0xff]  ;;  %v552_v13 = vpop.f32.mrf.mxu1 }
 0x126   :  { %1118 = vmatpush.msrb.mxu0 %v872_v5  ;;  %1006 = vmatpush.msra.mxu3 %v863_v9  ;;  %v914_v5 = vld [vmem:[#allocation10 + $0x198] sm:$0xff] }
 0x127   :  { %5314 = vmatmul.msk.f32.gmra.mxu2 %vm621_vm2, %v457_v7  ;;  %v954_v7 = vld [vmem:[#allocation10 + $0x2d8] sm:$0xff] }
 0x128   :  { %1334 = vmatpush.msrb.mxu2 %v954_v7  ;;  %1119 = vmatpush.msrb.mxu0 %v864_v10 }
 0x12a   :  { %v430_v15 = vpop.f32.mrf.mxu0  ;;  %1335 = vmatpush.msrb.mxu2 %v946_v20 }
 0x12b   :  { %v431_v16 = vadd.f32 %v6259_v29, %v430_v15 }
 0x12c   :  { %1336 = vmatpush.msrb.mxu2 %v938_v31 }
 0x12d   :  { %v458_v21 = vmax.f32 %v431_v16, 0.0  ;;  %v555_v18 = vpop.f32.mrf.mxu1 }
 0x12e   :  { %1337 = vmatpush.msrb.mxu2 %v930_v44 }
 0x12f   :  { %5315 = vmatmul.msk.f32.gmra.mxu2 %vm621_vm2, %v458_v21  ;;  %v547_v21 = vadd.f32 %v6259_v29, %v6333_v49 }
 0x130   :  { %1338 = vmatpush.msrb.mxu2 %v922_v56 }
 0x131   :  { %v594_v22 = vmax.f32 %v547_v21, 0.0 }
 0x132   :  { %v433_v32 = vpop.f32.mrf.mxu0  ;;  %1339 = vmatpush.msrb.mxu2 %v914_v5 }
 0x133   :  { %v434_v33 = vadd.f32 %v6259_v29, %v433_v32  ;;  %v553_v32 = vadd.f32 %v6259_v29, %v552_v13 }
 0x135   :  { %v459_v38 = vmax.f32 %v434_v33, 0.0  ;;  %v558_v23 = vpop.f32.mrf.mxu1  ;;  %v596_v35 = vmax.f32 %v553_v32, 0.0 }
 0x136   :  { %v559_v45 = vadd.f32 %v6259_v29, %v558_v23 }
 0x137   :  { %5316 = vmatmul.msk.f32.gmra.mxu2 %vm621_vm2, %v459_v38  ;;  %v556_v38 = vadd.f32 %v6259_v29, %v555_v18  ;;  %v906_v18 = vld [vmem:[#allocation10 + $0x158] sm:$0xff] }
 0x138   :  { %v598_v47 = vmax.f32 %v559_v45, 0.0  ;;  %1340 = vmatpush.msrb.mxu2 %v906_v18  ;;  %v866_v45 = vld [vmem:[#allocation10 + $0x18] sm:$0xff] }
 0x139   :  { %v597_v41 = vmax.f32 %v556_v38, 0.0 }
 0x13a   :  { %v436_v48 = vpop.f32.mrf.mxu0 }
 0x13b   :  { %v437_v51 = vadd.f32 %v6259_v29, %v436_v48 }
 0x13d   :  { %v460_v55 = vmax.f32 %v437_v51, 0.0  ;;  %v561_v33 = vpop.f32.mrf.mxu1 }
 0x13e   :  { %v562_v51 = vadd.f32 %v6259_v29, %v561_v33  ;;  %v898_v33 = vld [vmem:[#allocation10 + $0x118] sm:$0xff] }
 0x13f   :  { %5317 = vmatmul.msk.f32.gmra.mxu2 %vm621_vm2, %v460_v55 }
 0x140   :  { %v599_v53 = vmax.f32 %v562_v51, 0.0  ;;  %1341 = vmatpush.msrb.mxu2 %v898_v33 }
 0x142   :  { %v439_v0 = vpop.f32.mrf.mxu0 }
 0x143   :  { %v440_v3 = vadd.f32 %v6259_v29, %v439_v0 }
 0x145   :  { %v461_v6 = vmax.f32 %v440_v3, 0.0  ;;  %v564_v40 = vpop.f32.mrf.mxu1 }
 0x146   :  { %v565_v58 = vadd.f32 %v6259_v29, %v564_v40 }
 0x147   :  { %5318 = vmatmul.msk.f32.gmra.mxu2 %vm621_vm2, %v461_v6 }
 0x148   :  { %v600_v60 = vmax.f32 %v565_v58, 0.0 }
 0x14a   :  { %v442_v12 = vpop.f32.mrf.mxu0 }
 0x14b   :  { %v443_v14 = vadd.f32 %v6259_v29, %v442_v12 }
 0x14d   :  { %v462_v15 = vmax.f32 %v443_v14, 0.0  ;;  %v567_v49 = vpop.f32.mrf.mxu1 }
 0x14e   :  { %v568_v63 = vadd.f32 %v6259_v29, %v567_v49 }
 0x14f   :  { %5319 = vmatmul.msk.f32.gmra.mxu2 %vm621_vm2, %v462_v15 }
 0x150   :  { %v601_v2 = vmax.f32 %v568_v63, 0.0 }
 0x152   :  { %v445_v16 = vpop.f32.mrf.mxu0 }
 0x153   :  { %v446_v17 = vadd.f32 %v6259_v29, %v445_v16 }
 0x155   :  { %v463_v19 = vmax.f32 %v446_v17, 0.0  ;;  %v570_v57 = vpop.f32.mrf.mxu1 }
 0x156   :  { %v571_v6 = vadd.f32 %v6259_v29, %v570_v57 }
 0x157   :  { %5320 = vmatmul.msk.f32.gmra.mxu2 %vm621_vm2, %v463_v19 }
 0x158   :  { %v602_v9 = vmax.f32 %v571_v6, 0.0 }
 0x15d   :  { %v573_v0 = vpop.f32.mrf.mxu1 }
 0x15e   :  { %v574_v12 = vadd.f32 %v6259_v29, %v573_v0 }
 0x15f   :  { %5321 = vmatmul.msk.f32.gmra.mxu2 %vm621_vm2, %v594_v22 }
 0x160   :  { %v603_v14 = vmax.f32 %v574_v12, 0.0 }
 0x162   :  { %v735_v26 = vpop.f32.mrf.mxu2 }
 0x163   :  { %v736_v28 = vadd.f32 %v6347_v25, %v735_v26 }
 0x165   :  { %v6350_v30 = vmax.f32 %v736_v28, 0.0  ;;  %v576_v8 = vpop.f32.mrf.mxu1 }
 0x166   :  { %v577_v19 = vadd.f32 %v6259_v29, %v576_v8 }
 0x167   :  { %8024 = vst [vmem:[#allocation40_spill] sm:$0xff] %v6350_v30  ;;  %5322 = vmatmul.msk.f32.gmra.mxu2 %vm621_vm2, %v595_v27  ;;  %1007 = vmatmul.f32.vlgmr.msra.gmra.mxu3 %v6350_v30 }
 0x168   :  { %1120 = vmatmul.f32.vlgmr.msrb.gmra.mxu0 %v6350_v30  ;;  %1233 = vmatmul.f32.vlgmr.msrb.gmra.mxu1 %v6350_v30  ;;  %v604_v21 = vmax.f32 %v577_v19, 0.0 }
 0x16a   :  { %v738_v34 = vpop.f32.mrf.mxu2 }
 0x16b   :  { %v739_v36 = vadd.f32 %v6347_v25, %v738_v34 }
 0x16d   :  { %v6358_v37 = vmax.f32 %v739_v36, 0.0  ;;  %v579_v16 = vpop.f32.mrf.mxu1  ;;  %v890_v36 = vld [vmem:[#allocation10 + $0xd8] sm:$0xff] }
 0x16e   :  { %v580_v26 = vadd.f32 %v6259_v29, %v579_v16  ;;  %1342 = vmatpush.msrb.mxu2 %v890_v36 }
 0x16f   :  { %8025 = vst [vmem:[#allocation41_spill] sm:$0xff] %v6358_v37  ;;  %5323 = vmatmul.msk.f32.gmra.mxu2 %vm621_vm2, %v596_v35  ;;  %1010 = vmatmul.f32.gmra.mxu3 %v6358_v37 }
 0x170   :  { %1123 = vmatmul.f32.gmra.mxu0 %v6358_v37  ;;  %1236 = vmatmul.f32.gmra.mxu1 %v6358_v37  ;;  %v605_v28 = vmax.f32 %v580_v26, 0.0 }
 0x172   :  { %v741_v39 = vpop.f32.mrf.mxu2 }
 0x173   :  { %v742_v42 = vadd.f32 %v6347_v25, %v741_v39  ;;  %v882_v39 = vld [vmem:[#allocation10 + $0x98] sm:$0xff] }
 0x174   :  { %1343 = vmatpush.msrb.mxu2 %v882_v39  ;;  %v989_v39 = vld [vmem:[#allocation10 + $0x3f0] sm:$0xff] }
 0x175   :  { %v6366_v43 = vmax.f32 %v742_v42, 0.0  ;;  %v582_v24 = vpop.f32.mrf.mxu1  ;;  %v874_v42 = vld [vmem:[#allocation10 + $0x58] sm:$0xff]  ;;  %1669 = vmatpush.msra.mxu1 %v989_v39  ;;  %v971_v39 = vld [vmem:[#allocation10 + $0x360] sm:$0xff] }
 0x176   :  { %v583_v34 = vadd.f32 %v6259_v29, %v582_v24  ;;  %1344 = vmatpush.msrb.mxu2 %v874_v42 }
 0x177   :  { %8026 = vst [vmem:[#allocation42_spill] sm:$0xff] %v6366_v43  ;;  %5324 = vmatmul.msk.f32.gmra.mxu2 %vm621_vm2, %v597_v41  ;;  %1013 = vmatmul.f32.gmra.mxu3 %v6366_v43 }
 0x178   :  { %1126 = vmatmul.f32.gmra.mxu0 %v6366_v43  ;;  %1239 = vmatmul.f32.gmra.mxu1 %v6366_v43  ;;  %v606_v40 = vmax.f32 %v583_v34, 0.0 }
 0x179   :  { %1345 = vmatpush.msrb.mxu2 %v866_v45 }
 0x17a   :  { %v744_v46 = vpop.f32.mrf.mxu2 }
 0x17b   :  { %v745_v48 = vadd.f32 %v6347_v25, %v744_v46 }
 0x17d   :  { %v6374_v50 = vmax.f32 %v745_v48, 0.0  ;;  %v585_v35 = vpop.f32.mrf.mxu1 }
 0x17e   :  { %v586_v46 = vadd.f32 %v6259_v29, %v585_v35 }
 0x17f   :  { %8027 = vst [vmem:[#allocation43_spill] sm:$0xff] %v6374_v50  ;;  %5325 = vmatmul.msk.f32.gmra.mxu2 %vm621_vm2, %v598_v47  ;;  %1016 = vmatmul.f32.gmra.mxu3 %v6374_v50 }
 0x180   :  { %1129 = vmatmul.f32.gmra.mxu0 %v6374_v50  ;;  %1242 = vmatmul.f32.gmra.mxu1 %v6374_v50  ;;  %v607_v49 = vmax.f32 %v586_v46, 0.0 }
 0x182   :  { %v747_v52 = vpop.f32.mrf.mxu2 }
 0x183   :  { %v748_v54 = vadd.f32 %v6347_v25, %v747_v52 }
 0x185   :  { %v6382_v55 = vmax.f32 %v748_v54, 0.0  ;;  %v588_v48 = vpop.f32.mrf.mxu1 }
 0x187   :  { %8028 = vst [vmem:[#allocation44_spill] sm:$0xff] %v6382_v55  ;;  %5326 = vmatmul.msk.f32.gmra.mxu2 %vm621_vm2, %v599_v53  ;;  %1019 = vmatmul.f32.gmra.mxu3 %v6382_v55  ;;  %v589_v53 = vadd.f32 %v6259_v29, %v588_v48 }
 0x188   :  { %1132 = vmatmul.f32.gmra.mxu0 %v6382_v55  ;;  %1245 = vmatmul.f32.gmra.mxu1 %v6382_v55 }
 0x189   :  { %v608_v56 = vmax.f32 %v589_v53, 0.0 }
 0x18a   :  { %v750_v59 = vpop.f32.mrf.mxu2 }
 0x18b   :  { %v751_v61 = vadd.f32 %v6347_v25, %v750_v59 }
 0x18d   :  { %v6390_v62 = vmax.f32 %v751_v61, 0.0  ;;  %v591_v58 = vpop.f32.mrf.mxu1 }
 0x18f   :  { %8029 = vst [vmem:[#allocation45_spill] sm:$0xff] %v6390_v62  ;;  %5327 = vmatmul.msk.f32.gmra.mxu2 %vm621_vm2, %v600_v60  ;;  %1022 = vmatmul.f32.gmra.mxu3 %v6390_v62  ;;  %v592_v60 = vadd.f32 %v6259_v29, %v591_v58 }
 0x190   :  { %1135 = vmatmul.f32.gmra.mxu0 %v6390_v62  ;;  %1248 = vmatmul.f32.gmra.mxu1 %v6390_v62 }
 0x191   :  { %v609_v63 = vmax.f32 %v592_v60, 0.0 }
 0x192   :  { %v753_v1 = vpop.f32.mrf.mxu2 }
 0x193   :  { %v754_v3 = vadd.f32 %v6347_v25, %v753_v1 }
 0x195   :  { %v6398_v4 = vmax.f32 %v754_v3, 0.0 }
 0x197   :  { %8030 = vst [vmem:[#allocation46_spill] sm:$0xff] %v6398_v4  ;;  %5328 = vmatmul.msk.f32.gmra.mxu2 %vm621_vm2, %v601_v2  ;;  %1025 = vmatmul.f32.gmra.mxu3 %v6398_v4 }
 0x198   :  { %1138 = vmatmul.f32.gmra.mxu0 %v6398_v4  ;;  %1251 = vmatmul.f32.gmra.mxu1 %v6398_v4 }
 0x19a   :  { %v756_v7 = vpop.f32.mrf.mxu2 }
 0x19b   :  { %v757_v10 = vadd.f32 %v6347_v25, %v756_v7 }
 0x19d   :  { %v6406_v11 = vmax.f32 %v757_v10, 0.0 }
 0x19f   :  { %8031 = vst [vmem:[#allocation47_spill] sm:$0xff] %v6406_v11  ;;  %5329 = vmatmul.msk.f32.gmra.mxu2 %vm621_vm2, %v602_v9  ;;  %1028 = vmatmul.f32.gmra.mxu3 %v6406_v11 }
 0x1a0   :  { %1141 = vmatmul.f32.gmra.mxu0 %v6406_v11  ;;  %1254 = vmatmul.f32.gmra.mxu1 %v6406_v11 }
 0x1a2   :  { %v759_v13 = vpop.f32.mrf.mxu2 }
 0x1a3   :  { %v760_v15 = vadd.f32 %v6347_v25, %v759_v13 }
 0x1a5   :  { %v6414_v17 = vmax.f32 %v760_v15, 0.0 }
 0x1a7   :  { %8032 = vst [vmem:[#allocation48_spill] sm:$0xff] %v6414_v17  ;;  %5330 = vmatmul.msk.f32.gmra.mxu2 %vm621_vm2, %v603_v14  ;;  %1031 = vmatmul.f32.gmra.mxu3 %v6414_v17 }
 0x1a8   :  { %1144 = vmatmul.f32.gmra.mxu0 %v6414_v17  ;;  %1257 = vmatmul.f32.gmra.mxu1 %v6414_v17 }
 0x1aa   :  { %v762_v20 = vpop.f32.mrf.mxu2 }
 0x1ab   :  { %v763_v22 = vadd.f32 %v6347_v25, %v762_v20 }
 0x1ad   :  { %v6422_v23 = vmax.f32 %v763_v22, 0.0 }
 0x1af   :  { %8033 = vst [vmem:[#allocation49_spill] sm:$0xff] %v6422_v23  ;;  %5331 = vmatmul.msk.f32.gmra.mxu2 %vm621_vm2, %v604_v21  ;;  %1034 = vmatmul.f32.gmra.mxu3 %v6422_v23 }
 0x1b0   :  { %1147 = vmatmul.f32.gmra.mxu0 %v6422_v23  ;;  %1260 = vmatmul.f32.gmra.mxu1 %v6422_v23 }
 0x1b2   :  { %v765_v27 = vpop.f32.mrf.mxu2 }
 0x1b3   :  { %v766_v31 = vadd.f32 %v6347_v25, %v765_v27 }
 0x1b5   :  { %v6430_v32 = vmax.f32 %v766_v31, 0.0 }
 0x1b7   :  { %5332 = vmatmul.msk.f32.gmra.mxu2 %vm621_vm2, %v605_v28  ;;  %1037 = vmatmul.f32.gmra.mxu3 %v6430_v32 }
 0x1b8   :  { %1150 = vmatmul.f32.gmra.mxu0 %v6430_v32  ;;  %1263 = vmatmul.f32.gmra.mxu1 %v6430_v32 }
 0x1ba   :  { %v768_v38 = vpop.f32.mrf.mxu2 }
 0x1bb   :  { %v769_v41 = vadd.f32 %v6347_v25, %v768_v38  ;;  %v987_v38 = vld [vmem:[#allocation10 + $0x3e0] sm:$0xff] }
 0x1bc   :  { %1443 = vmatpush.msrb.mxu3 %v987_v38 }
 0x1bd   :  { %v6438_v44 = vmax.f32 %v769_v41, 0.0 }
 0x1bf   :  { %5333 = vmatmul.msk.f32.gmra.mxu2 %vm621_vm2, %v606_v40  ;;  %1040 = vmatmul.f32.gmra.mxu3 %v6438_v44 }
 0x1c0   :  { %1153 = vmatmul.f32.gmra.mxu0 %v6438_v44  ;;  %1266 = vmatmul.f32.gmra.mxu1 %v6438_v44 }
 0x1c2   :  { %v771_v47 = vpop.f32.mrf.mxu2 }
 0x1c3   :  { %v772_v51 = vadd.f32 %v6347_v25, %v771_v47 }
 0x1c5   :  { %v6446_v52 = vmax.f32 %v772_v51, 0.0  ;;  %v990_v51 = vld [vmem:[#allocation10 + $0x3f8] sm:$0xff] }
 0x1c6   :  { %1782 = vmatpush.msra.mxu2 %v990_v51 }
 0x1c7   :  { %8034 = vst [vmem:[#allocation50_spill] sm:$0xff] %v6446_v52  ;;  %5334 = vmatmul.msk.f32.gmra.mxu2 %vm621_vm2, %v607_v49  ;;  %1043 = vmatmul.f32.gmra.mxu3 %v6446_v52  ;;  %v988_v49 = vld [vmem:[#allocation10 + $0x3e8] sm:$0xff] }
 0x1c8   :  { %1156 = vmatmul.f32.gmra.mxu0 %v6446_v52  ;;  %1269 = vmatmul.f32.gmra.mxu1 %v6446_v52 }
 0x1c9   :  { %1556 = vmatpush.msra.mxu0 %v988_v49 }
 0x1ca   :  { %v774_v54 = vpop.f32.mrf.mxu2 }
 0x1cb   :  { %v775_v57 = vadd.f32 %v6347_v25, %v774_v54 }
 0x1cd   :  { %v6454_v59 = vmax.f32 %v775_v57, 0.0 }
 0x1cf   :  { %8035 = vst [vmem:[#allocation51_spill] sm:$0xff] %v6454_v59  ;;  %5335 = vmatmul.msk.f32.gmra.mxu2 %vm621_vm2, %v608_v56  ;;  %1046 = vmatmul.f32.gmra.mxu3 %v6454_v59 }
 0x1d0   :  { %1159 = vmatmul.f32.gmra.mxu0 %v6454_v59  ;;  %1272 = vmatmul.f32.gmra.mxu1 %v6454_v59 }
 0x1d2   :  { %v777_v61 = vpop.f32.mrf.mxu2 }
 0x1d3   :  { %v778_v0 = vadd.f32 %v6347_v25, %v777_v61 }
 0x1d5   :  { %v6462_v1 = vmax.f32 %v778_v0, 0.0  ;;  %v981_v0 = vld [vmem:[#allocation10 + $0x3b0] sm:$0xff] }
 0x1d6   :  { %1670 = vmatpush.msra.mxu1 %v981_v0 }
 0x1d7   :  { %8036 = vst [vmem:[#allocation52_spill] sm:$0xff] %v6462_v1  ;;  %5336 = vmatmul.msk.f32.gmra.mxu2 %vm621_vm2, %v609_v63  ;;  %1049 = vmatmul.f32.gmra.mxu3 %v6462_v1  ;;  %v979_v63 = vld [vmem:[#allocation10 + $0x3a0] sm:$0xff] }
 0x1d8   :  { %1162 = vmatmul.f32.gmra.mxu0 %v6462_v1  ;;  %1275 = vmatmul.f32.gmra.mxu1 %v6462_v1 }
 0x1d9   :  { %1444 = vmatpush.msrb.mxu3 %v979_v63 }
 0x1da   :  { %v780_v2 = vpop.f32.mrf.mxu2 }
 0x1db   :  { %v781_v29 = vadd.f32 %v6347_v25, %v780_v2  ;;  %1445 = vmatpush.msrb.mxu3 %v971_v39  ;;  %v957_v39 = vld [vmem:[#allocation10 + $0x2f0] sm:$0xff] }
 0x1dd   :  { %v6469_v3 = vmax.f32 %v781_v29, 0.0 }
 0x1df   :  { %8037 = vst [vmem:[#allocation53_spill] sm:$0xff] %v6469_v3  ;;  %1052 = vmatmul.f32.gmra.mxu3 %v6469_v3  ;;  %1346 = vmatmul.f32.vlgmr.msrb.gmra.mxu2 %v6350_v30 }
 0x1e0   :  { %1165 = vmatmul.f32.gmra.mxu0 %v6469_v3  ;;  %1278 = vmatmul.f32.gmra.mxu1 %v6469_v3 }
 0x1e2   :  { %v783_v5 = vpop.f32.mrf.mxu2 }
 0x1e3   :  { %v784_v6 = vadd.f32 %v6347_v25, %v783_v5 }
 0x1e5   :  { %v6476_v7 = vmax.f32 %v784_v6, 0.0  ;;  %v6478_v8 = vpop.f32.mrf.mxu0  ;;  %v6480_v9 = vpop.f32.mrf.mxu1 }
 0x1e7   :  { %8038 = vst [vmem:[#allocation54_spill] sm:$0xff] %v6476_v7  ;;  %1055 = vmatmul.f32.gmra.mxu3 %v6476_v7  ;;  %1349 = vmatmul.f32.gmra.mxu2 %v6358_v37 }
 0x1e8   :  { %1168 = vmatmul.f32.gmra.mxu0 %v6476_v7  ;;  %1281 = vmatmul.f32.gmra.mxu1 %v6476_v7 }
 0x1ea   :  { %v786_v10 = vpop.f32.mrf.mxu2  ;;  %v1008_v12 = vpop.f32.mrf.mxu3 }
 0x1eb   :  { %v787_v13 = vadd.f32 %v6347_v25, %v786_v10 }
 0x1ed   :  { %v6487_v14 = vmax.f32 %v787_v13, 0.0  ;;  %v6489_v15 = vpop.f32.mrf.mxu0  ;;  %v6491_v16 = vpop.f32.mrf.mxu1 }
 0x1ef   :  { %8039 = vst [vmem:[#allocation55_spill] sm:$0xff] %v6487_v14  ;;  %1058 = vmatmul.f32.gmra.mxu3 %v6487_v14  ;;  %1352 = vmatmul.f32.gmra.mxu2 %v6366_v43 }
 0x1f0   :  { %1171 = vmatmul.f32.gmra.mxu0 %v6487_v14  ;;  %1284 = vmatmul.f32.gmra.mxu1 %v6487_v14 }
 0x1f2   :  { %v789_v18 = vpop.f32.mrf.mxu2  ;;  %v1011_v19 = vpop.f32.mrf.mxu3 }
 0x1f3   :  { %v790_v20 = vadd.f32 %v6347_v25, %v789_v18  ;;  %v1895_v21 = vmax.f32 %v1008_v12, %v1011_v19  ;;  %v980_v18 = vld [vmem:[#allocation10 + $0x3a8] sm:$0xff]  ;;  %v982_v19 = vld [vmem:[#allocation10 + $0x3b8] sm:$0xff] }
 0x1f4   :  { %1557 = vmatpush.msra.mxu0 %v980_v18  ;;  %1783 = vmatpush.msra.mxu2 %v982_v19  ;;  %v963_v19 = vld [vmem:[#allocation10 + $0x320] sm:$0xff] }
 0x1f5   :  { %v6498_v22 = vmax.f32 %v790_v20, 0.0  ;;  %v6500_v24 = vpop.f32.mrf.mxu0  ;;  %v6502_v26 = vpop.f32.mrf.mxu1  ;;  %1446 = vmatpush.msrb.mxu3 %v963_v19 }
 0x1f7   :  { %8040 = vst [vmem:[#allocation56_spill] sm:$0xff] %v6498_v22  ;;  %1061 = vmatmul.f32.gmra.mxu3 %v6498_v22  ;;  %1355 = vmatmul.f32.gmra.mxu2 %v6374_v50 }
 0x1f8   :  { %1174 = vmatmul.f32.gmra.mxu0 %v6498_v22  ;;  %1287 = vmatmul.f32.gmra.mxu1 %v6498_v22 }
 0x1fa   :  { %v792_v27 = vpop.f32.mrf.mxu2  ;;  %v1014_v28 = vpop.f32.mrf.mxu3 }
 0x1fb   :  { %v793_v31 = vadd.f32 %v6347_v25, %v792_v27  ;;  %v1896_v33 = vmax.f32 %v1895_v21, %v1014_v28 }
 0x1fd   :  { %v6509_v34 = vmax.f32 %v793_v31, 0.0  ;;  %v6511_v35 = vpop.f32.mrf.mxu0  ;;  %v6513_v36 = vpop.f32.mrf.mxu1 }
 0x1ff   :  { %8041 = vst [vmem:[#allocation57_spill] sm:$0xff] %v6509_v34  ;;  %1064 = vmatmul.f32.gmra.mxu3 %v6509_v34  ;;  %1358 = vmatmul.f32.gmra.mxu2 %v6382_v55 }
 0x200   :  { %1177 = vmatmul.f32.gmra.mxu0 %v6509_v34  ;;  %1290 = vmatmul.f32.gmra.mxu1 %v6509_v34 }
 0x202   :  { %v795_v40 = vpop.f32.mrf.mxu2  ;;  %v1017_v41 = vpop.f32.mrf.mxu3 }
 0x203   :  { %v796_v42 = vadd.f32 %v6347_v25, %v795_v40  ;;  %v1897_v45 = vmax.f32 %v1896_v33, %v1017_v41  ;;  %v973_v40 = vld [vmem:[#allocation10 + $0x370] sm:$0xff] }
 0x204   :  { %1671 = vmatpush.msra.mxu1 %v973_v40 }
 0x205   :  { %v6520_v46 = vmax.f32 %v796_v42, 0.0  ;;  %v6522_v47 = vpop.f32.mrf.mxu0  ;;  %v6524_v48 = vpop.f32.mrf.mxu1 }
 0x207   :  { %8042 = vst [vmem:[#allocation58_spill] sm:$0xff] %v6520_v46  ;;  %1067 = vmatmul.f32.gmra.mxu3 %v6520_v46  ;;  %1361 = vmatmul.f32.gmra.mxu2 %v6390_v62 }
 0x208   :  { %1180 = vmatmul.f32.gmra.mxu0 %v6520_v46  ;;  %1293 = vmatmul.f32.gmra.mxu1 %v6520_v46 }
 0x20a   :  { %v798_v53 = vpop.f32.mrf.mxu2  ;;  %v1020_v54 = vpop.f32.mrf.mxu3 }
 0x20b   :  { %v799_v56 = vadd.f32 %v6347_v25, %v798_v53  ;;  %v1898_v57 = vmax.f32 %v1897_v45, %v1020_v54 }
 0x20d   :  { %v6531_v58 = vmax.f32 %v799_v56, 0.0  ;;  %v6533_v60 = vpop.f32.mrf.mxu0  ;;  %v6535_v61 = vpop.f32.mrf.mxu1  ;;  %v972_v56 = vld [vmem:[#allocation10 + $0x368] sm:$0xff] }
 0x20e   :  { %1558 = vmatpush.msra.mxu0 %v972_v56 }
 0x20f   :  { %8043 = vst [vmem:[#allocation59_spill] sm:$0xff] %v6531_v58  ;;  %1070 = vmatmul.f32.gmra.mxu3 %v6531_v58  ;;  %1364 = vmatmul.f32.gmra.mxu2 %v6398_v4 }
 0x210   :  { %1183 = vmatmul.f32.gmra.mxu0 %v6531_v58  ;;  %1296 = vmatmul.f32.gmra.mxu1 %v6531_v58 }
 0x212   :  { %v801_v2 = vpop.f32.mrf.mxu2  ;;  %v1023_v29 = vpop.f32.mrf.mxu3 }
 0x213   :  { %v802_v5 = vadd.f32 %v6347_v25, %v801_v2  ;;  %v1899_v6 = vmax.f32 %v1898_v57, %v1023_v29  ;;  %v974_v57 = vld [vmem:[#allocation10 + $0x378] sm:$0xff] }
 0x214   :  { %1784 = vmatpush.msra.mxu2 %v974_v57 }
 0x215   :  { %v6542_v10 = vmax.f32 %v802_v5, 0.0  ;;  %v6544_v12 = vpop.f32.mrf.mxu0  ;;  %v6546_v13 = vpop.f32.mrf.mxu1 }
 0x217   :  { %8044 = vst [vmem:[#allocation60_spill] sm:$0xff] %v6542_v10  ;;  %1073 = vmatmul.f32.gmra.mxu3 %v6542_v10  ;;  %1367 = vmatmul.f32.gmra.mxu2 %v6406_v11 }
 0x218   :  { %1186 = vmatmul.f32.gmra.mxu0 %v6542_v10  ;;  %1299 = vmatmul.f32.gmra.mxu1 %v6542_v10 }
 0x21a   :  { %v804_v20 = vpop.f32.mrf.mxu2  ;;  %v1026_v21 = vpop.f32.mrf.mxu3 }
 0x21b   :  { %v805_v27 = vadd.f32 %v6347_v25, %v804_v20  ;;  %v1900_v28 = vmax.f32 %v1899_v6, %v1026_v21  ;;  %v964_v20 = vld [vmem:[#allocation10 + $0x328] sm:$0xff]  ;;  %v965_v21 = vld [vmem:[#allocation10 + $0x330] sm:$0xff] }
 0x21c   :  { %1559 = vmatpush.msra.mxu0 %v964_v20  ;;  %1672 = vmatpush.msra.mxu1 %v965_v21  ;;  %v966_v20 = vld [vmem:[#allocation10 + $0x338] sm:$0xff]  ;;  %v940_v21 = vld [vmem:[#allocation10 + $0x268] sm:$0xff] }
 0x21d   :  { %v6553_v31 = vmax.f32 %v805_v27, 0.0  ;;  %v6555_v33 = vpop.f32.mrf.mxu0  ;;  %v6557_v38 = vpop.f32.mrf.mxu1  ;;  %v955_v27 = vld [vmem:[#allocation10 + $0x2e0] sm:$0xff]  ;;  %1785 = vmatpush.msra.mxu2 %v966_v20 }
 0x21e   :  { %1447 = vmatpush.msrb.mxu3 %v955_v27  ;;  %1673 = vmatpush.msra.mxu1 %v957_v39  ;;  %v941_v27 = vld [vmem:[#allocation10 + $0x270] sm:$0xff]  ;;  %v915_v20 = vld [vmem:[#allocation10 + $0x1a0] sm:$0xff] }
 0x21f   :  { %8045 = vst [vmem:[#allocation61_spill] sm:$0xff] %v6553_v31  ;;  %1076 = vmatmul.f32.gmra.mxu3 %v6553_v31  ;;  %1370 = vmatmul.f32.gmra.mxu2 %v6414_v17  ;;  %v933_v39 = vld [vmem:[#allocation10 + $0x230] sm:$0xff] }
 0x220   :  { %1189 = vmatmul.f32.gmra.mxu0 %v6553_v31  ;;  %1302 = vmatmul.f32.gmra.mxu1 %v6553_v31 }
 0x222   :  { %v807_v41 = vpop.f32.mrf.mxu2  ;;  %v1029_v42 = vpop.f32.mrf.mxu3 }
 0x223   :  { %v808_v45 = vadd.f32 %v6347_v25, %v807_v41  ;;  %v1901_v49 = vmax.f32 %v1900_v28, %v1029_v42  ;;  %v956_v28 = vld [vmem:[#allocation10 + $0x2e8] sm:$0xff]  ;;  %v947_v42 = vld [vmem:[#allocation10 + $0x2a0] sm:$0xff] }
 0x224   :  { %1560 = vmatpush.msra.mxu0 %v956_v28  ;;  %1448 = vmatpush.msrb.mxu3 %v947_v42  ;;  %v932_v28 = vld [vmem:[#allocation10 + $0x228] sm:$0xff] }
 0x225   :  { %v6564_v51 = vmax.f32 %v808_v45, 0.0  ;;  %v6566_v53 = vpop.f32.mrf.mxu0  ;;  %v6568_v54 = vpop.f32.mrf.mxu1  ;;  %v948_v45 = vld [vmem:[#allocation10 + $0x2a8] sm:$0xff] }
 0x226   :  { %1561 = vmatpush.msra.mxu0 %v948_v45  ;;  %v924_v45 = vld [vmem:[#allocation10 + $0x1e8] sm:$0xff] }
 0x227   :  { %8046 = vst [vmem:[#allocation62_spill] sm:$0xff] %v6564_v51  ;;  %1079 = vmatmul.f32.gmra.mxu3 %v6564_v51  ;;  %1373 = vmatmul.f32.gmra.mxu2 %v6422_v23 }
 0x228   :  { %1192 = vmatmul.f32.gmra.mxu0 %v6564_v51  ;;  %1305 = vmatmul.f32.gmra.mxu1 %v6564_v51 }
 0x229   :  { %1562 = vmatpush.msra.mxu0 %v940_v21  ;;  %v916_v21 = vld [vmem:[#allocation10 + $0x1a8] sm:$0xff] }
 0x22a   :  { %v810_v63 = vpop.f32.mrf.mxu2  ;;  %v1032_v0 = vpop.f32.mrf.mxu3 }
 0x22b   :  { %v811_v2 = vadd.f32 %v6347_v25, %v810_v63  ;;  %v1902_v29 = vmax.f32 %v1901_v49, %v1032_v0  ;;  %v949_v49 = vld [vmem:[#allocation10 + $0x2b0] sm:$0xff]  ;;  %v939_v63 = vld [vmem:[#allocation10 + $0x260] sm:$0xff]  ;;  %1563 = vmatpush.msra.mxu0 %v932_v28 }
 0x22c   :  { %1674 = vmatpush.msra.mxu1 %v949_v49  ;;  %1449 = vmatpush.msrb.mxu3 %v939_v63  ;;  %v925_v49 = vld [vmem:[#allocation10 + $0x1f0] sm:$0xff] }
 0x22d   :  { %v6575_v5 = vmax.f32 %v811_v2, 0.0  ;;  %v6577_v6 = vpop.f32.mrf.mxu0  ;;  %v6579_v18 = vpop.f32.mrf.mxu1  ;;  %1564 = vmatpush.msra.mxu0 %v924_v45  ;;  %v909_v28 = vld [vmem:[#allocation10 + $0x170] sm:$0xff] }
 0x22e   :  { %8048 = vst [vmem:[#allocation64_spill] sm:$0xff] %v6579_v18  ;;  %1675 = vmatpush.msra.mxu1 %v941_v27  ;;  %v917_v27 = vld [vmem:[#allocation10 + $0x1b0] sm:$0xff] }
 0x22f   :  { %8047 = vst [vmem:[#allocation63_spill] sm:$0xff] %v6575_v5  ;;  %1082 = vmatmul.f32.gmra.mxu3 %v6575_v5  ;;  %1376 = vmatmul.f32.gmra.mxu2 %v6430_v32  ;;  %v901_v45 = vld [vmem:[#allocation10 + $0x130] sm:$0xff] }
 0x230   :  { %1195 = vmatmul.f32.gmra.mxu0 %v6575_v5  ;;  %1308 = vmatmul.f32.gmra.mxu1 %v6575_v5 }
 0x231   :  { %1676 = vmatpush.msra.mxu1 %v933_v39  ;;  %1565 = vmatpush.msra.mxu0 %v916_v21  ;;  %v899_v39 = vld [vmem:[#allocation10 + $0x120] sm:$0xff]  ;;  %v892_v21 = vld [vmem:[#allocation10 + $0xe8] sm:$0xff] }
 0x232   :  { %v813_v40 = vpop.f32.mrf.mxu2  ;;  %v1035_v41 = vpop.f32.mrf.mxu3 }
 0x233   :  { %v814_v56 = vadd.f32 %v6347_v25, %v813_v40  ;;  %v1903_v57 = vmax.f32 %v1902_v29, %v1035_v41  ;;  %v931_v29 = vld [vmem:[#allocation10 + $0x220] sm:$0xff]  ;;  %1677 = vmatpush.msra.mxu1 %v925_v49 }
 0x234   :  { %v923_v40 = vld [vmem:[#allocation10 + $0x1e0] sm:$0xff]  ;;  %1450 = vmatpush.msrb.mxu3 %v931_v29  ;;  %v908_v29 = vld [vmem:[#allocation10 + $0x168] sm:$0xff] }
 0x235   :  { %v6586_v0 = vmax.f32 %v814_v56, 0.0  ;;  %v6588_v2 = vpop.f32.mrf.mxu0  ;;  %v6590_v19 = vpop.f32.mrf.mxu1  ;;  %1678 = vmatpush.msra.mxu1 %v917_v27  ;;  %1566 = vmatpush.msra.mxu0 %v908_v29  ;;  %v893_v27 = vld [vmem:[#allocation10 + $0xf0] sm:$0xff] }
 0x236   :  { %8050 = vst [vmem:[#allocation66_spill] sm:$0xff] %v6588_v2  ;;  %1451 = vmatpush.msrb.mxu3 %v923_v40  ;;  %v885_v29 = vld [vmem:[#allocation10 + $0xb0] sm:$0xff] }
 0x237   :  { %8049 = vst [vmem:[#allocation65_spill] sm:$0xff] %v6586_v0  ;;  %1085 = vmatmul.f32.gmra.mxu3 %v6586_v0  ;;  %1379 = vmatmul.f32.gmra.mxu2 %v6438_v44 }
 0x238   :  { %8051 = vst [vmem:[#allocation67_spill] sm:$0xff] %v6590_v19  ;;  %1198 = vmatmul.f32.gmra.mxu0 %v6586_v0  ;;  %1311 = vmatmul.f32.gmra.mxu1 %v6586_v0 }
 0x239   :  { %1452 = vmatpush.msrb.mxu3 %v915_v20  ;;  %1679 = vmatpush.msra.mxu1 %v909_v28  ;;  %v891_v20 = vld [vmem:[#allocation10 + $0xe0] sm:$0xff] }
 0x23a   :  { %v816_v41 = vpop.f32.mrf.mxu2  ;;  %v1038_v42 = vpop.f32.mrf.mxu3  ;;  %v875_v28 = vld [vmem:[#allocation10 + $0x60] sm:$0xff] }
 0x23b   :  { %v817_v56 = vadd.f32 %v6347_v25, %v816_v41  ;;  %v1904_v63 = vmax.f32 %v1903_v57, %v1038_v42  ;;  %v907_v57 = vld [vmem:[#allocation10 + $0x160] sm:$0xff]  ;;  %v900_v42 = vld [vmem:[#allocation10 + $0x128] sm:$0xff]  ;;  %1680 = vmatpush.msra.mxu1 %v901_v45 }
 0x23c   :  { %1453 = vmatpush.msrb.mxu3 %v907_v57  ;;  %1567 = vmatpush.msra.mxu0 %v900_v42  ;;  %v884_v57 = vld [vmem:[#allocation10 + $0xa8] sm:$0xff]  ;;  %v877_v42 = vld [vmem:[#allocation10 + $0x70] sm:$0xff] }
 0x23d   :  { %v6597_v19 = vmax.f32 %v817_v56, 0.0  ;;  %v6599_v2 = vpop.f32.mrf.mxu0  ;;  %v6601_v18 = vpop.f32.mrf.mxu1  ;;  %1681 = vmatpush.msra.mxu1 %v893_v27  ;;  %v869_v27 = vld [vmem:[#allocation10 + $0x30] sm:$0xff] }
 0x23e   :  { %8052 = vst [vmem:[#allocation68_spill] sm:$0xff] %v6599_v2  ;;  %1454 = vmatpush.msrb.mxu3 %v899_v39  ;;  %1568 = vmatpush.msra.mxu0 %v892_v21  ;;  %v868_v21 = vld [vmem:[#allocation10 + $0x28] sm:$0xff] }
 0x23f   :  { %8053 = vst [vmem:[#allocation69_spill] sm:$0xff] %v6601_v18  ;;  %1088 = vmatmul.f32.gmra.mxu3 %v6597_v19  ;;  %1382 = vmatmul.f32.gmra.mxu2 %v6446_v52 }
 0x240   :  { %1201 = vmatmul.f32.gmra.mxu0 %v6597_v19  ;;  %1314 = vmatmul.f32.gmra.mxu1 %v6597_v19 }
 0x241   :  { %1455 = vmatpush.msrb.mxu3 %v891_v20  ;;  %1569 = vmatpush.msra.mxu0 %v884_v57  ;;  %v867_v20 = vld [vmem:[#allocation10 + $0x20] sm:$0xff] }
 0x242   :  { %v819_v40 = vpop.f32.mrf.mxu2  ;;  %v1041_v41 = vpop.f32.mrf.mxu3  ;;  %1682 = vmatpush.msra.mxu1 %v885_v29 }
 0x243   :  { %v820_v49 = vadd.f32 %v6347_v25, %v819_v40  ;;  %v1905_v56 = vmax.f32 %v1904_v63, %v1041_v41  ;;  %v883_v63 = vld [vmem:[#allocation10 + $0xa0] sm:$0xff]  ;;  %v876_v41 = vld [vmem:[#allocation10 + $0x68] sm:$0xff] }
 0x244   :  { %1456 = vmatpush.msrb.mxu3 %v883_v63  ;;  %1570 = vmatpush.msra.mxu0 %v876_v41 }
 0x245   :  { %v6608_v18 = vmax.f32 %v820_v49, 0.0  ;;  %v6610_v52 = vpop.f32.mrf.mxu0  ;;  %v6612_v2 = vpop.f32.mrf.mxu1  ;;  %1683 = vmatpush.msra.mxu1 %v877_v42 }
 0x246   :  { %8054 = vst [vmem:[#allocation70_spill] sm:$0xff] %v6610_v52  ;;  %1457 = vmatpush.msrb.mxu3 %v875_v28  ;;  %1571 = vmatpush.msra.mxu0 %v868_v21 }
 0x247   :  { %8055 = vst [vmem:[#allocation71_spill] sm:$0xff] %v6612_v2  ;;  %1091 = vmatmul.f32.gmra.mxu3 %v6608_v18  ;;  %1385 = vmatmul.f32.gmra.mxu2 %v6454_v59 }
 0x248   :  { %1204 = vmatmul.f32.gmra.mxu0 %v6608_v18  ;;  %1317 = vmatmul.f32.gmra.mxu1 %v6608_v18 }
 0x249   :  { %1458 = vmatpush.msrb.mxu3 %v867_v20  ;;  %1684 = vmatpush.msra.mxu1 %v869_v27 }
 0x24a   :  { %v822_v39 = vpop.f32.mrf.mxu2  ;;  %v1044_v40 = vpop.f32.mrf.mxu3 }
 0x24b   :  { %v823_v45 = vadd.f32 %v6347_v25, %v822_v39  ;;  %v1906_v49 = vmax.f32 %v1905_v56, %v1044_v40  ;;  %v958_v56 = vld [vmem:[#allocation10 + $0x2f8] sm:$0xff] }
 0x24c   :  { %1786 = vmatpush.msra.mxu2 %v958_v56  ;;  %v950_v39 = vld [vmem:[#allocation10 + $0x2b8] sm:$0xff] }
 0x24d   :  { %v6619_v59 = vmax.f32 %v823_v45, 0.0  ;;  %v6621_v2 = vpop.f32.mrf.mxu0  ;;  %v6623_v52 = vpop.f32.mrf.mxu1 }
 0x24e   :  { %1787 = vmatpush.msra.mxu2 %v950_v39 }
 0x24f   :  { %1094 = vmatmul.f32.gmra.mxu3 %v6619_v59  ;;  %1388 = vmatmul.f32.gmra.mxu2 %v6462_v1 }
 0x250   :  { %1207 = vmatmul.f32.gmra.mxu0 %v6619_v59  ;;  %1320 = vmatmul.f32.gmra.mxu1 %v6619_v59 }
 0x252   :  { %v825_v63 = vpop.f32.mrf.mxu2  ;;  %v1047_v57 = vpop.f32.mrf.mxu3 }
 0x253   :  { %v826_v29 = vadd.f32 %v6347_v25, %v825_v63  ;;  %v1907_v28 = vmax.f32 %v1906_v49, %v1047_v57 }
 0x255   :  { %v6630_v40 = vmax.f32 %v826_v29, 0.0  ;;  %v6632_v41 = vpop.f32.mrf.mxu0  ;;  %v6634_v42 = vpop.f32.mrf.mxu1 }
 0x257   :  { %8056 = vst [vmem:[#allocation72_spill] sm:$0xff] %v6630_v40  ;;  %1097 = vmatmul.f32.gmra.mxu3 %v6630_v40  ;;  %1391 = vmatmul.f32.gmra.mxu2 %v6469_v3 }
 0x258   :  { %1210 = vmatmul.f32.gmra.mxu0 %v6630_v40  ;;  %1323 = vmatmul.f32.gmra.mxu1 %v6630_v40 }
 0x25a   :  { %v828_v45 = vpop.f32.mrf.mxu2  ;;  %v1050_v20 = vpop.f32.mrf.mxu3 }
 0x25b   :  { %v829_v49 = vadd.f32 %v6347_v25, %v828_v45  ;;  %v1908_v21 = vmax.f32 %v1907_v28, %v1050_v20  ;;  %v942_v25 = vld [vmem:[#allocation10 + $0x278] sm:$0xff] }
 0x25c   :  { %1788 = vmatpush.msra.mxu2 %v942_v25 }
 0x25d   :  { %v6641_v27 = vmax.f32 %v829_v49, 0.0  ;;  %v6643_v56 = vpop.f32.mrf.mxu0  ;;  %v6645_v63 = vpop.f32.mrf.mxu1 }
 0x25f   :  { %8057 = vst [vmem:[#allocation73_spill] sm:$0xff] %v6641_v27  ;;  %1100 = vmatmul.f32.gmra.mxu3 %v6641_v27  ;;  %1394 = vmatmul.f32.gmra.mxu2 %v6476_v7 }
 0x260   :  { %1213 = vmatmul.f32.gmra.mxu0 %v6641_v27  ;;  %1326 = vmatmul.f32.gmra.mxu1 %v6641_v27 }
 0x262   :  { %v1053_v57 = vpop.f32.mrf.mxu3  ;;  %v1347_v29 = vpop.f32.mrf.mxu2 }
 0x263   :  { %v6651_v39 = vmax.f32 %v1908_v21, %v1053_v57 }
 0x265   :  { %8058 = vst [vmem:[#allocation74_spill] sm:$0xff] %v6651_v39  ;;  %v6653_v28 = vpop.f32.mrf.mxu0  ;;  %v6655_v45 = vpop.f32.mrf.mxu1 }
 0x267   :  { %1397 = vmatmul.f32.gmra.mxu2 %v6487_v14  ;;  %1459 = vmatmul.f32.vlgmr.msrb.gmra.mxu3 %v6350_v30 }
 0x268   :  { %1572 = vmatmul.f32.vlgmr.msra.gmra.mxu0 %v6350_v30  ;;  %1685 = vmatmul.f32.vlgmr.msra.gmra.mxu1 %v6350_v30  ;;  %v934_v30 = vld [vmem:[#allocation10 + $0x238] sm:$0xff] }
 0x269   :  { %1789 = vmatpush.msra.mxu2 %v934_v30 }
 0x26a   :  { %v1056_v20 = vpop.f32.mrf.mxu3  ;;  %v1350_v49 = vpop.f32.mrf.mxu2 }
 0x26b   :  { %v1958_v7 = vmax.f32 %v1347_v29, %v1350_v49 }
 0x26d   :  { %v6661_v3 = vpop.f32.mrf.mxu0  ;;  %v6663_v21 = vpop.f32.mrf.mxu1 }
 0x26f   :  { %1400 = vmatmul.f32.gmra.mxu2 %v6498_v22  ;;  %1462 = vmatmul.f32.gmra.mxu3 %v6358_v37 }
 0x270   :  { %1575 = vmatmul.f32.gmra.mxu0 %v6358_v37  ;;  %1688 = vmatmul.f32.gmra.mxu1 %v6358_v37 }
 0x272   :  { %v1059_v57 = vpop.f32.mrf.mxu3  ;;  %v1353_v25 = vpop.f32.mrf.mxu2 }
 0x273   :  { %v2063_v14 = vmax.f32 %v1056_v20, %v1059_v57  ;;  %v1959_v39 = vmax.f32 %v1958_v7, %v1353_v25 }
 0x275   :  { %v6669_v1 = vpop.f32.mrf.mxu0  ;;  %v6671_v29 = vpop.f32.mrf.mxu1 }
 0x277   :  { %1403 = vmatmul.f32.gmra.mxu2 %v6509_v34  ;;  %1465 = vmatmul.f32.gmra.mxu3 %v6366_v43 }
 0x278   :  { %1578 = vmatmul.f32.gmra.mxu0 %v6366_v43  ;;  %1691 = vmatmul.f32.gmra.mxu1 %v6366_v43  ;;  %v926_v43 = vld [vmem:[#allocation10 + $0x1f8] sm:$0xff] }
 0x279   :  { %1790 = vmatpush.msra.mxu2 %v926_v43 }
 0x27a   :  { %v1062_v49 = vpop.f32.mrf.mxu3  ;;  %v1356_v22 = vpop.f32.mrf.mxu2 }
 0x27b   :  { %v2064_v37 = vmax.f32 %v2063_v14, %v1062_v49  ;;  %v1960_v27 = vmax.f32 %v1959_v39, %v1356_v22 }
 0x27d   :  { %v6677_v20 = vpop.f32.mrf.mxu0  ;;  %v6679_v7 = vpop.f32.mrf.mxu1 }
 0x27f   :  { %1406 = vmatmul.f32.gmra.mxu2 %v6520_v46  ;;  %1468 = vmatmul.f32.gmra.mxu3 %v6374_v50 }
 0x280   :  { %1581 = vmatmul.f32.gmra.mxu0 %v6374_v50  ;;  %1694 = vmatmul.f32.gmra.mxu1 %v6374_v50 }
 0x282   :  { %v1065_v30 = vpop.f32.mrf.mxu3  ;;  %v1359_v57 = vpop.f32.mrf.mxu2 }
 0x283   :  { %v2065_v25 = vmax.f32 %v2064_v37, %v1065_v30  ;;  %v1961_v34 = vmax.f32 %v1960_v27, %v1359_v57 }
 0x285   :  { %v6685_v14 = vpop.f32.mrf.mxu0  ;;  %v6687_v22 = vpop.f32.mrf.mxu1 }
 0x287   :  { %1409 = vmatmul.f32.gmra.mxu2 %v6531_v58  ;;  %1471 = vmatmul.f32.gmra.mxu3 %v6382_v55 }
 0x288   :  { %1584 = vmatmul.f32.gmra.mxu0 %v6382_v55  ;;  %1697 = vmatmul.f32.gmra.mxu1 %v6382_v55  ;;  %v918_v55 = vld [vmem:[#allocation10 + $0x1b8] sm:$0xff] }
 0x289   :  { %1791 = vmatpush.msra.mxu2 %v918_v55 }
 0x28a   :  { %v1068_v39 = vpop.f32.mrf.mxu3  ;;  %v1362_v49 = vpop.f32.mrf.mxu2 }
 0x28b   :  { %v2066_v46 = vmax.f32 %v2065_v25, %v1068_v39  ;;  %v1962_v50 = vmax.f32 %v1961_v34, %v1362_v49 }
 0x28d   :  { %v6693_v37 = vpop.f32.mrf.mxu0  ;;  %v6695_v27 = vpop.f32.mrf.mxu1 }
 0x28f   :  { %1412 = vmatmul.f32.gmra.mxu2 %v6542_v10  ;;  %1474 = vmatmul.f32.gmra.mxu3 %v6390_v62 }
 0x290   :  { %1587 = vmatmul.f32.gmra.mxu0 %v6390_v62  ;;  %1700 = vmatmul.f32.gmra.mxu1 %v6390_v62 }
 0x292   :  { %v1071_v43 = vpop.f32.mrf.mxu3  ;;  %v1365_v30 = vpop.f32.mrf.mxu2 }
 0x293   :  { %v2067_v57 = vmax.f32 %v2066_v46, %v1071_v43  ;;  %v1963_v58 = vmax.f32 %v1962_v50, %v1365_v30 }
 0x295   :  { %v6701_v25 = vpop.f32.mrf.mxu0  ;;  %v6703_v34 = vpop.f32.mrf.mxu1 }
 0x297   :  { %1415 = vmatmul.f32.gmra.mxu2 %v6553_v31  ;;  %1477 = vmatmul.f32.gmra.mxu3 %v6398_v4 }
 0x298   :  { %1590 = vmatmul.f32.gmra.mxu0 %v6398_v4  ;;  %1703 = vmatmul.f32.gmra.mxu1 %v6398_v4  ;;  %v910_v4 = vld [vmem:[#allocation10 + $0x178] sm:$0xff] }
 0x299   :  { %1792 = vmatpush.msra.mxu2 %v910_v4 }
 0x29a   :  { %v1074_v39 = vpop.f32.mrf.mxu3  ;;  %v1368_v49 = vpop.f32.mrf.mxu2 }
 0x29b   :  { %v2068_v10 = vmax.f32 %v2067_v57, %v1074_v39  ;;  %v1964_v62 = vmax.f32 %v1963_v58, %v1368_v49 }
 0x29d   :  { %v6709_v46 = vpop.f32.mrf.mxu0  ;;  %v6711_v50 = vpop.f32.mrf.mxu1 }
 0x29f   :  { %1418 = vmatmul.f32.gmra.mxu2 %v6564_v51  ;;  %1480 = vmatmul.f32.gmra.mxu3 %v6406_v11 }
 0x2a0   :  { %1593 = vmatmul.f32.gmra.mxu0 %v6406_v11  ;;  %1706 = vmatmul.f32.gmra.mxu1 %v6406_v11 }
 0x2a2   :  { %v1077_v55 = vpop.f32.mrf.mxu3  ;;  %v1371_v43 = vpop.f32.mrf.mxu2 }
 0x2a3   :  { %v2069_v30 = vmax.f32 %v2068_v10, %v1077_v55  ;;  %v1965_v31 = vmax.f32 %v1964_v62, %v1371_v43  ;;  %v1916_v43 = vmax.f32 %v6478_v8, %v6489_v15  ;;  %v894_v8 = vld [vmem:[#allocation10 + $0xf8] sm:$0xff] }
 0x2a5   :  { %v6717_v57 = vpop.f32.mrf.mxu0  ;;  %v6719_v58 = vpop.f32.mrf.mxu1 }
 0x2a7   :  { %1421 = vmatmul.f32.gmra.mxu2 %v6575_v5  ;;  %1483 = vmatmul.f32.gmra.mxu3 %v6414_v17 }
 0x2a8   :  { %1596 = vmatmul.f32.gmra.mxu0 %v6414_v17  ;;  %1709 = vmatmul.f32.gmra.mxu1 %v6414_v17 }
 0x2aa   :  { %v1080_v39 = vpop.f32.mrf.mxu3  ;;  %v1374_v49 = vpop.f32.mrf.mxu2 }
 0x2ab   :  { %v2070_v51 = vmax.f32 %v2069_v30, %v1080_v39  ;;  %v1966_v11 = vmax.f32 %v1965_v31, %v1374_v49  ;;  %v902_v31 = vld [vmem:[#allocation10 + $0x138] sm:$0xff]  ;;  %v1937_v39 = vmax.f32 %v6480_v9, %v6491_v16  ;;  %v1917_v49 = vmax.f32 %v1916_v43, %v6500_v24 }
 0x2ac   :  { %1793 = vmatpush.msra.mxu2 %v902_v31 }
 0x2ad   :  { %v6725_v10 = vpop.f32.mrf.mxu0  ;;  %v6727_v62 = vpop.f32.mrf.mxu1 }
 0x2ae   :  { %8059 = vst [vmem:[#allocation75_spill] sm:$0xff] %v6727_v62  ;;  %v1918_v62 = vmax.f32 %v1917_v49, %v6511_v35  ;;  %1794 = vmatpush.msra.mxu2 %v894_v8 }
 0x2af   :  { %1424 = vmatmul.f32.gmra.mxu2 %v6586_v0  ;;  %1486 = vmatmul.f32.gmra.mxu3 %v6422_v23 }
 0x2b0   :  { %1599 = vmatmul.f32.gmra.mxu0 %v6422_v23  ;;  %1712 = vmatmul.f32.gmra.mxu1 %v6422_v23  ;;  %v1938_v23 = vmax.f32 %v1937_v39, %v6502_v26  ;;  %v1919_v9 = vmax.f32 %v1918_v62, %v6522_v47  ;;  %v886_v26 = vld [vmem:[#allocation10 + $0xb8] sm:$0xff] }
 0x2b1   :  { %1795 = vmatpush.msra.mxu2 %v886_v26  ;;  %v8063_v26 = vld [vmem:[#allocation68_spill] sm:$0xff] }
 0x2b2   :  { %v1083_v4 = vpop.f32.mrf.mxu3  ;;  %v1377_v55 = vpop.f32.mrf.mxu2  ;;  %v1920_v35 = vmax.f32 %v1919_v9, %v6533_v60 }
 0x2b3   :  { %v2071_v5 = vmax.f32 %v2070_v51, %v1083_v4  ;;  %v1967_v30 = vmax.f32 %v1966_v11, %v1377_v55  ;;  %v1939_v11 = vmax.f32 %v1938_v23, %v6513_v36  ;;  %v878_v36 = vld [vmem:[#allocation10 + $0x78] sm:$0xff] }
 0x2b4   :  { %v1921_v55 = vmax.f32 %v1920_v35, %v6544_v12  ;;  %1796 = vmatpush.msra.mxu2 %v878_v36  ;;  %v8064_v35 = vld [vmem:[#allocation50_spill] sm:$0xff]  ;;  %v8067_v36 = vld [vmem:[#allocation71_spill] sm:$0xff] }
 0x2b5   :  { %v6738_v0 = vpop.f32.mrf.mxu0  ;;  %v6740_v17 = vpop.f32.mrf.mxu1  ;;  %v1940_v15 = vmax.f32 %v1939_v11, %v6524_v48  ;;  %v870_v48 = vld [vmem:[#allocation10 + $0x38] sm:$0xff]  ;;  %v8060_v11 = vld [vmem:[#allocation64_spill] sm:$0xff] }
 0x2b6   :  { %v1922_v62 = vmax.f32 %v1921_v55, %v6555_v33  ;;  %1797 = vmatpush.msra.mxu2 %v870_v48  ;;  %v2105_v33 = vmax.f32 %v6655_v45, %v6663_v21 }
 0x2b7   :  { %1427 = vmatmul.f32.gmra.mxu2 %v6597_v19  ;;  %1489 = vmatmul.f32.gmra.mxu3 %v6430_v32  ;;  %v1941_v23 = vmax.f32 %v1940_v15, %v6535_v61  ;;  %v8061_v15 = vld [vmem:[#allocation66_spill] sm:$0xff] }
 0x2b8   :  { %1602 = vmatmul.f32.gmra.mxu0 %v6430_v32  ;;  %1715 = vmatmul.f32.gmra.mxu1 %v6430_v32  ;;  %v1923_v61 = vmax.f32 %v1922_v62, %v6566_v53  ;;  %v2106_v53 = vmax.f32 %v2105_v33, %v6671_v29 }
 0x2b9   :  { %v1942_v47 = vmax.f32 %v1941_v23, %v6546_v13  ;;  %v2084_v13 = vmax.f32 %v6653_v28, %v6661_v3  ;;  %v8062_v3 = vld [vmem:[#allocation67_spill] sm:$0xff]  ;;  %v8066_v23 = vld [vmem:[#allocation70_spill] sm:$0xff] }
 0x2ba   :  { %v1086_v16 = vpop.f32.mrf.mxu3  ;;  %v1380_v24 = vpop.f32.mrf.mxu2  ;;  %v1924_v39 = vmax.f32 %v1923_v61, %v6577_v6  ;;  %v2107_v21 = vmax.f32 %v2106_v53, %v6679_v7 }
 0x2bb   :  { %v2072_v51 = vmax.f32 %v2071_v5, %v1086_v16  ;;  %v1968_v4 = vmax.f32 %v1967_v30, %v1380_v24  ;;  %v1943_v60 = vmax.f32 %v1942_v47, %v6557_v38  ;;  %v2085_v9 = vmax.f32 %v2084_v13, %v6669_v1 }
 0x2bd   :  { %v6754_v43 = vpop.f32.mrf.mxu0  ;;  %v6756_v31 = vpop.f32.mrf.mxu1  ;;  %v1944_v12 = vmax.f32 %v1943_v60, %v6568_v54  ;;  %v1925_v54 = vmax.f32 %v1924_v39, %v8061_v15  ;;  %v2086_v45 = vmax.f32 %v2085_v9, %v6677_v20 }
 0x2bf   :  { %1430 = vmatmul.f32.gmra.mxu2 %v6608_v18  ;;  %1492 = vmatmul.f32.gmra.mxu3 %v6438_v44  ;;  %v1945_v8 = vmax.f32 %v1944_v12, %v8060_v11  ;;  %v1926_v6 = vmax.f32 %v1925_v54, %v8063_v26  ;;  %v2087_v29 = vmax.f32 %v2086_v45, %v6685_v14 }
 0x2c0   :  { %1605 = vmatmul.f32.gmra.mxu0 %v6438_v44  ;;  %1718 = vmatmul.f32.gmra.mxu1 %v6438_v44 }
 0x2c1   :  { %v1946_v28 = vmax.f32 %v1945_v8, %v8062_v3  ;;  %v1927_v20 = vmax.f32 %v1926_v6, %v8066_v23  ;;  %v2088_v55 = vmax.f32 %v2087_v29, %v6693_v37 }
 0x2c2   :  { %v1089_v5 = vpop.f32.mrf.mxu3  ;;  %v1383_v30 = vpop.f32.mrf.mxu2 }
 0x2c3   :  { %v2073_v38 = vmax.f32 %v2072_v51, %v1089_v5  ;;  %v1969_v49 = vmax.f32 %v1968_v4, %v1383_v30  ;;  %v8065_v51 = vld [vmem:[#allocation69_spill] sm:$0xff]  ;;  %v2108_v4 = vmax.f32 %v2107_v21, %v6687_v22  ;;  %v1928_v60 = vmax.f32 %v1927_v20, %v6621_v2 }
 0x2c4   :  { %v1947_v1 = vmax.f32 %v1946_v28, %v8065_v51  ;;  %v2089_v12 = vmax.f32 %v2088_v55, %v6701_v25  ;;  %v8071_v28 = vld [vmem:[#allocation52_spill] sm:$0xff] }
 0x2c5   :  { %v1205_v16 = vpop.f32.mrf.mxu0  ;;  %v1318_v24 = vpop.f32.mrf.mxu1  ;;  %v2109_v47 = vmax.f32 %v2108_v4, %v6695_v27  ;;  %v1929_v33 = vmax.f32 %v1928_v60, %v6632_v41 }
 0x2c6   :  { %v1948_v7 = vmax.f32 %v1947_v1, %v8067_v36  ;;  %v2090_v27 = vmax.f32 %v2089_v12, %v6709_v46 }
 0x2c7   :  { %1433 = vmatmul.f32.gmra.mxu2 %v6619_v59  ;;  %1495 = vmatmul.f32.gmra.mxu3 %v8064_v35  ;;  %v2110_v13 = vmax.f32 %v2109_v47, %v6703_v34  ;;  %v1930_v2 = vmax.f32 %v1929_v33, %v6643_v56  ;;  %v8069_v34 = vld [vmem:[#allocation75_spill] sm:$0xff] }
 0x2c8   :  { %1608 = vmatmul.f32.gmra.mxu0 %v8064_v35  ;;  %1721 = vmatmul.f32.gmra.mxu1 %v8064_v35  ;;  %v1949_v22 = vmax.f32 %v1948_v7, %v6623_v52  ;;  %v2091_v25 = vmax.f32 %v2090_v27, %v6717_v57 }
 0x2c9   :  { %v2111_v39 = vmax.f32 %v2110_v13, %v6711_v50 }
 0x2ca   :  { %v1092_v48 = vpop.f32.mrf.mxu3  ;;  %v1386_v62 = vpop.f32.mrf.mxu2  ;;  %v1950_v37 = vmax.f32 %v1949_v22, %v6634_v42  ;;  %v2092_v42 = vmax.f32 %v2091_v25, %v6725_v10  ;;  %v8070_v10 = vld [vmem:[#allocation73_spill] sm:$0xff] }
 0x2cb   :  { %v2074_v61 = vmax.f32 %v2073_v38, %v1092_v48  ;;  %v1970_v14 = vmax.f32 %v1969_v49, %v1386_v62  ;;  %v8068_v38 = vld [vmem:[#allocation51_spill] sm:$0xff]  ;;  %v2112_v41 = vmax.f32 %v2111_v39, %v6719_v58  ;;  %v1931_v49 = vrot.slane %v1930_v2, 4  ;;  %v8073_v48 = vld [vmem:[#allocation53_spill] sm:$0xff]  ;;  %v8074_v62 = vld [vmem:[#allocation40_spill] sm:$0xff] }
 0x2cc   :  { %v1951_v52 = vmax.f32 %v1950_v37, %v6645_v63  ;;  %v2093_v63 = vmax.f32 %v2092_v42, %v6738_v0  ;;  %v8072_v0 = vld [vmem:[#allocation74_spill] sm:$0xff]  ;;  %v6825_v39 = vld [vmem:[#allocation11] sm:$0xff] }
 0x2cd   :  { %v1208_v5 = vpop.f32.mrf.mxu0  ;;  %v1321_v30 = vpop.f32.mrf.mxu1  ;;  %v2113_v46 = vmax.f32 %v2112_v41, %v8069_v34  ;;  %v1932_v3 = vmax.f32 %v1930_v2, %v1931_v49  ;;  %v2234_v49 = vperm.slane %v6825_v39, 1 }
 0x2ce   :  { %v1952_v9 = vrot.slane %v1951_v52, 4  ;;  %v2094_v15 = vmax.f32 %v2093_v63, %v6754_v43  ;;  %v8076_v63 = vld [vmem:[#allocation41_spill] sm:$0xff] }
 0x2cf   :  { %1436 = vmatmul.f32.gmra.mxu2 %v6630_v40  ;;  %1498 = vmatmul.f32.gmra.mxu3 %v8068_v38  ;;  %v2114_v57 = vmax.f32 %v2113_v46, %v6740_v17  ;;  %v1910_v17 = vrot.slane %v8072_v0, 4  ;;  %v1933_v4 = vrot.slane %v1932_v3, 2 }
 0x2d0   :  { %1611 = vmatmul.f32.gmra.mxu0 %v8068_v38  ;;  %1724 = vmatmul.f32.gmra.mxu1 %v8068_v38  ;;  %v1953_v45 = vmax.f32 %v1951_v52, %v1952_v9  ;;  %v2095_v21 = vmax.f32 %v2094_v15, %v1205_v16  ;;  %v8075_v9 = vld [vmem:[#allocation54_spill] sm:$0xff] }
 0x2d1   :  { %v2115_v54 = vmax.f32 %v2114_v57, %v6756_v31  ;;  %v1911_v16 = vmax.f32 %v8072_v0, %v1910_v17  ;;  %v1934_v60 = vmax.f32 %v1932_v3, %v1933_v4 }
 0x2d2   :  { %v1095_v50 = vpop.f32.mrf.mxu3  ;;  %v1389_v56 = vpop.f32.mrf.mxu2  ;;  %v2096_v6 = vmax.f32 %v2095_v21, %v1208_v5  ;;  %v1954_v23 = vrot.slane %v1953_v45, 2 }
 0x2d3   :  { %v2075_v11 = vmax.f32 %v2074_v61, %v1095_v50  ;;  %v1971_v8 = vmax.f32 %v1970_v14, %v1389_v56  ;;  %v2116_v26 = vmax.f32 %v2115_v54, %v1318_v24  ;;  %v1912_v12 = vrot.slane %v1911_v16, 2 }
 0x2d4   :  { %v1955_v61 = vmax.f32 %v1953_v45, %v1954_v23  ;;  %v1935_v27 = vrot.slane %v1934_v60, 1  ;;  %v2233_v23 = vperm.slane %v6825_v39, 0 }
 0x2d5   :  { %v1211_v53 = vpop.f32.mrf.mxu0  ;;  %v1324_v58 = vpop.f32.mrf.mxu1  ;;  %v2117_v51 = vmax.f32 %v2116_v26, %v1321_v30  ;;  %v1913_v41 = vmax.f32 %v1911_v16, %v1912_v12 }
 0x2d6   :  { %v2097_v20 = vmax.f32 %v2096_v6, %v1211_v53  ;;  %v1956_v2 = vrot.slane %v1955_v61, 1  ;;  %v1936_v57 = vmax.f32 %v1934_v60, %v1935_v27 }
 0x2d7   :  { %1439 = vmatmul.f32.gmra.mxu2 %v8070_v10  ;;  %1501 = vmatmul.f32.gmra.mxu3 %v8071_v28  ;;  %v2118_v36 = vmax.f32 %v2117_v51, %v1324_v58  ;;  %v1914_v54 = vrot.slane %v1913_v41, 1 }
 0x2d8   :  { %1614 = vmatmul.f32.gmra.mxu0 %v8071_v28  ;;  %1727 = vmatmul.f32.gmra.mxu1 %v8071_v28  ;;  %v1957_v53 = vmax.f32 %v1955_v61, %v1956_v2  ;;  %v2250_v51 = vadd.f32 %v2234_v49, %v1936_v57 }
 0x2d9   :  { %v1915_v4 = vmax.f32 %v1913_v41, %v1914_v54  ;;  %v8084_v54 = vld [vmem:[#allocation57_spill] sm:$0xff] }
 0x2da   :  { %v1098_v1 = vpop.f32.mrf.mxu3  ;;  %v1392_v43 = vpop.f32.mrf.mxu2  ;;  %v2266_v60 = vmax.f32 %v2250_v51, 0.0  ;;  %v8086_v51 = vld [vmem:[#allocation58_spill] sm:$0xff] }
 0x2db   :  { %v2076_v29 = vmax.f32 %v2075_v11, %v1098_v1  ;;  %v6818_v31 = vmax.f32 %v1971_v8, %v1392_v43  ;;  %v2235_v11 = vperm.slane %v6825_v39, 2  ;;  %v2249_v12 = vadd.f32 %v2233_v23, %v1915_v4 }
 0x2dd   :  { %v1214_v24 = vpop.f32.mrf.mxu0  ;;  %v1327_v7 = vpop.f32.mrf.mxu1  ;;  %v2251_v1 = vadd.f32 %v2235_v11, %v1957_v53 }
 0x2de   :  { %v2098_v55 = vmax.f32 %v2097_v20, %v1214_v24  ;;  %v2119_v47 = vmax.f32 %v2118_v36, %v1327_v7 }
 0x2df   :  { %1504 = vmatmul.f32.gmra.mxu3 %v8073_v48  ;;  %1798 = vmatmul.f32.vlgmr.msra.gmra.mxu2 %v8074_v62  ;;  %v8078_v62 = vld [vmem:[#allocation42_spill] sm:$0xff] }
 0x2e0   :  { %v2099_v14 = vrot.slane %v2098_v55, 4  ;;  %v2120_v22 = vrot.slane %v2119_v47, 4  ;;  %1617 = vmatmul.f32.gmra.mxu0 %v8073_v48  ;;  %1730 = vmatmul.f32.gmra.mxu1 %v8073_v48 }
 0x2e2   :  { %v2100_v13 = vmax.f32 %v2098_v55, %v2099_v14  ;;  %v2121_v33 = vmax.f32 %v2119_v47, %v2120_v22  ;;  %v1101_v5 = vpop.f32.mrf.mxu3  ;;  %v1395_v30 = vpop.f32.mrf.mxu2  ;;  %v8077_v47 = vld [vmem:[#allocation55_spill] sm:$0xff]  ;;  %v2267_v14 = vmax.f32 %v2251_v1, 0.0  ;;  %v8087_v1 = vld [vmem:[#allocation45_spill] sm:$0xff] }
 0x2e3   :  { %v2077_v37 = vmax.f32 %v2076_v29, %v1101_v5 }
 0x2e4   :  { %v2101_v52 = vrot.slane %v2100_v13, 2  ;;  %v2122_v25 = vrot.slane %v2121_v33, 2 }
 0x2e5   :  { %v2078_v42 = vrot.slane %v2077_v37, 4  ;;  %v6827_v34 = vpop.f32.mrf.mxu0  ;;  %v6829_v46 = vpop.f32.mrf.mxu1 }
 0x2e6   :  { %v2102_v50 = vmax.f32 %v2100_v13, %v2101_v52  ;;  %v2123_v56 = vmax.f32 %v2121_v33, %v2122_v25 }
 0x2e7   :  { %v2079_v8 = vmax.f32 %v2077_v37, %v2078_v42  ;;  %1507 = vmatmul.f32.gmra.mxu3 %v8075_v9  ;;  %1801 = vmatmul.f32.gmra.mxu2 %v8076_v63  ;;  %v2265_v42 = vmax.f32 %v2249_v12, 0.0 }
 0x2e8   :  { %v2103_v58 = vrot.slane %v2102_v50, 1  ;;  %v2124_v15 = vrot.slane %v2123_v56, 1  ;;  %1620 = vmatmul.f32.gmra.mxu0 %v8075_v9  ;;  %1733 = vmatmul.f32.gmra.mxu1 %v8075_v9 }
 0x2e9   :  { %v2080_v3 = vrot.slane %v2079_v8, 2 }
 0x2ea   :  { %v2104_v45 = vmax.f32 %v2102_v50, %v2103_v58  ;;  %v2125_v21 = vmax.f32 %v2123_v56, %v2124_v15  ;;  %v1398_v26 = vpop.f32.mrf.mxu2  ;;  %v1460_v0 = vpop.f32.mrf.mxu3  ;;  %v8081_v56 = vld [vmem:[#allocation56_spill] sm:$0xff] }
 0x2eb   :  { %v2081_v17 = vmax.f32 %v2079_v8, %v2080_v3  ;;  %v2126_v6 = vmax.f32 %v1395_v30, %v1398_v26  ;;  %v8085_v3 = vld [vmem:[#allocation44_spill] sm:$0xff] }
 0x2ec   :  { %v2258_v43 = vadd.f32 %v2234_v49, %v2104_v45  ;;  %v2259_v29 = vadd.f32 %v2235_v11, %v2125_v21  ;;  %v8082_v49 = vld [vmem:[#allocation43_spill] sm:$0xff] }
 0x2ed   :  { %v2082_v20 = vrot.slane %v2081_v17, 1  ;;  %v6838_v36 = vpop.f32.mrf.mxu0  ;;  %v6840_v16 = vpop.f32.mrf.mxu1 }
 0x2ee   :  { %v2274_v24 = vmax.f32 %v2258_v43, 0.0  ;;  %v2275_v7 = vmax.f32 %v2259_v29, 0.0  ;;  %v2341_v43 = vld [vmem:[#allocation13 + $0x1e0] sm:$0xff] }
 0x2ef   :  { %v2083_v55 = vmax.f32 %v2081_v17, %v2082_v20  ;;  %1510 = vmatmul.f32.gmra.mxu3 %v8077_v47  ;;  %1804 = vmatmul.f32.gmra.mxu2 %v8078_v62  ;;  %v2333_v62 = vld [vmem:[#allocation13 + $0x1a0] sm:$0xff] }
 0x2f0   :  { %1623 = vmatmul.f32.gmra.mxu0 %v8077_v47  ;;  %1736 = vmatmul.f32.gmra.mxu1 %v8077_v47  ;;  %v2822_v61 = vrot.slane %v2274_v24, 7  ;;  %v2824_v22 = vrot.slane %v2275_v7, 7  ;;  %v2337_v24 = vld [vmem:[#allocation13 + $0x1c0] sm:$0xff] }
 0x2f1   :  { %v2257_v13 = vadd.f32 %v2233_v23, %v2083_v55  ;;  %2844 = vmatpush.msra.mxu3 %v2341_v43  ;;  %v8093_v43 = vld [vmem:[#allocation48_spill] sm:$0xff] }
 0x2f2   :  { %v1401_v33 = vpop.f32.mrf.mxu2  ;;  %v1463_v5 = vpop.f32.mrf.mxu3  ;;  %v6847_v30 = vsel %vm2820_vm3, %v2822_v61, %v2266_v60  ;;  %v6850_v37 = vsel %vm2820_vm3, %v2824_v22, %v2267_v14  ;;  %v8088_v60 = vld [vmem:[#allocation59_spill] sm:$0xff]  ;;  %v8089_v61 = vld [vmem:[#allocation46_spill] sm:$0xff]  ;;  %v2329_v14 = vld [vmem:[#allocation13 + $0x180] sm:$0xff] }
 0x2f3   :  { %8079 = vst [vmem:[#allocation64_spill] sm:$0xff] %v6847_v30  ;;  %v2273_v27 = vmax.f32 %v2257_v13, 0.0  ;;  %v2127_v2 = vmax.f32 %v2126_v6, %v1401_v33  ;;  %v1979_v52 = vmax.f32 %v1460_v0, %v1463_v5  ;;  %2845 = vmatpush.msra.mxu3 %v2337_v24  ;;  %v2325_v22 = vld [vmem:[#allocation13 + $0x160] sm:$0xff] }
 0x2f4   :  { %8080 = vst [vmem:[#allocation66_spill] sm:$0xff] %v6850_v37 }
 0x2f5   :  { %v6852_v25 = vpop.f32.mrf.mxu0  ;;  %v6854_v41 = vpop.f32.mrf.mxu1  ;;  %v2819_v50 = vrot.slane %v2273_v27, 7  ;;  %2846 = vmatpush.msra.mxu3 %v2333_v62  ;;  %v2321_v27 = vld [vmem:[#allocation13 + $0x140] sm:$0xff] }
 0x2f7   :  { %1513 = vmatmul.f32.gmra.mxu3 %v8081_v56  ;;  %1807 = vmatmul.f32.gmra.mxu2 %v8082_v49  ;;  %v6859_v11 = vsel %vm2820_vm3, %v2819_v50, %v2265_v42  ;;  %v2317_v42 = vld [vmem:[#allocation13 + $0x120] sm:$0xff]  ;;  %v8091_v49 = vld [vmem:[#allocation47_spill] sm:$0xff] }
 0x2f8   :  { %8083 = vst [vmem:[#allocation67_spill] sm:$0xff] %v6859_v11  ;;  %1626 = vmatmul.f32.gmra.mxu0 %v8081_v56  ;;  %1739 = vmatmul.f32.gmra.mxu1 %v8081_v56  ;;  %v8090_v50 = vld [vmem:[#allocation60_spill] sm:$0xff] }
 0x2f9   :  { %2847 = vmatpush.msra.mxu3 %v2329_v14 }
 0x2fa   :  { %v1404_v8 = vpop.f32.mrf.mxu2  ;;  %v1466_v63 = vpop.f32.mrf.mxu3 }
 0x2fb   :  { %v2128_v57 = vmax.f32 %v2127_v2, %v1404_v8  ;;  %v1980_v53 = vmax.f32 %v1979_v52, %v1466_v63  ;;  %2848 = vmatpush.msra.mxu3 %v2325_v22  ;;  %v2313_v8 = vld [vmem:[#allocation13 + $0x100] sm:$0xff] }
 0x2fc   :  { %v2293_v22 = vld [vmem:[#allocation13 + $0x60] sm:$0xff] }
 0x2fd   :  { %v6863_v58 = vpop.f32.mrf.mxu0  ;;  %v6865_v15 = vpop.f32.mrf.mxu1  ;;  %2849 = vmatpush.msra.mxu3 %v2321_v27 }
 0x2ff   :  { %1516 = vmatmul.f32.gmra.mxu3 %v8084_v54  ;;  %1810 = vmatmul.f32.gmra.mxu2 %v8085_v3 }
 0x300   :  { %1629 = vmatmul.f32.gmra.mxu0 %v8084_v54  ;;  %1742 = vmatmul.f32.gmra.mxu1 %v8084_v54 }
 0x301   :  { %2850 = vmatpush.msra.mxu3 %v2317_v42  ;;  %v2285_v42 = vld [vmem:[#allocation13 + $0x20] sm:$0xff] }
 0x302   :  { %v1407_v45 = vpop.f32.mrf.mxu2  ;;  %v1469_v21 = vpop.f32.mrf.mxu3 }
 0x303   :  { %v2129_v26 = vmax.f32 %v2128_v57, %v1407_v45  ;;  %v1981_v0 = vmax.f32 %v1980_v53, %v1469_v21  ;;  %v2309_v53 = vld [vmem:[#allocation13 + $0xe0] sm:$0xff]  ;;  %2851 = vmatpush.msra.mxu3 %v2313_v8 }
 0x305   :  { %v6871_v17 = vpop.f32.mrf.mxu0  ;;  %v6873_v6 = vpop.f32.mrf.mxu1  ;;  %2852 = vmatpush.msra.mxu3 %v2309_v53  ;;  %v2281_v53 = vld [vmem:[#allocation13] sm:$0xff] }
 0x307   :  { %1519 = vmatmul.f32.gmra.mxu3 %v8086_v51  ;;  %1813 = vmatmul.f32.gmra.mxu2 %v8087_v1  ;;  %v8092_v1 = vld [vmem:[#allocation61_spill] sm:$0xff] }
 0x308   :  { %1632 = vmatmul.f32.gmra.mxu0 %v8086_v51  ;;  %1745 = vmatmul.f32.gmra.mxu1 %v8086_v51 }
 0x30a   :  { %v1410_v29 = vpop.f32.mrf.mxu2  ;;  %v1472_v4 = vpop.f32.mrf.mxu3 }
 0x30b   :  { %v2130_v23 = vmax.f32 %v2129_v26, %v1410_v29  ;;  %v1982_v20 = vmax.f32 %v1981_v0, %v1472_v4  ;;  %v2305_v0 = vld [vmem:[#allocation13 + $0xc0] sm:$0xff] }
 0x30c   :  { %v2301_v29 = vld [vmem:[#allocation13 + $0xa0] sm:$0xff]  ;;  %2853 = vmatpush.msra.mxu3 %v2305_v0 }
 0x30d   :  { %v6879_v7 = vpop.f32.mrf.mxu0  ;;  %v6881_v55 = vpop.f32.mrf.mxu1  ;;  %v2401_v0 = vld [vmem:[#allocation13 + $0x3c0] sm:$0xff] }
 0x30e   :  { %2854 = vmatpush.msra.mxu3 %v2301_v29 }
 0x30f   :  { %1522 = vmatmul.f32.gmra.mxu3 %v8088_v60  ;;  %1816 = vmatmul.f32.gmra.mxu2 %v8089_v61 }
 0x310   :  { %1635 = vmatmul.f32.gmra.mxu0 %v8088_v60  ;;  %1748 = vmatmul.f32.gmra.mxu1 %v8088_v60 }
 0x312   :  { %v1413_v12 = vpop.f32.mrf.mxu2  ;;  %v1475_v13 = vpop.f32.mrf.mxu3 }
 0x313   :  { %v2131_v33 = vmax.f32 %v2130_v23, %v1413_v12  ;;  %v1983_v5 = vmax.f32 %v1982_v20, %v1475_v13  ;;  %v2297_v20 = vld [vmem:[#allocation13 + $0x80] sm:$0xff]  ;;  %v8094_v12 = vld [vmem:[#allocation62_spill] sm:$0xff] }
 0x314   :  { %2855 = vmatpush.msra.mxu3 %v2297_v20  ;;  %v8095_v13 = vld [vmem:[#allocation49_spill] sm:$0xff] }
 0x315   :  { %v6887_v2 = vpop.f32.mrf.mxu0  ;;  %v6889_v52 = vpop.f32.mrf.mxu1  ;;  %v2397_v20 = vld [vmem:[#allocation13 + $0x3a0] sm:$0xff] }
 0x316   :  { %2856 = vmatpush.msra.mxu3 %v2293_v22  ;;  %v8099_v22 = vld [vmem:[#allocation65_spill] sm:$0xff] }
 0x317   :  { %1525 = vmatmul.f32.gmra.mxu3 %v8090_v50  ;;  %1819 = vmatmul.f32.gmra.mxu2 %v8091_v49 }
 0x318   :  { %1638 = vmatmul.f32.gmra.mxu0 %v8090_v50  ;;  %1751 = vmatmul.f32.gmra.mxu1 %v8090_v50 }
 0x31a   :  { %v1416_v63 = vpop.f32.mrf.mxu2  ;;  %v1478_v57 = vpop.f32.mrf.mxu3 }
 0x31b   :  { %v2132_v3 = vmax.f32 %v2131_v33, %v1416_v63  ;;  %v1984_v45 = vmax.f32 %v1983_v5, %v1478_v57  ;;  %v2289_v33 = vld [vmem:[#allocation13 + $0x40] sm:$0xff] }
 0x31c   :  { %2857 = vmatpush.msra.mxu3 %v2289_v33 }
 0x31d   :  { %v6895_v21 = vpop.f32.mrf.mxu0  ;;  %v6897_v26 = vpop.f32.mrf.mxu1 }
 0x31e   :  { %2858 = vmatpush.msra.mxu3 %v2285_v42 }
 0x31f   :  { %1528 = vmatmul.f32.gmra.mxu3 %v8092_v1  ;;  %1822 = vmatmul.f32.gmra.mxu2 %v8093_v43 }
 0x320   :  { %1641 = vmatmul.f32.gmra.mxu0 %v8092_v1  ;;  %1754 = vmatmul.f32.gmra.mxu1 %v8092_v1 }
 0x321   :  { %2859 = vmatpush.msra.mxu3 %v2281_v53 }
 0x322   :  { %v1419_v4 = vpop.f32.mrf.mxu2  ;;  %v1481_v23 = vpop.f32.mrf.mxu3 }
 0x323   :  { %v2133_v24 = vmax.f32 %v2132_v3, %v1419_v4  ;;  %v1985_v62 = vmax.f32 %v1984_v45, %v1481_v23  ;;  %v8097_v3 = vld [vmem:[#allocation63_spill] sm:$0xff]  ;;  %v2405_v45 = vld [vmem:[#allocation13 + $0x3e0] sm:$0xff] }
 0x324   :  { %2864 = vmatpush.msrb.mxu3 %v2405_v45  ;;  %v2381_v45 = vld [vmem:[#allocation13 + $0x320] sm:$0xff] }
 0x325   :  { %v6903_v61 = vpop.f32.mrf.mxu0  ;;  %v6905_v14 = vpop.f32.mrf.mxu1  ;;  %v2357_v23 = vld [vmem:[#allocation13 + $0x260] sm:$0xff] }
 0x326   :  { %2865 = vmatpush.msrb.mxu3 %v2401_v0 }
 0x327   :  { %1531 = vmatmul.f32.gmra.mxu3 %v8094_v12  ;;  %1825 = vmatmul.f32.gmra.mxu2 %v8095_v13  ;;  %v2389_v13 = vld [vmem:[#allocation13 + $0x360] sm:$0xff] }
 0x328   :  { %1644 = vmatmul.f32.gmra.mxu0 %v8094_v12  ;;  %1757 = vmatmul.f32.gmra.mxu1 %v8094_v12 }
 0x329   :  { %2866 = vmatpush.msrb.mxu3 %v2397_v20 }
 0x32a   :  { %v1422_v5 = vpop.f32.mrf.mxu2  ;;  %v1484_v27 = vpop.f32.mrf.mxu3 }
 0x32b   :  { %v2134_v49 = vmax.f32 %v2133_v24, %v1422_v5  ;;  %v6911_v8 = vmax.f32 %v1985_v62, %v1484_v27  ;;  %v2393_v62 = vld [vmem:[#allocation13 + $0x380] sm:$0xff] }
 0x32c   :  { %2867 = vmatpush.msrb.mxu3 %v2393_v62  ;;  %v2385_v27 = vld [vmem:[#allocation13 + $0x340] sm:$0xff] }
 0x32d   :  { %8096 = vst [vmem:[#allocation68_spill] sm:$0xff] %v6911_v8  ;;  %v6913_v63 = vpop.f32.mrf.mxu0  ;;  %v6915_v57 = vpop.f32.mrf.mxu1  ;;  %v2521_v8 = vld [vmem:[#allocation13 + $0x780] sm:$0xff] }
 0x32e   :  { %2868 = vmatpush.msrb.mxu3 %v2389_v13 }
 0x32f   :  { %1534 = vmatmul.f32.gmra.mxu3 %v8097_v3  ;;  %1828 = vmatmul.f32.gmra.mxu2 %v6430_v32 }
 0x330   :  { %1647 = vmatmul.f32.gmra.mxu0 %v8097_v3  ;;  %1760 = vmatmul.f32.gmra.mxu1 %v8097_v3 }
 0x331   :  { %2869 = vmatpush.msrb.mxu3 %v2385_v27 }
 0x332   :  { %v1425_v43 = vpop.f32.mrf.mxu2  ;;  %v6921_v29 = vpop.f32.mrf.mxu3 }
 0x333   :  { %8098 = vst [vmem:[#allocation50_spill] sm:$0xff] %v6921_v29  ;;  %v2135_v4 = vmax.f32 %v2134_v49, %v1425_v43  ;;  %2870 = vmatpush.msrb.mxu3 %v2381_v45 }
 0x335   :  { %v6925_v24 = vpop.f32.mrf.mxu0  ;;  %v6927_v32 = vpop.f32.mrf.mxu1 }
 0x337   :  { %1537 = vmatmul.f32.gmra.mxu3 %v8099_v22  ;;  %1831 = vmatmul.f32.gmra.mxu2 %v6438_v44  ;;  %v2377_v44 = vld [vmem:[#allocation13 + $0x300] sm:$0xff] }
 0x338   :  { %1650 = vmatmul.f32.gmra.mxu0 %v8099_v22  ;;  %1763 = vmatmul.f32.gmra.mxu1 %v8099_v22 }
 0x339   :  { %2871 = vmatpush.msrb.mxu3 %v2377_v44 }
 0x33a   :  { %v1428_v33 = vpop.f32.mrf.mxu2  ;;  %v6933_v5 = vpop.f32.mrf.mxu3 }
 0x33b   :  { %8100 = vst [vmem:[#allocation69_spill] sm:$0xff] %v6933_v5  ;;  %v2136_v42 = vmax.f32 %v2135_v4, %v1428_v33  ;;  %v2373_v4 = vld [vmem:[#allocation13 + $0x2e0] sm:$0xff] }
 0x33c   :  { %2872 = vmatpush.msrb.mxu3 %v2373_v4  ;;  %v2369_v33 = vld [vmem:[#allocation13 + $0x2c0] sm:$0xff] }
 0x33d   :  { %v6935_v49 = vpop.f32.mrf.mxu0  ;;  %v6937_v53 = vpop.f32.mrf.mxu1  ;;  %v2517_v5 = vld [vmem:[#allocation13 + $0x760] sm:$0xff] }
 0x33e   :  { %2873 = vmatpush.msrb.mxu3 %v2369_v33  ;;  %v1973_v33 = vrot.slane %v6818_v31, 4 }
 0x33f   :  { %1540 = vmatmul.f32.gmra.mxu3 %v6597_v19  ;;  %1834 = vmatmul.f32.gmra.mxu2 %v8064_v35  ;;  %v2365_v35 = vld [vmem:[#allocation13 + $0x2a0] sm:$0xff] }
 0x340   :  { %1653 = vmatmul.f32.gmra.mxu0 %v6597_v19  ;;  %1766 = vmatmul.f32.gmra.mxu1 %v6597_v19 }
 0x341   :  { %2874 = vmatpush.msrb.mxu3 %v2365_v35 }
 0x342   :  { %v1431_v0 = vpop.f32.mrf.mxu2  ;;  %v6943_v43 = vpop.f32.mrf.mxu3 }
 0x343   :  { %8101 = vst [vmem:[#allocation70_spill] sm:$0xff] %v6943_v43  ;;  %v2137_v20 = vmax.f32 %v2136_v42, %v1431_v0  ;;  %v2361_v42 = vld [vmem:[#allocation13 + $0x280] sm:$0xff] }
 0x344   :  { %2875 = vmatpush.msrb.mxu3 %v2361_v42  ;;  %v1974_v42 = vmax.f32 %v6818_v31, %v1973_v33 }
 0x345   :  { %v6945_v62 = vpop.f32.mrf.mxu0  ;;  %v6947_v13 = vpop.f32.mrf.mxu1 }
 0x346   :  { %2876 = vmatpush.msrb.mxu3 %v2357_v23  ;;  %v1975_v23 = vrot.slane %v1974_v42, 2 }
 0x347   :  { %1543 = vmatmul.f32.gmra.mxu3 %v6608_v18  ;;  %1837 = vmatmul.f32.gmra.mxu2 %v8068_v38  ;;  %v2353_v38 = vld [vmem:[#allocation13 + $0x240] sm:$0xff] }
 0x348   :  { %1656 = vmatmul.f32.gmra.mxu0 %v6608_v18  ;;  %1769 = vmatmul.f32.gmra.mxu1 %v6608_v18  ;;  %v1976_v33 = vmax.f32 %v1974_v42, %v1975_v23  ;;  %v2236_v23 = vperm.slane %v6825_v39, 3 }
 0x349   :  { %2877 = vmatpush.msrb.mxu3 %v2353_v38 }
 0x34a   :  { %v1434_v27 = vpop.f32.mrf.mxu2  ;;  %v6953_v45 = vpop.f32.mrf.mxu3 }
 0x34b   :  { %8102 = vst [vmem:[#allocation71_spill] sm:$0xff] %v6953_v45  ;;  %v2138_v44 = vmax.f32 %v2137_v20, %v1434_v27  ;;  %v2349_v27 = vld [vmem:[#allocation13 + $0x220] sm:$0xff] }
 0x34c   :  { %2878 = vmatpush.msrb.mxu3 %v2349_v27 }
 0x34d   :  { %v6955_v0 = vpop.f32.mrf.mxu0  ;;  %v6957_v4 = vpop.f32.mrf.mxu1 }
 0x34e   :  { %8103 = vst [vmem:[#allocation51_spill] sm:$0xff] %v6955_v0 }
 0x34f   :  { %8104 = vst [vmem:[#allocation75_spill] sm:$0xff] %v6957_v4  ;;  %1546 = vmatmul.f32.gmra.mxu3 %v6619_v59  ;;  %1840 = vmatmul.f32.gmra.mxu2 %v8071_v28  ;;  %v2345_v28 = vld [vmem:[#allocation13 + $0x200] sm:$0xff] }
 0x350   :  { %1659 = vmatmul.f32.gmra.mxu0 %v6619_v59  ;;  %1772 = vmatmul.f32.gmra.mxu1 %v6619_v59 }
 0x351   :  { %2879 = vmatpush.msrb.mxu3 %v2345_v28 }
 0x352   :  { %v1437_v20 = vpop.f32.mrf.mxu2  ;;  %v6964_v35 = vpop.f32.mrf.mxu3 }
 0x353   :  { %8105 = vst [vmem:[#allocation52_spill] sm:$0xff] %v6964_v35  ;;  %v2139_v35 = vmax.f32 %v2138_v44, %v1437_v20 }
 0x355   :  { %v6967_v45 = vpop.f32.mrf.mxu0  ;;  %v6969_v43 = vpop.f32.mrf.mxu1 }
 0x356   :  { %8106 = vst [vmem:[#allocation74_spill] sm:$0xff] %v6967_v45 }
 0x357   :  { %8107 = vst [vmem:[#allocation53_spill] sm:$0xff] %v6969_v43  ;;  %1549 = vmatmul.f32.gmra.mxu3 %v6630_v40  ;;  %1843 = vmatmul.f32.gmra.mxu2 %v8073_v48  ;;  %v1977_v48 = vrot.slane %v1976_v33, 1 }
 0x358   :  { %1662 = vmatmul.f32.gmra.mxu0 %v6630_v40  ;;  %1775 = vmatmul.f32.gmra.mxu1 %v6630_v40  ;;  %v2461_v40 = vld [vmem:[#allocation13 + $0x5a0] sm:$0xff] }
 0x359   :  { %v1978_v28 = vmax.f32 %v1976_v33, %v1977_v48 }
 0x35a   :  { %v1440_v38 = vpop.f32.mrf.mxu2  ;;  %v6975_v4 = vpop.f32.mrf.mxu3 }
 0x35b   :  { %8108 = vst [vmem:[#allocation40_spill] sm:$0xff] %v6975_v4  ;;  %v2140_v31 = vmax.f32 %v2139_v35, %v1440_v38 }
 0x35d   :  { %v2141_v45 = vrot.slane %v2140_v31, 4  ;;  %v6977_v43 = vpop.f32.mrf.mxu0  ;;  %v6979_v27 = vpop.f32.mrf.mxu1 }
 0x35e   :  { %8109 = vst [vmem:[#allocation54_spill] sm:$0xff] %v6977_v43 }
 0x35f   :  { %8110 = vst [vmem:[#allocation41_spill] sm:$0xff] %v6979_v27  ;;  %v2142_v0 = vmax.f32 %v2140_v31, %v2141_v45  ;;  %1552 = vmatmul.f32.gmra.mxu3 %v8070_v10  ;;  %1846 = vmatmul.f32.gmra.mxu2 %v8075_v9  ;;  %v2469_v31 = vld [vmem:[#allocation13 + $0x5e0] sm:$0xff]  ;;  %v2252_v27 = vadd.f32 %v2236_v23, %v1978_v28 }
 0x360   :  { %1665 = vmatmul.f32.gmra.mxu0 %v8070_v10  ;;  %1778 = vmatmul.f32.gmra.mxu1 %v8070_v10  ;;  %v2465_v10 = vld [vmem:[#allocation13 + $0x5c0] sm:$0xff] }
 0x361   :  { %v2143_v44 = vrot.slane %v2142_v0, 2 }
 0x362   :  { %v6985_v20 = vpop.f32.mrf.mxu3  ;;  %v1799_v35 = vpop.f32.mrf.mxu2 }
 0x363   :  { %8111 = vst [vmem:[#allocation55_spill] sm:$0xff] %v6985_v20  ;;  %v2144_v42 = vmax.f32 %v2142_v0, %v2143_v44  ;;  %v2457_v44 = vld [vmem:[#allocation13 + $0x580] sm:$0xff] }
 0x365   :  { %v2145_v38 = vrot.slane %v2144_v42, 1  ;;  %v6988_v4 = vpop.f32.mrf.mxu0  ;;  %v6990_v45 = vpop.f32.mrf.mxu1 }
 0x367   :  { %v2146_v9 = vmax.f32 %v2144_v42, %v2145_v38  ;;  %1849 = vmatmul.f32.gmra.mxu2 %v8077_v47  ;;  %2860 = vmatmul.f32.vlgmr.msra.gmra.mxu3 %v6859_v11  ;;  %v2453_v47 = vld [vmem:[#allocation13 + $0x560] sm:$0xff]  ;;  %v2268_v38 = vmax.f32 %v2252_v27, 0.0 }
 0x368   :  { %2884 = vmatpush.msra.mxu3 %v2469_v31  ;;  %v2441_v31 = vld [vmem:[#allocation13 + $0x500] sm:$0xff] }
 0x369   :  { %v2260_v20 = vadd.f32 %v2236_v23, %v2146_v9 }
 0x36a   :  { %2885 = vmatpush.msra.mxu3 %v2465_v10  ;;  %v6994_v0 = vpop.f32.mrf.mxu3  ;;  %v1802_v39 = vpop.f32.mrf.mxu2  ;;  %v2449_v10 = vld [vmem:[#allocation13 + $0x540] sm:$0xff] }
 0x36b   :  { %v2276_v33 = vmax.f32 %v2260_v20, 0.0  ;;  %v2042_v48 = vmax.f32 %v1799_v35, %v1802_v39  ;;  %v2445_v20 = vld [vmem:[#allocation13 + $0x520] sm:$0xff] }
 0x36c   :  { %2886 = vmatpush.msra.mxu3 %v2461_v40  ;;  %v2433_v39 = vld [vmem:[#allocation13 + $0x4c0] sm:$0xff] }
 0x36d   :  { %v6996_v43 = vpop.f32.mrf.mxu0  ;;  %v6998_v42 = vpop.f32.mrf.mxu1  ;;  %v2826_v11 = vrot.slane %v2276_v33, 7 }
 0x36e   :  { %2887 = vmatpush.msra.mxu3 %v2457_v44 }
 0x36f   :  { %1852 = vmatmul.f32.gmra.mxu2 %v8081_v56  ;;  %2880 = vmatmul.f32.vlgmr.msrb.gmra.mxu3 %v6847_v30  ;;  %v7003_v28 = vsel %vm2820_vm3, %v2826_v11, %v2268_v38  ;;  %v2437_v56 = vld [vmem:[#allocation13 + $0x4e0] sm:$0xff] }
 0x370   :  { %8112 = vst [vmem:[#allocation42_spill] sm:$0xff] %v7003_v28  ;;  %2888 = vmatpush.msra.mxu3 %v2453_v47  ;;  %v2429_v11 = vld [vmem:[#allocation13 + $0x4a0] sm:$0xff] }
 0x371   :  { %v2425_v38 = vld [vmem:[#allocation13 + $0x480] sm:$0xff] }
 0x372   :  { %2889 = vmatpush.msra.mxu3 %v2449_v10  ;;  %v7005_v40 = vpop.f32.mrf.mxu3  ;;  %v1805_v35 = vpop.f32.mrf.mxu2 }
 0x373   :  { %v2043_v23 = vmax.f32 %v2042_v48, %v1805_v35  ;;  %v2417_v35 = vld [vmem:[#allocation13 + $0x440] sm:$0xff] }
 0x374   :  { %2890 = vmatpush.msra.mxu3 %v2445_v20  ;;  %v2421_v20 = vld [vmem:[#allocation13 + $0x460] sm:$0xff] }
 0x375   :  { %v7007_v27 = vpop.f32.mrf.mxu0  ;;  %v7009_v9 = vpop.f32.mrf.mxu1 }
 0x376   :  { %2891 = vmatpush.msra.mxu3 %v2441_v31 }
 0x377   :  { %1855 = vmatmul.f32.gmra.mxu2 %v8084_v54  ;;  %v2413_v54 = vld [vmem:[#allocation13 + $0x420] sm:$0xff] }
 0x378   :  { %2892 = vmatpush.msra.mxu3 %v2437_v56 }
 0x37a   :  { %2893 = vmatpush.msra.mxu3 %v2433_v39  ;;  %v7012_v33 = vpop.f32.mrf.mxu3  ;;  %v1808_v44 = vpop.f32.mrf.mxu2  ;;  %v2471_v39 = vld [vmem:[#allocation13 + $0x5f0] sm:$0xff] }
 0x37b   :  { %v2044_v47 = vmax.f32 %v2043_v23, %v1808_v44  ;;  %v2409_v23 = vld [vmem:[#allocation13 + $0x400] sm:$0xff]  ;;  %3204 = vmatpush.msrb.mxu2 %v2471_v39 }
 0x37c   :  { %2894 = vmatpush.msra.mxu3 %v2429_v11  ;;  %v2467_v11 = vld [vmem:[#allocation13 + $0x5d0] sm:$0xff] }
 0x37d   :  { %v7014_v48 = vpop.f32.mrf.mxu0  ;;  %v7016_v10 = vpop.f32.mrf.mxu1  ;;  %3205 = vmatpush.msrb.mxu2 %v2467_v11  ;;  %v2597_v11 = vld [vmem:[#allocation13 + $0x9e0] sm:$0xff] }
 0x37e   :  { %2895 = vmatpush.msra.mxu3 %v2425_v38  ;;  %v2533_v38 = vld [vmem:[#allocation13 + $0x7e0] sm:$0xff]  ;;  %2924 = vmatpush.msrb.mxu0 %v2597_v11 }
 0x37f   :  { %1858 = vmatmul.f32.gmra.mxu2 %v8086_v51  ;;  %v2463_v51 = vld [vmem:[#allocation13 + $0x5b0] sm:$0xff]  ;;  %v2505_v11 = vld [vmem:[#allocation13 + $0x700] sm:$0xff] }
 0x380   :  { %2896 = vmatpush.msra.mxu3 %v2421_v20  ;;  %v2529_v20 = vld [vmem:[#allocation13 + $0x7c0] sm:$0xff]  ;;  %3206 = vmatpush.msrb.mxu2 %v2463_v51  ;;  %v2447_v51 = vld [vmem:[#allocation13 + $0x530] sm:$0xff] }
 0x382   :  { %2897 = vmatpush.msra.mxu3 %v2417_v35  ;;  %v7019_v31 = vpop.f32.mrf.mxu3  ;;  %v1811_v56 = vpop.f32.mrf.mxu2  ;;  %v2459_v35 = vld [vmem:[#allocation13 + $0x590] sm:$0xff] }
 0x383   :  { %8113 = vst [vmem:[#allocation56_spill] sm:$0xff] %v7019_v31  ;;  %v2045_v30 = vmax.f32 %v2044_v47, %v1811_v56  ;;  %v2525_v47 = vld [vmem:[#allocation13 + $0x7a0] sm:$0xff]  ;;  %v2455_v56 = vld [vmem:[#allocation13 + $0x570] sm:$0xff]  ;;  %3207 = vmatpush.msrb.mxu2 %v2459_v35 }
 0x384   :  { %2898 = vmatpush.msra.mxu3 %v2413_v54  ;;  %v2509_v35 = vld [vmem:[#allocation13 + $0x720] sm:$0xff] }
 0x385   :  { %v7021_v44 = vpop.f32.mrf.mxu0  ;;  %v7023_v29 = vpop.f32.mrf.mxu1  ;;  %3208 = vmatpush.msrb.mxu2 %v2455_v56 }
 0x386   :  { %2899 = vmatpush.msra.mxu3 %v2409_v23  ;;  %v2451_v23 = vld [vmem:[#allocation13 + $0x550] sm:$0xff] }
 0x387   :  { %2900 = vmatmul.f32.vlgmr.msra.gmra.mxu3 %v6850_v37  ;;  %1861 = vmatmul.f32.gmra.mxu2 %v8088_v60 }
 0x388   :  { %2904 = vmatpush.msrb.mxu3 %v2533_v38  ;;  %3209 = vmatpush.msrb.mxu2 %v2451_v23  ;;  %v2661_v38 = vld [vmem:[#allocation13 + $0xbe0] sm:$0xff] }
 0x389   :  { %2944 = vmatpush.msrb.mxu1 %v2661_v38  ;;  %v2501_v38 = vld [vmem:[#allocation13 + $0x6e0] sm:$0xff] }
 0x38a   :  { %2905 = vmatpush.msrb.mxu3 %v2529_v20  ;;  %v7027_v54 = vpop.f32.mrf.mxu3  ;;  %v1814_v39 = vpop.f32.mrf.mxu2  ;;  %v2513_v20 = vld [vmem:[#allocation13 + $0x740] sm:$0xff]  ;;  %3210 = vmatpush.msrb.mxu2 %v2447_v51 }
 0x38b   :  { %8114 = vst [vmem:[#allocation43_spill] sm:$0xff] %v7027_v54  ;;  %v2046_v31 = vmax.f32 %v2045_v30, %v1814_v39  ;;  %v2443_v30 = vld [vmem:[#allocation13 + $0x510] sm:$0xff]  ;;  %v2657_v51 = vld [vmem:[#allocation13 + $0xbc0] sm:$0xff] }
 0x38c   :  { %2906 = vmatpush.msrb.mxu3 %v2525_v47  ;;  %v2439_v47 = vld [vmem:[#allocation13 + $0x4f0] sm:$0xff]  ;;  %3211 = vmatpush.msrb.mxu2 %v2443_v30  ;;  %v2653_v30 = vld [vmem:[#allocation13 + $0xba0] sm:$0xff] }
 0x38d   :  { %v7029_v37 = vpop.f32.mrf.mxu0  ;;  %v7031_v60 = vpop.f32.mrf.mxu1  ;;  %2945 = vmatpush.msrb.mxu1 %v2657_v51 }
 0x38e   :  { %8115 = vst [vmem:[#allocation57_spill] sm:$0xff] %v7031_v60  ;;  %2907 = vmatpush.msrb.mxu3 %v2521_v8  ;;  %v2435_v8 = vld [vmem:[#allocation13 + $0x4d0] sm:$0xff]  ;;  %3212 = vmatpush.msrb.mxu2 %v2439_v47 }
 0x38f   :  { %1864 = vmatmul.f32.gmra.mxu2 %v8090_v50  ;;  %2946 = vmatpush.msrb.mxu1 %v2653_v30  ;;  %v2641_v30 = vld [vmem:[#allocation13 + $0xb40] sm:$0xff] }
 0x390   :  { %2908 = vmatpush.msrb.mxu3 %v2517_v5  ;;  %3213 = vmatpush.msrb.mxu2 %v2435_v8  ;;  %v2431_v5 = vld [vmem:[#allocation13 + $0x4b0] sm:$0xff]  ;;  %v2489_v8 = vld [vmem:[#allocation13 + $0x680] sm:$0xff] }
 0x392   :  { %2909 = vmatpush.msrb.mxu3 %v2513_v20  ;;  %v7034_v56 = vpop.f32.mrf.mxu3  ;;  %v1817_v39 = vpop.f32.mrf.mxu2  ;;  %v2497_v20 = vld [vmem:[#allocation13 + $0x6c0] sm:$0xff]  ;;  %3214 = vmatpush.msrb.mxu2 %v2431_v5 }
 0x393   :  { %8116 = vst [vmem:[#allocation44_spill] sm:$0xff] %v7034_v56  ;;  %v2047_v54 = vmax.f32 %v2046_v31, %v1817_v39  ;;  %v2427_v56 = vld [vmem:[#allocation13 + $0x490] sm:$0xff]  ;;  %v2493_v31 = vld [vmem:[#allocation13 + $0x6a0] sm:$0xff] }
 0x394   :  { %2910 = vmatpush.msrb.mxu3 %v2509_v35  ;;  %v2423_v35 = vld [vmem:[#allocation13 + $0x470] sm:$0xff]  ;;  %3215 = vmatpush.msrb.mxu2 %v2427_v56  ;;  %v2645_v5 = vld [vmem:[#allocation13 + $0xb60] sm:$0xff] }
 0x395   :  { %v7036_v23 = vpop.f32.mrf.mxu0  ;;  %v7038_v50 = vpop.f32.mrf.mxu1  ;;  %v2411_v56 = vld [vmem:[#allocation13 + $0x410] sm:$0xff] }
 0x396   :  { %8117 = vst [vmem:[#allocation58_spill] sm:$0xff] %v7036_v23  ;;  %2911 = vmatpush.msrb.mxu3 %v2505_v11  ;;  %v2593_v23 = vld [vmem:[#allocation13 + $0x9c0] sm:$0xff]  ;;  %3216 = vmatpush.msrb.mxu2 %v2423_v35  ;;  %v2727_v35 = vld [vmem:[#allocation13 + $0xdf0] sm:$0xff] }
 0x397   :  { %8118 = vst [vmem:[#allocation45_spill] sm:$0xff] %v7038_v50  ;;  %1867 = vmatmul.f32.gmra.mxu2 %v8092_v1  ;;  %v2649_v50 = vld [vmem:[#allocation13 + $0xb80] sm:$0xff]  ;;  %v2419_v1 = vld [vmem:[#allocation13 + $0x450] sm:$0xff]  ;;  %2925 = vmatpush.msrb.mxu0 %v2593_v23 }
 0x398   :  { %2912 = vmatpush.msrb.mxu3 %v2501_v38  ;;  %v2485_v38 = vld [vmem:[#allocation13 + $0x660] sm:$0xff]  ;;  %2947 = vmatpush.msrb.mxu1 %v2649_v50 }
 0x399   :  { %3217 = vmatpush.msrb.mxu2 %v2419_v1  ;;  %v2723_v1 = vld [vmem:[#allocation13 + $0xdd0] sm:$0xff] }
 0x39a   :  { %2913 = vmatpush.msrb.mxu3 %v2497_v20  ;;  %v7041_v47 = vpop.f32.mrf.mxu3  ;;  %v1820_v39 = vpop.f32.mrf.mxu2  ;;  %v2415_v20 = vld [vmem:[#allocation13 + $0x430] sm:$0xff]  ;;  %2948 = vmatpush.msrb.mxu1 %v2645_v5 }
 0x39b   :  { %8119 = vst [vmem:[#allocation59_spill] sm:$0xff] %v7041_v47  ;;  %v2048_v11 = vmax.f32 %v2047_v54, %v1820_v39  ;;  %v2481_v54 = vld [vmem:[#allocation13 + $0x640] sm:$0xff]  ;;  %3218 = vmatpush.msrb.mxu2 %v2415_v20 }
 0x39c   :  { %2914 = vmatpush.msrb.mxu3 %v2493_v31  ;;  %v2637_v31 = vld [vmem:[#allocation13 + $0xb20] sm:$0xff]  ;;  %2949 = vmatpush.msrb.mxu1 %v2641_v30 }
 0x39d   :  { %v7043_v51 = vpop.f32.mrf.mxu0  ;;  %v7045_v60 = vpop.f32.mrf.mxu1  ;;  %v2477_v39 = vld [vmem:[#allocation13 + $0x620] sm:$0xff]  ;;  %3219 = vmatpush.msrb.mxu2 %v2411_v56 }
 0x39e   :  { %2915 = vmatpush.msrb.mxu3 %v2489_v8  ;;  %v2473_v8 = vld [vmem:[#allocation13 + $0x600] sm:$0xff]  ;;  %2950 = vmatpush.msrb.mxu1 %v2637_v31  ;;  %v2715_v31 = vld [vmem:[#allocation13 + $0xd90] sm:$0xff] }
 0x39f   :  { %1870 = vmatmul.f32.gmra.mxu2 %v8094_v12  ;;  %v2633_v12 = vld [vmem:[#allocation13 + $0xb00] sm:$0xff] }
 0x3a0   :  { %2916 = vmatpush.msrb.mxu3 %v2485_v38  ;;  %3284 = vmatpush.msra.mxu2 %v2727_v35  ;;  %v2725_v20 = vld [vmem:[#allocation13 + $0xde0] sm:$0xff] }
 0x3a1   :  { %2951 = vmatpush.msrb.mxu1 %v2633_v12  ;;  %v2629_v30 = vld [vmem:[#allocation13 + $0xae0] sm:$0xff] }
 0x3a2   :  { %2917 = vmatpush.msrb.mxu3 %v2481_v54  ;;  %v7048_v47 = vpop.f32.mrf.mxu3  ;;  %v1823_v23 = vpop.f32.mrf.mxu2  ;;  %3285 = vmatpush.msra.mxu2 %v2723_v1  ;;  %v2719_v54 = vld [vmem:[#allocation13 + $0xdb0] sm:$0xff]  ;;  %v2625_v56 = vld [vmem:[#allocation13 + $0xac0] sm:$0xff] }
 0x3a3   :  { %8120 = vst [vmem:[#allocation46_spill] sm:$0xff] %v7048_v47  ;;  %v7050_v50 = vmax.f32 %v2048_v11, %v1823_v23  ;;  %v2721_v11 = vld [vmem:[#allocation13 + $0xdc0] sm:$0xff]  ;;  %2952 = vmatpush.msrb.mxu1 %v2629_v30 }
 0x3a4   :  { %2918 = vmatpush.msrb.mxu3 %v2477_v39  ;;  %v2717_v35 = vld [vmem:[#allocation13 + $0xda0] sm:$0xff]  ;;  %3286 = vmatpush.msra.mxu2 %v2719_v54  ;;  %v2707_v54 = vld [vmem:[#allocation13 + $0xd50] sm:$0xff] }
 0x3a5   :  { %8121 = vst [vmem:[#allocation60_spill] sm:$0xff] %v7050_v50  ;;  %v7052_v5 = vpop.f32.mrf.mxu0  ;;  %v7054_v38 = vpop.f32.mrf.mxu1  ;;  %v2621_v39 = vld [vmem:[#allocation13 + $0xaa0] sm:$0xff]  ;;  %2953 = vmatpush.msrb.mxu1 %v2625_v56  ;;  %v2703_v56 = vld [vmem:[#allocation13 + $0xd30] sm:$0xff] }
 0x3a6   :  { %2919 = vmatpush.msrb.mxu3 %v2473_v8  ;;  %v2711_v8 = vld [vmem:[#allocation13 + $0xd70] sm:$0xff]  ;;  %v2713_v12 = vld [vmem:[#allocation13 + $0xd80] sm:$0xff]  ;;  %3287 = vmatpush.msra.mxu2 %v2715_v31 }
 0x3a7   :  { %2920 = vmatmul.f32.vlgmr.msrb.gmra.mxu3 %v7003_v28  ;;  %1873 = vmatmul.f32.gmra.mxu2 %v8097_v3  ;;  %v2617_v1 = vld [vmem:[#allocation13 + $0xa80] sm:$0xff] }
 0x3a8   :  { %2964 = vmatpush.msra.mxu3 %v2725_v20  ;;  %2954 = vmatpush.msrb.mxu1 %v2621_v39  ;;  %v2589_v3 = vld [vmem:[#allocation13 + $0x9a0] sm:$0xff]  ;;  %v2699_v39 = vld [vmem:[#allocation13 + $0xd10] sm:$0xff] }
 0x3a9   :  { %v2709_v30 = vld [vmem:[#allocation13 + $0xd60] sm:$0xff]  ;;  %3288 = vmatpush.msra.mxu2 %v2711_v8  ;;  %2926 = vmatpush.msrb.mxu0 %v2589_v3  ;;  %v2021_v3 = vmax.f32 %v6829_v46, %v6840_v16  ;;  %v2687_v16 = vld [vmem:[#allocation13 + $0xcb0] sm:$0xff] }
 0x3aa   :  { %v7058_v23 = vpop.f32.mrf.mxu3  ;;  %v7060_v50 = vpop.f32.mrf.mxu2  ;;  %2965 = vmatpush.msra.mxu3 %v2721_v11  ;;  %2955 = vmatpush.msrb.mxu1 %v2617_v1  ;;  %v2705_v11 = vld [vmem:[#allocation13 + $0xd40] sm:$0xff] }
 0x3ab   :  { %8122 = vst [vmem:[#allocation47_spill] sm:$0xff] %v7058_v23  ;;  %3289 = vmatpush.msra.mxu2 %v2707_v54  ;;  %v2609_v31 = vld [vmem:[#allocation13 + $0xa40] sm:$0xff] }
 0x3ac   :  { %8123 = vst [vmem:[#allocation61_spill] sm:$0xff] %v7060_v50  ;;  %2966 = vmatpush.msra.mxu3 %v2717_v35  ;;  %v2613_v50 = vld [vmem:[#allocation13 + $0xa60] sm:$0xff] }
 0x3ad   :  { %v7062_v28 = vpop.f32.mrf.mxu0  ;;  %v7064_v20 = vpop.f32.mrf.mxu1  ;;  %v2701_v35 = vld [vmem:[#allocation13 + $0xd20] sm:$0xff]  ;;  %2956 = vmatpush.msrb.mxu1 %v2613_v50  ;;  %3290 = vmatpush.msra.mxu2 %v2703_v56  ;;  %v2691_v56 = vld [vmem:[#allocation13 + $0xcd0] sm:$0xff] }
 0x3ae   :  { %2967 = vmatpush.msra.mxu3 %v2713_v12  ;;  %v2605_v8 = vld [vmem:[#allocation13 + $0xa20] sm:$0xff]  ;;  %v2000_v12 = vmax.f32 %v6827_v34, %v6838_v36  ;;  %v2022_v34 = vmax.f32 %v2021_v3, %v6854_v41  ;;  %v2342_v36 = vld [vmem:[#allocation13 + $0x1e8] sm:$0xff]  ;;  %v2683_v41 = vld [vmem:[#allocation13 + $0xc90] sm:$0xff] }
 0x3af   :  { %1876 = vmatmul.f32.gmra.mxu2 %v8099_v22  ;;  %v2697_v1 = vld [vmem:[#allocation13 + $0xd00] sm:$0xff]  ;;  %2957 = vmatpush.msrb.mxu1 %v2609_v31  ;;  %v2695_v22 = vld [vmem:[#allocation13 + $0xcf0] sm:$0xff] }
 0x3b0   :  { %2968 = vmatpush.msra.mxu3 %v2709_v30  ;;  %3291 = vmatpush.msra.mxu2 %v2699_v39  ;;  %v2601_v50 = vld [vmem:[#allocation13 + $0xa00] sm:$0xff]  ;;  %v2001_v30 = vmax.f32 %v2000_v12, %v6852_v25  ;;  %v2023_v25 = vmax.f32 %v2022_v34, %v6865_v15  ;;  %v2679_v3 = vld [vmem:[#allocation13 + $0xc70] sm:$0xff] }
 0x3b1   :  { %2958 = vmatpush.msrb.mxu1 %v2605_v8  ;;  %v2689_v46 = vld [vmem:[#allocation13 + $0xcc0] sm:$0xff]  ;;  %v2675_v34 = vld [vmem:[#allocation13 + $0xc50] sm:$0xff] }
 0x3b2   :  { %v7067_v23 = vpop.f32.mrf.mxu3  ;;  %v7069_v47 = vpop.f32.mrf.mxu2  ;;  %2969 = vmatpush.msra.mxu3 %v2705_v11  ;;  %v2693_v11 = vld [vmem:[#allocation13 + $0xce0] sm:$0xff]  ;;  %3292 = vmatpush.msra.mxu2 %v2695_v22  ;;  %v2002_v31 = vmax.f32 %v2001_v30, %v6863_v58  ;;  %v2024_v12 = vmax.f32 %v2023_v25, %v6873_v6  ;;  %v2322_v25 = vld [vmem:[#allocation13 + $0x148] sm:$0xff] }
 0x3b3   :  { %8124 = vst [vmem:[#allocation48_spill] sm:$0xff] %v7069_v47  ;;  %2959 = vmatpush.msrb.mxu1 %v2601_v50  ;;  %v2685_v8 = vld [vmem:[#allocation13 + $0xca0] sm:$0xff] }
 0x3b4   :  { %2970 = vmatpush.msra.mxu3 %v2701_v35  ;;  %3293 = vmatpush.msra.mxu2 %v2691_v56  ;;  %v2338_v35 = vld [vmem:[#allocation13 + $0x1c8] sm:$0xff]  ;;  %v2003_v39 = vmax.f32 %v2002_v31, %v6871_v17  ;;  %v2681_v15 = vld [vmem:[#allocation13 + $0xc80] sm:$0xff]  ;;  %v2025_v50 = vmax.f32 %v2024_v12, %v6881_v55 }
 0x3b5   :  { %v7076_v54 = vpop.f32.mrf.mxu0  ;;  %v7078_v47 = vpop.f32.mrf.mxu1  ;;  %3004 = vmatpush.msra.mxu1 %v2342_v36  ;;  %v2330_v17 = vld [vmem:[#allocation13 + $0x188] sm:$0xff]  ;;  %v2677_v56 = vld [vmem:[#allocation13 + $0xc60] sm:$0xff] }
 0x3b6   :  { %2971 = vmatpush.msra.mxu3 %v2697_v1  ;;  %3294 = vmatpush.msra.mxu2 %v2687_v16  ;;  %v2004_v22 = vmax.f32 %v2003_v39, %v6879_v7  ;;  %v2026_v36 = vmax.f32 %v2025_v50, %v6889_v52  ;;  %v2326_v7 = vld [vmem:[#allocation13 + $0x168] sm:$0xff]  ;;  %v2673_v55 = vld [vmem:[#allocation13 + $0xc40] sm:$0xff]  ;;  %v2667_v52 = vld [vmem:[#allocation13 + $0xc10] sm:$0xff] }
 0x3b7   :  { %1879 = vmatmul.f32.gmra.mxu2 %v6597_v19  ;;  %v2334_v19 = vld [vmem:[#allocation13 + $0x1a8] sm:$0xff]  ;;  %3005 = vmatpush.msra.mxu1 %v2338_v35  ;;  %v2585_v16 = vld [vmem:[#allocation13 + $0x980] sm:$0xff] }
 0x3b8   :  { %2972 = vmatpush.msra.mxu3 %v2693_v11  ;;  %3295 = vmatpush.msra.mxu2 %v2683_v41  ;;  %v2005_v30 = vmax.f32 %v2004_v22, %v6887_v2  ;;  %v2027_v2 = vmax.f32 %v2026_v36, %v6897_v26  ;;  %v2669_v39 = vld [vmem:[#allocation13 + $0xc20] sm:$0xff]  ;;  %v2318_v12 = vld [vmem:[#allocation13 + $0x128] sm:$0xff] }
 0x3b9   :  { %3006 = vmatpush.msra.mxu1 %v2334_v19  ;;  %2927 = vmatpush.msrb.mxu0 %v2585_v16  ;;  %v2665_v22 = vld [vmem:[#allocation13 + $0xc00] sm:$0xff] }
 0x3ba   :  { %v7086_v1 = vpop.f32.mrf.mxu3  ;;  %v7088_v58 = vpop.f32.mrf.mxu2  ;;  %2973 = vmatpush.msra.mxu3 %v2689_v46  ;;  %3296 = vmatpush.msra.mxu2 %v2679_v3  ;;  %v2006_v31 = vmax.f32 %v2005_v30, %v6895_v21  ;;  %v2671_v46 = vld [vmem:[#allocation13 + $0xc30] sm:$0xff]  ;;  %v2189_v21 = vmax.f32 %v6990_v45, %v6998_v42  ;;  %v2406_v45 = vld [vmem:[#allocation13 + $0x3e8] sm:$0xff]  ;;  %v2577_v42 = vld [vmem:[#allocation13 + $0x940] sm:$0xff] }
 0x3bb   :  { %3007 = vmatpush.msra.mxu1 %v2330_v17  ;;  %v2573_v30 = vld [vmem:[#allocation13 + $0x920] sm:$0xff] }
 0x3bc   :  { %2974 = vmatpush.msra.mxu3 %v2685_v8  ;;  %3297 = vmatpush.msra.mxu2 %v2675_v34  ;;  %v2007_v35 = vmax.f32 %v2006_v31, %v6903_v61  ;;  %v2028_v8 = vmax.f32 %v2027_v2, %v6905_v14  ;;  %v2581_v61 = vld [vmem:[#allocation13 + $0x960] sm:$0xff]  ;;  %v2310_v34 = vld [vmem:[#allocation13 + $0xe8] sm:$0xff] }
 0x3bd   :  { %v7093_v6 = vpop.f32.mrf.mxu0  ;;  %v7095_v11 = vpop.f32.mrf.mxu1  ;;  %3008 = vmatpush.msra.mxu1 %v2326_v7  ;;  %2928 = vmatpush.msrb.mxu0 %v2581_v61  ;;  %v2398_v7 = vld [vmem:[#allocation13 + $0x3a8] sm:$0xff]  ;;  %v2565_v2 = vld [vmem:[#allocation13 + $0x8e0] sm:$0xff] }
 0x3be   :  { %2975 = vmatpush.msra.mxu3 %v2681_v15  ;;  %3298 = vmatpush.msra.mxu2 %v2671_v46  ;;  %v2008_v19 = vmax.f32 %v2007_v35, %v6913_v63  ;;  %v2029_v14 = vmax.f32 %v2028_v8, %v6915_v57  ;;  %v2314_v63 = vld [vmem:[#allocation13 + $0x108] sm:$0xff] }
 0x3bf   :  { %1882 = vmatmul.f32.gmra.mxu2 %v6608_v18  ;;  %v2168_v18 = vmax.f32 %v6988_v4, %v6996_v43  ;;  %3009 = vmatpush.msra.mxu1 %v2322_v25  ;;  %v2190_v4 = vmax.f32 %v2189_v21, %v7009_v9  ;;  %v2402_v9 = vld [vmem:[#allocation13 + $0x3c8] sm:$0xff] }
 0x3c0   :  { %2976 = vmatpush.msra.mxu3 %v2677_v56  ;;  %3299 = vmatpush.msra.mxu2 %v2667_v52  ;;  %v2009_v15 = vmax.f32 %v2008_v19, %v6925_v24  ;;  %v2030_v17 = vmax.f32 %v2029_v14, %v6927_v32  ;;  %v2147_v24 = vmax.f32 %v6994_v0, %v7005_v40  ;;  %v2306_v0 = vld [vmem:[#allocation13 + $0xc8] sm:$0xff] }
 0x3c1   :  { %v2169_v43 = vmax.f32 %v2168_v18, %v7007_v27  ;;  %3010 = vmatpush.msra.mxu1 %v2318_v12  ;;  %2929 = vmatpush.msrb.mxu0 %v2577_v42  ;;  %v2191_v27 = vmax.f32 %v2190_v4, %v7016_v10  ;;  %v2569_v10 = vld [vmem:[#allocation13 + $0x900] sm:$0xff]  ;;  %v8128_v25 = vld [vmem:[#allocation50_spill] sm:$0xff]  ;;  %v8132_v18 = vld [vmem:[#allocation75_spill] sm:$0xff] }
 0x3c2   :  { %v7107_v41 = vpop.f32.mrf.mxu3  ;;  %v7109_v26 = vpop.f32.mrf.mxu2  ;;  %2977 = vmatpush.msra.mxu3 %v2673_v55  ;;  %v2010_v56 = vmax.f32 %v2009_v15, %v6935_v49  ;;  %v2031_v36 = vmax.f32 %v2030_v17, %v6937_v53  ;;  %v2148_v49 = vmax.f32 %v2147_v24, %v7012_v33  ;;  %v8125_v55 = vld [vmem:[#allocation57_spill] sm:$0xff]  ;;  %v8133_v12 = vld [vmem:[#allocation58_spill] sm:$0xff] }
 0x3c3   :  { %v2170_v57 = vmax.f32 %v2169_v43, %v7014_v48  ;;  %v2192_v48 = vmax.f32 %v2191_v27, %v7023_v29  ;;  %3011 = vmatpush.msra.mxu1 %v2314_v63  ;;  %2930 = vmatpush.msrb.mxu0 %v2573_v30  ;;  %v2394_v29 = vld [vmem:[#allocation13 + $0x388] sm:$0xff]  ;;  %v2561_v43 = vld [vmem:[#allocation13 + $0x8c0] sm:$0xff]  ;;  %v8137_v63 = vld [vmem:[#allocation43_spill] sm:$0xff] }
 0x3c4   :  { %2978 = vmatpush.msra.mxu3 %v2669_v39  ;;  %v2011_v31 = vmax.f32 %v2010_v56, %v6945_v62  ;;  %v8126_v16 = vld [vmem:[#allocation69_spill] sm:$0xff]  ;;  %v8127_v62 = vld [vmem:[#allocation68_spill] sm:$0xff]  ;;  %v8130_v39 = vld [vmem:[#allocation51_spill] sm:$0xff] }
 0x3c5   :  { %v7116_v3 = vpop.f32.mrf.mxu0  ;;  %v7118_v50 = vpop.f32.mrf.mxu1  ;;  %v2171_v32 = vmax.f32 %v2170_v57, %v7021_v44  ;;  %v2193_v53 = vmax.f32 %v2192_v48, %v8125_v55  ;;  %3012 = vmatpush.msra.mxu1 %v2310_v34  ;;  %2931 = vmatpush.msrb.mxu0 %v2569_v10  ;;  %v8129_v33 = vmax.f32 %v8127_v62, %v8128_v25  ;;  %v8134_v19 = vld [vmem:[#allocation45_spill] sm:$0xff]  ;;  %v8135_v4 = vld [vmem:[#allocation70_spill] sm:$0xff]  ;;  %v8139_v48 = vld [vmem:[#allocation71_spill] sm:$0xff] }
 0x3c6   :  { %2979 = vmatpush.msra.mxu3 %v2665_v22  ;;  %v2012_v52 = vmax.f32 %v2011_v31, %v8130_v39  ;;  %v2390_v14 = vld [vmem:[#allocation13 + $0x368] sm:$0xff]  ;;  %v8145_v25 = vld [vmem:[#allocation59_spill] sm:$0xff] }
 0x3c7   :  { %1885 = vmatmul.f32.gmra.mxu2 %v6619_v59  ;;  %v2032_v59 = vmax.f32 %v2031_v36, %v6947_v13  ;;  %v2172_v40 = vmax.f32 %v2171_v32, %v7029_v37  ;;  %v1988_v35 = vmax.f32 %v8129_v33, %v8126_v16  ;;  %v8131_v13 = vld [vmem:[#allocation56_spill] sm:$0xff]  ;;  %v2302_v37 = vld [vmem:[#allocation13 + $0xa8] sm:$0xff]  ;;  %v2194_v22 = vmax.f32 %v2193_v53, %v8134_v19 }
 0x3c8   :  { %3024 = vmatpush.msrb.mxu3 %v2406_v45  ;;  %v2149_v8 = vmax.f32 %v2148_v49, %v8131_v13  ;;  %3013 = vmatpush.msra.mxu1 %v2306_v0  ;;  %v8136_v42 = vld [vmem:[#allocation74_spill] sm:$0xff]  ;;  %v8138_v30 = vld [vmem:[#allocation53_spill] sm:$0xff]  ;;  %v8141_v49 = vld [vmem:[#allocation44_spill] sm:$0xff] }
 0x3c9   :  { %v2033_v21 = vmax.f32 %v2032_v59, %v8132_v18  ;;  %v2173_v61 = vmax.f32 %v2172_v40, %v8133_v12  ;;  %2932 = vmatpush.msrb.mxu0 %v2565_v2  ;;  %v1989_v45 = vmax.f32 %v1988_v35, %v8135_v4  ;;  %v2013_v15 = vmax.f32 %v2012_v52, %v8136_v42  ;;  %v2386_v36 = vld [vmem:[#allocation13 + $0x348] sm:$0xff]  ;;  %v2557_v32 = vld [vmem:[#allocation13 + $0x8a0] sm:$0xff] }
 0x3ca   :  { %3025 = vmatpush.msrb.mxu3 %v2402_v9  ;;  %v7135_v46 = vpop.f32.mrf.mxu3  ;;  %v7137_v44 = vpop.f32.mrf.mxu2  ;;  %v2150_v17 = vmax.f32 %v2149_v8, %v8137_v63  ;;  %v2298_v9 = vld [vmem:[#allocation13 + $0x88] sm:$0xff]  ;;  %v2195_v34 = vmax.f32 %v2194_v22, %v7045_v60  ;;  %3014 = vmatpush.msra.mxu1 %v2302_v37  ;;  %v8142_v59 = vld [vmem:[#allocation72_spill] sm:$0xff] }
 0x3cb   :  { %v2034_v56 = vmax.f32 %v2033_v21, %v8138_v30  ;;  %v2174_v24 = vmax.f32 %v2173_v61, %v7043_v51  ;;  %2933 = vmatpush.msrb.mxu0 %v2561_v43  ;;  %v8140_v10 = vld [vmem:[#allocation54_spill] sm:$0xff]  ;;  %v8143_v55 = vld [vmem:[#allocation41_spill] sm:$0xff]  ;;  %v8144_v16 = vld [vmem:[#allocation52_spill] sm:$0xff] }
 0x3cc   :  { %3026 = vmatpush.msrb.mxu3 %v2398_v7  ;;  %v1990_v7 = vmax.f32 %v1989_v45, %v8139_v48  ;;  %v2014_v31 = vmax.f32 %v2013_v15, %v8140_v10  ;;  %v2151_v0 = vmax.f32 %v2150_v17, %v8141_v49  ;;  %v2294_v40 = vld [vmem:[#allocation13 + $0x68] sm:$0xff]  ;;  %v2196_v60 = vmax.f32 %v2195_v34, %v7054_v38  ;;  %v2553_v2 = vld [vmem:[#allocation13 + $0x880] sm:$0xff]  ;;  %v8148_v43 = vld [vmem:[#allocation55_spill] sm:$0xff] }
 0x3cd   :  { %v7151_v57 = vpop.f32.mrf.mxu0  ;;  %v7153_v27 = vpop.f32.mrf.mxu1  ;;  %v2035_v53 = vmax.f32 %v2034_v56, %v8143_v55  ;;  %v2175_v51 = vmax.f32 %v2174_v24, %v7052_v5  ;;  %3015 = vmatpush.msra.mxu1 %v2298_v9  ;;  %2934 = vmatpush.msrb.mxu0 %v2557_v32  ;;  %v2290_v35 = vld [vmem:[#allocation13 + $0x48] sm:$0xff]  ;;  %v2549_v38 = vld [vmem:[#allocation13 + $0x860] sm:$0xff]  ;;  %v8149_v45 = vld [vmem:[#allocation47_spill] sm:$0xff] }
 0x3ce   :  { %3027 = vmatpush.msrb.mxu3 %v2394_v29  ;;  %v2382_v29 = vld [vmem:[#allocation13 + $0x328] sm:$0xff]  ;;  %v1991_v62 = vmax.f32 %v1990_v7, %v8144_v16  ;;  %v2152_v33 = vmax.f32 %v2151_v0, %v8145_v25  ;;  %v2197_v52 = vmax.f32 %v2196_v60, %v7064_v20  ;;  %v8146_v37 = vld [vmem:[#allocation40_spill] sm:$0xff]  ;;  %v2015_v21 = vrot.slane %v2014_v31, 4 }
 0x3cf   :  { %1888 = vmatmul.f32.gmra.mxu2 %v8142_v59  ;;  %v2176_v39 = vmax.f32 %v2175_v51, %v7062_v28  ;;  %v2378_v5 = vld [vmem:[#allocation13 + $0x308] sm:$0xff]  ;;  %3016 = vmatpush.msra.mxu1 %v2294_v40  ;;  %v2036_v22 = vrot.slane %v2035_v53, 4  ;;  %v2545_v9 = vld [vmem:[#allocation13 + $0x840] sm:$0xff]  ;;  %v2472_v16 = vld [vmem:[#allocation13 + $0x5f8] sm:$0xff] }
 0x3d0   :  { %3028 = vmatpush.msrb.mxu3 %v2390_v14  ;;  %2935 = vmatpush.msrb.mxu0 %v2553_v2  ;;  %v1992_v18 = vmax.f32 %v1991_v62, %v8146_v37  ;;  %v8147_v12 = vld [vmem:[#allocation46_spill] sm:$0xff]  ;;  %v2198_v20 = vmax.f32 %v2197_v52, %v7078_v47  ;;  %v2016_v47 = vmax.f32 %v2014_v31, %v2015_v21  ;;  %v8150_v34 = vld [vmem:[#allocation73_spill] sm:$0xff]  ;;  %v2464_v21 = vld [vmem:[#allocation13 + $0x5b8] sm:$0xff] }
 0x3d1   :  { %v2153_v61 = vmax.f32 %v2152_v33, %v8147_v12  ;;  %v2286_v19 = vld [vmem:[#allocation13 + $0x28] sm:$0xff]  ;;  %v2177_v28 = vmax.f32 %v2176_v39, %v7076_v54  ;;  %3017 = vmatpush.msra.mxu1 %v2290_v35  ;;  %v2037_v32 = vmax.f32 %v2035_v53, %v2036_v22  ;;  %v2537_v49 = vld [vmem:[#allocation13 + $0x800] sm:$0xff] }
 0x3d2   :  { %3029 = vmatpush.msrb.mxu3 %v2386_v36  ;;  %v7169_v13 = vpop.f32.mrf.mxu3  ;;  %v7171_v8 = vpop.f32.mrf.mxu2  ;;  %v2374_v14 = vld [vmem:[#allocation13 + $0x2e8] sm:$0xff]  ;;  %2936 = vmatpush.msrb.mxu0 %v2549_v38  ;;  %v1993_v4 = vmax.f32 %v1992_v18, %v8148_v43  ;;  %v2199_v56 = vmax.f32 %v2198_v20, %v7095_v11  ;;  %v2541_v36 = vld [vmem:[#allocation13 + $0x820] sm:$0xff]  ;;  %v2460_v20 = vld [vmem:[#allocation13 + $0x598] sm:$0xff] }
 0x3d3   :  { %v2154_v42 = vmax.f32 %v2153_v61, %v8149_v45  ;;  %v2282_v17 = vld [vmem:[#allocation13 + $0x8] sm:$0xff]  ;;  %v2178_v30 = vmax.f32 %v2177_v28, %v7093_v6  ;;  %3018 = vmatpush.msra.mxu1 %v2286_v19  ;;  %v2038_v55 = vrot.slane %v2037_v32, 2 }
 0x3d4   :  { %3030 = vmatpush.msrb.mxu3 %v2382_v29  ;;  %v2370_v24 = vld [vmem:[#allocation13 + $0x2c8] sm:$0xff]  ;;  %2937 = vmatpush.msrb.mxu0 %v2545_v9  ;;  %v2200_v7 = vmax.f32 %v2199_v56, %v7118_v50  ;;  %v1994_v6 = vrot.slane %v1993_v4, 4  ;;  %v2017_v50 = vrot.slane %v2016_v47, 2 }
 0x3d5   :  { %v1663_v15 = vpop.f32.mrf.mxu0  ;;  %v1776_v63 = vpop.f32.mrf.mxu1  ;;  %v2155_v54 = vmax.f32 %v2154_v42, %v7067_v23  ;;  %v2179_v48 = vmax.f32 %v2178_v30, %v7116_v3  ;;  %v2366_v10 = vld [vmem:[#allocation13 + $0x2a8] sm:$0xff]  ;;  %3019 = vmatpush.msra.mxu1 %v2282_v17  ;;  %v2039_v52 = vmax.f32 %v2037_v32, %v2038_v55  ;;  %v7196_v30 = vld [vmem:[#allocation11] sm:$0xff] }
 0x3d6   :  { %3031 = vmatpush.msrb.mxu3 %v2378_v5  ;;  %2938 = vmatpush.msrb.mxu0 %v2541_v36  ;;  %v2201_v23 = vmax.f32 %v2200_v7, %v7153_v27  ;;  %v2362_v40 = vld [vmem:[#allocation13 + $0x288] sm:$0xff]  ;;  %v2018_v39 = vmax.f32 %v2016_v47, %v2017_v50  ;;  %v2238_v56 = vperm.slane %v7196_v30, 5 }
 0x3d7   :  { %1891 = vmatmul.f32.gmra.mxu2 %v8150_v34  ;;  %v2156_v11 = vmax.f32 %v2155_v54, %v7086_v1  ;;  %v2180_v31 = vmax.f32 %v2179_v48, %v7151_v57  ;;  %v2358_v60 = vld [vmem:[#allocation13 + $0x268] sm:$0xff]  ;;  %v1995_v1 = vmax.f32 %v1993_v4, %v1994_v6  ;;  %v2040_v43 = vrot.slane %v2039_v52, 1  ;;  %v2452_v54 = vld [vmem:[#allocation13 + $0x558] sm:$0xff] }
 0x3d8   :  { %3032 = vmatpush.msrb.mxu3 %v2374_v14  ;;  %2939 = vmatpush.msrb.mxu0 %v2537_v49  ;;  %v2202_v51 = vmax.f32 %v2201_v23, %v1776_v63  ;;  %v2354_v25 = vld [vmem:[#allocation13 + $0x248] sm:$0xff]  ;;  %v2019_v14 = vrot.slane %v2018_v39, 1  ;;  %v2456_v63 = vld [vmem:[#allocation13 + $0x578] sm:$0xff] }
 0x3d9   :  { %v2157_v3 = vmax.f32 %v2156_v11, %v7107_v41  ;;  %v2181_v53 = vmax.f32 %v2180_v31, %v1663_v15  ;;  %v8151_v35 = vld [vmem:[#allocation66_spill] sm:$0xff]  ;;  %v2468_v41 = vld [vmem:[#allocation13 + $0x5d8] sm:$0xff]  ;;  %v2041_v36 = vmax.f32 %v2039_v52, %v2040_v43 }
 0x3da   :  { %3033 = vmatpush.msrb.mxu3 %v2370_v24  ;;  %v1550_v0 = vpop.f32.mrf.mxu3  ;;  %v7188_v59 = vpop.f32.mrf.mxu2  ;;  %v2350_v37 = vld [vmem:[#allocation13 + $0x228] sm:$0xff]  ;;  %v2239_v24 = vperm.slane %v7196_v30, 6  ;;  %v2020_v34 = vmax.f32 %v2018_v39, %v2019_v14  ;;  %v2448_v6 = vld [vmem:[#allocation13 + $0x538] sm:$0xff] }
 0x3db   :  { %v2158_v29 = vmax.f32 %v2157_v3, %v7135_v46  ;;  %v1996_v46 = vrot.slane %v1995_v1, 2  ;;  %v2534_v52 = vld [vmem:[#allocation13 + $0x7e8] sm:$0xff]  ;;  %v2424_v43 = vld [vmem:[#allocation13 + $0x478] sm:$0xff] }
 0x3dc   :  { %3034 = vmatpush.msrb.mxu3 %v2366_v10  ;;  %v2255_v3 = vadd.f32 %v2239_v24, %v2041_v36  ;;  %v2590_v14 = vld [vmem:[#allocation13 + $0x9a8] sm:$0xff]  ;;  %v2412_v36 = vld [vmem:[#allocation13 + $0x418] sm:$0xff] }
 0x3dd   :  { %v1666_v2 = vpop.f32.mrf.mxu0  ;;  %v1779_v57 = vpop.f32.mrf.mxu1  ;;  %v2159_v33 = vmax.f32 %v2158_v29, %v7169_v13  ;;  %v2346_v13 = vld [vmem:[#allocation13 + $0x208] sm:$0xff]  ;;  %v1997_v42 = vmax.f32 %v1995_v1, %v1996_v46  ;;  %v2440_v1 = vld [vmem:[#allocation13 + $0x4f8] sm:$0xff] }
 0x3de   :  { %3035 = vmatpush.msrb.mxu3 %v2362_v40  ;;  %v2182_v27 = vmax.f32 %v2181_v53, %v1666_v2  ;;  %v2203_v62 = vmax.f32 %v2202_v51, %v1779_v57  ;;  %v2254_v40 = vadd.f32 %v2238_v56, %v2020_v34  ;;  %v2237_v51 = vperm.slane %v7196_v30, 4  ;;  %v2578_v34 = vld [vmem:[#allocation13 + $0x948] sm:$0xff] }
 0x3df   :  { %3220 = vmatmul.f32.vlgmr.msrb.gmra.mxu2 %v8151_v35  ;;  %v2160_v18 = vmax.f32 %v2159_v33, %v1550_v0  ;;  %v1998_v7 = vrot.slane %v1997_v42, 1  ;;  %v2444_v0 = vld [vmem:[#allocation13 + $0x518] sm:$0xff] }
 0x3e0   :  { %3036 = vmatpush.msrb.mxu3 %v2358_v60  ;;  %v2183_v5 = vrot.slane %v2182_v27, 4  ;;  %v2204_v38 = vrot.slane %v2203_v62, 4  ;;  %3364 = vmatpush.msrb.mxu2 %v2472_v16  ;;  %v2436_v16 = vld [vmem:[#allocation13 + $0x4d8] sm:$0xff] }
 0x3e1   :  { %v1999_v53 = vmax.f32 %v1997_v42, %v1998_v7  ;;  %v2586_v42 = vld [vmem:[#allocation13 + $0x988] sm:$0xff]  ;;  %v2728_v7 = vld [vmem:[#allocation13 + $0xdf8] sm:$0xff] }
 0x3e2   :  { %3037 = vmatpush.msrb.mxu3 %v2354_v25  ;;  %v2184_v12 = vmax.f32 %v2182_v27, %v2183_v5  ;;  %v2205_v61 = vmax.f32 %v2203_v62, %v2204_v38  ;;  %3365 = vmatpush.msrb.mxu2 %v2468_v41  ;;  %v1553_v19 = vpop.f32.mrf.mxu3  ;;  %v7194_v22 = vpop.f32.mrf.mxu2  ;;  %v2270_v27 = vmax.f32 %v2254_v40, 0.0  ;;  %v2271_v25 = vmax.f32 %v2255_v3, 0.0  ;;  %v2598_v5 = vld [vmem:[#allocation13 + $0x9e8] sm:$0xff]  ;;  %v2720_v40 = vld [vmem:[#allocation13 + $0xdb8] sm:$0xff] }
 0x3e3   :  { %v2161_v28 = vmax.f32 %v2160_v18, %v1553_v19  ;;  %v2253_v41 = vadd.f32 %v2237_v51, %v1999_v53  ;;  %v2428_v19 = vld [vmem:[#allocation13 + $0x498] sm:$0xff]  ;;  %v2498_v3 = vld [vmem:[#allocation13 + $0x6c8] sm:$0xff] }
 0x3e4   :  { %3038 = vmatpush.msrb.mxu3 %v2350_v37  ;;  %v2185_v4 = vrot.slane %v2184_v12, 2  ;;  %v2206_v45 = vrot.slane %v2205_v61, 2  ;;  %3366 = vmatpush.msrb.mxu2 %v2464_v21  ;;  %v2432_v21 = vld [vmem:[#allocation13 + $0x4b8] sm:$0xff]  ;;  %v2494_v53 = vld [vmem:[#allocation13 + $0x6a8] sm:$0xff] }
 0x3e5   :  { %v2162_v15 = vrot.slane %v2161_v28, 4 }
 0x3e6   :  { %3039 = vmatpush.msrb.mxu3 %v2346_v13  ;;  %v2186_v17 = vmax.f32 %v2184_v12, %v2185_v4  ;;  %v2207_v9 = vmax.f32 %v2205_v61, %v2206_v45  ;;  %3367 = vmatpush.msrb.mxu2 %v2460_v20  ;;  %v2530_v12 = vld [vmem:[#allocation13 + $0x7c8] sm:$0xff] }
 0x3e7   :  { %v2163_v47 = vmax.f32 %v2161_v28, %v2162_v15  ;;  %v2594_v61 = vld [vmem:[#allocation13 + $0x9c8] sm:$0xff]  ;;  %v2269_v28 = vmax.f32 %v2253_v41, 0.0  ;;  %v2420_v15 = vld [vmem:[#allocation13 + $0x458] sm:$0xff] }
 0x3e8   :  { %v2187_v32 = vrot.slane %v2186_v17, 1  ;;  %v2208_v48 = vrot.slane %v2207_v9, 1  ;;  %3368 = vmatpush.msrb.mxu2 %v2456_v63  ;;  %v2526_v13 = vld [vmem:[#allocation13 + $0x7a8] sm:$0xff]  ;;  %v2700_v41 = vld [vmem:[#allocation13 + $0xd18] sm:$0xff] }
 0x3e9   :  { %v2164_v10 = vrot.slane %v2163_v47, 2  ;;  %v2522_v45 = vld [vmem:[#allocation13 + $0x788] sm:$0xff] }
 0x3ea   :  { %v2188_v11 = vmax.f32 %v2186_v17, %v2187_v32  ;;  %v2209_v49 = vmax.f32 %v2207_v9, %v2208_v48  ;;  %3369 = vmatpush.msrb.mxu2 %v2452_v54  ;;  %v7200_v31 = vpop.f32.mrf.mxu2  ;;  %v2518_v17 = vld [vmem:[#allocation13 + $0x768] sm:$0xff] }
 0x3eb   :  { %v2165_v23 = vmax.f32 %v2163_v47, %v2164_v10  ;;  %v2582_v9 = vld [vmem:[#allocation13 + $0x968] sm:$0xff]  ;;  %v8153_v47 = vld [vmem:[#allocation64_spill] sm:$0xff] }
 0x3ec   :  { %v2262_v50 = vadd.f32 %v2238_v56, %v2188_v11  ;;  %v2263_v55 = vadd.f32 %v2239_v24, %v2209_v49  ;;  %3370 = vmatpush.msrb.mxu2 %v2448_v6  ;;  %v8152_v56 = vld [vmem:[#allocation67_spill] sm:$0xff]  ;;  %v2514_v54 = vld [vmem:[#allocation13 + $0x748] sm:$0xff] }
 0x3ed   :  { %v2166_v60 = vrot.slane %v2165_v23, 1  ;;  %v2416_v24 = vld [vmem:[#allocation13 + $0x438] sm:$0xff]  ;;  %v2510_v32 = vld [vmem:[#allocation13 + $0x728] sm:$0xff] }
 0x3ee   :  { %v2278_v29 = vmax.f32 %v2262_v50, 0.0  ;;  %v2279_v2 = vmax.f32 %v2263_v55, 0.0  ;;  %3371 = vmatpush.msrb.mxu2 %v2444_v0  ;;  %v2574_v48 = vld [vmem:[#allocation13 + $0x928] sm:$0xff]  ;;  %v2724_v11 = vld [vmem:[#allocation13 + $0xdd8] sm:$0xff] }
 0x3ef   :  { %v2167_v57 = vmax.f32 %v2165_v23, %v2166_v60  ;;  %v2506_v10 = vld [vmem:[#allocation13 + $0x708] sm:$0xff]  ;;  %v2716_v55 = vld [vmem:[#allocation13 + $0xd98] sm:$0xff] }
 0x3f0   :  { %3372 = vmatpush.msrb.mxu2 %v2440_v1  ;;  %v2830_v62 = vrot.slane %v2278_v29, 7  ;;  %v2832_v33 = vrot.slane %v2279_v2, 7  ;;  %v2570_v6 = vld [vmem:[#allocation13 + $0x908] sm:$0xff]  ;;  %v2712_v60 = vld [vmem:[#allocation13 + $0xd78] sm:$0xff] }
 0x3f1   :  { %v2261_v39 = vadd.f32 %v2237_v51, %v2167_v57  ;;  %v2502_v23 = vld [vmem:[#allocation13 + $0x6e8] sm:$0xff]  ;;  %v2708_v2 = vld [vmem:[#allocation13 + $0xd58] sm:$0xff] }
 0x3f2   :  { %3373 = vmatpush.msrb.mxu2 %v2436_v16  ;;  %v7203_v38 = vpop.f32.mrf.mxu2  ;;  %v7206_v37 = vsel %vm2820_vm3, %v2830_v62, %v2270_v27  ;;  %v7209_v46 = vsel %vm2820_vm3, %v2832_v33, %v2271_v25  ;;  %v2566_v0 = vld [vmem:[#allocation13 + $0x8e8] sm:$0xff]  ;;  %v2704_v62 = vld [vmem:[#allocation13 + $0xd38] sm:$0xff] }
 0x3f3   :  { %v2277_v18 = vmax.f32 %v2261_v39, 0.0  ;;  %2960 = vmatmul.f32.vlgmr.msrb.gmra.mxu1 %v7206_v37  ;;  %2980 = vmatmul.f32.vlgmr.msra.gmra.mxu3 %v7209_v46  ;;  %v2562_v50 = vld [vmem:[#allocation13 + $0x8c8] sm:$0xff] }
 0x3f4   :  { %3064 = vmatpush.msrb.mxu1 %v2534_v52  ;;  %3084 = vmatpush.msra.mxu3 %v2598_v5  ;;  %v2558_v51 = vld [vmem:[#allocation13 + $0x8a8] sm:$0xff]  ;;  %v2696_v5 = vld [vmem:[#allocation13 + $0xcf8] sm:$0xff] }
 0x3f5   :  { %3300 = vmatmul.f32.vlgmr.msra.gmra.mxu2 %v7209_v46  ;;  %v2828_v20 = vrot.slane %v2277_v18, 7  ;;  %v2490_v1 = vld [vmem:[#allocation13 + $0x688] sm:$0xff] }
 0x3f6   :  { %3374 = vmatpush.msrb.mxu2 %v2432_v21  ;;  %3065 = vmatpush.msrb.mxu1 %v2530_v12  ;;  %v2554_v29 = vld [vmem:[#allocation13 + $0x888] sm:$0xff]  ;;  %v2692_v12 = vld [vmem:[#allocation13 + $0xcd8] sm:$0xff] }
 0x3f7   :  { %3085 = vmatpush.msra.mxu3 %v2594_v61  ;;  %v7215_v4 = vsel %vm2820_vm3, %v2828_v20, %v2269_v28  ;;  %v2486_v16 = vld [vmem:[#allocation13 + $0x668] sm:$0xff]  ;;  %v2688_v28 = vld [vmem:[#allocation13 + $0xcb8] sm:$0xff] }
 0x3f8   :  { %3375 = vmatpush.msrb.mxu2 %v2428_v19  ;;  %3066 = vmatpush.msrb.mxu1 %v2526_v13  ;;  %v2550_v27 = vld [vmem:[#allocation13 + $0x868] sm:$0xff] }
 0x3f9   :  { %3086 = vmatpush.msra.mxu3 %v2590_v14  ;;  %2940 = vmatmul.f32.vlgmr.msrb.gmra.mxu0 %v7215_v4  ;;  %v2482_v25 = vld [vmem:[#allocation13 + $0x648] sm:$0xff]  ;;  %v2684_v14 = vld [vmem:[#allocation13 + $0xc98] sm:$0xff] }
 0x3fa   :  { %3376 = vmatpush.msrb.mxu2 %v2424_v43  ;;  %3067 = vmatpush.msrb.mxu1 %v2522_v45  ;;  %v7218_v63 = vpop.f32.mrf.mxu2  ;;  %v2546_v33 = vld [vmem:[#allocation13 + $0x848] sm:$0xff]  ;;  %v2789_v43 = vld [vmem:[#allocation13 + $0xfe0] sm:$0xff] }
 0x3fb   :  { %3087 = vmatpush.msra.mxu3 %v2586_v42  ;;  %3020 = vmatmul.f32.vlgmr.msra.gmra.mxu1 %v8152_v56  ;;  %v2478_v39 = vld [vmem:[#allocation13 + $0x628] sm:$0xff] }
 0x3fc   :  { %3377 = vmatpush.msrb.mxu2 %v2420_v15  ;;  %3040 = vmatmul.f32.vlgmr.msrb.gmra.mxu3 %v8153_v47  ;;  %v2542_v52 = vld [vmem:[#allocation13 + $0x828] sm:$0xff]  ;;  %v2680_v15 = vld [vmem:[#allocation13 + $0xc78] sm:$0xff] }
 0x3fd   :  { %3068 = vmatpush.msrb.mxu1 %v2518_v17  ;;  %3088 = vmatpush.msra.mxu3 %v2582_v9  ;;  %v2474_v18 = vld [vmem:[#allocation13 + $0x608] sm:$0xff]  ;;  %v2785_v17 = vld [vmem:[#allocation13 + $0xfc0] sm:$0xff] }
 0x3fe   :  { %3378 = vmatpush.msrb.mxu2 %v2416_v24  ;;  %v2538_v21 = vld [vmem:[#allocation13 + $0x808] sm:$0xff]  ;;  %2984 = vmatpush.msra.mxu0 %v2789_v43 }
 0x3ff   :  { %3069 = vmatpush.msrb.mxu1 %v2514_v54  ;;  %3089 = vmatpush.msra.mxu3 %v2578_v34  ;;  %v2726_v19 = vld [vmem:[#allocation13 + $0xde8] sm:$0xff]  ;;  %v2676_v54 = vld [vmem:[#allocation13 + $0xc58] sm:$0xff] }
 0x400   :  { %3379 = vmatpush.msrb.mxu2 %v2412_v36  ;;  %v8154_v13 = vld [vmem:[#allocation42_spill] sm:$0xff]  ;;  %2985 = vmatpush.msra.mxu0 %v2785_v17  ;;  %v2781_v36 = vld [vmem:[#allocation13 + $0xfa0] sm:$0xff] }
 0x401   :  { %3070 = vmatpush.msrb.mxu1 %v2510_v32  ;;  %3090 = vmatpush.msra.mxu3 %v2574_v48  ;;  %v2722_v20 = vld [vmem:[#allocation13 + $0xdc8] sm:$0xff] }
 0x402   :  { %3380 = vmatmul.f32.vlgmr.msrb.gmra.mxu2 %v8151_v35  ;;  %v7223_v49 = vpop.f32.mrf.mxu2  ;;  %v2790_v45 = vld [vmem:[#allocation13 + $0xfe8] sm:$0xff]  ;;  %2986 = vmatpush.msra.mxu0 %v2781_v36  ;;  %v2407_v36 = vld [vmem:[#allocation13 + $0x3f0] sm:$0xff] }
 0x403   :  { %3444 = vmatpush.msra.mxu2 %v2728_v7  ;;  %3071 = vmatpush.msrb.mxu1 %v2506_v10  ;;  %v2718_v42 = vld [vmem:[#allocation13 + $0xda8] sm:$0xff]  ;;  %v2672_v7 = vld [vmem:[#allocation13 + $0xc38] sm:$0xff]  ;;  %v2777_v10 = vld [vmem:[#allocation13 + $0xf80] sm:$0xff] }
 0x404   :  { %3091 = vmatpush.msra.mxu3 %v2570_v6  ;;  %v2786_v9 = vld [vmem:[#allocation13 + $0xfc8] sm:$0xff]  ;;  %2987 = vmatpush.msra.mxu0 %v2777_v10 }
 0x405   :  { %3445 = vmatpush.msra.mxu2 %v2724_v11  ;;  %3072 = vmatpush.msrb.mxu1 %v2502_v23  ;;  %v2714_v24 = vld [vmem:[#allocation13 + $0xd88] sm:$0xff]  ;;  %v2668_v23 = vld [vmem:[#allocation13 + $0xc18] sm:$0xff] }
 0x406   :  { %3092 = vmatpush.msra.mxu3 %v2566_v0  ;;  %v2782_v32 = vld [vmem:[#allocation13 + $0xfa8] sm:$0xff]  ;;  %v2773_v0 = vld [vmem:[#allocation13 + $0xf60] sm:$0xff] }
 0x407   :  { %3446 = vmatpush.msra.mxu2 %v2720_v40  ;;  %3073 = vmatpush.msrb.mxu1 %v2498_v3  ;;  %v2710_v48 = vld [vmem:[#allocation13 + $0xd68] sm:$0xff] }
 0x408   :  { %3093 = vmatpush.msra.mxu3 %v2562_v50  ;;  %v2778_v6 = vld [vmem:[#allocation13 + $0xf88] sm:$0xff]  ;;  %2988 = vmatpush.msra.mxu0 %v2773_v0  ;;  %v2769_v50 = vld [vmem:[#allocation13 + $0xf40] sm:$0xff]  ;;  %v2531_v0 = vld [vmem:[#allocation13 + $0x7d0] sm:$0xff] }
 0x409   :  { %3447 = vmatpush.msra.mxu2 %v2716_v55  ;;  %3074 = vmatpush.msrb.mxu1 %v2494_v53  ;;  %v2706_v11 = vld [vmem:[#allocation13 + $0xd48] sm:$0xff] }
 0x40a   :  { %3094 = vmatpush.msra.mxu3 %v2558_v51  ;;  %v7225_v57 = vpop.f32.mrf.mxu2  ;;  %v2774_v40 = vld [vmem:[#allocation13 + $0xf68] sm:$0xff]  ;;  %2989 = vmatpush.msra.mxu0 %v2769_v50  ;;  %v2527_v50 = vld [vmem:[#allocation13 + $0x7b0] sm:$0xff] }
 0x40b   :  { %3448 = vmatpush.msra.mxu2 %v2712_v60  ;;  %3075 = vmatpush.msrb.mxu1 %v2490_v1  ;;  %v2702_v3 = vld [vmem:[#allocation13 + $0xd28] sm:$0xff]  ;;  %v2765_v60 = vld [vmem:[#allocation13 + $0xf20] sm:$0xff] }
 0x40c   :  { %3095 = vmatpush.msra.mxu3 %v2554_v29  ;;  %v2770_v55 = vld [vmem:[#allocation13 + $0xf48] sm:$0xff]  ;;  %2990 = vmatpush.msra.mxu0 %v2765_v60  ;;  %v2523_v60 = vld [vmem:[#allocation13 + $0x790] sm:$0xff] }
 0x40d   :  { %3449 = vmatpush.msra.mxu2 %v2708_v2  ;;  %3076 = vmatpush.msrb.mxu1 %v2486_v16  ;;  %v2698_v53 = vld [vmem:[#allocation13 + $0xd08] sm:$0xff]  ;;  %v2761_v2 = vld [vmem:[#allocation13 + $0xf00] sm:$0xff] }
 0x40e   :  { %3096 = vmatpush.msra.mxu3 %v2550_v27  ;;  %v2766_v1 = vld [vmem:[#allocation13 + $0xf28] sm:$0xff]  ;;  %2991 = vmatpush.msra.mxu0 %v2761_v2  ;;  %v2519_v2 = vld [vmem:[#allocation13 + $0x770] sm:$0xff] }
 0x40f   :  { %3450 = vmatpush.msra.mxu2 %v2704_v62  ;;  %3077 = vmatpush.msrb.mxu1 %v2482_v25  ;;  %v2694_v29 = vld [vmem:[#allocation13 + $0xce8] sm:$0xff]  ;;  %v2757_v62 = vld [vmem:[#allocation13 + $0xee0] sm:$0xff] }
 0x410   :  { %3097 = vmatpush.msra.mxu3 %v2546_v33  ;;  %v2762_v16 = vld [vmem:[#allocation13 + $0xf08] sm:$0xff]  ;;  %2992 = vmatpush.msra.mxu0 %v2757_v62 }
 0x411   :  { %3451 = vmatpush.msra.mxu2 %v2700_v41  ;;  %3078 = vmatpush.msrb.mxu1 %v2478_v39  ;;  %v2690_v27 = vld [vmem:[#allocation13 + $0xcc8] sm:$0xff]  ;;  %v2753_v41 = vld [vmem:[#allocation13 + $0xec0] sm:$0xff] }
 0x412   :  { %3098 = vmatpush.msra.mxu3 %v2542_v52  ;;  %v7227_v61 = vpop.f32.mrf.mxu2  ;;  %v2758_v25 = vld [vmem:[#allocation13 + $0xee8] sm:$0xff]  ;;  %2993 = vmatpush.msra.mxu0 %v2753_v41 }
 0x413   :  { %3452 = vmatpush.msra.mxu2 %v2696_v5  ;;  %3079 = vmatpush.msrb.mxu1 %v2474_v18  ;;  %v2686_v33 = vld [vmem:[#allocation13 + $0xca8] sm:$0xff]  ;;  %v2749_v18 = vld [vmem:[#allocation13 + $0xea0] sm:$0xff] }
 0x414   :  { %3099 = vmatpush.msra.mxu3 %v2538_v21  ;;  %3080 = vmatmul.f32.vlgmr.msrb.gmra.mxu1 %v8154_v13  ;;  %v2754_v39 = vld [vmem:[#allocation13 + $0xec8] sm:$0xff] }
 0x415   :  { %3453 = vmatpush.msra.mxu2 %v2692_v12  ;;  %3100 = vmatmul.f32.vlgmr.msra.gmra.mxu3 %v7215_v4  ;;  %v2682_v52 = vld [vmem:[#allocation13 + $0xc88] sm:$0xff] }
 0x416   :  { %3124 = vmatpush.msra.mxu1 %v2726_v19  ;;  %3144 = vmatpush.msrb.mxu3 %v2790_v45  ;;  %v2750_v21 = vld [vmem:[#allocation13 + $0xea8] sm:$0xff]  ;;  %v2745_v19 = vld [vmem:[#allocation13 + $0xe80] sm:$0xff] }
 0x417   :  { %3454 = vmatpush.msra.mxu2 %v2688_v28  ;;  %v2678_v12 = vld [vmem:[#allocation13 + $0xc68] sm:$0xff]  ;;  %2994 = vmatpush.msra.mxu0 %v2749_v18  ;;  %v2515_v18 = vld [vmem:[#allocation13 + $0x750] sm:$0xff] }
 0x418   :  { %3125 = vmatpush.msra.mxu1 %v2722_v20  ;;  %3145 = vmatpush.msrb.mxu3 %v2786_v9  ;;  %v2746_v28 = vld [vmem:[#allocation13 + $0xe88] sm:$0xff] }
 0x419   :  { %3455 = vmatpush.msra.mxu2 %v2684_v14  ;;  %v2674_v20 = vld [vmem:[#allocation13 + $0xc48] sm:$0xff]  ;;  %2995 = vmatpush.msra.mxu0 %v2745_v19  ;;  %v2741_v14 = vld [vmem:[#allocation13 + $0xe60] sm:$0xff] }
 0x41a   :  { %3126 = vmatpush.msra.mxu1 %v2718_v42  ;;  %v7231_v34 = vpop.f32.mrf.mxu2  ;;  %3146 = vmatpush.msrb.mxu3 %v2782_v32  ;;  %v2742_v43 = vld [vmem:[#allocation13 + $0xe68] sm:$0xff]  ;;  %v2737_v42 = vld [vmem:[#allocation13 + $0xe40] sm:$0xff]  ;;  %v2403_v32 = vld [vmem:[#allocation13 + $0x3d0] sm:$0xff] }
 0x41b   :  { %3456 = vmatpush.msra.mxu2 %v2680_v15  ;;  %v2670_v45 = vld [vmem:[#allocation13 + $0xc28] sm:$0xff]  ;;  %2996 = vmatpush.msra.mxu0 %v2741_v14 }
 0x41c   :  { %3127 = vmatpush.msra.mxu1 %v2714_v24  ;;  %3147 = vmatpush.msrb.mxu3 %v2778_v6  ;;  %v2738_v15 = vld [vmem:[#allocation13 + $0xe48] sm:$0xff]  ;;  %v2733_v24 = vld [vmem:[#allocation13 + $0xe20] sm:$0xff]  ;;  %v2399_v6 = vld [vmem:[#allocation13 + $0x3b0] sm:$0xff] }
 0x41d   :  { %3457 = vmatpush.msra.mxu2 %v2676_v54  ;;  %v2666_v17 = vld [vmem:[#allocation13 + $0xc08] sm:$0xff]  ;;  %2997 = vmatpush.msra.mxu0 %v2737_v42  ;;  %v2507_v42 = vld [vmem:[#allocation13 + $0x710] sm:$0xff] }
 0x41e   :  { %3128 = vmatpush.msra.mxu1 %v2710_v48  ;;  %3148 = vmatpush.msrb.mxu3 %v2774_v40  ;;  %v2734_v54 = vld [vmem:[#allocation13 + $0xe28] sm:$0xff]  ;;  %v2729_v48 = vld [vmem:[#allocation13 + $0xe00] sm:$0xff]  ;;  %v2395_v40 = vld [vmem:[#allocation13 + $0x390] sm:$0xff] }
 0x41f   :  { %3458 = vmatpush.msra.mxu2 %v2672_v7  ;;  %2998 = vmatpush.msra.mxu0 %v2733_v24  ;;  %v2730_v7 = vld [vmem:[#allocation13 + $0xe08] sm:$0xff] }
 0x420   :  { %3129 = vmatpush.msra.mxu1 %v2706_v11  ;;  %3149 = vmatpush.msrb.mxu3 %v2770_v55  ;;  %v2470_v10 = vld [vmem:[#allocation13 + $0x5e8] sm:$0xff]  ;;  %v2535_v11 = vld [vmem:[#allocation13 + $0x7f0] sm:$0xff] }
 0x421   :  { %3459 = vmatpush.msra.mxu2 %v2668_v23  ;;  %2999 = vmatpush.msra.mxu0 %v2729_v48  ;;  %v2466_v23 = vld [vmem:[#allocation13 + $0x5c8] sm:$0xff]  ;;  %v2391_v55 = vld [vmem:[#allocation13 + $0x370] sm:$0xff] }
 0x422   :  { %3130 = vmatpush.msra.mxu1 %v2702_v3  ;;  %3460 = vmatmul.f32.vlgmr.msra.gmra.mxu2 %v7209_v46  ;;  %v7234_v51 = vpop.f32.mrf.mxu2  ;;  %v8155_v62 = vld [vmem:[#allocation61_spill] sm:$0xff]  ;;  %v2499_v48 = vld [vmem:[#allocation13 + $0x6d0] sm:$0xff] }
 0x423   :  { %3150 = vmatpush.msrb.mxu3 %v2766_v1  ;;  %3044 = vmatpush.msrb.mxu0 %v2470_v10  ;;  %v2387_v1 = vld [vmem:[#allocation13 + $0x350] sm:$0xff]  ;;  %v2438_v24 = vld [vmem:[#allocation13 + $0x4e8] sm:$0xff] }
 0x424   :  { %3131 = vmatpush.msra.mxu1 %v2698_v53  ;;  %v2458_v53 = vld [vmem:[#allocation13 + $0x588] sm:$0xff]  ;;  %v2359_v10 = vld [vmem:[#allocation13 + $0x270] sm:$0xff] }
 0x425   :  { %3151 = vmatpush.msrb.mxu3 %v2762_v16  ;;  %3045 = vmatpush.msrb.mxu0 %v2466_v23  ;;  %v2210_v16 = vmax.f32 %v7194_v22, %v7200_v31  ;;  %v2375_v31 = vld [vmem:[#allocation13 + $0x2f0] sm:$0xff] }
 0x426   :  { %3132 = vmatpush.msra.mxu1 %v2694_v29  ;;  %v2454_v29 = vld [vmem:[#allocation13 + $0x568] sm:$0xff]  ;;  %v2491_v23 = vld [vmem:[#allocation13 + $0x690] sm:$0xff] }
 0x427   :  { %3152 = vmatpush.msrb.mxu3 %v2758_v25  ;;  %v8156_v25 = vld [vmem:[#allocation60_spill] sm:$0xff]  ;;  %v2211_v41 = vmax.f32 %v2210_v16, %v7203_v38 }
 0x428   :  { %3133 = vmatpush.msra.mxu1 %v2690_v27  ;;  %v2383_v27 = vld [vmem:[#allocation13 + $0x330] sm:$0xff] }
 0x429   :  { %3153 = vmatpush.msrb.mxu3 %v2754_v39  ;;  %v2379_v39 = vld [vmem:[#allocation13 + $0x310] sm:$0xff]  ;;  %v2212_v22 = vmax.f32 %v2211_v41, %v7218_v63 }
 0x42a   :  { %3134 = vmatpush.msra.mxu1 %v2686_v33  ;;  %v7236_v5 = vpop.f32.mrf.mxu2  ;;  %v2050_v33 = vmax.f32 %v8156_v25, %v8155_v62  ;;  %v2659_v25 = vld [vmem:[#allocation13 + $0xbd0] sm:$0xff] }
 0x42b   :  { %3154 = vmatpush.msrb.mxu3 %v2750_v21  ;;  %v2213_v14 = vmax.f32 %v2212_v22, %v7223_v49 }
 0x42c   :  { %3135 = vmatpush.msra.mxu1 %v2682_v52  ;;  %v2450_v52 = vld [vmem:[#allocation13 + $0x548] sm:$0xff] }
 0x42d   :  { %3155 = vmatpush.msrb.mxu3 %v2746_v28  ;;  %v2446_v28 = vld [vmem:[#allocation13 + $0x528] sm:$0xff]  ;;  %v2214_v63 = vmax.f32 %v2213_v14, %v7225_v57 }
 0x42e   :  { %3136 = vmatpush.msra.mxu1 %v2678_v12  ;;  %v8157_v12 = vld [vmem:[#allocation48_spill] sm:$0xff] }
 0x42f   :  { %3156 = vmatpush.msrb.mxu3 %v2742_v43  ;;  %v2051_v19 = vmax.f32 %v2050_v33, %v8157_v12  ;;  %v2371_v43 = vld [vmem:[#allocation13 + $0x2d0] sm:$0xff]  ;;  %v2215_v49 = vmax.f32 %v2214_v63, %v7227_v61 }
 0x430   :  { %3137 = vmatpush.msra.mxu1 %v2674_v20  ;;  %v2511_v20 = vld [vmem:[#allocation13 + $0x730] sm:$0xff] }
 0x431   :  { %3157 = vmatpush.msrb.mxu3 %v2738_v15  ;;  %v2052_v38 = vmax.f32 %v2051_v19, %v7088_v58  ;;  %v2216_v57 = vmax.f32 %v2215_v49, %v7231_v34  ;;  %v2475_v33 = vld [vmem:[#allocation13 + $0x610] sm:$0xff] }
 0x432   :  { %3138 = vmatpush.msra.mxu1 %v2670_v45  ;;  %v7238_v9 = vpop.f32.mrf.mxu2  ;;  %v2442_v45 = vld [vmem:[#allocation13 + $0x508] sm:$0xff]  ;;  %v2647_v19 = vld [vmem:[#allocation13 + $0xb70] sm:$0xff] }
 0x433   :  { %3158 = vmatpush.msrb.mxu3 %v2734_v54  ;;  %v2053_v15 = vmax.f32 %v2052_v38, %v7109_v26  ;;  %v2503_v54 = vld [vmem:[#allocation13 + $0x6f0] sm:$0xff] }
 0x434   :  { %3139 = vmatpush.msra.mxu1 %v2666_v17  ;;  %v2367_v17 = vld [vmem:[#allocation13 + $0x2b0] sm:$0xff] }
 0x435   :  { %3140 = vmatmul.f32.vlgmr.msra.gmra.mxu1 %v7209_v46  ;;  %3159 = vmatpush.msrb.mxu3 %v2730_v7  ;;  %v2462_v46 = vld [vmem:[#allocation13 + $0x5a8] sm:$0xff]  ;;  %v2054_v58 = vmax.f32 %v2053_v15, %v7137_v44  ;;  %v2639_v38 = vld [vmem:[#allocation13 + $0xb30] sm:$0xff] }
 0x436   :  { %3184 = vmatpush.msrb.mxu1 %v2407_v36  ;;  %3046 = vmatpush.msrb.mxu0 %v2462_v46  ;;  %v2363_v36 = vld [vmem:[#allocation13 + $0x290] sm:$0xff]  ;;  %v2426_v44 = vld [vmem:[#allocation13 + $0x488] sm:$0xff] }
 0x437   :  { %3224 = vmatpush.msra.mxu3 %v2535_v11  ;;  %v2055_v26 = vmax.f32 %v2054_v58, %v7171_v8  ;;  %v2495_v11 = vld [vmem:[#allocation13 + $0x6b0] sm:$0xff]  ;;  %v2422_v46 = vld [vmem:[#allocation13 + $0x468] sm:$0xff] }
 0x438   :  { %3185 = vmatpush.msrb.mxu1 %v2403_v32  ;;  %3047 = vmatpush.msrb.mxu0 %v2458_v53  ;;  %v2434_v32 = vld [vmem:[#allocation13 + $0x4c8] sm:$0xff]  ;;  %v2487_v8 = vld [vmem:[#allocation13 + $0x670] sm:$0xff] }
 0x439   :  { %3225 = vmatpush.msra.mxu3 %v2531_v0  ;;  %v2056_v61 = vmax.f32 %v2055_v26, %v7188_v59  ;;  %v2217_v0 = vmax.f32 %v2216_v57, %v7234_v51  ;;  %v2483_v53 = vld [vmem:[#allocation13 + $0x650] sm:$0xff] }
 0x43a   :  { %3186 = vmatpush.msrb.mxu1 %v2399_v6  ;;  %v7241_v3 = vpop.f32.mrf.mxu2  ;;  %3048 = vmatpush.msrb.mxu0 %v2454_v29  ;;  %v2430_v6 = vld [vmem:[#allocation13 + $0x4a8] sm:$0xff]  ;;  %v2347_v59 = vld [vmem:[#allocation13 + $0x210] sm:$0xff] }
 0x43b   :  { %3226 = vmatpush.msra.mxu3 %v2527_v50  ;;  %v2218_v34 = vmax.f32 %v2217_v0, %v7236_v5  ;;  %v2351_v50 = vld [vmem:[#allocation13 + $0x230] sm:$0xff]  ;;  %v2414_v29 = vld [vmem:[#allocation13 + $0x428] sm:$0xff] }
 0x43c   :  { %3187 = vmatpush.msrb.mxu1 %v2395_v40  ;;  %3049 = vmatpush.msrb.mxu0 %v2450_v52  ;;  %v2355_v40 = vld [vmem:[#allocation13 + $0x250] sm:$0xff] }
 0x43d   :  { %3227 = vmatpush.msra.mxu3 %v2523_v60  ;;  %v2057_v60 = vrot.slane %v2056_v61, 4  ;;  %v2631_v15 = vld [vmem:[#allocation13 + $0xaf0] sm:$0xff] }
 0x43e   :  { %3188 = vmatpush.msrb.mxu1 %v2391_v55  ;;  %3050 = vmatpush.msrb.mxu0 %v2446_v28  ;;  %v2418_v55 = vld [vmem:[#allocation13 + $0x448] sm:$0xff]  ;;  %v2623_v49 = vld [vmem:[#allocation13 + $0xab0] sm:$0xff] }
 0x43f   :  { %3228 = vmatpush.msra.mxu3 %v2519_v2  ;;  %v2479_v2 = vld [vmem:[#allocation13 + $0x630] sm:$0xff]  ;;  %v2058_v5 = vmax.f32 %v2056_v61, %v2057_v60  ;;  %v2658_v61 = vld [vmem:[#allocation13 + $0xbc8] sm:$0xff]  ;;  %v2400_v60 = vld [vmem:[#allocation13 + $0x3b8] sm:$0xff] }
 0x440   :  { %3189 = vmatpush.msrb.mxu1 %v2387_v1  ;;  %3051 = vmatpush.msrb.mxu0 %v2442_v45  ;;  %v2219_v1 = vmax.f32 %v2218_v34, %v7238_v9  ;;  %v2410_v9 = vld [vmem:[#allocation13 + $0x408] sm:$0xff]  ;;  %v2635_v45 = vld [vmem:[#allocation13 + $0xb10] sm:$0xff] }
 0x441   :  { %3229 = vmatpush.msra.mxu3 %v2515_v18  ;;  %v2651_v18 = vld [vmem:[#allocation13 + $0xb90] sm:$0xff] }
 0x442   :  { %3190 = vmatpush.msrb.mxu1 %v2383_v27  ;;  %v7248_v21 = vpop.f32.mrf.mxu2  ;;  %3052 = vmatpush.msrb.mxu0 %v2438_v24  ;;  %v2220_v16 = vmax.f32 %v2219_v1, %v7241_v3  ;;  %v2663_v27 = vld [vmem:[#allocation13 + $0xbf0] sm:$0xff]  ;;  %v2059_v3 = vrot.slane %v2058_v5, 2  ;;  %v2646_v1 = vld [vmem:[#allocation13 + $0xb68] sm:$0xff] }
 0x443   :  { %3230 = vmatpush.msra.mxu3 %v2511_v20  ;;  %v2615_v26 = vld [vmem:[#allocation13 + $0xa70] sm:$0xff] }
 0x444   :  { %3191 = vmatpush.msrb.mxu1 %v2379_v39  ;;  %3053 = vmatpush.msrb.mxu0 %v2434_v32  ;;  %v2221_v62 = vmax.f32 %v2220_v16, %v7248_v21  ;;  %v2655_v39 = vld [vmem:[#allocation13 + $0xbb0] sm:$0xff]  ;;  %v2060_v21 = vmax.f32 %v2058_v5, %v2059_v3  ;;  %v2392_v16 = vld [vmem:[#allocation13 + $0x378] sm:$0xff]  ;;  %v2626_v3 = vld [vmem:[#allocation13 + $0xac8] sm:$0xff] }
 0x445   :  { %3231 = vmatpush.msra.mxu3 %v2507_v42  ;;  %v2611_v57 = vld [vmem:[#allocation13 + $0xa50] sm:$0xff] }
 0x446   :  { %3192 = vmatpush.msrb.mxu1 %v2375_v31  ;;  %3054 = vmatpush.msrb.mxu0 %v2430_v6  ;;  %v2643_v31 = vld [vmem:[#allocation13 + $0xb50] sm:$0xff]  ;;  %v2061_v14 = vrot.slane %v2060_v21, 1 }
 0x447   :  { %3232 = vmatpush.msra.mxu3 %v2503_v54  ;;  %v2627_v54 = vld [vmem:[#allocation13 + $0xad0] sm:$0xff] }
 0x448   :  { %3193 = vmatpush.msrb.mxu1 %v2371_v43  ;;  %3055 = vmatpush.msrb.mxu0 %v2426_v44  ;;  %v2062_v63 = vmax.f32 %v2060_v21, %v2061_v14  ;;  %v2607_v44 = vld [vmem:[#allocation13 + $0xa30] sm:$0xff]  ;;  %v2618_v21 = vld [vmem:[#allocation13 + $0xa88] sm:$0xff]  ;;  %v2364_v14 = vld [vmem:[#allocation13 + $0x298] sm:$0xff] }
 0x449   :  { %3233 = vmatpush.msra.mxu3 %v2499_v48  ;;  %v2619_v48 = vld [vmem:[#allocation13 + $0xa90] sm:$0xff] }
 0x44a   :  { %3194 = vmatpush.msrb.mxu1 %v2367_v17  ;;  %v1886_v7 = vpop.f32.mrf.mxu2  ;;  %3056 = vmatpush.msrb.mxu0 %v2422_v46  ;;  %v2240_v17 = vperm.slane %v7196_v30, 7  ;;  %v2603_v0 = vld [vmem:[#allocation13 + $0xa10] sm:$0xff]  ;;  %v2654_v46 = vld [vmem:[#allocation13 + $0xba8] sm:$0xff] }
 0x44b   :  { %3234 = vmatpush.msra.mxu3 %v2495_v11  ;;  %v2222_v41 = vmax.f32 %v2221_v62, %v1886_v7  ;;  %v2662_v11 = vld [vmem:[#allocation13 + $0xbe8] sm:$0xff]  ;;  %v2783_v34 = vld [vmem:[#allocation13 + $0xfb0] sm:$0xff]  ;;  %v2388_v62 = vld [vmem:[#allocation13 + $0x358] sm:$0xff] }
 0x44c   :  { %3195 = vmatpush.msrb.mxu1 %v2363_v36  ;;  %3057 = vmatpush.msrb.mxu0 %v2418_v55  ;;  %v2256_v36 = vadd.f32 %v2240_v17, %v2062_v63  ;;  %v2404_v55 = vld [vmem:[#allocation13 + $0x3d8] sm:$0xff]  ;;  %v2767_v5 = vld [vmem:[#allocation13 + $0xf30] sm:$0xff] }
 0x44d   :  { %3235 = vmatpush.msra.mxu3 %v2491_v23  ;;  %v2791_v23 = vld [vmem:[#allocation13 + $0xff0] sm:$0xff] }
 0x44e   :  { %3196 = vmatpush.msrb.mxu1 %v2359_v10  ;;  %3058 = vmatpush.msrb.mxu0 %v2414_v29  ;;  %v2272_v10 = vmax.f32 %v2256_v36, 0.0  ;;  %v2642_v29 = vld [vmem:[#allocation13 + $0xb48] sm:$0xff]  ;;  %v2735_v63 = vld [vmem:[#allocation13 + $0xe30] sm:$0xff]  ;;  %v2348_v36 = vld [vmem:[#allocation13 + $0x218] sm:$0xff] }
 0x44f   :  { %3236 = vmatpush.msra.mxu3 %v2487_v8  ;;  %v2408_v8 = vld [vmem:[#allocation13 + $0x3f8] sm:$0xff] }
 0x450   :  { %3197 = vmatpush.msrb.mxu1 %v2355_v40  ;;  %3059 = vmatpush.msrb.mxu0 %v2410_v9  ;;  %v2787_v40 = vld [vmem:[#allocation13 + $0xfd0] sm:$0xff] }
 0x451   :  { %3237 = vmatpush.msra.mxu3 %v2483_v53  ;;  %v2779_v53 = vld [vmem:[#allocation13 + $0xf90] sm:$0xff] }
 0x452   :  { %3198 = vmatpush.msrb.mxu1 %v2351_v50  ;;  %v1889_v51 = vpop.f32.mrf.mxu2  ;;  %v2650_v50 = vld [vmem:[#allocation13 + $0xb88] sm:$0xff]  ;;  %v2763_v9 = vld [vmem:[#allocation13 + $0xf10] sm:$0xff] }
 0x453   :  { %3238 = vmatpush.msra.mxu3 %v2479_v2  ;;  %v2223_v52 = vmax.f32 %v2222_v41, %v1889_v51  ;;  %v2396_v51 = vld [vmem:[#allocation13 + $0x398] sm:$0xff]  ;;  %v2771_v2 = vld [vmem:[#allocation13 + $0xf50] sm:$0xff] }
 0x454   :  { %3199 = vmatpush.msrb.mxu1 %v2347_v59  ;;  %v2775_v59 = vld [vmem:[#allocation13 + $0xf70] sm:$0xff] }
 0x455   :  { %3200 = vmatmul.f32.vlgmr.msrb.gmra.mxu1 %v8153_v47  ;;  %3239 = vmatpush.msra.mxu3 %v2475_v33  ;;  %v2384_v33 = vld [vmem:[#allocation13 + $0x338] sm:$0xff]  ;;  %v2759_v41 = vld [vmem:[#allocation13 + $0xef0] sm:$0xff] }
 0x456   :  { %3264 = vmatpush.msra.mxu1 %v2663_v27  ;;  %v2638_v27 = vld [vmem:[#allocation13 + $0xb28] sm:$0xff] }
 0x458   :  { %3265 = vmatpush.msra.mxu1 %v2659_v25  ;;  %v2634_v25 = vld [vmem:[#allocation13 + $0xb08] sm:$0xff] }
 0x45a   :  { %3266 = vmatpush.msra.mxu1 %v2655_v39  ;;  %v1892_v12 = vpop.f32.mrf.mxu2  ;;  %v2380_v39 = vld [vmem:[#allocation13 + $0x318] sm:$0xff] }
 0x45b   :  { %v2224_v22 = vmax.f32 %v2223_v52, %v1892_v12  ;;  %v2755_v52 = vld [vmem:[#allocation13 + $0xed0] sm:$0xff]  ;;  %v2622_v12 = vld [vmem:[#allocation13 + $0xaa8] sm:$0xff] }
 0x45c   :  { %3267 = vmatpush.msra.mxu1 %v2651_v18  ;;  %v2376_v18 = vld [vmem:[#allocation13 + $0x2f8] sm:$0xff] }
 0x45d   :  { %v2225_v28 = vrot.slane %v2224_v22, 4 }
 0x45e   :  { %3268 = vmatpush.msra.mxu1 %v2647_v19  ;;  %v2751_v19 = vld [vmem:[#allocation13 + $0xeb0] sm:$0xff] }
 0x45f   :  { %v2226_v20 = vmax.f32 %v2224_v22, %v2225_v28  ;;  %v2372_v22 = vld [vmem:[#allocation13 + $0x2d8] sm:$0xff] }
 0x460   :  { %3269 = vmatpush.msra.mxu1 %v2643_v31  ;;  %v2747_v31 = vld [vmem:[#allocation13 + $0xe90] sm:$0xff]  ;;  %v2368_v28 = vld [vmem:[#allocation13 + $0x2b8] sm:$0xff] }
 0x461   :  { %v2227_v43 = vrot.slane %v2226_v20, 2 }
 0x462   :  { %3270 = vmatpush.msra.mxu1 %v2639_v38  ;;  %v2743_v38 = vld [vmem:[#allocation13 + $0xe70] sm:$0xff] }
 0x463   :  { %v2228_v42 = vmax.f32 %v2226_v20, %v2227_v43  ;;  %v2614_v20 = vld [vmem:[#allocation13 + $0xa68] sm:$0xff] }
 0x464   :  { %3271 = vmatpush.msra.mxu1 %v2635_v45  ;;  %v2610_v43 = vld [vmem:[#allocation13 + $0xa48] sm:$0xff]  ;;  %v2739_v45 = vld [vmem:[#allocation13 + $0xe50] sm:$0xff] }
 0x465   :  { %v2229_v24 = vrot.slane %v2228_v42, 1 }
 0x466   :  { %3272 = vmatpush.msra.mxu1 %v2631_v15  ;;  %v2606_v15 = vld [vmem:[#allocation13 + $0xa28] sm:$0xff] }
 0x467   :  { %v2230_v58 = vmax.f32 %v2228_v42, %v2229_v24  ;;  %v2360_v42 = vld [vmem:[#allocation13 + $0x278] sm:$0xff]  ;;  %v2602_v24 = vld [vmem:[#allocation13 + $0xa08] sm:$0xff] }
 0x468   :  { %3273 = vmatpush.msra.mxu1 %v2627_v54  ;;  %v2731_v54 = vld [vmem:[#allocation13 + $0xe10] sm:$0xff] }
 0x469   :  { %v2264_v32 = vadd.f32 %v2240_v17, %v2230_v58  ;;  %v2356_v17 = vld [vmem:[#allocation13 + $0x258] sm:$0xff] }
 0x46a   :  { %3274 = vmatpush.msra.mxu1 %v2623_v49  ;;  %v2352_v58 = vld [vmem:[#allocation13 + $0x238] sm:$0xff]  ;;  %v2343_v49 = vld [vmem:[#allocation13 + $0x1f0] sm:$0xff] }
 0x46b   :  { %v2280_v7 = vmax.f32 %v2264_v32, 0.0  ;;  %v2536_v32 = vld [vmem:[#allocation13 + $0x7f8] sm:$0xff] }
 0x46c   :  { %3275 = vmatpush.msra.mxu1 %v2619_v48  ;;  %v2339_v48 = vld [vmem:[#allocation13 + $0x1d0] sm:$0xff] }
 0x46d   :  { %v2834_v6 = vrot.slane %v2280_v7, 7  ;;  %v2664_v7 = vld [vmem:[#allocation13 + $0xbf8] sm:$0xff] }
 0x46e   :  { %3276 = vmatpush.msra.mxu1 %v2615_v26  ;;  %v2532_v26 = vld [vmem:[#allocation13 + $0x7d8] sm:$0xff] }
 0x46f   :  { %v7269_v30 = vsel %vm2820_vm3, %v2834_v6, %v2272_v10  ;;  %v2660_v10 = vld [vmem:[#allocation13 + $0xbd8] sm:$0xff] }
 0x470   :  { %3277 = vmatpush.msra.mxu1 %v2611_v57  ;;  %3000 = vmatmul.f32.vlgmr.msra.gmra.mxu0 %v7269_v30  ;;  %v2335_v57 = vld [vmem:[#allocation13 + $0x1b0] sm:$0xff]  ;;  %v2528_v6 = vld [vmem:[#allocation13 + $0x7b8] sm:$0xff] }
 0x471   :  { %3104 = vmatpush.msra.mxu0 %v2662_v11  ;;  %3160 = vmatmul.f32.vlgmr.msrb.gmra.mxu3 %v7269_v30  ;;  %v2331_v11 = vld [vmem:[#allocation13 + $0x190] sm:$0xff] }
 0x472   :  { %3278 = vmatpush.msra.mxu1 %v2607_v44  ;;  %3304 = vmatpush.msrb.mxu3 %v2791_v23  ;;  %v2656_v44 = vld [vmem:[#allocation13 + $0xbb8] sm:$0xff] }
 0x473   :  { %3105 = vmatpush.msra.mxu0 %v2658_v61  ;;  %v2524_v23 = vld [vmem:[#allocation13 + $0x798] sm:$0xff]  ;;  %v2327_v61 = vld [vmem:[#allocation13 + $0x170] sm:$0xff] }
 0x474   :  { %3279 = vmatpush.msra.mxu1 %v2603_v0  ;;  %3305 = vmatpush.msrb.mxu3 %v2787_v40  ;;  %v2652_v0 = vld [vmem:[#allocation13 + $0xb98] sm:$0xff] }
 0x475   :  { %3280 = vmatmul.f32.vlgmr.msra.gmra.mxu1 %v7206_v37  ;;  %3106 = vmatpush.msra.mxu0 %v2654_v46  ;;  %v2520_v40 = vld [vmem:[#allocation13 + $0x778] sm:$0xff]  ;;  %v2323_v46 = vld [vmem:[#allocation13 + $0x150] sm:$0xff] }
 0x476   :  { %3344 = vmatpush.msrb.mxu1 %v2408_v8  ;;  %3306 = vmatpush.msrb.mxu3 %v2783_v34  ;;  %v2648_v8 = vld [vmem:[#allocation13 + $0xb78] sm:$0xff]  ;;  %v2319_v34 = vld [vmem:[#allocation13 + $0x130] sm:$0xff] }
 0x477   :  { %3107 = vmatpush.msra.mxu0 %v2650_v50  ;;  %v2644_v50 = vld [vmem:[#allocation13 + $0xb58] sm:$0xff] }
 0x478   :  { %3345 = vmatpush.msrb.mxu1 %v2404_v55  ;;  %3307 = vmatpush.msrb.mxu3 %v2779_v53  ;;  %v2512_v55 = vld [vmem:[#allocation13 + $0x738] sm:$0xff]  ;;  %v2315_v53 = vld [vmem:[#allocation13 + $0x110] sm:$0xff] }
 0x479   :  { %3060 = vmatmul.f32.vlgmr.msrb.gmra.mxu0 %v8151_v35  ;;  %3240 = vmatmul.f32.vlgmr.msra.gmra.mxu3 %v8154_v13  ;;  %v2630_v35 = vld [vmem:[#allocation13 + $0xae8] sm:$0xff] }
 0x47a   :  { %3346 = vmatpush.msrb.mxu1 %v2400_v60  ;;  %3108 = vmatpush.msra.mxu0 %v2646_v1  ;;  %v2640_v60 = vld [vmem:[#allocation13 + $0xb38] sm:$0xff] }
 0x47b   :  { %3308 = vmatpush.msrb.mxu3 %v2775_v59  ;;  %v2508_v1 = vld [vmem:[#allocation13 + $0x718] sm:$0xff]  ;;  %v2311_v59 = vld [vmem:[#allocation13 + $0xf0] sm:$0xff] }
 0x47c   :  { %3347 = vmatpush.msrb.mxu1 %v2396_v51  ;;  %3109 = vmatpush.msra.mxu0 %v2642_v29  ;;  %v2636_v51 = vld [vmem:[#allocation13 + $0xb18] sm:$0xff] }
 0x47d   :  { %3309 = vmatpush.msrb.mxu3 %v2771_v2  ;;  %v2504_v29 = vld [vmem:[#allocation13 + $0x6f8] sm:$0xff]  ;;  %v2307_v2 = vld [vmem:[#allocation13 + $0xd0] sm:$0xff] }
 0x47e   :  { %3348 = vmatpush.msrb.mxu1 %v2392_v16  ;;  %3110 = vmatpush.msra.mxu0 %v2638_v27  ;;  %v2632_v16 = vld [vmem:[#allocation13 + $0xaf8] sm:$0xff] }
 0x47f   :  { %3310 = vmatpush.msrb.mxu3 %v2767_v5  ;;  %v2500_v27 = vld [vmem:[#allocation13 + $0x6d8] sm:$0xff]  ;;  %v2303_v5 = vld [vmem:[#allocation13 + $0xb0] sm:$0xff] }
 0x480   :  { %3349 = vmatpush.msrb.mxu1 %v2388_v62  ;;  %3111 = vmatpush.msra.mxu0 %v2634_v25  ;;  %v2628_v62 = vld [vmem:[#allocation13 + $0xad8] sm:$0xff] }
 0x481   :  { %3311 = vmatpush.msrb.mxu3 %v2763_v9  ;;  %v2496_v25 = vld [vmem:[#allocation13 + $0x6b8] sm:$0xff]  ;;  %v2299_v9 = vld [vmem:[#allocation13 + $0x90] sm:$0xff] }
 0x482   :  { %3350 = vmatpush.msrb.mxu1 %v2384_v33  ;;  %3112 = vmatpush.msra.mxu0 %v2630_v35  ;;  %v2624_v33 = vld [vmem:[#allocation13 + $0xab8] sm:$0xff] }
 0x483   :  { %3312 = vmatpush.msrb.mxu3 %v2759_v41  ;;  %v2492_v35 = vld [vmem:[#allocation13 + $0x698] sm:$0xff]  ;;  %v2295_v41 = vld [vmem:[#allocation13 + $0x70] sm:$0xff] }
 0x484   :  { %3351 = vmatpush.msrb.mxu1 %v2380_v39  ;;  %3113 = vmatpush.msra.mxu0 %v2626_v3  ;;  %v2620_v39 = vld [vmem:[#allocation13 + $0xa98] sm:$0xff] }
 0x485   :  { %3313 = vmatpush.msrb.mxu3 %v2755_v52  ;;  %v2488_v3 = vld [vmem:[#allocation13 + $0x678] sm:$0xff]  ;;  %v2291_v52 = vld [vmem:[#allocation13 + $0x50] sm:$0xff] }
 0x486   :  { %3352 = vmatpush.msrb.mxu1 %v2376_v18  ;;  %3114 = vmatpush.msra.mxu0 %v2622_v12  ;;  %v2616_v18 = vld [vmem:[#allocation13 + $0xa78] sm:$0xff] }
 0x487   :  { %3314 = vmatpush.msrb.mxu3 %v2751_v19  ;;  %v2484_v12 = vld [vmem:[#allocation13 + $0x658] sm:$0xff]  ;;  %v2287_v19 = vld [vmem:[#allocation13 + $0x30] sm:$0xff] }
 0x488   :  { %3353 = vmatpush.msrb.mxu1 %v2372_v22  ;;  %3115 = vmatpush.msra.mxu0 %v2618_v21  ;;  %v2612_v22 = vld [vmem:[#allocation13 + $0xa58] sm:$0xff] }
 0x489   :  { %3315 = vmatpush.msrb.mxu3 %v2747_v31  ;;  %v2480_v21 = vld [vmem:[#allocation13 + $0x638] sm:$0xff]  ;;  %v2283_v31 = vld [vmem:[#allocation13 + $0x10] sm:$0xff] }
 0x48a   :  { %3354 = vmatpush.msrb.mxu1 %v2368_v28  ;;  %3116 = vmatpush.msra.mxu0 %v2614_v20  ;;  %v2608_v28 = vld [vmem:[#allocation13 + $0xa38] sm:$0xff] }
 0x48b   :  { %3316 = vmatpush.msrb.mxu3 %v2743_v38  ;;  %v2476_v20 = vld [vmem:[#allocation13 + $0x618] sm:$0xff] }
 0x48c   :  { %3355 = vmatpush.msrb.mxu1 %v2364_v14  ;;  %3117 = vmatpush.msra.mxu0 %v2610_v43  ;;  %v2604_v38 = vld [vmem:[#allocation13 + $0xa18] sm:$0xff]  ;;  %v2599_v14 = vld [vmem:[#allocation13 + $0x9f0] sm:$0xff] }
 0x48d   :  { %3317 = vmatpush.msrb.mxu3 %v2739_v45  ;;  %v2792_v43 = vld [vmem:[#allocation13 + $0xff8] sm:$0xff]  ;;  %v2595_v45 = vld [vmem:[#allocation13 + $0x9d0] sm:$0xff] }
 0x48e   :  { %3356 = vmatpush.msrb.mxu1 %v2360_v42  ;;  %3118 = vmatpush.msra.mxu0 %v2606_v15  ;;  %v2788_v42 = vld [vmem:[#allocation13 + $0xfd8] sm:$0xff]  ;;  %v2591_v15 = vld [vmem:[#allocation13 + $0x9b0] sm:$0xff] }
 0x48f   :  { %3318 = vmatpush.msrb.mxu3 %v2735_v63  ;;  %v2784_v63 = vld [vmem:[#allocation13 + $0xfb8] sm:$0xff] }
 0x490   :  { %3357 = vmatpush.msrb.mxu1 %v2356_v17  ;;  %3119 = vmatpush.msra.mxu0 %v2602_v24  ;;  %v2587_v17 = vld [vmem:[#allocation13 + $0x990] sm:$0xff]  ;;  %v2780_v24 = vld [vmem:[#allocation13 + $0xf98] sm:$0xff] }
 0x491   :  { %3319 = vmatpush.msrb.mxu3 %v2731_v54  ;;  %3120 = vmatmul.f32.vlgmr.msra.gmra.mxu0 %v7206_v37  ;;  %v2583_v54 = vld [vmem:[#allocation13 + $0x970] sm:$0xff] }
 0x492   :  { %3358 = vmatpush.msrb.mxu1 %v2352_v58  ;;  %3164 = vmatpush.msrb.mxu0 %v2343_v49  ;;  %v2776_v58 = vld [vmem:[#allocation13 + $0xf78] sm:$0xff] }
 0x493   :  { %3320 = vmatmul.f32.vlgmr.msrb.gmra.mxu3 %v7269_v30  ;;  %v2772_v49 = vld [vmem:[#allocation13 + $0xf58] sm:$0xff] }
 0x494   :  { %3359 = vmatpush.msrb.mxu1 %v2348_v36  ;;  %3384 = vmatpush.msra.mxu3 %v2536_v32  ;;  %v2575_v36 = vld [vmem:[#allocation13 + $0x930] sm:$0xff] }
 0x495   :  { %3360 = vmatmul.f32.vlgmr.msrb.gmra.mxu1 %v8153_v47  ;;  %3165 = vmatpush.msrb.mxu0 %v2339_v48  ;;  %v2516_v47 = vld [vmem:[#allocation13 + $0x758] sm:$0xff]  ;;  %v2571_v32 = vld [vmem:[#allocation13 + $0x910] sm:$0xff] }
 0x496   :  { %3424 = vmatpush.msra.mxu1 %v2664_v7  ;;  %3385 = vmatpush.msra.mxu3 %v2532_v26  ;;  %v2764_v48 = vld [vmem:[#allocation13 + $0xf18] sm:$0xff]  ;;  %v2567_v7 = vld [vmem:[#allocation13 + $0x8f0] sm:$0xff] }
 0x497   :  { %3166 = vmatpush.msrb.mxu0 %v2335_v57  ;;  %v2760_v26 = vld [vmem:[#allocation13 + $0xef8] sm:$0xff]  ;;  %v2563_v57 = vld [vmem:[#allocation13 + $0x8d0] sm:$0xff] }
 0x498   :  { %3425 = vmatpush.msra.mxu1 %v2660_v10  ;;  %3386 = vmatpush.msra.mxu3 %v2528_v6  ;;  %v2756_v10 = vld [vmem:[#allocation13 + $0xed8] sm:$0xff]  ;;  %v2559_v6 = vld [vmem:[#allocation13 + $0x8b0] sm:$0xff] }
 0x499   :  { %3167 = vmatpush.msrb.mxu0 %v2331_v11  ;;  %v2752_v11 = vld [vmem:[#allocation13 + $0xeb8] sm:$0xff] }
 0x49a   :  { %3426 = vmatpush.msra.mxu1 %v2656_v44  ;;  %3387 = vmatpush.msra.mxu3 %v2524_v23  ;;  %v3550_v44 = vld [vmem:[#allocation16 + $0x1f0] sm:$0xff] }
 0x49b   :  { %3168 = vmatpush.msrb.mxu0 %v2327_v61  ;;  %v2555_v23 = vld [vmem:[#allocation13 + $0x890] sm:$0xff]  ;;  %v2748_v61 = vld [vmem:[#allocation13 + $0xe98] sm:$0xff] }
 0x49c   :  { %3427 = vmatpush.msra.mxu1 %v2652_v0  ;;  %3388 = vmatpush.msra.mxu3 %v2520_v40  ;;  %v3548_v0 = vld [vmem:[#allocation16 + $0x1e0] sm:$0xff]  ;;  %v2551_v40 = vld [vmem:[#allocation13 + $0x870] sm:$0xff] }
 0x49d   :  { %3169 = vmatpush.msrb.mxu0 %v2323_v46  ;;  %v2744_v46 = vld [vmem:[#allocation13 + $0xe78] sm:$0xff] }
 0x49e   :  { %3428 = vmatpush.msra.mxu1 %v2648_v8  ;;  %3389 = vmatpush.msra.mxu3 %v2516_v47  ;;  %v3546_v8 = vld [vmem:[#allocation16 + $0x1d0] sm:$0xff] }
 0x49f   :  { %3170 = vmatpush.msrb.mxu0 %v2319_v34  ;;  %v2547_v47 = vld [vmem:[#allocation13 + $0x850] sm:$0xff]  ;;  %v2740_v34 = vld [vmem:[#allocation13 + $0xe58] sm:$0xff] }
 0x4a0   :  { %3429 = vmatpush.msra.mxu1 %v2644_v50  ;;  %3390 = vmatpush.msra.mxu3 %v2512_v55  ;;  %v3544_v50 = vld [vmem:[#allocation16 + $0x1c0] sm:$0xff]  ;;  %v2543_v55 = vld [vmem:[#allocation13 + $0x830] sm:$0xff] }
 0x4a1   :  { %3171 = vmatpush.msrb.mxu0 %v2315_v53  ;;  %v2736_v53 = vld [vmem:[#allocation13 + $0xe38] sm:$0xff] }
 0x4a2   :  { %3430 = vmatpush.msra.mxu1 %v2640_v60  ;;  %3391 = vmatpush.msra.mxu3 %v2508_v1  ;;  %v3542_v60 = vld [vmem:[#allocation16 + $0x1b0] sm:$0xff] }
 0x4a3   :  { %3172 = vmatpush.msrb.mxu0 %v2311_v59  ;;  %v2539_v1 = vld [vmem:[#allocation13 + $0x810] sm:$0xff]  ;;  %v2732_v59 = vld [vmem:[#allocation13 + $0xe18] sm:$0xff] }
 0x4a4   :  { %3431 = vmatpush.msra.mxu1 %v2636_v51  ;;  %3392 = vmatpush.msra.mxu3 %v2504_v29  ;;  %v3540_v51 = vld [vmem:[#allocation16 + $0x1a0] sm:$0xff]  ;;  %v2344_v29 = vld [vmem:[#allocation13 + $0x1f8] sm:$0xff] }
 0x4a5   :  { %3173 = vmatpush.msrb.mxu0 %v2307_v2  ;;  %v3538_v2 = vld [vmem:[#allocation16 + $0x190] sm:$0xff] }
 0x4a6   :  { %3432 = vmatpush.msra.mxu1 %v2632_v16  ;;  %3393 = vmatpush.msra.mxu3 %v2500_v27  ;;  %v2340_v16 = vld [vmem:[#allocation13 + $0x1d8] sm:$0xff]  ;;  %v7283_v27 = vpop.f32.mrf.mxu3 }
 0x4a7   :  { %3174 = vmatpush.msrb.mxu0 %v2303_v5  ;;  %v3536_v5 = vld [vmem:[#allocation16 + $0x180] sm:$0xff] }
 0x4a8   :  { %3433 = vmatpush.msra.mxu1 %v2628_v62  ;;  %3394 = vmatpush.msra.mxu3 %v2496_v25  ;;  %v2336_v62 = vld [vmem:[#allocation13 + $0x1b8] sm:$0xff] }
 0x4a9   :  { %3175 = vmatpush.msrb.mxu0 %v2299_v9  ;;  %v3534_v25 = vld [vmem:[#allocation16 + $0x170] sm:$0xff] }
 0x4aa   :  { %3434 = vmatpush.msra.mxu1 %v2624_v33  ;;  %3395 = vmatpush.msra.mxu3 %v2492_v35  ;;  %v2332_v9 = vld [vmem:[#allocation13 + $0x198] sm:$0xff]  ;;  %v3532_v33 = vld [vmem:[#allocation16 + $0x160] sm:$0xff] }
 0x4ab   :  { %3176 = vmatpush.msrb.mxu0 %v2295_v41  ;;  %v2328_v35 = vld [vmem:[#allocation13 + $0x178] sm:$0xff] }
 0x4ac   :  { %3435 = vmatpush.msra.mxu1 %v2620_v39  ;;  %3396 = vmatpush.msra.mxu3 %v2488_v3  ;;  %v3530_v41 = vld [vmem:[#allocation16 + $0x150] sm:$0xff]  ;;  %v3528_v3 = vld [vmem:[#allocation16 + $0x140] sm:$0xff] }
 0x4ad   :  { %3177 = vmatpush.msrb.mxu0 %v2291_v52  ;;  %v2324_v39 = vld [vmem:[#allocation13 + $0x158] sm:$0xff] }
 0x4ae   :  { %3436 = vmatpush.msra.mxu1 %v2616_v18  ;;  %3397 = vmatpush.msra.mxu3 %v2484_v12  ;;  %v2320_v52 = vld [vmem:[#allocation13 + $0x138] sm:$0xff] }
 0x4af   :  { %3178 = vmatpush.msrb.mxu0 %v2287_v19  ;;  %v3526_v18 = vld [vmem:[#allocation16 + $0x130] sm:$0xff]  ;;  %v3524_v19 = vld [vmem:[#allocation16 + $0x120] sm:$0xff] }
 0x4b0   :  { %3437 = vmatpush.msra.mxu1 %v2612_v22  ;;  %3398 = vmatpush.msra.mxu3 %v2480_v21  ;;  %v2316_v12 = vld [vmem:[#allocation13 + $0x118] sm:$0xff] }
 0x4b1   :  { %3179 = vmatpush.msrb.mxu0 %v2283_v31  ;;  %v2312_v22 = vld [vmem:[#allocation13 + $0xf8] sm:$0xff] }
 0x4b2   :  { %3438 = vmatpush.msra.mxu1 %v2608_v28  ;;  %3399 = vmatpush.msra.mxu3 %v2476_v20  ;;  %v3522_v21 = vld [vmem:[#allocation16 + $0x110] sm:$0xff]  ;;  %v3520_v28 = vld [vmem:[#allocation16 + $0x100] sm:$0xff] }
 0x4b3   :  { %3180 = vmatmul.f32.vlgmr.msrb.gmra.mxu0 %v8152_v56  ;;  %3400 = vmatmul.f32.vlgmr.msra.gmra.mxu3 %v8154_v13  ;;  %v2579_v13 = vld [vmem:[#allocation13 + $0x950] sm:$0xff]  ;;  %v2308_v31 = vld [vmem:[#allocation13 + $0xd8] sm:$0xff] }
 0x4b4   :  { %3439 = vmatpush.msra.mxu1 %v2604_v38  ;;  %3244 = vmatpush.msra.mxu0 %v2599_v14  ;;  %v2304_v20 = vld [vmem:[#allocation13 + $0xb8] sm:$0xff] }
 0x4b5   :  { %3440 = vmatmul.f32.vlgmr.msra.gmra.mxu1 %v7206_v37  ;;  %3464 = vmatpush.msrb.mxu3 %v2792_v43  ;;  %v2768_v37 = vld [vmem:[#allocation13 + $0xf38] sm:$0xff] }
 0x4b6   :  { %3245 = vmatpush.msra.mxu0 %v2595_v45  ;;  %3642 = vmatpush.msrb.mxu1 %v3550_v44  ;;  %v3551_v14 = vld [vmem:[#allocation16 + $0x1f8] sm:$0xff]  ;;  %v3549_v45 = vld [vmem:[#allocation16 + $0x1e8] sm:$0xff] }
 0x4b7   :  { %3465 = vmatpush.msrb.mxu3 %v2788_v42  ;;  %v2300_v43 = vld [vmem:[#allocation13 + $0x98] sm:$0xff] }
 0x4b8   :  { %3246 = vmatpush.msra.mxu0 %v2591_v15  ;;  %3643 = vmatpush.msrb.mxu1 %v3548_v0  ;;  %v2296_v42 = vld [vmem:[#allocation13 + $0x78] sm:$0xff] }
 0x4b9   :  { %3466 = vmatpush.msrb.mxu3 %v2784_v63  ;;  %v3547_v15 = vld [vmem:[#allocation16 + $0x1d8] sm:$0xff] }
 0x4ba   :  { %3247 = vmatpush.msra.mxu0 %v2587_v17  ;;  %3644 = vmatpush.msrb.mxu1 %v3546_v8  ;;  %v2292_v63 = vld [vmem:[#allocation13 + $0x58] sm:$0xff]  ;;  %v3545_v17 = vld [vmem:[#allocation16 + $0x1c8] sm:$0xff] }
 0x4bb   :  { %3467 = vmatpush.msrb.mxu3 %v2780_v24  ;;  %v2288_v24 = vld [vmem:[#allocation13 + $0x38] sm:$0xff] }
 0x4bc   :  { %3248 = vmatpush.msra.mxu0 %v2583_v54  ;;  %3645 = vmatpush.msrb.mxu1 %v3544_v50  ;;  %v2580_v0 = vld [vmem:[#allocation13 + $0x958] sm:$0xff] }
 0x4bd   :  { %3468 = vmatpush.msrb.mxu3 %v2776_v58  ;;  %v3543_v58 = vld [vmem:[#allocation16 + $0x1b8] sm:$0xff] }
 0x4be   :  { %3249 = vmatpush.msra.mxu0 %v2579_v13  ;;  %3646 = vmatpush.msrb.mxu1 %v3542_v60  ;;  %v2284_v13 = vld [vmem:[#allocation13 + $0x18] sm:$0xff]  ;;  %v3525_v60 = vld [vmem:[#allocation16 + $0x128] sm:$0xff] }
 0x4bf   :  { %3469 = vmatpush.msrb.mxu3 %v2772_v49  ;;  %v7292_v49 = vpop.f32.mrf.mxu0  ;;  %v3527_v50 = vld [vmem:[#allocation16 + $0x138] sm:$0xff] }
 0x4c0   :  { %3250 = vmatpush.msra.mxu0 %v2575_v36  ;;  %3647 = vmatpush.msrb.mxu1 %v3540_v51  ;;  %v3541_v36 = vld [vmem:[#allocation16 + $0x1a8] sm:$0xff] }
 0x4c1   :  { %3470 = vmatpush.msrb.mxu3 %v2768_v37  ;;  %v2600_v37 = vld [vmem:[#allocation13 + $0x9f8] sm:$0xff] }
 0x4c2   :  { %3251 = vmatpush.msra.mxu0 %v2571_v32  ;;  %3648 = vmatpush.msrb.mxu1 %v3538_v2  ;;  %v3539_v32 = vld [vmem:[#allocation16 + $0x198] sm:$0xff] }
 0x4c3   :  { %3471 = vmatpush.msrb.mxu3 %v2764_v48  ;;  %v2596_v48 = vld [vmem:[#allocation13 + $0x9d8] sm:$0xff] }
 0x4c4   :  { %3252 = vmatpush.msra.mxu0 %v2567_v7  ;;  %3649 = vmatpush.msrb.mxu1 %v3536_v5  ;;  %v7295_v7 = vpop.f32.mrf.mxu1  ;;  %v3521_v5 = vld [vmem:[#allocation16 + $0x108] sm:$0xff] }
 0x4c5   :  { %3472 = vmatpush.msrb.mxu3 %v2760_v26  ;;  %v3537_v26 = vld [vmem:[#allocation16 + $0x188] sm:$0xff] }
 0x4c6   :  { %3253 = vmatpush.msra.mxu0 %v2563_v57  ;;  %3650 = vmatpush.msrb.mxu1 %v3534_v25  ;;  %v2592_v57 = vld [vmem:[#allocation13 + $0x9b8] sm:$0xff] }
 0x4c7   :  { %3473 = vmatpush.msrb.mxu3 %v2756_v10  ;;  %v2560_v25 = vld [vmem:[#allocation13 + $0x8b8] sm:$0xff] }
 0x4c8   :  { %3254 = vmatpush.msra.mxu0 %v2559_v6  ;;  %3651 = vmatpush.msrb.mxu1 %v3532_v33  ;;  %v3535_v6 = vld [vmem:[#allocation16 + $0x178] sm:$0xff]  ;;  %v3582_v33 = vld [vmem:[#allocation16 + $0x2f0] sm:$0xff] }
 0x4c9   :  { %3474 = vmatpush.msrb.mxu3 %v2752_v11  ;;  %v2588_v11 = vld [vmem:[#allocation13 + $0x998] sm:$0xff]  ;;  %3662 = vmatpush.msrb.mxu2 %v3582_v33 }
 0x4ca   :  { %3255 = vmatpush.msra.mxu0 %v2555_v23  ;;  %3652 = vmatpush.msrb.mxu1 %v3530_v41  ;;  %v3533_v23 = vld [vmem:[#allocation16 + $0x168] sm:$0xff] }
 0x4cb   :  { %3475 = vmatpush.msrb.mxu3 %v2748_v61  ;;  %v2584_v61 = vld [vmem:[#allocation13 + $0x978] sm:$0xff] }
 0x4cc   :  { %3256 = vmatpush.msra.mxu0 %v2551_v40  ;;  %3653 = vmatpush.msrb.mxu1 %v3528_v3  ;;  %v7301_v40 = vld [vmem:[#allocation14] sm:$0xf]  ;;  %v3580_v3 = vld [vmem:[#allocation16 + $0x2e0] sm:$0xff] }
 0x4cd   :  { %3476 = vmatpush.msrb.mxu3 %v2744_v46  ;;  %v3529_v46 = vld [vmem:[#allocation16 + $0x148] sm:$0xff]  ;;  %v2796_v8 = vperm.slane %v7301_v40, 1  ;;  %3663 = vmatpush.msrb.mxu2 %v3580_v3 }
 0x4ce   :  { %3257 = vmatpush.msra.mxu0 %v2547_v47  ;;  %3654 = vmatpush.msrb.mxu1 %v3526_v18  ;;  %v2576_v47 = vld [vmem:[#allocation13 + $0x938] sm:$0xff]  ;;  %v3569_v3 = vld [vmem:[#allocation16 + $0x288] sm:$0xff] }
 0x4cf   :  { %3477 = vmatpush.msrb.mxu3 %v2740_v34  ;;  %v3021_v34 = vpop.f32.mrf.mxu1  ;;  %v2548_v18 = vld [vmem:[#allocation13 + $0x858] sm:$0xff] }
 0x4d0   :  { %3258 = vmatpush.msra.mxu0 %v2543_v55  ;;  %3655 = vmatpush.msrb.mxu1 %v3524_v19  ;;  %v2572_v55 = vld [vmem:[#allocation13 + $0x918] sm:$0xff] }
 0x4d1   :  { %3478 = vmatpush.msrb.mxu3 %v2736_v53  ;;  %v2544_v19 = vld [vmem:[#allocation13 + $0x838] sm:$0xff] }
 0x4d2   :  { %3259 = vmatpush.msra.mxu0 %v2539_v1  ;;  %3656 = vmatpush.msrb.mxu1 %v3522_v21  ;;  %v3022_v1 = vadd.f32 %v3021_v34, %v2796_v8  ;;  %v3576_v21 = vld [vmem:[#allocation16 + $0x2c0] sm:$0xff] }
 0x4d3   :  { %3479 = vmatpush.msrb.mxu3 %v2732_v59  ;;  %3260 = vmatmul.f32.vlgmr.msra.gmra.mxu0 %v7215_v4  ;;  %v2568_v59 = vld [vmem:[#allocation13 + $0x8f8] sm:$0xff]  ;;  %v3504_v8 = vld [vmem:[#allocation16 + $0x80] sm:$0xff] }
 0x4d4   :  { %3324 = vmatpush.msrb.mxu0 %v2344_v29  ;;  %3480 = vmatmul.f32.vlgmr.msrb.gmra.mxu3 %v7269_v30  ;;  %v7286_v30 = vpop.f32.mrf.mxu3  ;;  %v3523_v29 = vld [vmem:[#allocation16 + $0x118] sm:$0xff] }
 0x4d5   :  { %3657 = vmatpush.msrb.mxu1 %v3520_v28  ;;  %v2540_v28 = vld [vmem:[#allocation13 + $0x818] sm:$0xff] }
 0x4d6   :  { %3325 = vmatpush.msrb.mxu0 %v2340_v16  ;;  %v2564_v16 = vld [vmem:[#allocation13 + $0x8d8] sm:$0xff] }
 0x4d7   :  { %3722 = vmatpush.msra.mxu1 %v3551_v14  ;;  %v3574_v14 = vld [vmem:[#allocation16 + $0x2b0] sm:$0xff] }
 0x4d8   :  { %3326 = vmatpush.msrb.mxu0 %v2336_v62 }
 0x4d9   :  { %3723 = vmatpush.msra.mxu1 %v3549_v45  ;;  %v3518_v45 = vld [vmem:[#allocation16 + $0xf0] sm:$0xff] }
 0x4da   :  { %3327 = vmatpush.msrb.mxu0 %v2332_v9  ;;  %v2556_v9 = vld [vmem:[#allocation13 + $0x898] sm:$0xff] }
 0x4db   :  { %3724 = vmatpush.msra.mxu1 %v3547_v15  ;;  %v3572_v15 = vld [vmem:[#allocation16 + $0x2a0] sm:$0xff] }
 0x4dc   :  { %3328 = vmatpush.msrb.mxu0 %v2328_v35  ;;  %v7288_v38 = vpop.f32.mrf.mxu3  ;;  %v3081_v35 = vpop.f32.mrf.mxu1 }
 0x4dd   :  { %3725 = vmatpush.msra.mxu1 %v3545_v17 }
 0x4de   :  { %3329 = vmatpush.msrb.mxu0 %v2324_v39  ;;  %v2552_v39 = vld [vmem:[#allocation13 + $0x878] sm:$0xff] }
 0x4df   :  { %3726 = vmatpush.msra.mxu1 %v3543_v58  ;;  %v3570_v58 = vld [vmem:[#allocation16 + $0x290] sm:$0xff] }
 0x4e0   :  { %3330 = vmatpush.msrb.mxu0 %v2320_v52 }
 0x4e1   :  { %3727 = vmatpush.msra.mxu1 %v3541_v36  ;;  %v3514_v36 = vld [vmem:[#allocation16 + $0xd0] sm:$0xff] }
 0x4e2   :  { %3331 = vmatpush.msrb.mxu0 %v2316_v12  ;;  %v3578_v12 = vld [vmem:[#allocation16 + $0x2d0] sm:$0xff] }
 0x4e3   :  { %3728 = vmatpush.msra.mxu1 %v3539_v32  ;;  %3664 = vmatpush.msrb.mxu2 %v3578_v12  ;;  %v2795_v32 = vperm.slane %v7301_v40, 0  ;;  %v3511_v12 = vld [vmem:[#allocation16 + $0xb8] sm:$0xff] }
 0x4e4   :  { %3332 = vmatpush.msrb.mxu0 %v2312_v22  ;;  %v7290_v54 = vpop.f32.mrf.mxu3 }
 0x4e5   :  { %3729 = vmatpush.msra.mxu1 %v3537_v26  ;;  %3665 = vmatpush.msrb.mxu2 %v3576_v21  ;;  %v3566_v26 = vld [vmem:[#allocation16 + $0x270] sm:$0xff]  ;;  %v3509_v21 = vld [vmem:[#allocation16 + $0xa8] sm:$0xff] }
 0x4e6   :  { %3333 = vmatpush.msrb.mxu0 %v2308_v31 }
 0x4e7   :  { %3730 = vmatpush.msra.mxu1 %v3535_v6  ;;  %3666 = vmatpush.msrb.mxu2 %v3574_v14  ;;  %v2862_v6 = vadd.f32 %v7283_v27, %v2795_v32  ;;  %v3502_v27 = vld [vmem:[#allocation16 + $0x70] sm:$0xff]  ;;  %v3559_v14 = vld [vmem:[#allocation16 + $0x238] sm:$0xff] }
 0x4e8   :  { %3334 = vmatpush.msrb.mxu0 %v2304_v20  ;;  %v3499_v32 = vld [vmem:[#allocation16 + $0x58] sm:$0xff] }
 0x4e9   :  { %3731 = vmatpush.msra.mxu1 %v3533_v23  ;;  %3667 = vmatpush.msrb.mxu2 %v3572_v15  ;;  %v3562_v23 = vld [vmem:[#allocation16 + $0x250] sm:$0xff] }
 0x4ea   :  { %3335 = vmatpush.msrb.mxu0 %v2300_v43  ;;  %v3141_v43 = vpop.f32.mrf.mxu1 }
 0x4eb   :  { %3668 = vmatpush.msrb.mxu2 %v3570_v58  ;;  %v3501_v58 = vld [vmem:[#allocation16 + $0x68] sm:$0xff] }
 0x4ec   :  { %3336 = vmatpush.msrb.mxu0 %v2296_v42  ;;  %v7297_v10 = vpop.f32.mrf.mxu3 }
 0x4ed   :  { %v7299_v44 = vpop.f32.mrf.mxu0 }
 0x4ee   :  { %3337 = vmatpush.msrb.mxu0 %v2292_v63 }
 0x4f0   :  { %3338 = vmatpush.msrb.mxu0 %v2288_v24  ;;  %v3516_v24 = vld [vmem:[#allocation16 + $0xe0] sm:$0xff] }
 0x4f2   :  { %3339 = vmatpush.msrb.mxu0 %v2284_v13 }
 0x4f3   :  { %3340 = vmatmul.f32.vlgmr.msrb.gmra.mxu0 %v8152_v56  ;;  %v3531_v56 = vld [vmem:[#allocation16 + $0x158] sm:$0xff] }
 0x4f4   :  { %3404 = vmatpush.msra.mxu0 %v2600_v37  ;;  %3732 = vmatpush.msra.mxu1 %v3531_v56  ;;  %v3041_v53 = vpop.f32.mrf.mxu3  ;;  %v3568_v37 = vld [vmem:[#allocation16 + $0x280] sm:$0xff]  ;;  %v3506_v56 = vld [vmem:[#allocation16 + $0x90] sm:$0xff] }
 0x4f5   :  { %v3042_v2 = vadd.f32 %v3041_v53, %v3022_v1  ;;  %3669 = vmatpush.msrb.mxu2 %v3568_v37  ;;  %v3554_v53 = vld [vmem:[#allocation16 + $0x210] sm:$0xff] }
 0x4f6   :  { %3405 = vmatpush.msra.mxu0 %v2596_v48  ;;  %3733 = vmatpush.msra.mxu1 %v3529_v46  ;;  %v3061_v51 = vpop.f32.mrf.mxu0  ;;  %v3512_v48 = vld [vmem:[#allocation16 + $0xc0] sm:$0xff]  ;;  %v3610_v37 = vld [vmem:[#allocation16 + $0x3d0] sm:$0xff] }
 0x4f7   :  { %v3062_v62 = vadd.f32 %v3061_v51, %v3042_v2  ;;  %3670 = vmatpush.msrb.mxu2 %v3566_v26  ;;  %v3583_v51 = vld [vmem:[#allocation16 + $0x2f8] sm:$0xff]  ;;  %v3492_v2 = vld [vmem:[#allocation16 + $0x20] sm:$0xff] }
 0x4f8   :  { %3406 = vmatpush.msra.mxu0 %v2592_v57  ;;  %3734 = vmatpush.msra.mxu1 %v3527_v50  ;;  %v3510_v57 = vld [vmem:[#allocation16 + $0xb0] sm:$0xff]  ;;  %v3556_v50 = vld [vmem:[#allocation16 + $0x220] sm:$0xff] }
 0x4f9   :  { %v3082_v41 = vadd.f32 %v3081_v35, %v3062_v62  ;;  %v3490_v62 = vld [vmem:[#allocation16 + $0x10] sm:$0xff]  ;;  %v3519_v35 = vld [vmem:[#allocation16 + $0xf8] sm:$0xff]  ;;  %v3608_v26 = vld [vmem:[#allocation16 + $0x3c0] sm:$0xff] }
 0x4fa   :  { %3407 = vmatpush.msra.mxu0 %v2588_v11  ;;  %3735 = vmatpush.msra.mxu1 %v3525_v60  ;;  %v3508_v11 = vld [vmem:[#allocation16 + $0xa0] sm:$0xff]  ;;  %v3498_v60 = vld [vmem:[#allocation16 + $0x50] sm:$0xff] }
 0x4fc   :  { %3408 = vmatpush.msra.mxu0 %v2584_v61  ;;  %3736 = vmatpush.msra.mxu1 %v3523_v29  ;;  %v3101_v52 = vpop.f32.mrf.mxu3  ;;  %v2882_v61 = vadd.f32 %v7286_v30, %v2862_v6  ;;  %v3500_v30 = vld [vmem:[#allocation16 + $0x60] sm:$0xff]  ;;  %v3581_v29 = vld [vmem:[#allocation16 + $0x2e8] sm:$0xff]  ;;  %v3606_v6 = vld [vmem:[#allocation16 + $0x3b0] sm:$0xff] }
 0x4fd   :  { %v3102_v22 = vadd.f32 %v3101_v52, %v3082_v41  ;;  %v3573_v41 = vld [vmem:[#allocation16 + $0x2a8] sm:$0xff] }
 0x4fe   :  { %3409 = vmatpush.msra.mxu0 %v2580_v0  ;;  %3737 = vmatpush.msra.mxu1 %v3521_v5  ;;  %v3560_v0 = vld [vmem:[#allocation16 + $0x240] sm:$0xff]  ;;  %v2902_v46 = vadd.f32 %v7288_v38, %v2882_v61  ;;  %v3513_v52 = vld [vmem:[#allocation16 + $0xc8] sm:$0xff] }
 0x4ff   :  { %v3552_v38 = vld [vmem:[#allocation16 + $0x200] sm:$0xff] }
 0x500   :  { %3410 = vmatpush.msra.mxu0 %v2576_v47  ;;  %v3558_v47 = vld [vmem:[#allocation16 + $0x230] sm:$0xff]  ;;  %v2922_v34 = vadd.f32 %v7290_v54, %v2902_v46  ;;  %v3604_v61 = vld [vmem:[#allocation16 + $0x3a0] sm:$0xff]  ;;  %v3491_v46 = vld [vmem:[#allocation16 + $0x18] sm:$0xff] }
 0x501   :  { %v3494_v54 = vld [vmem:[#allocation16 + $0x30] sm:$0xff] }
 0x502   :  { %3411 = vmatpush.msra.mxu0 %v2572_v55  ;;  %v2942_v55 = vadd.f32 %v7292_v49, %v2922_v34 }
 0x504   :  { %3412 = vmatpush.msra.mxu0 %v2568_v59  ;;  %v3161_v63 = vpop.f32.mrf.mxu3  ;;  %v2962_v1 = vadd.f32 %v7295_v7, %v2942_v55  ;;  %v3496_v59 = vld [vmem:[#allocation16 + $0x40] sm:$0xff]  ;;  %v3577_v7 = vld [vmem:[#allocation16 + $0x2c8] sm:$0xff] }
 0x506   :  { %3413 = vmatpush.msra.mxu0 %v2564_v16  ;;  %v2982_v49 = vadd.f32 %v7297_v10, %v2962_v1  ;;  %v3579_v16 = vld [vmem:[#allocation16 + $0x2d8] sm:$0xff]  ;;  %v3517_v10 = vld [vmem:[#allocation16 + $0xe8] sm:$0xff]  ;;  %v3598_v1 = vld [vmem:[#allocation16 + $0x370] sm:$0xff] }
 0x508   :  { %3414 = vmatpush.msra.mxu0 %v2560_v25  ;;  %v7314_v5 = vadd.f32 %v7299_v44, %v2982_v49  ;;  %v3488_v25 = vld [vmem:[#allocation16] sm:$0xff]  ;;  %v3571_v44 = vld [vmem:[#allocation16 + $0x298] sm:$0xff]  ;;  %v3594_v49 = vld [vmem:[#allocation16 + $0x350] sm:$0xff] }
 0x50a   :  { %3415 = vmatpush.msra.mxu0 %v2556_v9  ;;  %v3575_v9 = vld [vmem:[#allocation16 + $0x2b8] sm:$0xff]  ;;  %v3484_v33 = vmax.f32 %v7314_v5, 0.0  ;;  %v3588_v5 = vld [vmem:[#allocation16 + $0x320] sm:$0xff] }
 0x50c   :  { %3416 = vmatpush.msra.mxu0 %v2552_v39  ;;  %v3515_v39 = vld [vmem:[#allocation16 + $0xd8] sm:$0xff] }
 0x50e   :  { %3417 = vmatpush.msra.mxu0 %v2548_v18  ;;  %v3121_v31 = vpop.f32.mrf.mxu0  ;;  %v3567_v18 = vld [vmem:[#allocation16 + $0x278] sm:$0xff] }
 0x50f   :  { %v3122_v20 = vadd.f32 %v3121_v31, %v3102_v22  ;;  %v3563_v22 = vld [vmem:[#allocation16 + $0x258] sm:$0xff]  ;;  %v3561_v31 = vld [vmem:[#allocation16 + $0x248] sm:$0xff] }
 0x510   :  { %3418 = vmatpush.msra.mxu0 %v2544_v19  ;;  %v3565_v19 = vld [vmem:[#allocation16 + $0x268] sm:$0xff] }
 0x511   :  { %v3142_v42 = vadd.f32 %v3141_v43, %v3122_v20  ;;  %v3507_v20 = vld [vmem:[#allocation16 + $0x98] sm:$0xff]  ;;  %v2797_v43 = vperm.slane %v7301_v40, 2 }
 0x512   :  { %3419 = vmatpush.msra.mxu0 %v2540_v28  ;;  %v3614_v28 = vld [vmem:[#allocation16 + $0x3f0] sm:$0xff] }
 0x513   :  { %3420 = vmatmul.f32.vlgmr.msra.gmra.mxu0 %v7215_v4  ;;  %v3162_v17 = vadd.f32 %v3161_v63, %v3142_v42  ;;  %v3564_v4 = vld [vmem:[#allocation16 + $0x260] sm:$0xff]  ;;  %3682 = vmatpush.msra.mxu3 %v3614_v28  ;;  %v3557_v42 = vld [vmem:[#allocation16 + $0x228] sm:$0xff]  ;;  %v3503_v63 = vld [vmem:[#allocation16 + $0x78] sm:$0xff] }
 0x514   :  { %3622 = vmatpush.msrb.mxu0 %v3518_v45  ;;  %3671 = vmatpush.msrb.mxu2 %v3564_v4  ;;  %v3505_v45 = vld [vmem:[#allocation16 + $0x88] sm:$0xff]  ;;  %v3587_v28 = vld [vmem:[#allocation16 + $0x318] sm:$0xff] }
 0x515   :  { %v3485_v13 = vmax.f32 %v3162_v17, 0.0  ;;  %v3555_v17 = vld [vmem:[#allocation16 + $0x218] sm:$0xff]  ;;  %v3497_v4 = vld [vmem:[#allocation16 + $0x48] sm:$0xff] }
 0x516   :  { %3623 = vmatpush.msrb.mxu0 %v3516_v24  ;;  %3672 = vmatpush.msrb.mxu2 %v3562_v23  ;;  %v3221_v23 = vpop.f32.mrf.mxu2 }
 0x517   :  { %3658 = vmatmul.f32.vlgmr.msrb.gmra.mxu1 %v3485_v13 }
 0x518   :  { %3624 = vmatpush.msrb.mxu0 %v3514_v36  ;;  %3673 = vmatpush.msrb.mxu2 %v3560_v0  ;;  %v3612_v36 = vld [vmem:[#allocation16 + $0x3e0] sm:$0xff] }
 0x519   :  { %3683 = vmatpush.msra.mxu3 %v3612_v36 }
 0x51a   :  { %3625 = vmatpush.msrb.mxu0 %v3512_v48  ;;  %3674 = vmatpush.msrb.mxu2 %v3558_v47  ;;  %v3201_v48 = vpop.f32.mrf.mxu1  ;;  %v3489_v47 = vld [vmem:[#allocation16 + $0x8] sm:$0xff] }
 0x51b   :  { %3684 = vmatpush.msra.mxu3 %v3610_v37 }
 0x51c   :  { %3626 = vmatpush.msrb.mxu0 %v3510_v57  ;;  %3675 = vmatpush.msrb.mxu2 %v3556_v50 }
 0x51d   :  { %3685 = vmatpush.msra.mxu3 %v3608_v26 }
 0x51e   :  { %3627 = vmatpush.msrb.mxu0 %v3508_v11  ;;  %3676 = vmatpush.msrb.mxu2 %v3554_v53  ;;  %v3495_v11 = vld [vmem:[#allocation16 + $0x38] sm:$0xff] }
 0x51f   :  { %3738 = vmatmul.f32.vlgmr.msra.gmra.mxu1 %v3485_v13  ;;  %v3553_v13 = vld [vmem:[#allocation16 + $0x208] sm:$0xff]  ;;  %3686 = vmatpush.msra.mxu3 %v3606_v6  ;;  %v3798_v6 = vld [vmem:[%s7951_s11 + $0x70] sm:$0xff] }
 0x520   :  { %3628 = vmatpush.msrb.mxu0 %v3506_v56  ;;  %3677 = vmatpush.msrb.mxu2 %v3552_v38  ;;  %v3493_v56 = vld [vmem:[#allocation16 + $0x28] sm:$0xff]  ;;  %v3301_v38 = vpop.f32.mrf.mxu2 }
 0x521   :  { %3687 = vmatpush.msra.mxu3 %v3604_v61  ;;  %v3814_v61 = vld [vmem:[%s7951_s11 + $0xf0] sm:$0xff] }
 0x522   :  { %3629 = vmatpush.msrb.mxu0 %v3504_v8  ;;  %3742 = vmatpush.msra.mxu2 %v3583_v51  ;;  %v3241_v8 = vpop.f32.mrf.mxu3  ;;  %v3281_v55 = vpop.f32.mrf.mxu1 }
 0x524   :  { %3630 = vmatpush.msrb.mxu0 %v3502_v27  ;;  %3743 = vmatpush.msra.mxu2 %v3581_v29 }
 0x526   :  { %3631 = vmatpush.msrb.mxu0 %v3500_v30  ;;  %3744 = vmatpush.msra.mxu2 %v3579_v16  ;;  %v3602_v30 = vld [vmem:[#allocation16 + $0x390] sm:$0xff]  ;;  %v3592_v16 = vld [vmem:[#allocation16 + $0x340] sm:$0xff] }
 0x527   :  { %3688 = vmatpush.msra.mxu3 %v3602_v30  ;;  %v3810_v30 = vld [vmem:[%s7951_s11 + $0xd0] sm:$0xff] }
 0x528   :  { %3632 = vmatpush.msrb.mxu0 %v3498_v60  ;;  %3745 = vmatpush.msra.mxu2 %v3577_v7  ;;  %v3600_v60 = vld [vmem:[#allocation16 + $0x380] sm:$0xff]  ;;  %v3586_v7 = vld [vmem:[#allocation16 + $0x310] sm:$0xff] }
 0x529   :  { %3689 = vmatpush.msra.mxu3 %v3600_v60  ;;  %v5349_v60 = vld [vmem:[%s7951_s11 + $0x160] sm:$0xff] }
 0x52a   :  { %3633 = vmatpush.msrb.mxu0 %v3496_v59  ;;  %3746 = vmatpush.msra.mxu2 %v3575_v9  ;;  %v3321_v51 = vpop.f32.mrf.mxu3  ;;  %v3615_v9 = vld [vmem:[#allocation16 + $0x3f8] sm:$0xff] }
 0x52b   :  { %3690 = vmatpush.msra.mxu3 %v3598_v1  ;;  %v5368_v1 = vld [vmem:[%s7951_s11 + $0x1f8] sm:$0xff] }
 0x52c   :  { %3634 = vmatpush.msrb.mxu0 %v3494_v54  ;;  %3747 = vmatpush.msra.mxu2 %v3573_v41  ;;  %v3596_v54 = vld [vmem:[#allocation16 + $0x360] sm:$0xff]  ;;  %v3609_v41 = vld [vmem:[#allocation16 + $0x3c8] sm:$0xff] }
 0x52d   :  { %3691 = vmatpush.msra.mxu3 %v3596_v54  ;;  %v5367_v54 = vld [vmem:[%s7951_s11 + $0x1f0] sm:$0xff] }
 0x52e   :  { %3635 = vmatpush.msrb.mxu0 %v3492_v2  ;;  %3748 = vmatpush.msra.mxu2 %v3571_v44  ;;  %v3605_v44 = vld [vmem:[#allocation16 + $0x3a8] sm:$0xff] }
 0x52f   :  { %3692 = vmatpush.msra.mxu3 %v3594_v49  ;;  %v5366_v49 = vld [vmem:[%s7951_s11 + $0x1e8] sm:$0xff] }
 0x530   :  { %3636 = vmatpush.msrb.mxu0 %v3490_v62  ;;  %3749 = vmatpush.msra.mxu2 %v3569_v3  ;;  %v3181_v15 = vpop.f32.mrf.mxu0  ;;  %v3590_v62 = vld [vmem:[#allocation16 + $0x330] sm:$0xff]  ;;  %v3601_v3 = vld [vmem:[#allocation16 + $0x388] sm:$0xff] }
 0x531   :  { %v3182_v24 = vadd.f32 %v3181_v15, %v2797_v43  ;;  %3693 = vmatpush.msra.mxu3 %v3592_v16  ;;  %v3381_v15 = vpop.f32.mrf.mxu2  ;;  %v5347_v16 = vld [vmem:[%s7951_s11 + $0x150] sm:$0xff] }
 0x532   :  { %3637 = vmatpush.msrb.mxu0 %v3488_v25  ;;  %3750 = vmatpush.msra.mxu2 %v3567_v18  ;;  %v3584_v25 = vld [vmem:[#allocation16 + $0x300] sm:$0xff]  ;;  %v3597_v18 = vld [vmem:[#allocation16 + $0x368] sm:$0xff] }
 0x533   :  { %3638 = vmatmul.f32.vlgmr.msrb.gmra.mxu0 %v3484_v33  ;;  %v3202_v57 = vadd.f32 %v3201_v48, %v3182_v24  ;;  %3694 = vmatpush.msra.mxu3 %v3590_v62  ;;  %v3807_v62 = vld [vmem:[%s7951_s11 + $0xb8] sm:$0xff] }
 0x534   :  { %3702 = vmatpush.msra.mxu0 %v3519_v35  ;;  %3751 = vmatpush.msra.mxu2 %v3565_v19  ;;  %v3611_v35 = vld [vmem:[#allocation16 + $0x3d8] sm:$0xff]  ;;  %v3593_v19 = vld [vmem:[#allocation16 + $0x348] sm:$0xff] }
 0x535   :  { %v3222_v0 = vadd.f32 %v3221_v23, %v3202_v57  ;;  %3695 = vmatpush.msra.mxu3 %v3588_v5  ;;  %v3797_v23 = vld [vmem:[%s7951_s11 + $0x68] sm:$0xff]  ;;  %v5365_v5 = vld [vmem:[%s7951_s11 + $0x1e0] sm:$0xff] }
 0x536   :  { %3703 = vmatpush.msra.mxu0 %v3517_v10  ;;  %3752 = vmatpush.msra.mxu2 %v3563_v22  ;;  %v3607_v10 = vld [vmem:[#allocation16 + $0x3b8] sm:$0xff] }
 0x537   :  { %v3242_v34 = vadd.f32 %v3241_v8, %v3222_v0  ;;  %3696 = vmatpush.msra.mxu3 %v3586_v7  ;;  %v3591_v22 = vld [vmem:[#allocation16 + $0x338] sm:$0xff]  ;;  %v3796_v0 = vld [vmem:[%s7951_s11 + $0x60] sm:$0xff]  ;;  %v3795_v8 = vld [vmem:[%s7951_s11 + $0x58] sm:$0xff] }
 0x538   :  { %3704 = vmatpush.msra.mxu0 %v3515_v39  ;;  %3753 = vmatpush.msra.mxu2 %v3561_v31  ;;  %v3603_v39 = vld [vmem:[#allocation16 + $0x398] sm:$0xff]  ;;  %v2798_v31 = vperm.slane %v7301_v40, 3 }
 0x539   :  { %3697 = vmatpush.msra.mxu3 %v3584_v25  ;;  %v3790_v7 = vld [vmem:[%s7951_s11 + $0x30] sm:$0xff]  ;;  %v5346_v25 = vld [vmem:[%s7951_s11 + $0x148] sm:$0xff] }
 0x53a   :  { %3705 = vmatpush.msra.mxu0 %v3513_v52  ;;  %3754 = vmatpush.msra.mxu2 %v3559_v14  ;;  %v3599_v52 = vld [vmem:[#allocation16 + $0x378] sm:$0xff]  ;;  %v3585_v14 = vld [vmem:[#allocation16 + $0x308] sm:$0xff] }
 0x53b   :  { %3762 = vmatpush.msrb.mxu3 %v3615_v9  ;;  %v3806_v9 = vld [vmem:[%s7951_s11 + $0xb0] sm:$0xff] }
 0x53c   :  { %3706 = vmatpush.msra.mxu0 %v3511_v12  ;;  %3755 = vmatpush.msra.mxu2 %v3557_v42  ;;  %v3595_v12 = vld [vmem:[#allocation16 + $0x358] sm:$0xff] }
 0x53e   :  { %3707 = vmatpush.msra.mxu0 %v3509_v21  ;;  %3756 = vmatpush.msra.mxu2 %v3555_v17  ;;  %v3589_v21 = vld [vmem:[#allocation16 + $0x328] sm:$0xff]  ;;  %v3401_v17 = vpop.f32.mrf.mxu3 }
 0x540   :  { %3708 = vmatpush.msra.mxu0 %v3507_v20  ;;  %3757 = vmatpush.msra.mxu2 %v3553_v13 }
 0x542   :  { %3709 = vmatpush.msra.mxu0 %v3505_v45  ;;  %v3361_v45 = vpop.f32.mrf.mxu1 }
 0x544   :  { %3710 = vmatpush.msra.mxu0 %v3503_v63 }
 0x546   :  { %3711 = vmatpush.msra.mxu0 %v3501_v58 }
 0x548   :  { %3712 = vmatpush.msra.mxu0 %v3499_v32  ;;  %v3461_v32 = vpop.f32.mrf.mxu2 }
 0x54a   :  { %3713 = vmatpush.msra.mxu0 %v3497_v4  ;;  %v3441_v36 = vpop.f32.mrf.mxu1  ;;  %v3799_v4 = vld [vmem:[%s7951_s11 + $0x78] sm:$0xff] }
 0x54c   :  { %3714 = vmatpush.msra.mxu0 %v3495_v11  ;;  %v3815_v11 = vld [vmem:[%s7951_s11 + $0xf8] sm:$0xff] }
 0x54d   :  { %3836 = vmatpush.msrb.mxu1 %v3815_v11  ;;  %v5377_v11 = vld [vmem:[%s7951_s11 + $0x240] sm:$0xff] }
 0x54e   :  { %3715 = vmatpush.msra.mxu0 %v3493_v56  ;;  %v3813_v56 = vld [vmem:[%s7951_s11 + $0xe8] sm:$0xff] }
 0x54f   :  { %3837 = vmatpush.msrb.mxu1 %v3814_v61  ;;  %v5339_v61 = vld [vmem:[%s7951_s11 + $0x110] sm:$0xff] }
 0x550   :  { %3716 = vmatpush.msra.mxu0 %v3491_v46  ;;  %v3261_v27 = vpop.f32.mrf.mxu0  ;;  %v3812_v46 = vld [vmem:[%s7951_s11 + $0xe0] sm:$0xff] }
 0x551   :  { %v3262_v50 = vadd.f32 %v3261_v27, %v3242_v34  ;;  %3838 = vmatpush.msrb.mxu1 %v3813_v56  ;;  %v3811_v34 = vld [vmem:[%s7951_s11 + $0xd8] sm:$0xff]  ;;  %v5351_v27 = vld [vmem:[%s7951_s11 + $0x170] sm:$0xff] }
 0x552   :  { %3717 = vmatpush.msra.mxu0 %v3489_v47  ;;  %v5352_v47 = vld [vmem:[%s7951_s11 + $0x178] sm:$0xff]  ;;  %v5359_v56 = vld [vmem:[%s7951_s11 + $0x1b0] sm:$0xff] }
 0x553   :  { %3718 = vmatmul.f32.vlgmr.msra.gmra.mxu0 %v3484_v33  ;;  %v3282_v53 = vadd.f32 %v3281_v55, %v3262_v50  ;;  %v3613_v33 = vld [vmem:[#allocation16 + $0x3e8] sm:$0xff]  ;;  %v3794_v50 = vld [vmem:[%s7951_s11 + $0x50] sm:$0xff]  ;;  %3839 = vmatpush.msrb.mxu1 %v3812_v46  ;;  %v5350_v55 = vld [vmem:[%s7951_s11 + $0x168] sm:$0xff] }
 0x554   :  { %3763 = vmatpush.msrb.mxu3 %v3613_v33  ;;  %3816 = vmatpush.msrb.mxu0 %v3799_v4  ;;  %v5364_v33 = vld [vmem:[%s7951_s11 + $0x1d8] sm:$0xff]  ;;  %v5379_v4 = vld [vmem:[%s7951_s11 + $0x250] sm:$0xff] }
 0x555   :  { %v3302_v59 = vadd.f32 %v3301_v38, %v3282_v53  ;;  %v3793_v53 = vld [vmem:[%s7951_s11 + $0x48] sm:$0xff]  ;;  %3840 = vmatpush.msrb.mxu1 %v3811_v34  ;;  %v5395_v46 = vld [vmem:[%s7951_s11 + $0x2d0] sm:$0xff] }
 0x556   :  { %3764 = vmatpush.msrb.mxu3 %v3611_v35  ;;  %3817 = vmatpush.msrb.mxu0 %v3798_v6  ;;  %v3809_v38 = vld [vmem:[%s7951_s11 + $0xc8] sm:$0xff] }
 0x557   :  { %v3322_v29 = vadd.f32 %v3321_v51, %v3302_v59  ;;  %v3481_v40 = vpop.f32.mrf.mxu3  ;;  %v3792_v59 = vld [vmem:[%s7951_s11 + $0x40] sm:$0xff]  ;;  %3841 = vmatpush.msrb.mxu1 %v3810_v30  ;;  %v5348_v51 = vld [vmem:[%s7951_s11 + $0x158] sm:$0xff]  ;;  %v3789_v35 = vld [vmem:[%s7951_s11 + $0x28] sm:$0xff] }
 0x558   :  { %3765 = vmatpush.msrb.mxu3 %v3609_v41  ;;  %3818 = vmatpush.msrb.mxu0 %v3797_v23  ;;  %v5345_v41 = vld [vmem:[%s7951_s11 + $0x140] sm:$0xff]  ;;  %v5378_v6 = vld [vmem:[%s7951_s11 + $0x248] sm:$0xff]  ;;  %v5376_v23 = vld [vmem:[%s7951_s11 + $0x238] sm:$0xff] }
 0x559   :  { %v3486_v2 = vmax.f32 %v3322_v29, 0.0  ;;  %v3808_v29 = vld [vmem:[%s7951_s11 + $0xc0] sm:$0xff]  ;;  %3842 = vmatpush.msrb.mxu1 %v3809_v38  ;;  %v5374_v34 = vld [vmem:[%s7951_s11 + $0x228] sm:$0xff]  ;;  %v5372_v38 = vld [vmem:[%s7951_s11 + $0x218] sm:$0xff] }
 0x55a   :  { %3766 = vmatpush.msrb.mxu3 %v3607_v10  ;;  %3819 = vmatpush.msrb.mxu0 %v3796_v0  ;;  %v3805_v10 = vld [vmem:[%s7951_s11 + $0xa8] sm:$0xff]  ;;  %v5375_v0 = vld [vmem:[%s7951_s11 + $0x230] sm:$0xff]  ;;  %v5373_v30 = vld [vmem:[%s7951_s11 + $0x220] sm:$0xff] }
 0x55b   :  { %3678 = vmatmul.f32.vlgmr.msrb.gmra.mxu2 %v3486_v2  ;;  %3843 = vmatpush.msrb.mxu1 %v3808_v29  ;;  %v5354_v29 = vld [vmem:[%s7951_s11 + $0x188] sm:$0xff] }
 0x55c   :  { %3767 = vmatpush.msrb.mxu3 %v3605_v44  ;;  %3889 = vmatpush.msrb.mxu2 %v5352_v47  ;;  %v5363_v44 = vld [vmem:[%s7951_s11 + $0x1d0] sm:$0xff]  ;;  %v5358_v47 = vld [vmem:[%s7951_s11 + $0x1a8] sm:$0xff] }
 0x55d   :  { %3820 = vmatpush.msrb.mxu0 %v3795_v8  ;;  %3844 = vmatpush.msrb.mxu1 %v3807_v62  ;;  %v5338_v8 = vld [vmem:[%s7951_s11 + $0x108] sm:$0xff]  ;;  %v5369_v62 = vld [vmem:[%s7951_s11 + $0x200] sm:$0xff] }
 0x55e   :  { %3768 = vmatpush.msrb.mxu3 %v3603_v39  ;;  %3890 = vmatpush.msrb.mxu2 %v5351_v27  ;;  %v3788_v39 = vld [vmem:[%s7951_s11 + $0x20] sm:$0xff]  ;;  %v5394_v27 = vld [vmem:[%s7951_s11 + $0x2c8] sm:$0xff] }
 0x55f   :  { %3821 = vmatpush.msrb.mxu0 %v3794_v50  ;;  %3845 = vmatpush.msrb.mxu1 %v3806_v9  ;;  %v5337_v50 = vld [vmem:[%s7951_s11 + $0x100] sm:$0xff]  ;;  %v3616_v9 = vld [vmem:[#allocation17] sm:$0x3] }
 0x560   :  { %3769 = vmatpush.msrb.mxu3 %v3601_v3  ;;  %3891 = vmatpush.msrb.mxu2 %v5350_v55  ;;  %v5344_v3 = vld [vmem:[%s7951_s11 + $0x138] sm:$0xff]  ;;  %v5357_v55 = vld [vmem:[%s7951_s11 + $0x1a0] sm:$0xff] }
 0x561   :  { %3822 = vmatpush.msrb.mxu0 %v3793_v53  ;;  %3846 = vmatpush.msrb.mxu1 %v3805_v10  ;;  %v5393_v53 = vld [vmem:[%s7951_s11 + $0x2c0] sm:$0xff] }
 0x562   :  { %3770 = vmatpush.msrb.mxu3 %v3599_v52  ;;  %3892 = vmatpush.msrb.mxu2 %v5349_v60  ;;  %v3804_v52 = vld [vmem:[%s7951_s11 + $0xa0] sm:$0xff]  ;;  %v5356_v60 = vld [vmem:[%s7951_s11 + $0x198] sm:$0xff] }
 0x563   :  { %3758 = vmatmul.f32.vlgmr.msra.gmra.mxu2 %v3486_v2  ;;  %v3791_v2 = vld [vmem:[%s7951_s11 + $0x38] sm:$0xff]  ;;  %3823 = vmatpush.msrb.mxu0 %v3792_v59  ;;  %v5355_v59 = vld [vmem:[%s7951_s11 + $0x190] sm:$0xff] }
 0x564   :  { %3771 = vmatpush.msrb.mxu3 %v3597_v18  ;;  %3893 = vmatpush.msrb.mxu2 %v5348_v51  ;;  %v5362_v18 = vld [vmem:[%s7951_s11 + $0x1c8] sm:$0xff]  ;;  %v5371_v51 = vld [vmem:[%s7951_s11 + $0x210] sm:$0xff] }
 0x565   :  { %3824 = vmatpush.msrb.mxu0 %v3791_v2  ;;  %3847 = vmatpush.msrb.mxu1 %v3804_v52  ;;  %v5390_v2 = vld [vmem:[%s7951_s11 + $0x2a8] sm:$0xff]  ;;  %v3619_v52 = vperm.slane %v3616_v9, 1 }
 0x566   :  { %3772 = vmatpush.msrb.mxu3 %v3595_v12  ;;  %3894 = vmatpush.msrb.mxu2 %v5347_v16  ;;  %v3787_v12 = vld [vmem:[%s7951_s11 + $0x18] sm:$0xff]  ;;  %v5353_v16 = vld [vmem:[%s7951_s11 + $0x180] sm:$0xff] }
 0x567   :  { %3825 = vmatpush.msrb.mxu0 %v3790_v7  ;;  %v5388_v7 = vld [vmem:[%s7951_s11 + $0x298] sm:$0xff] }
 0x568   :  { %3773 = vmatpush.msrb.mxu3 %v3593_v19  ;;  %3895 = vmatpush.msrb.mxu2 %v5346_v25  ;;  %v5343_v19 = vld [vmem:[%s7951_s11 + $0x130] sm:$0xff] }
 0x569   :  { %3826 = vmatpush.msrb.mxu0 %v3789_v35  ;;  %v5387_v25 = vld [vmem:[%s7951_s11 + $0x290] sm:$0xff]  ;;  %v5385_v35 = vld [vmem:[%s7951_s11 + $0x280] sm:$0xff] }
 0x56a   :  { %3774 = vmatpush.msrb.mxu3 %v3591_v22  ;;  %3896 = vmatpush.msrb.mxu2 %v5345_v41  ;;  %v3803_v22 = vld [vmem:[%s7951_s11 + $0x98] sm:$0xff]  ;;  %v3618_v41 = vperm.slane %v3616_v9, 0  ;;  %v5524_v9 = vld [vmem:[%s8023_s27 + $0xb0] sm:$0xff] }
 0x56b   :  { %3827 = vmatpush.msrb.mxu0 %v3788_v39  ;;  %3848 = vmatpush.msrb.mxu1 %v3803_v22 }
 0x56c   :  { %3775 = vmatpush.msrb.mxu3 %v3589_v21  ;;  %3897 = vmatpush.msrb.mxu2 %v5344_v3  ;;  %v5361_v21 = vld [vmem:[%s7951_s11 + $0x1c0] sm:$0xff] }
 0x56d   :  { %3828 = vmatpush.msrb.mxu0 %v3787_v12 }
 0x56e   :  { %3776 = vmatpush.msrb.mxu3 %v3587_v28  ;;  %v5342_v28 = vld [vmem:[%s7951_s11 + $0x128] sm:$0xff]  ;;  %3898 = vmatpush.msrb.mxu2 %v5343_v19 }
 0x570   :  { %v3341_v20 = vpop.f32.mrf.mxu0  ;;  %3777 = vmatpush.msrb.mxu3 %v3585_v14  ;;  %v5360_v14 = vld [vmem:[%s7951_s11 + $0x1b8] sm:$0xff]  ;;  %3899 = vmatpush.msrb.mxu2 %v5342_v28 }
 0x571   :  { %v3342_v43 = vadd.f32 %v3341_v20, %v2798_v31  ;;  %v3786_v31 = vld [vmem:[%s7951_s11 + $0x10] sm:$0xff] }
 0x572   :  { %v3802_v20 = vld [vmem:[%s7951_s11 + $0x90] sm:$0xff]  ;;  %3829 = vmatpush.msrb.mxu0 %v3786_v31 }
 0x573   :  { %v3362_v42 = vadd.f32 %v3361_v45, %v3342_v43  ;;  %v3785_v43 = vld [vmem:[%s7951_s11 + $0x8] sm:$0xff]  ;;  %v5341_v45 = vld [vmem:[%s7951_s11 + $0x120] sm:$0xff]  ;;  %3849 = vmatpush.msrb.mxu1 %v3802_v20 }
 0x574   :  { %3830 = vmatpush.msrb.mxu0 %v3785_v43  ;;  %3900 = vmatpush.msrb.mxu2 %v5341_v45 }
 0x575   :  { %v3382_v63 = vadd.f32 %v3381_v15, %v3362_v42  ;;  %v3801_v42 = vld [vmem:[%s7951_s11 + $0x88] sm:$0xff]  ;;  %v3784_v15 = vld [vmem:[%s7951_s11] sm:$0xff] }
 0x576   :  { %3850 = vmatpush.msrb.mxu1 %v3801_v42  ;;  %3831 = vmatpush.msrb.mxu0 %v3784_v15 }
 0x577   :  { %v3402_v24 = vadd.f32 %v3401_v17, %v3382_v63  ;;  %v5340_v63 = vld [vmem:[%s7951_s11 + $0x118] sm:$0xff] }
 0x578   :  { %v5384_v17 = vld [vmem:[%s7951_s11 + $0x278] sm:$0xff]  ;;  %3901 = vmatpush.msrb.mxu2 %v5340_v63 }
 0x579   :  { %3962 = vmatpush.msra.mxu0 %v5384_v17  ;;  %v310_v17 = vld [vmem:[#allocation20] sm:$0x7] }
 0x57a   :  { %3902 = vmatpush.msrb.mxu2 %v5339_v61  ;;  %v4004_v61 = vld [vmem:[#allocation19] sm:$0x7] }
 0x57c   :  { %3903 = vmatpush.msrb.mxu2 %v5338_v8 }
 0x57e   :  { %3904 = vmatpush.msrb.mxu2 %v5337_v50 }
 0x580   :  { %5401 = vmatpush.msk.msra.mxu2 %vm379_vm0, %v310_v17 }
 0x590   :  { %v3421_v58 = vpop.f32.mrf.mxu0 }
 0x591   :  { %v3422_v13 = vadd.f32 %v3421_v58, %v3402_v24  ;;  %v3800_v24 = vld [vmem:[%s7951_s11 + $0x80] sm:$0xff]  ;;  %v5400_v58 = vld [vmem:[%s7951_s11 + $0x2f8] sm:$0xff] }
 0x592   :  { %3851 = vmatpush.msrb.mxu1 %v3800_v24 }
 0x593   :  { %v3442_v37 = vadd.f32 %v3441_v36, %v3422_v13  ;;  %v5383_v13 = vld [vmem:[%s7951_s11 + $0x270] sm:$0xff] }
 0x594   :  { %v5399_v36 = vld [vmem:[%s7951_s11 + $0x2f0] sm:$0xff]  ;;  %3982 = vmatpush.msra.mxu1 %v5400_v58  ;;  %3963 = vmatpush.msra.mxu0 %v5383_v13  ;;  %v3659_v39 = vpop.f32.mrf.mxu1  ;;  %v4002_v13 = vlaneseq }
 0x595   :  { %v3462_v48 = vadd.f32 %v3461_v32, %v3442_v37  ;;  %v5382_v37 = vld [vmem:[%s7951_s11 + $0x268] sm:$0xff] }
 0x596   :  { %v5398_v32 = vld [vmem:[%s7951_s11 + $0x2e8] sm:$0xff]  ;;  %3983 = vmatpush.msra.mxu1 %v5399_v36  ;;  %3964 = vmatpush.msra.mxu0 %v5382_v37 }
 0x597   :  { %v3482_v26 = vadd.f32 %v3481_v40, %v3462_v48  ;;  %v5381_v48 = vld [vmem:[%s7951_s11 + $0x260] sm:$0xff] }
 0x598   :  { %v5397_v40 = vld [vmem:[%s7951_s11 + $0x2e0] sm:$0xff]  ;;  %3984 = vmatpush.msra.mxu1 %v5398_v32  ;;  %3965 = vmatpush.msra.mxu0 %v5381_v48  ;;  %v4003_v32 = vshrl.u32 %v4002_v13, 7  ;;  %v5539_v13 = vld [vmem:[%s8023_s27 + $0x78] sm:$0xff] }
 0x599   :  { %v3487_v57 = vmax.f32 %v3482_v26, 0.0  ;;  %v5380_v26 = vld [vmem:[%s7951_s11 + $0x258] sm:$0xff] }
 0x59a   :  { %3985 = vmatpush.msra.mxu1 %v5397_v40  ;;  %3966 = vmatpush.msra.mxu0 %v5380_v26  ;;  %vm4006_vm4 = vcmp.eq.s32.totalorder %v4003_v32, 1  ;;  %vm4005_vm5 = vcmp.eq.s32.totalorder %v4003_v32, 0  ;;  %v4548_v32 = vld [vmem:[#allocation26 + $0x1c8] sm:$0xff] }
 0x59b   :  { %3698 = vmatmul.f32.vlgmr.msra.gmra.mxu3 %v3487_v57 }
 0x59c   :  { %3909 = vmatpush.msra.mxu3 %v5368_v1  ;;  %3967 = vmatpush.msra.mxu0 %v5379_v4  ;;  %v5392_v1 = vld [vmem:[%s7951_s11 + $0x2b8] sm:$0xff]  ;;  %v3739_v20 = vpop.f32.mrf.mxu1 }
 0x59e   :  { %3910 = vmatpush.msra.mxu3 %v5367_v54  ;;  %3968 = vmatpush.msra.mxu0 %v5378_v6  ;;  %v5391_v54 = vld [vmem:[%s7951_s11 + $0x2b0] sm:$0xff] }
 0x5a0   :  { %3911 = vmatpush.msra.mxu3 %v5366_v49  ;;  %3969 = vmatpush.msra.mxu0 %v5377_v11  ;;  %v5370_v49 = vld [vmem:[%s7951_s11 + $0x208] sm:$0xff] }
 0x5a2   :  { %3912 = vmatpush.msra.mxu3 %v5365_v5  ;;  %3970 = vmatpush.msra.mxu0 %v5376_v23  ;;  %v5389_v5 = vld [vmem:[%s7951_s11 + $0x2a0] sm:$0xff] }
 0x5a3   :  { %3778 = vmatmul.f32.vlgmr.msrb.gmra.mxu3 %v3487_v57  ;;  %v5396_v57 = vld [vmem:[%s7951_s11 + $0x2d8] sm:$0xff] }
 0x5a4   :  { %3913 = vmatpush.msra.mxu3 %v5364_v33  ;;  %3986 = vmatpush.msra.mxu1 %v5396_v57  ;;  %v5386_v33 = vld [vmem:[%s7951_s11 + $0x288] sm:$0xff] }
 0x5a5   :  { %3971 = vmatpush.msra.mxu0 %v5375_v0 }
 0x5a6   :  { %3914 = vmatpush.msra.mxu3 %v5363_v44  ;;  %3987 = vmatpush.msra.mxu1 %v5395_v46 }
 0x5a7   :  { %3972 = vmatpush.msra.mxu0 %v5374_v34 }
 0x5a8   :  { %3915 = vmatpush.msra.mxu3 %v5362_v18  ;;  %3988 = vmatpush.msra.mxu1 %v5394_v27 }
 0x5a9   :  { %3973 = vmatpush.msra.mxu0 %v5373_v30 }
 0x5aa   :  { %3916 = vmatpush.msra.mxu3 %v5361_v21  ;;  %3989 = vmatpush.msra.mxu1 %v5393_v53  ;;  %v5510_v53 = vld [vmem:[%s8023_s27] sm:$0xff] }
 0x5ab   :  { %3974 = vmatpush.msra.mxu0 %v5372_v38  ;;  %v5511_v38 = vld [vmem:[%s8023_s27 + $0x8] sm:$0xff] }
 0x5ac   :  { %3917 = vmatpush.msra.mxu3 %v5360_v14  ;;  %3990 = vmatpush.msra.mxu1 %v5392_v1  ;;  %v5512_v1 = vld [vmem:[%s8023_s27 + $0x80] sm:$0xff] }
 0x5ad   :  { %3975 = vmatpush.msra.mxu0 %v5371_v51  ;;  %v5514_v51 = vld [vmem:[%s8023_s27 + $0x88] sm:$0xff] }
 0x5ae   :  { %3918 = vmatpush.msra.mxu3 %v5359_v56  ;;  %3991 = vmatpush.msra.mxu1 %v5391_v54  ;;  %v5515_v54 = vld [vmem:[%s8023_s27 + $0x18] sm:$0xff] }
 0x5af   :  { %3976 = vmatpush.msra.mxu0 %v5370_v49  ;;  %v5517_v49 = vld [vmem:[%s8023_s27 + $0x20] sm:$0xff] }
 0x5b0   :  { %3919 = vmatpush.msra.mxu3 %v5358_v47  ;;  %3992 = vmatpush.msra.mxu1 %v5390_v2  ;;  %v3639_v10 = vpop.f32.mrf.mxu0  ;;  %v5518_v2 = vld [vmem:[%s8023_s27 + $0x98] sm:$0xff] }
 0x5b1   :  { %3977 = vmatpush.msra.mxu0 %v5369_v62  ;;  %v3640_v44 = vadd.f32 %v3639_v10, %v3618_v41  ;;  %v5520_v62 = vld [vmem:[%s8023_s27 + $0xa0] sm:$0xff]  ;;  %v5527_v41 = vld [vmem:[%s8023_s27 + $0x48] sm:$0xff] }
 0x5b2   :  { %3920 = vmatpush.msra.mxu3 %v5357_v55  ;;  %3993 = vmatpush.msra.mxu1 %v5389_v5  ;;  %v5521_v5 = vld [vmem:[%s8023_s27 + $0x30] sm:$0xff]  ;;  %v5528_v10 = vld [vmem:[%s8023_s27 + $0xc0] sm:$0xff] }
 0x5b3   :  { %v3660_v18 = vadd.f32 %v3659_v39, %v3640_v44  ;;  %v5529_v44 = vld [vmem:[%s8023_s27 + $0x50] sm:$0xff]  ;;  %v5530_v39 = vld [vmem:[%s8023_s27 + $0xc8] sm:$0xff] }
 0x5b4   :  { %3921 = vmatpush.msra.mxu3 %v5356_v60  ;;  %3994 = vmatpush.msra.mxu1 %v5388_v7  ;;  %v5522_v7 = vld [vmem:[%s8023_s27 + $0xa8] sm:$0xff] }
 0x5b6   :  { %3922 = vmatpush.msra.mxu3 %v5355_v59  ;;  %3995 = vmatpush.msra.mxu1 %v5387_v25  ;;  %v5513_v59 = vld [vmem:[%s8023_s27 + $0x10] sm:$0xff]  ;;  %v5523_v25 = vld [vmem:[%s8023_s27 + $0x38] sm:$0xff] }
 0x5b8   :  { %3923 = vmatpush.msra.mxu3 %v5354_v29  ;;  %3996 = vmatpush.msra.mxu1 %v5386_v33  ;;  %v5516_v29 = vld [vmem:[%s8023_s27 + $0x90] sm:$0xff]  ;;  %v5525_v33 = vld [vmem:[%s8023_s27 + $0x40] sm:$0xff] }
 0x5ba   :  { %3924 = vmatpush.msra.mxu3 %v5353_v16  ;;  %3997 = vmatpush.msra.mxu1 %v5385_v35  ;;  %v5519_v16 = vld [vmem:[%s8023_s27 + $0x28] sm:$0xff]  ;;  %v5526_v35 = vld [vmem:[%s8023_s27 + $0xb8] sm:$0xff] }
 0x5d0   :  { %v3719_v12 = vpop.f32.mrf.mxu0 }
 0x5d1   :  { %v3720_v21 = vadd.f32 %v3719_v12, %v3619_v52  ;;  %v5532_v52 = vld [vmem:[%s8023_s27 + $0xd0] sm:$0xff] }
 0x5d2   :  { %v4245_v12 = vld [vmem:[#allocation23 + $0x30] sm:$0xff] }
 0x5d3   :  { %v3740_v43 = vadd.f32 %v3739_v20, %v3720_v21  ;;  %v5533_v21 = vld [vmem:[%s8023_s27 + $0x60] sm:$0xff]  ;;  %v4241_v20 = vld [vmem:[#allocation23 + $0x10] sm:$0xff] }
 0x5de   :  { %v3679_v3 = vpop.f32.mrf.mxu2 }
 0x5df   :  { %v3680_v19 = vadd.f32 %v3679_v3, %v3660_v18  ;;  %v5531_v3 = vld [vmem:[%s8023_s27 + $0x58] sm:$0xff] }
 0x5e0   :  { %v4246_v18 = vld [vmem:[#allocation23 + $0x38] sm:$0xff] }
 0x5e6   :  { %v3759_v14 = vpop.f32.mrf.mxu2 }
 0x5e7   :  { %v3760_v45 = vadd.f32 %v3759_v14, %v3740_v43  ;;  %v4240_v14 = vld [vmem:[#allocation23 + $0x8] sm:$0xff]  ;;  %v4239_v43 = vld [vmem:[#allocation23] sm:$0xff] }
 0x61e   :  { %v3699_v22 = vpop.f32.mrf.mxu3 }
 0x61f   :  { %v3700_v31 = vadd.f32 %v3699_v22, %v3680_v19  ;;  %v4244_v19 = vld [vmem:[#allocation23 + $0x28] sm:$0xff]  ;;  %v4243_v22 = vld [vmem:[#allocation23 + $0x20] sm:$0xff] }
 0x621   :  { %v3782_v28 = vmax.f32 %v3700_v31, 0.0  ;;  %v5534_v31 = vld [vmem:[%s8023_s27 + $0xd8] sm:$0xff] }
 0x623   :  { %3832 = vmatmul.f32.vlgmr.msrb.gmra.mxu0 %v3782_v28  ;;  %3905 = vmatmul.f32.vlgmr.msrb.gmra.mxu2 %v3782_v28 }
 0x624   :  { %5403 = vmatpush.msk.msrb.mxu2 %vm379_vm0, %v310_v17  ;;  %4354 = vmatpush.msrb.mxu0 %v4246_v18  ;;  %v4552_v17 = vld [vmem:[#allocation26 + $0x1e8] sm:$0xff] }
 0x626   :  { %v3779_v42 = vpop.f32.mrf.mxu3  ;;  %4355 = vmatpush.msrb.mxu0 %v4245_v12 }
 0x627   :  { %v3780_v15 = vadd.f32 %v3779_v42, %v3760_v45  ;;  %v5535_v45 = vld [vmem:[%s8023_s27 + $0x68] sm:$0xff]  ;;  %v5536_v42 = vld [vmem:[%s8023_s27 + $0xe0] sm:$0xff] }
 0x628   :  { %4356 = vmatpush.msrb.mxu0 %v4244_v19 }
 0x629   :  { %v3783_v63 = vmax.f32 %v3780_v15, 0.0  ;;  %v5537_v15 = vld [vmem:[%s8023_s27 + $0x70] sm:$0xff] }
 0x62a   :  { %4357 = vmatpush.msrb.mxu0 %v4243_v22 }
 0x62b   :  { %3852 = vmatmul.f32.vlgmr.msrb.gmra.mxu1 %v3783_v63  ;;  %3925 = vmatmul.f32.vlgmr.msra.gmra.mxu3 %v3783_v63 }
 0x62c   :  { %3978 = vmatmul.f32.vlgmr.msra.gmra.mxu0 %v3782_v28  ;;  %5471 = vmatpush.msrb.mxu1 %v4246_v18  ;;  %v4242_v28 = vld [vmem:[#allocation23 + $0x18] sm:$0xff] }
 0x62d   :  { %4358 = vmatpush.msrb.mxu0 %v4242_v28  ;;  %v4529_v18 = vld [vmem:[#allocation26 + $0x130] sm:$0xff] }
 0x62e   :  { %5472 = vmatpush.msrb.mxu1 %v4245_v12 }
 0x62f   :  { %4359 = vmatpush.msrb.mxu0 %v4241_v20 }
 0x630   :  { %5473 = vmatpush.msrb.mxu1 %v4244_v19 }
 0x631   :  { %4360 = vmatpush.msrb.mxu0 %v4240_v14 }
 0x632   :  { %5474 = vmatpush.msrb.mxu1 %v4243_v22 }
 0x633   :  { %3998 = vmatmul.f32.vlgmr.msra.gmra.mxu1 %v3783_v63  ;;  %4361 = vmatpush.msrb.mxu0 %v4239_v43  ;;  %v5538_v63 = vld [vmem:[%s8023_s27 + $0xe8] sm:$0xff] }
 0x634   :  { %5475 = vmatpush.msrb.mxu1 %v4242_v28 }
 0x636   :  { %5476 = vmatpush.msrb.mxu1 %v4241_v20  ;;  %v4530_v20 = vld [vmem:[#allocation26 + $0x138] sm:$0xff] }
 0x638   :  { %5477 = vmatpush.msrb.mxu1 %v4240_v14  ;;  %v4527_v14 = vld [vmem:[#allocation26 + $0x120] sm:$0xff] }
 0x63a   :  { %5478 = vmatpush.msrb.mxu1 %v4239_v43  ;;  %v4524_v43 = vld [vmem:[#allocation26 + $0x108] sm:$0xff] }
 0x6a0   :  { %v3833_v24 = vpop.f32.mrf.mxu0 }
 0x6a6   :  { %v3906_v36 = vpop.f32.mrf.mxu2 }
 0x6a8   :  { %v3853_v58 = vpop.f32.mrf.mxu1 }
 0x6a9   :  { %v3854_v40 = vadd.f32 %v3853_v58, %v3833_v24  ;;  %v3979_v26 = vpop.f32.mrf.mxu0  ;;  %v4553_v24 = vld [vmem:[#allocation26 + $0x1f0] sm:$0xff]  ;;  %v4554_v58 = vld [vmem:[#allocation26 + $0x1f8] sm:$0xff] }
 0x6aa   :  { %4894 = vmatpush.msra.mxu0 %v4554_v58 }
 0x6ab   :  { %v4010_v23 = vperm.slane %v3854_v40, 0  ;;  %v4042_v27 = vperm.slane %v3854_v40, 1  ;;  %v4550_v40 = vld [vmem:[#allocation26 + $0x1d8] sm:$0xff] }
 0x6ac   :  { %4895 = vmatpush.msra.mxu0 %v4550_v40 }
 0x6ae   :  { %v3926_v37 = vpop.f32.mrf.mxu3 }
 0x6af   :  { %v3927_v48 = vadd.f32 %v3926_v37, %v3906_v36  ;;  %v5540_v36 = vld [vmem:[%s8023_s27 + $0xf0] sm:$0xff]  ;;  %v4551_v37 = vld [vmem:[#allocation26 + $0x1e0] sm:$0xff] }
 0x6b0   :  { %v3999_v57 = vpop.f32.mrf.mxu1  ;;  %4555 = vmatpush.msra.mxu1 %v4551_v37  ;;  %v4520_v37 = vld [vmem:[#allocation26 + $0xe8] sm:$0xff] }
 0x6b1   :  { %v4000_v4 = vadd.f32 %v3999_v57, %v3979_v26  ;;  %v4007_v6 = vperm.slane %v3927_v48, 0  ;;  %v4039_v8 = vperm.slane %v3927_v48, 1  ;;  %v4549_v48 = vld [vmem:[#allocation26 + $0x1d0] sm:$0xff]  ;;  %v7741_v26 = vld [vmem:[#allocation22] ss:$0 sm:$0xff] }
 0x6b2   :  { %v5541_v57 = vld [vmem:[%s8023_s27 + $0xf8] sm:$0xff]  ;;  %s6019_s27 = smov [#allocation29]  }
 0x6b3   :  { %v4008_v11 = vperm.slane %v4000_v4, 0  ;;  %v4040_v0 = vperm.slane %v4000_v4, 1  ;;  %v4547_v4 = vld [vmem:[#allocation26 + $0x1c0] sm:$0xff]  ;;  %s5235_s10 = sshll.u32 %s6019_s27, 4  ;;  %s5236_s10 = int_to_ptr.vmem [resolvable:$true] %s5235_s10 }
 0x6b4   :  { %4556 = vmatpush.msra.mxu1 %v4547_v4 }
 0x6b5   :  { %v4009_v56 = vsel %vm4006_vm4, %v4007_v6, %v4008_v11  ;;  %v4041_v34 = vsel %vm4006_vm4, %v4039_v8, %v4040_v0  ;;  %v4544_v6 = vld [vmem:[#allocation26 + $0x1a8] sm:$0xff]  ;;  %v4545_v11 = vld [vmem:[#allocation26 + $0x1b0] sm:$0xff]  ;;  %v4546_v0 = vld [vmem:[#allocation26 + $0x1b8] sm:$0xff] }
 0x6b6   :  { %v4011_v46 = vsel %vm4005_vm5, %v4010_v23, %v4009_v56  ;;  %v4043_v50 = vsel %vm4005_vm5, %v4042_v27, %v4041_v34  ;;  %4896 = vmatpush.msra.mxu0 %v4546_v0  ;;  %v4540_v8 = vld [vmem:[#allocation26 + $0x188] sm:$0xff]  ;;  %v4517_v0 = vld [vmem:[#allocation26 + $0xd0] sm:$0xff] }
 0x6b7   :  { %v4012_v47 = vadd.f32 %v4011_v46, %v4004_v61  ;;  %v4044_v55 = vadd.f32 %v4043_v50, %v4004_v61  ;;  %v4543_v46 = vld [vmem:[#allocation26 + $0x1a0] sm:$0xff] }
 0x6b8   :  { %4557 = vmatpush.msra.mxu1 %v4543_v46 }
 0x6b9   :  { %5402 = vmatmul.msk.f32.vlgmr.msra.gmra.mxu2 %vm330_vm1, %v4012_v47  ;;  %v4541_v47 = vld [vmem:[#allocation26 + $0x190] sm:$0xff] }
 0x6c1   :  { %5404 = vmatmul.msk.f32.vlgmr.msrb.gmra.mxu2 %vm330_vm1, %v4044_v55 }
 0x73c   :  { %v4036_v30 = vpop.f32.mrf.mxu2 }
 0x73d   :  { %5405 = vmatpush.msk.msra.mxu2 %vm379_vm0, %v4036_v30 }
 0x73e   :  { %5406 = vmatmul.msk.f32.vlgmr.msra.gmra.mxu2 %vm330_vm1, %v5510_v53 }
 0x73f   :  { %4668 = vmatpush.msrb.mxu2 %v4552_v17 }
 0x741   :  { %4669 = vmatpush.msrb.mxu2 %v4548_v32  ;;  %v4521_v32 = vld [vmem:[#allocation26 + $0xf0] sm:$0xff] }
 0x743   :  { %4670 = vmatpush.msrb.mxu2 %v4544_v6 }
 0x744   :  { %v4065_v60 = vpop.f32.mrf.mxu2 }
 0x745   :  { %5422 = vmatpush.msk.msrb.mxu3 %vm379_vm0, %v4065_v60  ;;  %4671 = vmatpush.msrb.mxu2 %v4540_v8  ;;  %v4542_v60 = vld [vmem:[#allocation26 + $0x198] sm:$0xff] }
 0x746   :  { %5407 = vmatmul.msk.f32.gmra.mxu2 %vm330_vm1, %v5511_v38  ;;  %5423 = vmatmul.msk.f32.vlgmr.msrb.gmra.mxu3 %vm330_vm1, %v5512_v1  ;;  %v4539_v38 = vld [vmem:[#allocation26 + $0x180] sm:$0xff]  ;;  %v4536_v1 = vld [vmem:[#allocation26 + $0x168] sm:$0xff] }
 0x747   :  { %4781 = vmatpush.msra.mxu3 %v4553_v24  ;;  %4897 = vmatpush.msra.mxu0 %v4542_v60  ;;  %v4513_v60 = vld [vmem:[#allocation26 + $0xb0] sm:$0xff] }
 0x748   :  { %4558 = vmatpush.msra.mxu1 %v4539_v38  ;;  %4672 = vmatpush.msrb.mxu2 %v4536_v1 }
 0x749   :  { %4782 = vmatpush.msra.mxu3 %v4549_v48 }
 0x74b   :  { %4783 = vmatpush.msra.mxu3 %v4545_v11 }
 0x74d   :  { %4784 = vmatpush.msra.mxu3 %v4541_v47 }
 0x74e   :  { %5408 = vmatmul.msk.f32.gmra.mxu2 %vm330_vm1, %v5513_v59  ;;  %5424 = vmatmul.msk.f32.gmra.mxu3 %vm330_vm1, %v5514_v51  ;;  %v4537_v59 = vld [vmem:[#allocation26 + $0x170] sm:$0xff] }
 0x74f   :  { %4785 = vmatpush.msra.mxu3 %v4537_v59 }
 0x756   :  { %5409 = vmatmul.msk.f32.gmra.mxu2 %vm330_vm1, %v5515_v54  ;;  %5425 = vmatmul.msk.f32.gmra.mxu3 %vm330_vm1, %v5516_v29 }
 0x75e   :  { %5410 = vmatmul.msk.f32.gmra.mxu2 %vm330_vm1, %v5517_v49  ;;  %5426 = vmatmul.msk.f32.gmra.mxu3 %vm330_vm1, %v5518_v2 }
 0x766   :  { %5411 = vmatmul.msk.f32.gmra.mxu2 %vm330_vm1, %v5519_v16  ;;  %5427 = vmatmul.msk.f32.gmra.mxu3 %vm330_vm1, %v5520_v62  ;;  %v4538_v62 = vld [vmem:[#allocation26 + $0x178] sm:$0xff] }
 0x767   :  { %4898 = vmatpush.msra.mxu0 %v4538_v62  ;;  %v4509_v62 = vld [vmem:[#allocation26 + $0x90] sm:$0xff] }
 0x76e   :  { %5412 = vmatmul.msk.f32.gmra.mxu2 %vm330_vm1, %v5521_v5  ;;  %5428 = vmatmul.msk.f32.gmra.mxu3 %vm330_vm1, %v5522_v7  ;;  %v4535_v5 = vld [vmem:[#allocation26 + $0x160] sm:$0xff]  ;;  %v4532_v7 = vld [vmem:[#allocation26 + $0x148] sm:$0xff] }
 0x76f   :  { %4559 = vmatpush.msra.mxu1 %v4535_v5  ;;  %4673 = vmatpush.msrb.mxu2 %v4532_v7 }
 0x776   :  { %5413 = vmatmul.msk.f32.gmra.mxu2 %vm330_vm1, %v5523_v25  ;;  %5429 = vmatmul.msk.f32.gmra.mxu3 %vm330_vm1, %v5524_v9  ;;  %v4533_v25 = vld [vmem:[#allocation26 + $0x150] sm:$0xff] }
 0x777   :  { %4786 = vmatpush.msra.mxu3 %v4533_v25 }
 0x779   :  { %4787 = vmatpush.msra.mxu3 %v4529_v18 }
 0x77e   :  { %5414 = vmatmul.msk.f32.gmra.mxu2 %vm330_vm1, %v5525_v33  ;;  %5430 = vmatmul.msk.f32.gmra.mxu3 %vm330_vm1, %v5526_v35 }
 0x786   :  { %5415 = vmatmul.msk.f32.gmra.mxu2 %vm330_vm1, %v5527_v41  ;;  %5431 = vmatmul.msk.f32.gmra.mxu3 %vm330_vm1, %v5528_v10 }
 0x78e   :  { %5416 = vmatmul.msk.f32.gmra.mxu2 %vm330_vm1, %v5529_v44  ;;  %5432 = vmatmul.msk.f32.gmra.mxu3 %vm330_vm1, %v5530_v39  ;;  %v4534_v39 = vld [vmem:[#allocation26 + $0x158] sm:$0xff] }
 0x78f   :  { %4899 = vmatpush.msra.mxu0 %v4534_v39  ;;  %v4505_v39 = vld [vmem:[#allocation26 + $0x70] sm:$0xff] }
 0x791   :  { %4900 = vmatpush.msra.mxu0 %v4530_v20  ;;  %v4501_v20 = vld [vmem:[#allocation26 + $0x50] sm:$0xff] }
 0x796   :  { %5417 = vmatmul.msk.f32.gmra.mxu2 %vm330_vm1, %v5531_v3  ;;  %5433 = vmatmul.msk.f32.gmra.mxu3 %vm330_vm1, %v5532_v52  ;;  %v4531_v3 = vld [vmem:[#allocation26 + $0x140] sm:$0xff]  ;;  %v4528_v52 = vld [vmem:[#allocation26 + $0x128] sm:$0xff] }
 0x797   :  { %4560 = vmatpush.msra.mxu1 %v4531_v3  ;;  %4674 = vmatpush.msrb.mxu2 %v4528_v52 }
 0x799   :  { %4561 = vmatpush.msra.mxu1 %v4527_v14  ;;  %4675 = vmatpush.msrb.mxu2 %v4524_v43 }
 0x79b   :  { %4676 = vmatpush.msrb.mxu2 %v4520_v37 }
 0x79e   :  { %5418 = vmatmul.msk.f32.gmra.mxu2 %vm330_vm1, %v5533_v21  ;;  %5434 = vmatmul.msk.f32.gmra.mxu3 %vm330_vm1, %v5534_v31 }
 0x7a6   :  { %5419 = vmatmul.msk.f32.gmra.mxu2 %vm330_vm1, %v5535_v45  ;;  %5435 = vmatmul.msk.f32.gmra.mxu3 %vm330_vm1, %v5536_v42  ;;  %v4525_v45 = vld [vmem:[#allocation26 + $0x110] sm:$0xff] }
 0x7a7   :  { %4788 = vmatpush.msra.mxu3 %v4525_v45 }
 0x7a9   :  { %4789 = vmatpush.msra.mxu3 %v4521_v32 }
 0x7ab   :  { %4790 = vmatpush.msra.mxu3 %v4517_v0 }
 0x7ad   :  { %4791 = vmatpush.msra.mxu3 %v4513_v60 }
 0x7ae   :  { %5420 = vmatmul.msk.f32.gmra.mxu2 %vm330_vm1, %v5537_v15  ;;  %5436 = vmatmul.msk.f32.gmra.mxu3 %vm330_vm1, %v5538_v63 }
 0x7af   :  { %4792 = vmatpush.msra.mxu3 %v4509_v62 }
 0x7b1   :  { %4793 = vmatpush.msra.mxu3 %v4505_v39 }
 0x7b3   :  { %4794 = vmatpush.msra.mxu3 %v4501_v20 }
 0x7b6   :  { %5421 = vmatmul.msk.f32.gmra.mxu2 %vm330_vm1, %v5539_v13  ;;  %5437 = vmatmul.msk.f32.gmra.mxu3 %vm330_vm1, %v5540_v36  ;;  %v4526_v13 = vld [vmem:[#allocation26 + $0x118] sm:$0xff]  ;;  %v4523_v36 = vld [vmem:[#allocation26 + $0x100] sm:$0xff] }
 0x7b7   :  { %4901 = vmatpush.msra.mxu0 %v4526_v13  ;;  %4562 = vmatpush.msra.mxu1 %v4523_v36  ;;  %v4497_v13 = vld [vmem:[#allocation26 + $0x30] sm:$0xff] }
 0x7b8   :  { %4795 = vmatpush.msra.mxu3 %v4497_v13 }
 0x7be   :  { %5438 = vmatmul.msk.f32.gmra.mxu3 %vm330_vm1, %v5541_v57 }
 0x7c1   :  { %v4091_v23 = vpop.f32.mrf.mxu2 }
 0x7c2   :  { %v4092_v61 = vadd.f32 %v7741_v26, %v4091_v23  ;;  %v4522_v23 = vld [vmem:[#allocation26 + $0xf8] sm:$0xff] }
 0x7c3   :  { %4902 = vmatpush.msra.mxu0 %v4522_v23  ;;  %v4493_v23 = vld [vmem:[#allocation26 + $0x10] sm:$0xff] }
 0x7c4   :  { %v4139_v56 = vmax.f32 %v4092_v61, 0.0  ;;  %v4519_v61 = vld [vmem:[#allocation26 + $0xe0] sm:$0xff]  ;;  %4796 = vmatpush.msra.mxu3 %v4493_v23 }
 0x7c5   :  { %4563 = vmatpush.msra.mxu1 %v4519_v61  ;;  %v4494_v61 = vld [vmem:[#allocation26 + $0x18] sm:$0xff] }
 0x7c6   :  { %5439 = vmatmul.msk.f32.vlgmr.msrb.gmra.mxu0 %vm621_vm2, %v4139_v56  ;;  %v4516_v56 = vld [vmem:[#allocation26 + $0xc8] sm:$0xff] }
 0x7c7   :  { %4677 = vmatpush.msrb.mxu2 %v4516_v56 }
 0x7c9   :  { %v4094_v34 = vpop.f32.mrf.mxu2  ;;  %v4175_v27 = vpop.f32.mrf.mxu3 }
 0x7ca   :  { %v4095_v50 = vadd.f32 %v7741_v26, %v4094_v34  ;;  %v4176_v55 = vadd.f32 %v7741_v26, %v4175_v27 }
 0x7cc   :  { %v4140_v30 = vmax.f32 %v4095_v50, 0.0  ;;  %v4223_v53 = vmax.f32 %v4176_v55, 0.0  ;;  %v4518_v55 = vld [vmem:[#allocation26 + $0xd8] sm:$0xff] }
 0x7cd   :  { %4903 = vmatpush.msra.mxu0 %v4518_v55 }
 0x7ce   :  { %5440 = vmatmul.msk.f32.gmra.mxu0 %vm621_vm2, %v4140_v30  ;;  %5455 = vmatmul.msk.f32.vlgmr.msrb.gmra.mxu1 %vm621_vm2, %v4223_v53  ;;  %v4515_v30 = vld [vmem:[#allocation26 + $0xc0] sm:$0xff]  ;;  %v4512_v53 = vld [vmem:[#allocation26 + $0xa8] sm:$0xff] }
 0x7cf   :  { %4564 = vmatpush.msra.mxu1 %v4515_v30  ;;  %4678 = vmatpush.msrb.mxu2 %v4512_v53 }
 0x7d1   :  { %v4097_v51 = vpop.f32.mrf.mxu2  ;;  %v4178_v54 = vpop.f32.mrf.mxu3 }
 0x7d2   :  { %v4098_v29 = vadd.f32 %v7741_v26, %v4097_v51  ;;  %v4179_v49 = vadd.f32 %v7741_v26, %v4178_v54 }
 0x7d4   :  { %v4141_v2 = vmax.f32 %v4098_v29, 0.0  ;;  %v4224_v16 = vmax.f32 %v4179_v49, 0.0  ;;  %v4514_v49 = vld [vmem:[#allocation26 + $0xb8] sm:$0xff] }
 0x7d5   :  { %4904 = vmatpush.msra.mxu0 %v4514_v49 }
 0x7d6   :  { %5441 = vmatmul.msk.f32.gmra.mxu0 %vm621_vm2, %v4141_v2  ;;  %5456 = vmatmul.msk.f32.gmra.mxu1 %vm621_vm2, %v4224_v16  ;;  %v4511_v2 = vld [vmem:[#allocation26 + $0xa0] sm:$0xff]  ;;  %v4508_v16 = vld [vmem:[#allocation26 + $0x88] sm:$0xff] }
 0x7d7   :  { %4565 = vmatpush.msra.mxu1 %v4511_v2  ;;  %4679 = vmatpush.msrb.mxu2 %v4508_v16  ;;  %v7809_v2 = vld [vmem:[#allocation25] ss:$0 sm:$0xff] }
 0x7d9   :  { %v4100_v9 = vpop.f32.mrf.mxu2  ;;  %v4181_v33 = vpop.f32.mrf.mxu3 }
 0x7da   :  { %v4101_v35 = vadd.f32 %v7741_v26, %v4100_v9  ;;  %v4182_v41 = vadd.f32 %v7741_v26, %v4181_v33 }
 0x7dc   :  { %v4142_v10 = vmax.f32 %v4101_v35, 0.0  ;;  %v4225_v44 = vmax.f32 %v4182_v41, 0.0  ;;  %v4510_v41 = vld [vmem:[#allocation26 + $0x98] sm:$0xff] }
 0x7dd   :  { %4905 = vmatpush.msra.mxu0 %v4510_v41 }
 0x7de   :  { %5442 = vmatmul.msk.f32.gmra.mxu0 %vm621_vm2, %v4142_v10  ;;  %5457 = vmatmul.msk.f32.gmra.mxu1 %vm621_vm2, %v4225_v44  ;;  %v4507_v10 = vld [vmem:[#allocation26 + $0x80] sm:$0xff]  ;;  %v4504_v44 = vld [vmem:[#allocation26 + $0x68] sm:$0xff] }
 0x7df   :  { %4566 = vmatpush.msra.mxu1 %v4507_v10  ;;  %4680 = vmatpush.msrb.mxu2 %v4504_v44 }
 0x7e1   :  { %v4103_v12 = vpop.f32.mrf.mxu2  ;;  %v4184_v19 = vpop.f32.mrf.mxu3 }
 0x7e2   :  { %v4104_v22 = vadd.f32 %v7741_v26, %v4103_v12  ;;  %v4185_v21 = vadd.f32 %v7741_v26, %v4184_v19 }
 0x7e4   :  { %v4143_v31 = vmax.f32 %v4104_v22, 0.0  ;;  %v4226_v28 = vmax.f32 %v4185_v21, 0.0  ;;  %v4506_v21 = vld [vmem:[#allocation26 + $0x78] sm:$0xff] }
 0x7e5   :  { %4906 = vmatpush.msra.mxu0 %v4506_v21 }
 0x7e6   :  { %5443 = vmatmul.msk.f32.gmra.mxu0 %vm621_vm2, %v4143_v31  ;;  %5458 = vmatmul.msk.f32.gmra.mxu1 %vm621_vm2, %v4226_v28  ;;  %v4503_v31 = vld [vmem:[#allocation26 + $0x60] sm:$0xff]  ;;  %v4500_v28 = vld [vmem:[#allocation26 + $0x48] sm:$0xff] }
 0x7e7   :  { %4567 = vmatpush.msra.mxu1 %v4503_v31  ;;  %4681 = vmatpush.msrb.mxu2 %v4500_v28 }
 0x7e9   :  { %v4106_v42 = vpop.f32.mrf.mxu2  ;;  %v4187_v15 = vpop.f32.mrf.mxu3 }
 0x7ea   :  { %v4107_v63 = vadd.f32 %v7741_v26, %v4106_v42  ;;  %v4188_v17 = vadd.f32 %v7741_v26, %v4187_v15 }
 0x7ec   :  { %v4144_v24 = vmax.f32 %v4107_v63, 0.0  ;;  %v4227_v58 = vmax.f32 %v4188_v17, 0.0  ;;  %v4502_v17 = vld [vmem:[#allocation26 + $0x58] sm:$0xff] }
 0x7ed   :  { %4907 = vmatpush.msra.mxu0 %v4502_v17 }
 0x7ee   :  { %5444 = vmatmul.msk.f32.gmra.mxu0 %vm621_vm2, %v4144_v24  ;;  %5459 = vmatmul.msk.f32.gmra.mxu1 %vm621_vm2, %v4227_v58  ;;  %v4499_v24 = vld [vmem:[#allocation26 + $0x40] sm:$0xff]  ;;  %v4496_v58 = vld [vmem:[#allocation26 + $0x28] sm:$0xff] }
 0x7ef   :  { %4568 = vmatpush.msra.mxu1 %v4499_v24  ;;  %4682 = vmatpush.msrb.mxu2 %v4496_v58 }
 0x7f1   :  { %v4109_v48 = vpop.f32.mrf.mxu2  ;;  %v4190_v40 = vpop.f32.mrf.mxu3 }
 0x7f2   :  { %v4110_v57 = vadd.f32 %v7741_v26, %v4109_v48  ;;  %v4191_v4 = vadd.f32 %v7741_v26, %v4190_v40 }
 0x7f4   :  { %v4145_v6 = vmax.f32 %v4110_v57, 0.0  ;;  %v4228_v11 = vmax.f32 %v4191_v4, 0.0  ;;  %v4498_v4 = vld [vmem:[#allocation26 + $0x38] sm:$0xff] }
 0x7f5   :  { %4908 = vmatpush.msra.mxu0 %v4498_v4 }
 0x7f6   :  { %5445 = vmatmul.msk.f32.gmra.mxu0 %vm621_vm2, %v4145_v6  ;;  %5460 = vmatmul.msk.f32.gmra.mxu1 %vm621_vm2, %v4228_v11  ;;  %v4495_v6 = vld [vmem:[#allocation26 + $0x20] sm:$0xff]  ;;  %v4492_v11 = vld [vmem:[#allocation26 + $0x8] sm:$0xff] }
 0x7f7   :  { %4569 = vmatpush.msra.mxu1 %v4495_v6  ;;  %4683 = vmatpush.msrb.mxu2 %v4492_v11 }
 0x7f8   :  { %4909 = vmatpush.msra.mxu0 %v4494_v61 }
 0x7f9   :  { %v4112_v46 = vpop.f32.mrf.mxu2  ;;  %v4193_v8 = vpop.f32.mrf.mxu3 }
 0x7fa   :  { %v4113_v47 = vadd.f32 %v7741_v26, %v4112_v46  ;;  %v4194_v34 = vadd.f32 %v7741_v26, %v4193_v8 }
 0x7fc   :  { %v4146_v27 = vmax.f32 %v4113_v47, 0.0  ;;  %v4229_v50 = vmax.f32 %v4194_v34, 0.0 }
 0x7fe   :  { %5446 = vmatmul.msk.f32.gmra.mxu0 %vm621_vm2, %v4146_v27  ;;  %5461 = vmatmul.msk.f32.gmra.mxu1 %vm621_vm2, %v4229_v50  ;;  %v4491_v27 = vld [vmem:[#allocation26] sm:$0xff] }
 0x7ff   :  { %4570 = vmatpush.msra.mxu1 %v4491_v27 }
 0x801   :  { %v4115_v38 = vpop.f32.mrf.mxu2  ;;  %v4196_v1 = vpop.f32.mrf.mxu3 }
 0x802   :  { %v4116_v59 = vadd.f32 %v7741_v26, %v4115_v38  ;;  %v4197_v51 = vadd.f32 %v7741_v26, %v4196_v1 }
 0x804   :  { %v4147_v54 = vmax.f32 %v4116_v59, 0.0  ;;  %v4230_v29 = vmax.f32 %v4197_v51, 0.0 }
 0x806   :  { %5447 = vmatmul.msk.f32.gmra.mxu0 %vm621_vm2, %v4147_v54  ;;  %5462 = vmatmul.msk.f32.gmra.mxu1 %vm621_vm2, %v4230_v29 }
 0x809   :  { %v4118_v5 = vpop.f32.mrf.mxu2  ;;  %v4199_v7 = vpop.f32.mrf.mxu3 }
 0x80a   :  { %v4119_v25 = vadd.f32 %v7741_v26, %v4118_v5  ;;  %v4200_v9 = vadd.f32 %v7741_v26, %v4199_v7 }
 0x80c   :  { %v4148_v33 = vmax.f32 %v4119_v25, 0.0  ;;  %v4231_v35 = vmax.f32 %v4200_v9, 0.0 }
 0x80e   :  { %5448 = vmatmul.msk.f32.gmra.mxu0 %vm621_vm2, %v4148_v33  ;;  %5463 = vmatmul.msk.f32.gmra.mxu1 %vm621_vm2, %v4231_v35 }
 0x811   :  { %v4121_v3 = vpop.f32.mrf.mxu2  ;;  %v4202_v52 = vpop.f32.mrf.mxu3 }
 0x812   :  { %v4122_v18 = vadd.f32 %v7741_v26, %v4121_v3  ;;  %v4203_v12 = vadd.f32 %v7741_v26, %v4202_v52 }
 0x814   :  { %v4149_v19 = vmax.f32 %v4122_v18, 0.0  ;;  %v4232_v22 = vmax.f32 %v4203_v12, 0.0 }
 0x816   :  { %5449 = vmatmul.msk.f32.gmra.mxu0 %vm621_vm2, %v4149_v19  ;;  %5464 = vmatmul.msk.f32.gmra.mxu1 %vm621_vm2, %v4232_v22 }
 0x819   :  { %v4124_v14 = vpop.f32.mrf.mxu2  ;;  %v4205_v43 = vpop.f32.mrf.mxu3 }
 0x81a   :  { %v4125_v45 = vadd.f32 %v7741_v26, %v4124_v14  ;;  %v4206_v42 = vadd.f32 %v7741_v26, %v4205_v43 }
 0x81c   :  { %v4150_v15 = vmax.f32 %v4125_v45, 0.0  ;;  %v4233_v63 = vmax.f32 %v4206_v42, 0.0 }
 0x81e   :  { %5450 = vmatmul.msk.f32.gmra.mxu0 %vm621_vm2, %v4150_v15  ;;  %5465 = vmatmul.msk.f32.gmra.mxu1 %vm621_vm2, %v4233_v63 }
 0x821   :  { %v4127_v36 = vpop.f32.mrf.mxu2  ;;  %v4208_v37 = vpop.f32.mrf.mxu3 }
 0x822   :  { %v4128_v32 = vadd.f32 %v7741_v26, %v4127_v36  ;;  %v4209_v48 = vadd.f32 %v7741_v26, %v4208_v37 }
 0x824   :  { %v4151_v40 = vmax.f32 %v4128_v32, 0.0  ;;  %v4234_v57 = vmax.f32 %v4209_v48, 0.0 }
 0x826   :  { %5451 = vmatmul.msk.f32.gmra.mxu0 %vm621_vm2, %v4151_v40  ;;  %5466 = vmatmul.msk.f32.gmra.mxu1 %vm621_vm2, %v4234_v57 }
 0x829   :  { %v4130_v56 = vpop.f32.mrf.mxu2  ;;  %v4211_v0 = vpop.f32.mrf.mxu3 }
 0x82a   :  { %v4131_v46 = vadd.f32 %v7741_v26, %v4130_v56  ;;  %v4212_v8 = vadd.f32 %v7741_v26, %v4211_v0 }
 0x82c   :  { %v4152_v47 = vmax.f32 %v4131_v46, 0.0  ;;  %v4235_v34 = vmax.f32 %v4212_v8, 0.0 }
 0x82e   :  { %5452 = vmatmul.msk.f32.gmra.mxu0 %vm621_vm2, %v4152_v47  ;;  %5467 = vmatmul.msk.f32.gmra.mxu1 %vm621_vm2, %v4235_v34 }
 0x831   :  { %v4133_v50 = vpop.f32.mrf.mxu2  ;;  %v4214_v55 = vpop.f32.mrf.mxu3 }
 0x832   :  { %v4134_v30 = vadd.f32 %v7741_v26, %v4133_v50  ;;  %v4215_v53 = vadd.f32 %v7741_v26, %v4214_v55 }
 0x834   :  { %v4153_v60 = vmax.f32 %v4134_v30, 0.0  ;;  %v4236_v38 = vmax.f32 %v4215_v53, 0.0 }
 0x836   :  { %5453 = vmatmul.msk.f32.gmra.mxu0 %vm621_vm2, %v4153_v60  ;;  %5468 = vmatmul.msk.f32.gmra.mxu1 %vm621_vm2, %v4236_v38 }
 0x839   :  { %v4136_v1 = vpop.f32.mrf.mxu2  ;;  %v4217_v59 = vpop.f32.mrf.mxu3 }
 0x83a   :  { %v4137_v51 = vadd.f32 %v7741_v26, %v4136_v1  ;;  %v4218_v54 = vadd.f32 %v7741_v26, %v4217_v59 }
 0x83c   :  { %v4154_v29 = vmax.f32 %v4137_v51, 0.0  ;;  %v4237_v49 = vmax.f32 %v4218_v54, 0.0 }
 0x83e   :  { %5454 = vmatmul.msk.f32.gmra.mxu0 %vm621_vm2, %v4154_v29  ;;  %5469 = vmatmul.msk.f32.gmra.mxu1 %vm621_vm2, %v4237_v49 }
 0x841   :  { %v4220_v16 = vpop.f32.mrf.mxu3 }
 0x842   :  { %v4221_v62 = vadd.f32 %v7741_v26, %v4220_v16 }
 0x843   :  { %v4363_v5 = vpop.f32.mrf.mxu0 }
 0x844   :  { %v4238_v7 = vmax.f32 %v4221_v62, 0.0  ;;  %v4364_v25 = vadd.f32 %v7809_v2, %v4363_v5 }
 0x846   :  { %v4459_v9 = vmax.f32 %v4364_v25, 0.0  ;;  %5470 = vmatmul.msk.f32.gmra.mxu1 %vm621_vm2, %v4238_v7 }
 0x848   :  { %4684 = vmatmul.f32.vlgmr.msrb.gmra.mxu2 %v4459_v9  ;;  %4797 = vmatmul.f32.vlgmr.msra.gmra.mxu3 %v4459_v9 }
 0x849   :  { %4910 = vmatmul.f32.vlgmr.msra.gmra.mxu0 %v4459_v9 }
 0x84b   :  { %v4366_v33 = vpop.f32.mrf.mxu0  ;;  %v7814_v35 = vpop.f32.mrf.mxu1 }
 0x84c   :  { %v4367_v41 = vadd.f32 %v7809_v2, %v4366_v33  ;;  %v4412_v7 = vadd.f32 %v7809_v2, %v7814_v35 }
 0x84e   :  { %v4460_v10 = vmax.f32 %v4367_v41, 0.0  ;;  %4571 = vmatmul.f32.vlgmr.msra.gmra.mxu1 %v4459_v9  ;;  %v4475_v9 = vmax.f32 %v4412_v7, 0.0 }
 0x850   :  { %4687 = vmatmul.f32.gmra.mxu2 %v4460_v10  ;;  %4800 = vmatmul.f32.gmra.mxu3 %v4460_v10 }
 0x851   :  { %4913 = vmatmul.f32.gmra.mxu0 %v4460_v10 }
 0x853   :  { %v4369_v26 = vpop.f32.mrf.mxu0  ;;  %v7817_v44 = vpop.f32.mrf.mxu1 }
 0x854   :  { %v4370_v39 = vadd.f32 %v7809_v2, %v4369_v26  ;;  %v4415_v41 = vadd.f32 %v7809_v2, %v7817_v44 }
 0x856   :  { %v4461_v3 = vmax.f32 %v4370_v39, 0.0  ;;  %4574 = vmatmul.f32.gmra.mxu1 %v4460_v10 }
 0x858   :  { %4690 = vmatmul.f32.gmra.mxu2 %v4461_v3  ;;  %4803 = vmatmul.f32.gmra.mxu3 %v4461_v3 }
 0x859   :  { %4916 = vmatmul.f32.gmra.mxu0 %v4461_v3 }
 0x85b   :  { %v4372_v52 = vpop.f32.mrf.mxu0  ;;  %v7820_v18 = vpop.f32.mrf.mxu1 }
 0x85c   :  { %v4373_v12 = vadd.f32 %v7809_v2, %v4372_v52  ;;  %v4418_v35 = vadd.f32 %v7809_v2, %v7820_v18 }
 0x85e   :  { %v4462_v19 = vmax.f32 %v4373_v12, 0.0  ;;  %4577 = vmatmul.f32.gmra.mxu1 %v4461_v3  ;;  %v4476_v3 = vmax.f32 %v4415_v41, 0.0 }
 0x860   :  { %4693 = vmatmul.f32.gmra.mxu2 %v4462_v19  ;;  %4806 = vmatmul.f32.gmra.mxu3 %v4462_v19 }
 0x861   :  { %4919 = vmatmul.f32.gmra.mxu0 %v4462_v19 }
 0x863   :  { %v4375_v22 = vpop.f32.mrf.mxu0  ;;  %v7823_v21 = vpop.f32.mrf.mxu1 }
 0x864   :  { %v4376_v31 = vadd.f32 %v7809_v2, %v4375_v22 }
 0x866   :  { %v4463_v28 = vmax.f32 %v4376_v31, 0.0  ;;  %4580 = vmatmul.f32.gmra.mxu1 %v4462_v19 }
 0x868   :  { %4696 = vmatmul.f32.gmra.mxu2 %v4463_v28  ;;  %4809 = vmatmul.f32.gmra.mxu3 %v4463_v28 }
 0x869   :  { %4922 = vmatmul.f32.gmra.mxu0 %v4463_v28 }
 0x86b   :  { %v4378_v20 = vpop.f32.mrf.mxu0  ;;  %v7826_v14 = vpop.f32.mrf.mxu1 }
 0x86c   :  { %v4379_v43 = vadd.f32 %v7809_v2, %v4378_v20 }
 0x86e   :  { %v4464_v45 = vmax.f32 %v4379_v43, 0.0  ;;  %4583 = vmatmul.f32.gmra.mxu1 %v4463_v28  ;;  %v4477_v28 = vmax.f32 %v4418_v35, 0.0  ;;  %v4421_v43 = vadd.f32 %v7809_v2, %v7823_v21 }
 0x870   :  { %4699 = vmatmul.f32.gmra.mxu2 %v4464_v45  ;;  %4812 = vmatmul.f32.gmra.mxu3 %v4464_v45 }
 0x871   :  { %4925 = vmatmul.f32.gmra.mxu0 %v4464_v45 }
 0x873   :  { %v4381_v42 = vpop.f32.mrf.mxu0  ;;  %v7829_v15 = vpop.f32.mrf.mxu1 }
 0x874   :  { %v4382_v63 = vadd.f32 %v7809_v2, %v4381_v42 }
 0x876   :  { %v4465_v17 = vmax.f32 %v4382_v63, 0.0  ;;  %4586 = vmatmul.f32.gmra.mxu1 %v4464_v45 }
 0x878   :  { %4702 = vmatmul.f32.gmra.mxu2 %v4465_v17  ;;  %4815 = vmatmul.f32.gmra.mxu3 %v4465_v17 }
 0x879   :  { %4928 = vmatmul.f32.gmra.mxu0 %v4465_v17 }
 0x87b   :  { %v4384_v24 = vpop.f32.mrf.mxu0  ;;  %v7832_v58 = vpop.f32.mrf.mxu1 }
 0x87c   :  { %v4385_v13 = vadd.f32 %v7809_v2, %v4384_v24  ;;  %v4478_v24 = vmax.f32 %v4421_v43, 0.0 }
 0x87e   :  { %v4466_v36 = vmax.f32 %v4385_v13, 0.0  ;;  %4589 = vmatmul.f32.gmra.mxu1 %v4465_v17 }
 0x880   :  { %4705 = vmatmul.f32.gmra.mxu2 %v4466_v36  ;;  %4818 = vmatmul.f32.gmra.mxu3 %v4466_v36 }
 0x881   :  { %4931 = vmatmul.f32.gmra.mxu0 %v4466_v36 }
 0x883   :  { %v4387_v37 = vpop.f32.mrf.mxu0  ;;  %v7835_v32 = vpop.f32.mrf.mxu1 }
 0x884   :  { %v4388_v48 = vadd.f32 %v7809_v2, %v4387_v37 }
 0x886   :  { %v4467_v40 = vmax.f32 %v4388_v48, 0.0  ;;  %4592 = vmatmul.f32.gmra.mxu1 %v4466_v36  ;;  %v4424_v36 = vadd.f32 %v7809_v2, %v7826_v14 }
 0x888   :  { %4708 = vmatmul.f32.gmra.mxu2 %v4467_v40  ;;  %4821 = vmatmul.f32.gmra.mxu3 %v4467_v40  ;;  %v4479_v21 = vmax.f32 %v4424_v36, 0.0 }
 0x889   :  { %4934 = vmatmul.f32.gmra.mxu0 %v4467_v40 }
 0x88b   :  { %v4390_v57 = vpop.f32.mrf.mxu0  ;;  %v7838_v4 = vpop.f32.mrf.mxu1 }
 0x88c   :  { %v4391_v6 = vadd.f32 %v7809_v2, %v4390_v57 }
 0x88e   :  { %v4468_v11 = vmax.f32 %v4391_v6, 0.0  ;;  %4595 = vmatmul.f32.gmra.mxu1 %v4467_v40 }
 0x890   :  { %4711 = vmatmul.f32.gmra.mxu2 %v4468_v11  ;;  %4824 = vmatmul.f32.gmra.mxu3 %v4468_v11 }
 0x891   :  { %4937 = vmatmul.f32.gmra.mxu0 %v4468_v11 }
 0x893   :  { %v4393_v23 = vpop.f32.mrf.mxu0  ;;  %v7841_v61 = vpop.f32.mrf.mxu1 }
 0x894   :  { %v4394_v56 = vadd.f32 %v7809_v2, %v4393_v23  ;;  %v4427_v23 = vadd.f32 %v7809_v2, %v7829_v15 }
 0x896   :  { %v4469_v0 = vmax.f32 %v4394_v56, 0.0  ;;  %4598 = vmatmul.f32.gmra.mxu1 %v4468_v11  ;;  %v4480_v14 = vmax.f32 %v4427_v23, 0.0 }
 0x898   :  { %4714 = vmatmul.f32.gmra.mxu2 %v4469_v0  ;;  %4827 = vmatmul.f32.gmra.mxu3 %v4469_v0 }
 0x899   :  { %4940 = vmatmul.f32.gmra.mxu0 %v4469_v0 }
 0x89b   :  { %v4396_v46 = vpop.f32.mrf.mxu0  ;;  %v7844_v8 = vpop.f32.mrf.mxu1 }
 0x89c   :  { %v4397_v47 = vadd.f32 %v7809_v2, %v4396_v46 }
 0x89e   :  { %v4470_v34 = vmax.f32 %v4397_v47, 0.0  ;;  %4601 = vmatmul.f32.gmra.mxu1 %v4469_v0 }
 0x8a0   :  { %4717 = vmatmul.f32.gmra.mxu2 %v4470_v34  ;;  %4830 = vmatmul.f32.gmra.mxu3 %v4470_v34 }
 0x8a1   :  { %4943 = vmatmul.f32.gmra.mxu0 %v4470_v34 }
 0x8a3   :  { %v4399_v27 = vpop.f32.mrf.mxu0  ;;  %v7847_v50 = vpop.f32.mrf.mxu1 }
 0x8a4   :  { %v4400_v55 = vadd.f32 %v7809_v2, %v4399_v27 }
 0x8a6   :  { %v4471_v30 = vmax.f32 %v4400_v55, 0.0  ;;  %4604 = vmatmul.f32.gmra.mxu1 %v4470_v34  ;;  %v4430_v55 = vadd.f32 %v7809_v2, %v7832_v58 }
 0x8a8   :  { %4720 = vmatmul.f32.gmra.mxu2 %v4471_v30  ;;  %4833 = vmatmul.f32.gmra.mxu3 %v4471_v30  ;;  %v4481_v15 = vmax.f32 %v4430_v55, 0.0 }
 0x8a9   :  { %4946 = vmatmul.f32.gmra.mxu0 %v4471_v30 }
 0x8ab   :  { %v4402_v53 = vpop.f32.mrf.mxu0  ;;  %v7850_v60 = vpop.f32.mrf.mxu1 }
 0x8ac   :  { %v4403_v38 = vadd.f32 %v7809_v2, %v4402_v53 }
 0x8ae   :  { %v4472_v1 = vmax.f32 %v4403_v38, 0.0  ;;  %4607 = vmatmul.f32.gmra.mxu1 %v4471_v30 }
 0x8b0   :  { %4723 = vmatmul.f32.gmra.mxu2 %v4472_v1  ;;  %4836 = vmatmul.f32.gmra.mxu3 %v4472_v1 }
 0x8b1   :  { %4949 = vmatmul.f32.gmra.mxu0 %v4472_v1 }
 0x8b3   :  { %v4405_v59 = vpop.f32.mrf.mxu0  ;;  %v7853_v51 = vpop.f32.mrf.mxu1 }
 0x8b4   :  { %v4406_v54 = vadd.f32 %v7809_v2, %v4405_v59 }
 0x8b6   :  { %v4473_v29 = vmax.f32 %v4406_v54, 0.0  ;;  %4610 = vmatmul.f32.gmra.mxu1 %v4472_v1 }
 0x8b8   :  { %4726 = vmatmul.f32.gmra.mxu2 %v4473_v29  ;;  %4839 = vmatmul.f32.gmra.mxu3 %v4473_v29 }
 0x8b9   :  { %4952 = vmatmul.f32.gmra.mxu0 %v4473_v29 }
 0x8bb   :  { %v4408_v49 = vpop.f32.mrf.mxu0  ;;  %v7856_v16 = vpop.f32.mrf.mxu1 }
 0x8bc   :  { %v4409_v62 = vadd.f32 %v7809_v2, %v4408_v49  ;;  %v4433_v49 = vadd.f32 %v7809_v2, %v7835_v32  ;;  %v4436_v32 = vadd.f32 %v7809_v2, %v7838_v4  ;;  %v4439_v4 = vadd.f32 %v7809_v2, %v7841_v61 }
 0x8be   :  { %v4474_v5 = vmax.f32 %v4409_v62, 0.0  ;;  %4613 = vmatmul.f32.gmra.mxu1 %v4473_v29 }
 0x8c0   :  { %4729 = vmatmul.f32.gmra.mxu2 %v4474_v5  ;;  %4842 = vmatmul.f32.gmra.mxu3 %v4474_v5 }
 0x8c1   :  { %4955 = vmatmul.f32.gmra.mxu0 %v4474_v5 }
 0x8c3   :  { %v7861_v25 = vpop.f32.mrf.mxu1 }
 0x8c6   :  { %v7863_v33 = vpop.f32.mrf.mxu0  ;;  %4616 = vmatmul.f32.gmra.mxu1 %v4474_v5 }
 0x8c8   :  { %4732 = vmatmul.f32.gmra.mxu2 %v4475_v9  ;;  %4845 = vmatmul.f32.gmra.mxu3 %v4475_v9 }
 0x8c9   :  { %4958 = vmatmul.f32.gmra.mxu0 %v4475_v9 }
 0x8cb   :  { %v7867_v10 = vpop.f32.mrf.mxu1  ;;  %v4685_v26 = vpop.f32.mrf.mxu2 }
 0x8cc   :  { %v4798_v39 = vpop.f32.mrf.mxu3 }
 0x8ce   :  { %v7869_v52 = vpop.f32.mrf.mxu0  ;;  %4619 = vmatmul.f32.gmra.mxu1 %v4475_v9 }
 0x8cf   :  { %v5070_v29 = vmax.f32 %v7863_v33, %v7869_v52 }
 0x8d0   :  { %4735 = vmatmul.f32.gmra.mxu2 %v4476_v3  ;;  %4848 = vmatmul.f32.gmra.mxu3 %v4476_v3 }
 0x8d1   :  { %4961 = vmatmul.f32.gmra.mxu0 %v4476_v3 }
 0x8d3   :  { %v7873_v12 = vpop.f32.mrf.mxu1  ;;  %v4688_v19 = vpop.f32.mrf.mxu2 }
 0x8d4   :  { %v5028_v22 = vmax.f32 %v4685_v26, %v4688_v19  ;;  %v4801_v31 = vpop.f32.mrf.mxu3 }
 0x8d5   :  { %v5049_v44 = vmax.f32 %v4798_v39, %v4801_v31  ;;  %v4482_v39 = vmax.f32 %v4433_v49, 0.0 }
 0x8d6   :  { %v4917_v20 = vpop.f32.mrf.mxu0  ;;  %4622 = vmatmul.f32.gmra.mxu1 %v4476_v3  ;;  %v5007_v3 = vmax.f32 %v7867_v10, %v7873_v12  ;;  %v4483_v12 = vmax.f32 %v4436_v32, 0.0 }
 0x8d7   :  { %v5071_v62 = vmax.f32 %v5070_v29, %v4917_v20 }
 0x8d8   :  { %4738 = vmatmul.f32.gmra.mxu2 %v4477_v28  ;;  %4851 = vmatmul.f32.gmra.mxu3 %v4477_v28 }
 0x8d9   :  { %4964 = vmatmul.f32.gmra.mxu0 %v4477_v28 }
 0x8db   :  { %v4578_v45 = vpop.f32.mrf.mxu1  ;;  %v4691_v42 = vpop.f32.mrf.mxu2 }
 0x8dc   :  { %v5029_v63 = vmax.f32 %v5028_v22, %v4691_v42  ;;  %v4804_v17 = vpop.f32.mrf.mxu3  ;;  %v5008_v22 = vmax.f32 %v5007_v3, %v4578_v45 }
 0x8dd   :  { %v5050_v18 = vmax.f32 %v5049_v44, %v4804_v17 }
 0x8de   :  { %v4920_v13 = vpop.f32.mrf.mxu0  ;;  %4625 = vmatmul.f32.gmra.mxu1 %v4477_v28 }
 0x8df   :  { %v5072_v41 = vmax.f32 %v5071_v62, %v4920_v13 }
 0x8e0   :  { %4741 = vmatmul.f32.gmra.mxu2 %v4478_v24  ;;  %4854 = vmatmul.f32.gmra.mxu3 %v4478_v24 }
 0x8e1   :  { %4967 = vmatmul.f32.gmra.mxu0 %v4478_v24 }
 0x8e3   :  { %v4581_v37 = vpop.f32.mrf.mxu1  ;;  %v4694_v48 = vpop.f32.mrf.mxu2 }
 0x8e4   :  { %v5030_v40 = vmax.f32 %v5029_v63, %v4694_v48  ;;  %v4807_v57 = vpop.f32.mrf.mxu3  ;;  %v5009_v52 = vmax.f32 %v5008_v22, %v4581_v37 }
 0x8e5   :  { %v5051_v6 = vmax.f32 %v5050_v18, %v4807_v57 }
 0x8e6   :  { %v4923_v11 = vpop.f32.mrf.mxu0  ;;  %4628 = vmatmul.f32.gmra.mxu1 %v4478_v24 }
 0x8e7   :  { %v5073_v19 = vmax.f32 %v5072_v41, %v4923_v11 }
 0x8e8   :  { %4744 = vmatmul.f32.gmra.mxu2 %v4479_v21  ;;  %4857 = vmatmul.f32.gmra.mxu3 %v4479_v21 }
 0x8e9   :  { %4970 = vmatmul.f32.gmra.mxu0 %v4479_v21 }
 0x8eb   :  { %v4584_v56 = vpop.f32.mrf.mxu1  ;;  %v4697_v0 = vpop.f32.mrf.mxu2 }
 0x8ec   :  { %v5031_v46 = vmax.f32 %v5030_v40, %v4697_v0  ;;  %v4810_v47 = vpop.f32.mrf.mxu3  ;;  %v5010_v20 = vmax.f32 %v5009_v52, %v4584_v56  ;;  %v4442_v56 = vadd.f32 %v7809_v2, %v7844_v8 }
 0x8ed   :  { %v5052_v34 = vmax.f32 %v5051_v6, %v4810_v47 }
 0x8ee   :  { %v4926_v27 = vpop.f32.mrf.mxu0  ;;  %4631 = vmatmul.f32.gmra.mxu1 %v4479_v21  ;;  %v4484_v21 = vmax.f32 %v4439_v4, 0.0  ;;  %v4457_v4 = vadd.f32 %v7809_v2, %v7861_v25 }
 0x8ef   :  { %v5074_v33 = vmax.f32 %v5073_v19, %v4926_v27  ;;  %v4485_v27 = vmax.f32 %v4442_v56, 0.0  ;;  %v4451_v19 = vadd.f32 %v7809_v2, %v7853_v51 }
 0x8f0   :  { %4747 = vmatmul.f32.gmra.mxu2 %v4480_v14  ;;  %4860 = vmatmul.f32.gmra.mxu3 %v4480_v14 }
 0x8f1   :  { %4973 = vmatmul.f32.gmra.mxu0 %v4480_v14 }
 0x8f3   :  { %v4587_v30 = vpop.f32.mrf.mxu1  ;;  %v4700_v53 = vpop.f32.mrf.mxu2 }
 0x8f4   :  { %v5032_v38 = vmax.f32 %v5031_v46, %v4700_v53  ;;  %v4813_v1 = vpop.f32.mrf.mxu3  ;;  %v5011_v17 = vmax.f32 %v5010_v20, %v4587_v30  ;;  %v4445_v53 = vadd.f32 %v7809_v2, %v7847_v50 }
 0x8f5   :  { %v5053_v59 = vmax.f32 %v5052_v34, %v4813_v1 }
 0x8f6   :  { %v4929_v54 = vpop.f32.mrf.mxu0  ;;  %4634 = vmatmul.f32.gmra.mxu1 %v4480_v14  ;;  %v4486_v29 = vmax.f32 %v4445_v53, 0.0 }
 0x8f7   :  { %v5075_v31 = vmax.f32 %v5074_v33, %v4929_v54 }
 0x8f8   :  { %4750 = vmatmul.f32.gmra.mxu2 %v4481_v15  ;;  %4863 = vmatmul.f32.gmra.mxu3 %v4481_v15 }
 0x8f9   :  { %4976 = vmatmul.f32.gmra.mxu0 %v4481_v15 }
 0x8fb   :  { %v4590_v5 = vpop.f32.mrf.mxu1  ;;  %v4703_v58 = vpop.f32.mrf.mxu2 }
 0x8fc   :  { %v5033_v7 = vmax.f32 %v5032_v38, %v4703_v58  ;;  %v4816_v9 = vpop.f32.mrf.mxu3  ;;  %v5012_v24 = vmax.f32 %v5011_v17, %v4590_v5  ;;  %v4448_v5 = vadd.f32 %v7809_v2, %v7850_v60 }
 0x8fd   :  { %v5054_v26 = vmax.f32 %v5053_v59, %v4816_v9 }
 0x8fe   :  { %v4932_v35 = vpop.f32.mrf.mxu0  ;;  %4637 = vmatmul.f32.gmra.mxu1 %v4481_v15 }
 0x8ff   :  { %v5076_v63 = vmax.f32 %v5075_v31, %v4932_v35 }
 0x900   :  { %4753 = vmatmul.f32.gmra.mxu2 %v4482_v39  ;;  %4866 = vmatmul.f32.gmra.mxu3 %v4482_v39 }
 0x901   :  { %4979 = vmatmul.f32.gmra.mxu0 %v4482_v39 }
 0x903   :  { %v4593_v44 = vpop.f32.mrf.mxu1  ;;  %v4706_v28 = vpop.f32.mrf.mxu2 }
 0x904   :  { %v5034_v43 = vmax.f32 %v5033_v7, %v4706_v28  ;;  %v4819_v42 = vpop.f32.mrf.mxu3  ;;  %v5013_v13 = vmax.f32 %v5012_v24, %v4593_v44  ;;  %v4488_v44 = vmax.f32 %v4451_v19, 0.0 }
 0x905   :  { %v5055_v10 = vmax.f32 %v5054_v26, %v4819_v42 }
 0x906   :  { %v4935_v18 = vpop.f32.mrf.mxu0  ;;  %4640 = vmatmul.f32.gmra.mxu1 %v4482_v39  ;;  %v4487_v39 = vmax.f32 %v4448_v5, 0.0 }
 0x907   :  { %v5077_v45 = vmax.f32 %v5076_v63, %v4935_v18 }
 0x908   :  { %4756 = vmatmul.f32.gmra.mxu2 %v4483_v12  ;;  %4869 = vmatmul.f32.gmra.mxu3 %v4483_v12 }
 0x909   :  { %4982 = vmatmul.f32.gmra.mxu0 %v4483_v12 }
 0x90b   :  { %v4596_v36 = vpop.f32.mrf.mxu1  ;;  %v4709_v37 = vpop.f32.mrf.mxu2 }
 0x90c   :  { %v5014_v48 = vmax.f32 %v5013_v13, %v4596_v36  ;;  %v5035_v40 = vmax.f32 %v5034_v43, %v4709_v37  ;;  %v4822_v57 = vpop.f32.mrf.mxu3  ;;  %v4454_v43 = vadd.f32 %v7809_v2, %v7856_v16 }
 0x90d   :  { %v5056_v6 = vmax.f32 %v5055_v10, %v4822_v57  ;;  %v4490_v57 = vmax.f32 %v4457_v4, 0.0 }
 0x90e   :  { %v4938_v11 = vpop.f32.mrf.mxu0  ;;  %4643 = vmatmul.f32.gmra.mxu1 %v4483_v12  ;;  %v4489_v18 = vmax.f32 %v4454_v43, 0.0 }
 0x90f   :  { %v5078_v23 = vmax.f32 %v5077_v45, %v4938_v11 }
 0x910   :  { %4759 = vmatmul.f32.gmra.mxu2 %v4484_v21  ;;  %4872 = vmatmul.f32.gmra.mxu3 %v4484_v21 }
 0x911   :  { %4985 = vmatmul.f32.gmra.mxu0 %v4484_v21 }
 0x913   :  { %v4599_v0 = vpop.f32.mrf.mxu1  ;;  %v4712_v46 = vpop.f32.mrf.mxu2 }
 0x914   :  { %v5015_v61 = vmax.f32 %v5014_v48, %v4599_v0  ;;  %v5036_v47 = vmax.f32 %v5035_v40, %v4712_v46  ;;  %v4825_v34 = vpop.f32.mrf.mxu3 }
 0x915   :  { %v5057_v14 = vmax.f32 %v5056_v6, %v4825_v34 }
 0x916   :  { %v4941_v55 = vpop.f32.mrf.mxu0  ;;  %4646 = vmatmul.f32.gmra.mxu1 %v4484_v21 }
 0x917   :  { %v5079_v30 = vmax.f32 %v5078_v23, %v4941_v55 }
 0x918   :  { %4762 = vmatmul.f32.gmra.mxu2 %v4485_v27  ;;  %4875 = vmatmul.f32.gmra.mxu3 %v4485_v27 }
 0x919   :  { %4988 = vmatmul.f32.gmra.mxu0 %v4485_v27 }
 0x91b   :  { %v4602_v38 = vpop.f32.mrf.mxu1  ;;  %v4715_v1 = vpop.f32.mrf.mxu2 }
 0x91c   :  { %v5016_v59 = vmax.f32 %v5015_v61, %v4602_v38  ;;  %v5037_v8 = vmax.f32 %v5036_v47, %v4715_v1  ;;  %v4828_v15 = vpop.f32.mrf.mxu3 }
 0x91d   :  { %v5058_v54 = vmax.f32 %v5057_v14, %v4828_v15 }
 0x91e   :  { %v4944_v49 = vpop.f32.mrf.mxu0  ;;  %4649 = vmatmul.f32.gmra.mxu1 %v4485_v27 }
 0x91f   :  { %v5080_v62 = vmax.f32 %v5079_v30, %v4944_v49 }
 0x920   :  { %4765 = vmatmul.f32.gmra.mxu2 %v4486_v29  ;;  %4878 = vmatmul.f32.gmra.mxu3 %v4486_v29 }
 0x921   :  { %4991 = vmatmul.f32.gmra.mxu0 %v4486_v29 }
 0x923   :  { %v4605_v58 = vpop.f32.mrf.mxu1  ;;  %v4718_v7 = vpop.f32.mrf.mxu2 }
 0x924   :  { %v5017_v9 = vmax.f32 %v5016_v59, %v4605_v58  ;;  %v5038_v50 = vmax.f32 %v5037_v8, %v4718_v7  ;;  %v4831_v41 = vpop.f32.mrf.mxu3  ;;  %v7905_v8 = vld [vmem:[#allocation28] sm:$0xf] }
 0x925   :  { %v5059_v26 = vmax.f32 %v5058_v54, %v4831_v41 }
 0x926   :  { %v4947_v3 = vpop.f32.mrf.mxu0  ;;  %4652 = vmatmul.f32.gmra.mxu1 %v4486_v29 }
 0x927   :  { %v5081_v35 = vmax.f32 %v5080_v62, %v4947_v3  ;;  %v5178_v3 = vperm.slane %v7905_v8, 1 }
 0x928   :  { %4768 = vmatmul.f32.gmra.mxu2 %v4487_v39  ;;  %4881 = vmatmul.f32.gmra.mxu3 %v4487_v39 }
 0x929   :  { %4994 = vmatmul.f32.gmra.mxu0 %v4487_v39 }
 0x92b   :  { %v4608_v22 = vpop.f32.mrf.mxu1  ;;  %v4721_v33 = vpop.f32.mrf.mxu2 }
 0x92c   :  { %v5018_v32 = vmax.f32 %v5017_v9, %v4608_v22  ;;  %v5039_v60 = vmax.f32 %v5038_v50, %v4721_v33  ;;  %v4834_v52 = vpop.f32.mrf.mxu3  ;;  %v5180_v50 = vperm.slane %v7905_v8, 3  ;;  %v5179_v22 = vperm.slane %v7905_v8, 2 }
 0x92d   :  { %v5060_v31 = vmax.f32 %v5059_v26, %v4834_v52 }
 0x92e   :  { %v4950_v28 = vpop.f32.mrf.mxu0  ;;  %4655 = vmatmul.f32.gmra.mxu1 %v4487_v39 }
 0x92f   :  { %v5082_v20 = vmax.f32 %v5081_v35, %v4950_v28 }
 0x930   :  { %4771 = vmatmul.f32.gmra.mxu2 %v4488_v44  ;;  %4884 = vmatmul.f32.gmra.mxu3 %v4488_v44 }
 0x931   :  { %4997 = vmatmul.f32.gmra.mxu0 %v4488_v44 }
 0x933   :  { %v4611_v42 = vpop.f32.mrf.mxu1  ;;  %v4724_v63 = vpop.f32.mrf.mxu2 }
 0x934   :  { %v5019_v10 = vmax.f32 %v5018_v32, %v4611_v42  ;;  %v5040_v51 = vmax.f32 %v5039_v60, %v4724_v63  ;;  %v4837_v12 = vpop.f32.mrf.mxu3  ;;  %v5177_v60 = vperm.slane %v7905_v8, 0 }
 0x935   :  { %v5061_v17 = vmax.f32 %v5060_v31, %v4837_v12 }
 0x936   :  { %v4953_v45 = vpop.f32.mrf.mxu0  ;;  %4658 = vmatmul.f32.gmra.mxu1 %v4488_v44 }
 0x937   :  { %v5083_v24 = vmax.f32 %v5082_v20, %v4953_v45 }
 0x938   :  { %4774 = vmatmul.f32.gmra.mxu2 %v4489_v18  ;;  %4887 = vmatmul.f32.gmra.mxu3 %v4489_v18 }
 0x939   :  { %5000 = vmatmul.f32.gmra.mxu0 %v4489_v18 }
 0x93b   :  { %v4614_v13 = vpop.f32.mrf.mxu1  ;;  %v4727_v36 = vpop.f32.mrf.mxu2 }
 0x93c   :  { %v5020_v37 = vmax.f32 %v5019_v10, %v4614_v13  ;;  %v5041_v16 = vmax.f32 %v5040_v51, %v4727_v36  ;;  %v4840_v48 = vpop.f32.mrf.mxu3 }
 0x93d   :  { %v5062_v40 = vmax.f32 %v5061_v17, %v4840_v48 }
 0x93e   :  { %v4956_v6 = vpop.f32.mrf.mxu0  ;;  %4661 = vmatmul.f32.gmra.mxu1 %v4489_v18 }
 0x93f   :  { %v5084_v21 = vmax.f32 %v5083_v24, %v4956_v6 }
 0x940   :  { %4777 = vmatmul.f32.gmra.mxu2 %v4490_v57  ;;  %4890 = vmatmul.f32.gmra.mxu3 %v4490_v57 }
 0x941   :  { %v5085_v11 = vrot.slane %v5084_v21, 4  ;;  %5003 = vmatmul.f32.gmra.mxu0 %v4490_v57 }
 0x943   :  { %v5086_v23 = vmax.f32 %v5084_v21, %v5085_v11  ;;  %v4617_v56 = vpop.f32.mrf.mxu1  ;;  %v4730_v0 = vpop.f32.mrf.mxu2 }
 0x944   :  { %v5021_v46 = vmax.f32 %v5020_v37, %v4617_v56  ;;  %v5042_v61 = vmax.f32 %v5041_v16, %v4730_v0  ;;  %v4843_v2 = vpop.f32.mrf.mxu3 }
 0x945   :  { %v5087_v25 = vrot.slane %v5086_v23, 2  ;;  %v5063_v47 = vmax.f32 %v5062_v40, %v4843_v2 }
 0x946   :  { %v5022_v34 = vrot.slane %v5021_v46, 4  ;;  %v5043_v14 = vrot.slane %v5042_v61, 4  ;;  %v4959_v27 = vpop.f32.mrf.mxu0  ;;  %4664 = vmatmul.f32.gmra.mxu1 %v4490_v57 }
 0x947   :  { %v5088_v55 = vmax.f32 %v5086_v23, %v5087_v25  ;;  %v5064_v30 = vrot.slane %v5063_v47, 4 }
 0x948   :  { %v5023_v53 = vmax.f32 %v5021_v46, %v5022_v34  ;;  %v5044_v38 = vmax.f32 %v5042_v61, %v5043_v14 }
 0x949   :  { %v5089_v1 = vrot.slane %v5088_v55, 1  ;;  %v5065_v59 = vmax.f32 %v5063_v47, %v5064_v30 }
 0x94a   :  { %v5024_v15 = vrot.slane %v5023_v53, 2  ;;  %v5045_v54 = vrot.slane %v5044_v38, 2 }
 0x94b   :  { %v5066_v29 = vrot.slane %v5065_v59, 2  ;;  %v4620_v49 = vpop.f32.mrf.mxu1  ;;  %v4733_v62 = vpop.f32.mrf.mxu2  ;;  %v5090_v9 = vmax.f32 %v5088_v55, %v5089_v1 }
 0x94c   :  { %v5025_v5 = vmax.f32 %v5023_v53, %v5024_v15  ;;  %v5046_v58 = vmax.f32 %v5044_v38, %v5045_v54  ;;  %v4846_v7 = vpop.f32.mrf.mxu3 }
 0x94d   :  { %v5067_v41 = vmax.f32 %v5065_v59, %v5066_v29  ;;  %v5188_v31 = vadd.f32 %v5180_v50, %v5090_v9 }
 0x94e   :  { %v5026_v26 = vrot.slane %v5025_v5, 1  ;;  %v5047_v39 = vrot.slane %v5046_v58, 1  ;;  %v4962_v35 = vpop.f32.mrf.mxu0 }
 0x94f   :  { %v5068_v19 = vrot.slane %v5067_v41, 1  ;;  %v5154_v33 = vmax.f32 %v4959_v27, %v4962_v35  ;;  %v5203_v18 = vrot.slane %v5188_v31, 2 }
 0x950   :  { %v5027_v32 = vmax.f32 %v5025_v5, %v5026_v26  ;;  %v5048_v52 = vmax.f32 %v5046_v58, %v5047_v39 }
 0x951   :  { %v5069_v44 = vmax.f32 %v5067_v41, %v5068_v19 }
 0x952   :  { %v5186_v28 = vadd.f32 %v5178_v3, %v5048_v52  ;;  %v5185_v63 = vadd.f32 %v5177_v60, %v5027_v32 }
 0x953   :  { %v5187_v20 = vadd.f32 %v5179_v22, %v5069_v44  ;;  %v4623_v43 = vpop.f32.mrf.mxu1  ;;  %v4736_v42 = vpop.f32.mrf.mxu2 }
 0x954   :  { %v5201_v10 = vrot.slane %v5186_v28, 6  ;;  %v5091_v51 = vmax.f32 %v4620_v49, %v4623_v43  ;;  %v5112_v12 = vmax.f32 %v4733_v62, %v4736_v42  ;;  %v4849_v17 = vpop.f32.mrf.mxu3 }
 0x955   :  { %v5202_v45 = vrot.slane %v5187_v20, 4  ;;  %v5133_v24 = vmax.f32 %v4846_v7, %v4849_v17 }
 0x956   :  { %v5208_v4 = vsel %vm5207_vm6, %v5185_v63, %v5201_v10  ;;  %v4965_v13 = vpop.f32.mrf.mxu0 }
 0x957   :  { %v5210_v36 = vsel %vm5209_vm7, %v5202_v45, %v5203_v18  ;;  %v5155_v37 = vmax.f32 %v5154_v33, %v4965_v13 }
 0x958   :  { %v7922_v16 = vsel %vm5211_vm8, %v5208_v4, %v5210_v36 }
 0x95b   :  { %v4626_v48 = vpop.f32.mrf.mxu1  ;;  %v4739_v40 = vpop.f32.mrf.mxu2 }
 0x95c   :  { %v5092_v57 = vmax.f32 %v5091_v51, %v4626_v48  ;;  %v5113_v6 = vmax.f32 %v5112_v12, %v4739_v40  ;;  %v4852_v21 = vpop.f32.mrf.mxu3 }
 0x95d   :  { %v5134_v11 = vmax.f32 %v5133_v24, %v4852_v21 }
 0x95e   :  { %v4968_v23 = vpop.f32.mrf.mxu0 }
 0x95f   :  { %v5156_v56 = vmax.f32 %v5155_v37, %v4968_v23 }
 0x963   :  { %v4629_v0 = vpop.f32.mrf.mxu1  ;;  %v4742_v46 = vpop.f32.mrf.mxu2 }
 0x964   :  { %v5093_v61 = vmax.f32 %v5092_v57, %v4629_v0  ;;  %v5114_v2 = vmax.f32 %v5113_v6, %v4742_v46  ;;  %v4855_v25 = vpop.f32.mrf.mxu3 }
 0x965   :  { %v5135_v47 = vmax.f32 %v5134_v11, %v4855_v25 }
 0x966   :  { %v4971_v34 = vpop.f32.mrf.mxu0 }
 0x967   :  { %v5157_v14 = vmax.f32 %v5156_v56, %v4971_v34 }
 0x96b   :  { %v4632_v27 = vpop.f32.mrf.mxu1  ;;  %v4745_v55 = vpop.f32.mrf.mxu2 }
 0x96c   :  { %v5094_v30 = vmax.f32 %v5093_v61, %v4632_v27  ;;  %v5115_v53 = vmax.f32 %v5114_v2, %v4745_v55  ;;  %v4858_v38 = vpop.f32.mrf.mxu3 }
 0x96d   :  { %v5136_v1 = vmax.f32 %v5135_v47, %v4858_v38 }
 0x96e   :  { %v4974_v59 = vpop.f32.mrf.mxu0 }
 0x96f   :  { %v5158_v18 = vmax.f32 %v5157_v14, %v4974_v59 }
 0x973   :  { %v4635_v15 = vpop.f32.mrf.mxu1  ;;  %v4748_v54 = vpop.f32.mrf.mxu2 }
 0x974   :  { %v4861_v29 = vpop.f32.mrf.mxu3  ;;  %v5095_v48 = vmax.f32 %v5094_v30, %v4635_v15  ;;  %v5116_v40 = vmax.f32 %v5115_v53, %v4748_v54 }
 0x975   :  { %v5137_v57 = vmax.f32 %v5136_v1, %v4861_v29 }
 0x976   :  { %v4977_v49 = vpop.f32.mrf.mxu0 }
 0x977   :  { %v5159_v13 = vmax.f32 %v5158_v18, %v4977_v49 }
 0x97b   :  { %v4638_v62 = vpop.f32.mrf.mxu1  ;;  %v4751_v5 = vpop.f32.mrf.mxu2 }
 0x97c   :  { %v4864_v58 = vpop.f32.mrf.mxu3  ;;  %v5096_v21 = vmax.f32 %v5095_v48, %v4638_v62  ;;  %v5117_v11 = vmax.f32 %v5116_v40, %v4751_v5 }
 0x97d   :  { %v5138_v23 = vmax.f32 %v5137_v57, %v4864_v58 }
 0x97e   :  { %v4980_v7 = vpop.f32.mrf.mxu0 }
 0x97f   :  { %v5160_v37 = vmax.f32 %v5159_v13, %v4980_v7 }
 0x983   :  { %v4641_v9 = vpop.f32.mrf.mxu1  ;;  %v4754_v41 = vpop.f32.mrf.mxu2 }
 0x984   :  { %v4867_v26 = vpop.f32.mrf.mxu3  ;;  %v5097_v61 = vmax.f32 %v5096_v21, %v4641_v9  ;;  %v5118_v2 = vmax.f32 %v5117_v11, %v4754_v41 }
 0x985   :  { %v5139_v47 = vmax.f32 %v5138_v23, %v4867_v26 }
 0x986   :  { %v4983_v39 = vpop.f32.mrf.mxu0 }
 0x987   :  { %v5161_v6 = vmax.f32 %v5160_v37, %v4983_v39 }
 0x98b   :  { %v4644_v35 = vpop.f32.mrf.mxu1  ;;  %v4757_v19 = vpop.f32.mrf.mxu2 }
 0x98c   :  { %v4870_v33 = vpop.f32.mrf.mxu3  ;;  %v5098_v14 = vmax.f32 %v5097_v61, %v4644_v35  ;;  %v5119_v27 = vmax.f32 %v5118_v2, %v4757_v19 }
 0x98d   :  { %v5140_v38 = vmax.f32 %v5139_v47, %v4870_v33 }
 0x98e   :  { %v4986_v32 = vpop.f32.mrf.mxu0 }
 0x98f   :  { %v5162_v56 = vmax.f32 %v5161_v6, %v4986_v32 }
 0x993   :  { %v4647_v52 = vpop.f32.mrf.mxu1  ;;  %v4760_v31 = vpop.f32.mrf.mxu2 }
 0x994   :  { %v4873_v44 = vpop.f32.mrf.mxu3  ;;  %v5099_v30 = vmax.f32 %v5098_v14, %v4647_v52  ;;  %v5120_v53 = vmax.f32 %v5119_v27, %v4760_v31 }
 0x995   :  { %v5141_v1 = vmax.f32 %v5140_v38, %v4873_v44 }
 0x996   :  { %v4989_v28 = vpop.f32.mrf.mxu0 }
 0x997   :  { %v5163_v34 = vmax.f32 %v5162_v56, %v4989_v28 }
 0x99b   :  { %v4650_v20 = vpop.f32.mrf.mxu1  ;;  %v4763_v43 = vpop.f32.mrf.mxu2 }
 0x99c   :  { %v4876_v42 = vpop.f32.mrf.mxu3  ;;  %v5100_v54 = vmax.f32 %v5099_v30, %v4650_v20  ;;  %v5121_v29 = vmax.f32 %v5120_v53, %v4763_v43 }
 0x99d   :  { %v5142_v49 = vmax.f32 %v5141_v1, %v4876_v42 }
 0x99e   :  { %v4992_v63 = vpop.f32.mrf.mxu0 }
 0x99f   :  { %v5164_v59 = vmax.f32 %v5163_v34, %v4992_v63 }
 0x9a3   :  { %v4653_v10 = vpop.f32.mrf.mxu1  ;;  %v4766_v51 = vpop.f32.mrf.mxu2 }
 0x9a4   :  { %v4879_v12 = vpop.f32.mrf.mxu3  ;;  %v5101_v7 = vmax.f32 %v5100_v54, %v4653_v10  ;;  %v5122_v9 = vmax.f32 %v5121_v29, %v4766_v51 }
 0x9a5   :  { %v5143_v26 = vmax.f32 %v5142_v49, %v4879_v12 }
 0x9a6   :  { %v4995_v17 = vpop.f32.mrf.mxu0 }
 0x9a7   :  { %v5165_v15 = vmax.f32 %v5164_v59, %v4995_v17 }
 0x9ab   :  { %v4656_v45 = vpop.f32.mrf.mxu1  ;;  %v4769_v24 = vpop.f32.mrf.mxu2 }
 0x9ac   :  { %v4882_v4 = vpop.f32.mrf.mxu3  ;;  %v5102_v35 = vmax.f32 %v5101_v7, %v4656_v45  ;;  %v5123_v19 = vmax.f32 %v5122_v9, %v4769_v24 }
 0x9ad   :  { %v5144_v33 = vmax.f32 %v5143_v26, %v4882_v4 }
 0x9ae   :  { %v4998_v36 = vpop.f32.mrf.mxu0 }
 0x9af   :  { %v5166_v62 = vmax.f32 %v5165_v15, %v4998_v36 }
 0x9b3   :  { %v4659_v0 = vpop.f32.mrf.mxu1  ;;  %v4772_v46 = vpop.f32.mrf.mxu2 }
 0x9b4   :  { %v4885_v25 = vpop.f32.mrf.mxu3  ;;  %v5103_v52 = vmax.f32 %v5102_v35, %v4659_v0  ;;  %v5124_v31 = vmax.f32 %v5123_v19, %v4772_v46 }
 0x9b5   :  { %v5145_v44 = vmax.f32 %v5144_v33, %v4885_v25 }
 0x9b6   :  { %v5001_v55 = vpop.f32.mrf.mxu0 }
 0x9b7   :  { %v5167_v39 = vmax.f32 %v5166_v62, %v5001_v55 }
 0x9bb   :  { %v4662_v5 = vpop.f32.mrf.mxu1  ;;  %v4775_v58 = vpop.f32.mrf.mxu2 }
 0x9bc   :  { %v4888_v41 = vpop.f32.mrf.mxu3  ;;  %v5104_v20 = vmax.f32 %v5103_v52, %v4662_v5  ;;  %v5125_v43 = vmax.f32 %v5124_v31, %v4775_v58 }
 0x9bd   :  { %v5146_v42 = vmax.f32 %v5145_v44, %v4888_v41 }
 0x9be   :  { %v5004_v32 = vpop.f32.mrf.mxu0 }
 0x9bf   :  { %v5168_v28 = vmax.f32 %v5167_v39, %v5004_v32 }
 0x9c1   :  { %v5169_v63 = vrot.slane %v5168_v28, 4 }
 0x9c3   :  { %v5170_v17 = vmax.f32 %v5168_v28, %v5169_v63  ;;  %v4665_v18 = vpop.f32.mrf.mxu1  ;;  %v4778_v13 = vpop.f32.mrf.mxu2 }
 0x9c4   :  { %v5105_v10 = vmax.f32 %v5104_v20, %v4665_v18  ;;  %v5126_v51 = vmax.f32 %v5125_v43, %v4778_v13  ;;  %v4891_v36 = vpop.f32.mrf.mxu3 }
 0x9c5   :  { %v5171_v12 = vrot.slane %v5170_v17, 2  ;;  %v5147_v37 = vmax.f32 %v5146_v42, %v4891_v36 }
 0x9c6   :  { %v5106_v45 = vrot.slane %v5105_v10, 4  ;;  %v5127_v24 = vrot.slane %v5126_v51, 4 }
 0x9c7   :  { %v5172_v48 = vmax.f32 %v5170_v17, %v5171_v12  ;;  %v5148_v4 = vrot.slane %v5147_v37, 4 }
 0x9c8   :  { %v5107_v40 = vmax.f32 %v5105_v10, %v5106_v45  ;;  %v5128_v57 = vmax.f32 %v5126_v51, %v5127_v24 }
 0x9c9   :  { %v5173_v6 = vrot.slane %v5172_v48, 1  ;;  %v5149_v21 = vmax.f32 %v5147_v37, %v5148_v4 }
 0x9ca   :  { %v5108_v11 = vrot.slane %v5107_v40, 2  ;;  %v5129_v23 = vrot.slane %v5128_v57, 2 }
 0x9cb   :  { %v5150_v56 = vrot.slane %v5149_v21, 2  ;;  %v5174_v61 = vmax.f32 %v5172_v48, %v5173_v6 }
 0x9cc   :  { %v5109_v0 = vmax.f32 %v5107_v40, %v5108_v11  ;;  %v5130_v46 = vmax.f32 %v5128_v57, %v5129_v23 }
 0x9cd   :  { %v5151_v2 = vmax.f32 %v5149_v21, %v5150_v56  ;;  %v5192_v55 = vadd.f32 %v5180_v50, %v5174_v61 }
 0x9ce   :  { %v5110_v25 = vrot.slane %v5109_v0, 1  ;;  %v5131_v47 = vrot.slane %v5130_v46, 1 }
 0x9cf   :  { %v5152_v34 = vrot.slane %v5151_v2, 1  ;;  %v5206_v15 = vrot.slane %v5192_v55, 2 }
 0x9d0   :  { %v5111_v14 = vmax.f32 %v5109_v0, %v5110_v25  ;;  %v5132_v27 = vmax.f32 %v5130_v46, %v5131_v47 }
 0x9d1   :  { %v5153_v38 = vmax.f32 %v5151_v2, %v5152_v34 }
 0x9d2   :  { %v5190_v59 = vadd.f32 %v5178_v3, %v5132_v27  ;;  %v5189_v53 = vadd.f32 %v5177_v60, %v5111_v14 }
 0x9d3   :  { %v5191_v30 = vadd.f32 %v5179_v22, %v5153_v38 }
 0x9d4   :  { %v5204_v1 = vrot.slane %v5190_v59, 6 }
 0x9d5   :  { %v5205_v54 = vrot.slane %v5191_v30, 4 }
 0x9d6   :  { %v5213_v29 = vsel %vm5207_vm6, %v5189_v53, %v5204_v1 }
 0x9d7   :  { %v5214_v49 = vsel %vm5209_vm7, %v5205_v54, %v5206_v15 }
 0x9d8   :  { %v5215_v62 = vsel %vm5211_vm8, %v5213_v29, %v5214_v49 }
 0x9d9   :  { %v5220_v50 = vrot.slane %v5215_v62, 7 }
 0x9db   :  { %v5221_v8 = vsel %vm2820_vm3, %v5220_v50, %v7922_v16 }
 0x9dc   :  { %v5223_v3 = vsel %vm5222_vm9, %v5220_v50, %v5221_v8 }
 0x9dd   :  { %v5225_v22 = vsel %vm5224_vm10, %v5220_v50, %v5223_v3 }
 0x9de   :  { %v5227_v60 = vsel %vm5226_vm11, %v5220_v50, %v5225_v22 }
 0x9df   :  { %5229 = vst [vmem:[#allocation29] sm:$0xff] %v5227_v60 }
 0x9e0   :  { %5240 = dma.vmem_to_hbm [thread:$0]  %s5236_s10, 128, %s5238_s13, [#allocation4]  }
 0x9e1   :  { %5992 = dma.done.wait [#allocation4], 128  }
 0x9e2   :  { %5993 = vsyncadd [#allocation4], 4294967168 }
 0x9e3   :  { %5245 = vsyncpa [#allocation3], 1 }
 0x9e4   :  { %5246 = vsyncpa [#allocation6], 1 }
 0x9e5   :  { %5247 = vsyncpa [#allocation9], 1 }
 0x9e6   :  { %5248 = vsyncpa [#allocation12], 1 }
 0x9e7   :  { %5249 = vsyncpa [#allocation15], 1 }
 0x9e8   :  { %5250 = vsyncpa [#allocation18], 1 }
 0x9e9   :  { %5251 = vsyncpa [#allocation21], 1 }
 0x9ea   :  { %5252 = vsyncpa [#allocation24], 1 }
 0x9eb   :  { %5253 = vsyncpa [#allocation27], 1 }
 0x9ec   :  { %5254 = vsyncpa [#allocation4], 1 }

</bundles_post_ra>
